<compile_context>
chip_gen: v6e
topology: v6e:2x2x1
jax: 0.10.0
libtpu: 0.0.40
codegen_flags: <defaults>
</compile_context>

<pallas_src>
import jax
import jax.numpy as jnp
from jax.experimental import pallas as pl
from jax.experimental.pallas import tpu as pltpu

_LANE = 128
_MIB = 1024 * 1024


def _round_up(x, m):
    return ((x + m - 1) // m) * m


def _tpu_gen_and_vmem():
    """Best-effort TPU generation & physical VMEM size (safe fallbacks)."""
    phys_vmem = 64 * _MIB                       # conservative default (v7x-sized)
    kind = ""
    try:
        kind = (jax.devices()[0].device_kind or "").lower()
    except Exception:
        pass
    try:
        info = pltpu.get_tpu_info()
        phys_vmem = int(getattr(info, "vmem_capacity_bytes", phys_vmem))
    except Exception:
        pass
    if "v5 lite" in kind or "v5e" in kind or "v5lite" in kind:
        gen = "v5e"
    elif "v6" in kind:
        gen = "v6e"
    elif "v7" in kind:
        gen = "v7x"
    elif "v5" in kind:
        gen = "v5p"
    else:
        gen = "unknown"
    return gen, phys_vmem


def _working_set_bytes(tb, ts, s_pad, input_size, hidden_size, feat_bytes):
    """Per-grid-step VMEM estimate: double-buffered input blocks (with lane /
    sublane padding), resident f32 output block (+ softmax-finalize temporaries)
    and the compiler-managed intermediates of the compute chain."""
    lane_i = _round_up(input_size, _LANE)
    lane_h = _round_up(hidden_size, _LANE)
    sub16 = _round_up(tb, 16)
    enc_buf = 2 * ts * sub16 * lane_i * 2                    # bf16 enc, 2 buffers
    mask_buf = 2 * _round_up(tb, 32) * ts                    # int8 mask, 2 buffers
    base_buf = 2 * sub16 * lane_h * feat_bytes               # hoisted hidden proj
    we_buf = 2 * _round_up(input_size, 16) * lane_h * 2      # encoder-half weight
    out_buf = 4 * _round_up(tb, 8) * s_pad * 4               # resident out + tmps
    inter = ts * tb * (lane_i * 2                            # enc value
                       + lane_h * 4                          # f32 proj
                       + 2 * lane_h * feat_bytes)            # feat + weighted prod
    scores_tmp = 2 * ts * _LANE * 4 + 2 * _round_up(tb, 8) * ts * 4
    return enc_buf + mask_buf + base_buf + we_buf + out_buf + inter + scores_tmp


def _tree_attn_kernel(base_ref, enc_ref, we_ref, ws_ref, bs_ref, mask_ref,
                      out_ref):
    ts, tb, di = enc_ref.shape          # (S block, B block, I)
    h = we_ref.shape[1]
    j = pl.program_id(1)                # S-block index (streaming axis)

    # ---- encoder-side half of the attn Linear on the MXU (f32 accumulate) ---
    # Flatten (ts, tb, I) -> (ts*tb, I): tb is a multiple of 16 (tile-aligned).
    enc2d = enc_ref[...].reshape(ts * tb, di)
    proj = jnp.dot(enc2d, we_ref[...],
                   preferred_element_type=jnp.float32)       # (ts*tb, H) f32

    # ---- add hoisted hidden-side base (already includes attn bias), tanh ----
    # base dtype is bf16 on v6e/v7x (bf16 VPU/EUP), f32 on v5e/unknown.
    feat = jnp.tanh(proj.reshape(ts, tb, h).astype(base_ref.dtype)
                    + base_ref[...][None, :, :])             # (ts, tb, H)

    # ---- score Linear: weighted reduce over H (f32 accum), go batch-major ---
    scores = jnp.sum((feat * ws_ref[...][None, :, :]).astype(jnp.float32),
                     axis=-1)                                # (ts, tb)
    scores = scores.T + bs_ref[0, 0]                         # (tb, ts)

    # ---- masked_fill: mask already covers padded columns (s >= S) -----------
    scores = jnp.where(mask_ref[...].astype(jnp.float32) != 0.0,
                       jnp.float32(-1e12), scores)

    start = pl.multiple_of(j * ts, 128)
    out_ref[:, pl.ds(start, ts)] = scores

    # ---- last S step: softmax over the VMEM-resident (tb, S_pad) block ------
    @pl.when(j == pl.num_programs(1) - 1)
    def _():
        x = out_ref[...]
        m = jnp.max(x, axis=1, keepdims=True)
        e = jnp.exp(x - m)
        denom = jnp.sum(e, axis=1, keepdims=True)
        out_ref[...] = e * pl.reciprocal(denom, approx=True)


def tree_attn(hidden, encoder_outputs, attn_w, attn_b, score_w, score_b,
              seq_mask=None, *, input_size, hidden_size,
              compute_dtype=jnp.bfloat16):
    """hidden (1,B,H), encoder_outputs (S,B,I), seq_mask (B,S) -> (B,1,S)."""
    S, B, I = encoder_outputs.shape
    H = hidden_size
    assert I == input_size
    assert hidden.shape == (1, B, H)

    gen, phys_vmem = _tpu_gen_and_vmem()
    # bf16 add/tanh path only on parts with bf16 VPU/EUP (v6e / v7x).
    feat_dtype = compute_dtype if gen in ("v6e", "v7x") else jnp.float32
    feat_bytes = jnp.dtype(feat_dtype).itemsize

    # Generation-aware VMEM limit and per-step working-set budget:
    # 128-MiB parts (v5e/v6e) -> 96 MiB limit; v7x (64 MiB) -> 48 MiB limit.
    vmem_limit = int(min(96 * _MIB, max(32 * _MIB, phys_vmem - 16 * _MIB)))
    budget = max(16 * _MIB, vmem_limit - 8 * _MIB)

    # ---- block sizes --------------------------------------------------------
    tb = min(128, _round_up(B, 16))
    if gen == "v7x" and B > 16:
        # 2 TensorCores: keep >= 2 blocks on the "parallel" B axis.
        tb = min(tb, max(16, _round_up(pl.cdiv(B, 2), 16)))

    s_cap = _round_up(S, _LANE)
    cands = sorted({min(c, s_cap) for c in (4096, 2048, 1024, 512, 256, 128)},
                   reverse=True)

    def s_pad_for(ts_):
        return pl.cdiv(S, ts_) * ts_

    while True:
        fits = [c for c in cands
                if _working_set_bytes(tb, c, s_pad_for(c), I, H,
                                      feat_bytes) <= budget]
        if fits or tb <= 16:
            break
        tb = max(16, tb // 2)
    # TODO(synk): for extreme S where even (tb=16, ts=128) blows the budget,
    # switch to a two-pass (streamed) softmax instead of the resident out block.
    ts = max(fits) if fits else 128
    nj = pl.cdiv(S, ts)
    s_pad = nj * ts
    nb = pl.cdiv(B, tb)

    # ---- operands: hoisted hidden work, bf16 streaming, int8 mask -----------
    hidden2d = hidden.reshape(B, H).astype(jnp.float32)
    wt = attn_w.T                                            # (H + I, H)
    w_h = wt[:H, :].astype(jnp.float32)                      # hidden half (f32)
    w_e = wt[H:, :].astype(compute_dtype)                    # encoder half (bf16)
    # Hidden-side projection + attn bias computed once here, not per S step.
    base = (hidden2d @ w_h
            + attn_b.reshape(1, H).astype(jnp.float32)).astype(feat_dtype)
    enc = encoder_outputs.astype(compute_dtype)              # keep (S, B, I)
    ws = score_w.reshape(1, H).astype(feat_dtype)
    bs = score_b.reshape(1, 1).astype(jnp.float32)

    if seq_mask is None:
        m2d = jnp.zeros((B, S), jnp.bool_)
    else:
        m2d = seq_mask.astype(jnp.bool_)
    # int8 mask, pre-padded so padded columns (s >= S) are masked too.
    mask = jnp.pad(m2d, ((0, 0), (0, s_pad - S)),
                   constant_values=True).astype(jnp.int8)

    out = pl.pallas_call(
        _tree_attn_kernel,
        out_shape=jax.ShapeDtypeStruct((B, s_pad), jnp.float32),
        grid=(nb, nj),
        in_specs=[
            pl.BlockSpec((tb, H), lambda i, j: (i, 0)),          # base (B,H)
            pl.BlockSpec((ts, tb, I), lambda i, j: (j, i, 0)),   # enc (S,B,I)
            pl.BlockSpec((I, H), lambda i, j: (0, 0)),           # w_e
            pl.BlockSpec((1, H), lambda i, j: (0, 0)),           # score weight
            pl.BlockSpec(memory_space=pltpu.MemorySpace.SMEM),   # score bias
            pl.BlockSpec((tb, ts), lambda i, j: (i, j)),         # mask (int8)
        ],
        out_specs=pl.BlockSpec((tb, s_pad), lambda i, j: (i, 0)),
        compiler_params=pltpu.CompilerParams(
            dimension_semantics=("parallel", "arbitrary"),
            vmem_limit_bytes=vmem_limit),
    )(base, enc, w_e, ws, bs, mask)

    return out[:, :S].reshape(B, 1, S)


def tree_attn_reference(hidden, encoder_outputs, attn_w, attn_b, score_w,
                        score_b, seq_mask, *, input_size, hidden_size):
    """Pure-JAX (f32) mirror of the PyTorch forward for validation."""
    S, B, I = encoder_outputs.shape
    hid = jnp.tile(hidden, (S, 1, 1))                              # (S, B, H)
    energy_in = jnp.concatenate([hid, encoder_outputs], axis=2)
    energy_in = energy_in.reshape(-1, input_size + hidden_size)
    feat = jnp.tanh(energy_in @ attn_w.T + attn_b)
    en = (feat @ score_w.T + score_b)[:, 0]
    en = en.reshape(S, B).T                                        # (B, S)
    if seq_mask is not None:
        en = jnp.where(seq_mask, -1e12, en)
    en = jax.nn.softmax(en, axis=1)
    return en[:, None, :]


if __name__ == "__main__":
    # Small shapes consistent with the module.
    INPUT_SIZE = 32    # encoder feature dim
    HIDDEN_SIZE = 32   # hidden / attn dim
    SEQ_LEN = 8
    BATCH = 2

    key = jax.random.PRNGKey(0)
    k_h, k_e, k_aw, k_ab, k_sw, k_sb = jax.random.split(key, 6)

    hidden = jax.random.normal(k_h, (1, BATCH, HIDDEN_SIZE), jnp.float32)
    encoder_outputs = jax.random.normal(
        k_e, (SEQ_LEN, BATCH, INPUT_SIZE), jnp.float32)

    # Deterministic parameter init (PyTorch nn.Linear shapes).
    fan_in = HIDDEN_SIZE + INPUT_SIZE
    bound = 1.0 / (fan_in ** 0.5)
    attn_w = jax.random.uniform(k_aw, (HIDDEN_SIZE, HIDDEN_SIZE + INPUT_SIZE),
                                jnp.float32, -bound, bound)
    attn_b = jax.random.uniform(k_ab, (HIDDEN_SIZE,), jnp.float32, -bound, bound)
    bound2 = 1.0 / (HIDDEN_SIZE ** 0.5)
    score_w = jax.random.uniform(k_sw, (1, HIDDEN_SIZE), jnp.float32,
                                 -bound2, bound2)
    score_b = jax.random.uniform(k_sb, (1,), jnp.float32, -bound2, bound2)

    # seq_mask: True = masked (e.g. padding at the tail of each sequence).
    lengths = jnp.array([6, 8], dtype=jnp.int32)                   # per batch
    seq_mask = jnp.arange(SEQ_LEN)[None, :] >= lengths[:, None]    # (B, S) bool

    out = tree_attn(hidden, encoder_outputs, attn_w, attn_b, score_w, score_b,
                    seq_mask, input_size=INPUT_SIZE, hidden_size=HIDDEN_SIZE)
    out = jax.block_until_ready(out)

    ref = tree_attn_reference(hidden, encoder_outputs, attn_w, attn_b, score_w,
                              score_b, seq_mask,
                              input_size=INPUT_SIZE, hidden_size=HIDDEN_SIZE)

    assert out.shape == (BATCH, 1, SEQ_LEN)
    # Tolerance accounts for bf16 streaming of enc / attn weights and the
    # bf16 add+tanh path on v6e/v7x (f32 MXU accumulation, f32 score/softmax).
    assert jnp.allclose(out, ref, atol=2e-2, rtol=2e-2), (
        f"max abs err {jnp.max(jnp.abs(out - ref))}")

    print("KERNEL_OK")
</pallas_src>

<mosaic_0001>
module attributes {stable_mosaic.version = 11 : i64} {
  func.func @_tree_attn_kernel(%arg0: i32, %arg1: i32, %arg2: memref<16x32xf32, #tpu.memory_space<vmem>>, %arg3: memref<128x16x32xbf16, #tpu.memory_space<vmem>>, %arg4: memref<32x32xbf16, #tpu.memory_space<vmem>>, %arg5: memref<1x32xf32, #tpu.memory_space<vmem>>, %arg6: memref<1x1xf32, #tpu.memory_space<smem>>, %arg7: memref<16x128xi8, #tpu.memory_space<vmem>>, %arg8: memref<16x128xf32, #tpu.memory_space<vmem>>) attributes {dimension_semantics = [#tpu.dimension_semantics<parallel>, #tpu.dimension_semantics<arbitrary>], iteration_bounds = array<i64: 1, 1>, scalar_prefetch = 0 : i64, scratch_operands = 0 : i64, tpu.core_type = #tpu.core_type<tc>, window_params = [{transform_indices = @transform_0, window_bounds = array<i64: 16, 32>}, {transform_indices = @transform_1, window_bounds = array<i64: 128, 16, 32>}, {pipeline_mode = #tpu.pipeline_mode<synchronous>, transform_indices = @transform_2, window_bounds = array<i64: 32, 32>}, {pipeline_mode = #tpu.pipeline_mode<synchronous>, transform_indices = @transform_3, window_bounds = array<i64: 1, 32>}, {transform_indices = @transform_4, window_bounds = array<i64: 1, 1>}, {transform_indices = @transform_5, window_bounds = array<i64: 16, 128>}, {transform_indices = @transform_6, window_bounds = array<i64: 16, 128>}]} {
    %c0 = arith.constant 0 : index
    %c0_0 = arith.constant 0 : index
    %c0_1 = arith.constant 0 : index
    %0 = vector.load %arg3[%c0, %c0_0, %c0_1] : memref<128x16x32xbf16, #tpu.memory_space<vmem>>, vector<128x16x32xbf16>
    %1 = vector.shape_cast %0 : vector<128x16x32xbf16> to vector<2048x32xbf16>
    %c0_2 = arith.constant 0 : index
    %c0_3 = arith.constant 0 : index
    %2 = vector.load %arg4[%c0_2, %c0_3] : memref<32x32xbf16, #tpu.memory_space<vmem>>, vector<32x32xbf16>
    %cst = arith.constant dense<0.000000e+00> : vector<2048x32xf32>
    %3 = tpu.matmul %1, %2, %cst {dimension_numbers = #tpu.dot_dimension_numbers<[1], [0], [0], [1], [0, 0, 1, 1], [], []>} : vector<2048x32xbf16>, vector<32x32xbf16>, vector<2048x32xf32> -> vector<2048x32xf32>
    %4 = vector.shape_cast %3 : vector<2048x32xf32> to vector<128x16x32xf32>
    %c0_4 = arith.constant 0 : index
    %c0_5 = arith.constant 0 : index
    %5 = vector.load %arg2[%c0_4, %c0_5] : memref<16x32xf32, #tpu.memory_space<vmem>>, vector<16x32xf32>
    %6 = vector.shape_cast %5 : vector<16x32xf32> to vector<1x16x32xf32>
    %7 = vector.broadcast %6 : vector<1x16x32xf32> to vector<128x16x32xf32>
    %8 = arith.addf %4, %7 : vector<128x16x32xf32>
    %9 = math.tanh %8 : vector<128x16x32xf32>
    %c0_6 = arith.constant 0 : index
    %c0_7 = arith.constant 0 : index
    %10 = vector.load %arg5[%c0_6, %c0_7] : memref<1x32xf32, #tpu.memory_space<vmem>>, vector<1x32xf32>
    %11 = vector.shape_cast %10 : vector<1x32xf32> to vector<1x1x32xf32>
    %12 = vector.broadcast %11 : vector<1x1x32xf32> to vector<128x16x32xf32>
    %13 = arith.mulf %9, %12 : vector<128x16x32xf32>
    %cst_8 = arith.constant dense<0.000000e+00> : vector<128x16xf32>
    %14 = vector.multi_reduction <add>, %13, %cst_8 [2] : vector<128x16x32xf32> to vector<128x16xf32>
    %15 = tpu.transpose %14, [1, 0] : vector<128x16xf32> -> vector<16x128xf32>
    %c0_9 = arith.constant 0 : index
    %c0_10 = arith.constant 0 : index
    %16 = memref.load %arg6[%c0_9, %c0_10] : memref<1x1xf32, #tpu.memory_space<smem>>
    %17 = vector.broadcast %16 : f32 to vector<16x128xf32>
    %18 = arith.addf %15, %17 : vector<16x128xf32>
    %c0_11 = arith.constant 0 : index
    %c0_12 = arith.constant 0 : index
    %19 = vector.load %arg7[%c0_11, %c0_12] : memref<16x128xi8, #tpu.memory_space<vmem>>, vector<16x128xi8>
    %20 = arith.sitofp %19 : vector<16x128xi8> to vector<16x128xf32>
    %cst_13 = arith.constant 0.000000e+00 : f32
    %21 = vector.broadcast %cst_13 : f32 to vector<16x128xf32>
    %22 = arith.cmpf one, %20, %21 : vector<16x128xf32>
    %cst_14 = arith.constant -9.99999995E+11 : f32
    %23 = vector.broadcast %cst_14 : f32 to vector<16x128xf32>
    %24 = arith.select %22, %23, %18 : vector<16x128xi1>, vector<16x128xf32>
    %c128_i32 = arith.constant 128 : i32
    %25 = arith.muli %arg1, %c128_i32 : i32
    %26 = tpu.assume_multiple %25, 128 : i32
    %c0_15 = arith.constant 0 : index
    %27 = arith.index_cast %26 : i32 to index
    %28 = vector.load %arg8[%c0_15, %27] : memref<16x128xf32, #tpu.memory_space<vmem>>, vector<16x128xf32>
    tpu.vector_store %arg8[%c0_15, %27], %24 {strides = array<i32>} : memref<16x128xf32, #tpu.memory_space<vmem>>, vector<16x128xf32>,
    %c0_i32 = arith.constant 0 : i32
    %29 = arith.cmpi eq, %arg1, %c0_i32 : i32
    %30 = arith.extui %29 : i1 to i32
    %c0_i32_16 = arith.constant 0 : i32
    %31 = arith.cmpi ne, %30, %c0_i32_16 : i32
    scf.if %31 {
      %c0_17 = arith.constant 0 : index
      %c0_18 = arith.constant 0 : index
      %32 = vector.load %arg8[%c0_17, %c0_18] : memref<16x128xf32, #tpu.memory_space<vmem>>, vector<16x128xf32>
      %cst_19 = arith.constant dense<0xFF800000> : vector<16xf32>
      %33 = vector.multi_reduction <maximumf>, %32, %cst_19 [1] : vector<16x128xf32> to vector<16xf32>
      %34 = vector.shape_cast %33 : vector<16xf32> to vector<16x1xf32>
      %35 = vector.broadcast %34 : vector<16x1xf32> to vector<16x128xf32>
      %36 = arith.subf %32, %35 : vector<16x128xf32>
      %37 = math.exp %36 : vector<16x128xf32>
      %cst_20 = arith.constant dense<0.000000e+00> : vector<16xf32>
      %38 = vector.multi_reduction <add>, %37, %cst_20 [1] : vector<16x128xf32> to vector<16xf32>
      %39 = vector.shape_cast %38 : vector<16xf32> to vector<16x1xf32>
      %40 = tpu.reciprocal %39 {approx = true} : vector<16x1xf32> -> vector<16x1xf32>
      %41 = vector.broadcast %40 : vector<16x1xf32> to vector<16x128xf32>
      %42 = arith.mulf %37, %41 : vector<16x128xf32>
      %c0_21 = arith.constant 0 : index
      %c0_22 = arith.constant 0 : index
      %43 = vector.load %arg8[%c0_21, %c0_22] : memref<16x128xf32, #tpu.memory_space<vmem>>, vector<16x128xf32>
      tpu.vector_store %arg8[%c0_21, %c0_22], %42 {strides = array<i32>} : memref<16x128xf32, #tpu.memory_space<vmem>>, vector<16x128xf32>,
    } else {
    }
    return
  }
  func.func @transform_0(%arg0: i32, %arg1: i32) -> (i32, i32) {
    %c0_i32 = arith.constant 0 : i32
    %c0_i32_0 = arith.constant 0 : i32
    return %arg0, %c0_i32 : i32, i32
  }
  func.func @transform_1(%arg0: i32, %arg1: i32) -> (i32, i32, i32) {
    %c0_i32 = arith.constant 0 : i32
    %c0_i32_0 = arith.constant 0 : i32
    return %arg1, %arg0, %c0_i32 : i32, i32, i32
  }
  func.func @transform_2(%arg0: i32, %arg1: i32) -> (i32, i32) {
    %c0_i32 = arith.constant 0 : i32
    %c0_i32_0 = arith.constant 0 : i32
    %c0_i32_1 = arith.constant 0 : i32
    return %c0_i32, %c0_i32_0 : i32, i32
  }
  func.func @transform_3(%arg0: i32, %arg1: i32) -> (i32, i32) {
    %c0_i32 = arith.constant 0 : i32
    %c0_i32_0 = arith.constant 0 : i32
    %c0_i32_1 = arith.constant 0 : i32
    return %c0_i32, %c0_i32_0 : i32, i32
  }
  func.func @transform_4(%arg0: i32, %arg1: i32) -> (i32, i32) {
    %c0_i32 = arith.constant 0 : i32
    %c0_i32_0 = arith.constant 0 : i32
    %c0_i32_1 = arith.constant 0 : i32
    return %c0_i32, %c0_i32_0 : i32, i32
  }
  func.func @transform_5(%arg0: i32, %arg1: i32) -> (i32, i32) {
    %c0_i32 = arith.constant 0 : i32
    return %arg0, %arg1 : i32, i32
  }
  func.func @transform_6(%arg0: i32, %arg1: i32) -> (i32, i32) {
    %c0_i32 = arith.constant 0 : i32
    %c0_i32_0 = arith.constant 0 : i32
    return %arg0, %c0_i32 : i32, i32
  }
}

</mosaic_0001>

<bundles_post_ra>
// kernel: tpu_custom_call.1
= control target key start
LH: loop header
LB: loop body
LE: loop exit
PB: predicated region body
PF: predicated region fallthrough
CT: control target
= control target key end

     0   :  { %12 = vsyncpa [#allocation4], 0  ;;  %s17374_s0 = inlined_call_operand.vmem [shape: f32[2,32], index: 0, kind: input, shape index: {}]   ;;  %s17375_s1 = inlined_call_operand.hbm [shape: bf16[8,2,32], index: 1, kind: input, shape index: {}]   ;;  %s17376_s2 = inlined_call_operand.hbm [shape: bf16[32,32], index: 2, kind: input, shape index: {}]   ;;  %s17377_s3 = inlined_call_operand.vmem [shape: f32[1,32], index: 3, kind: input, shape index: {}]   ;;  %s17378_s4 = inlined_call_operand.<no memory space> [shape: f32[1,1], index: 4, kind: input, shape index: {}]   ;;  %s17379_s5 = inlined_call_operand.vmem [shape: s8[2,128], index: 5, kind: input, shape index: {}]   ;;  %s17380_s6 = inlined_call_operand.hbm [shape: f32[2,128], index: 6, kind: output, shape index: {}]  }
   0x1   :  { %13 = vsyncpa [#allocation7], 0 }
   0x2   :  { %14 = vsyncpa [#allocation5], 0 }
   0x3   :  { %21 = vsyncadd [#allocation4], 16256  ;;  %s26_s21 = sld [smem:[#allocation0]]   ;;  %s14196_s22 = smov [#allocation3]  }
   0x4   :  { %s34_s23 = sshll.u32 %s14196_s22, 4  ;;  %s14197_s24 = smov 16   ;;  %s35_s23 = int_to_ptr.vmem [resolvable:$true] %s34_s23 }
   0x5   :  { %41 = sst [smem:[#allocation10]] %s14197_s24  ;;  %s14198_s25 = smov 128  }
   0x6   :  { %43 = sst [smem:[#allocation10 + $0x1]] %s14198_s25  ;;  %s14199_s26 = smov 1  }
   0x7   :  { %45 = sst [smem:[#allocation10 + $0x2]] %s14199_s26  ;;  %s14200_s29 = smov [#allocation4]  }
   0x8   :  { %47 = sst [smem:[#allocation10 + $0x3]] %s14197_s24  ;;  %s14201_s30 = smov 131072  }
   0x9   :  { %s13070_s27 = sshll.u32 %s26_s21, 26  ;;  %49 = sst [smem:[#allocation10 + $0x4]] %s14197_s24 }
   0xa   :  { %s13071_s28 = sadd.s32 134217728, %s13070_s27  ;;  %51 = sst [smem:[#allocation10 + $0x5]] %s14199_s26 }
   0xb   :  { %53 = dma.general %s17375_s1, 128, %s35_s23, %s14200_s29, %s14201_s30, [#allocation10], %s13071_s28, 0  }
   0xc   :  { %s14202_s9 = smov [#allocation6]  }
   0xd   :  { %s59_s10 = sshll.u32 %s14202_s9, 4  ;;  %s60_s10 = int_to_ptr.vmem [resolvable:$true] %s59_s10 }
   0xe   :  { %s14158_s11 = scalar_lea.vmem %s60_s10, 256  ;;  %p14163_p1 = scmp.lt.s32.totalorder %s60_s10, %s60_s10 }
   0xf   :  { %p14159_p0 = scmp.ne.s32.totalorder %s60_s10, %s14158_s11  ;;  %p14164_p2 = scmp.lt.s32.totalorder %s14158_s11, %s14158_s11 }
  0x11   :  { %p14165_p3 = por %p14164_p2, %p14163_p1 }
  0x13   :  { %p14166_p4 = pnand %p14165_p3, %p14159_p0 }
  0x15   :  { %14169 = shalt.err (!%p14166_p4)
}
  0x16   :  { %s14203_s12 = smov 64   ;;  %s14204_s13 = smov 4  }
  0x17   :  { %65 = dma.hbm_to_vmem [thread:$0]  %s17376_s2, 256, %s60_s10, [#allocation7], %s14203_s12, %s14203_s12, %s14204_s13  }
  0x18   :  { %14190 = dma.done.wait [#allocation4], 16384  }
  0x19   :  { %14191 = vsyncadd [#allocation4], 4294950912 }
  0x1a   :  { %14192 = dma.done.wait [#allocation7], 256  }
  0x1b   :  { %14193 = vsyncadd [#allocation7], 4294967040  ;;  %v17381_v0 = vlaneseq  ;;  %v14205_v1 = vmov 1966171168   ;;  %v13610_v5 = vld [vmem:[#allocation6 + $0x8] sm:$0xff]   ;;  %v13611_v6 = vld [vmem:[#allocation6] sm:$0xff]  }
  0x1c   :  { %v2136_v2 = vunpack.c.l.s4 %v14205_v1  ;;  %13333 = vmatprep.subr.bf16.mxu0 %v13610_v5  ;;  %13593 = vmatprep.subr.bf16.mxu1 %v13610_v5  ;;  %v79_v8 = vld [vmem:[#allocation3] sm:$0x1]  ;;  %v80_v9 = vld [vmem:[#allocation3 + $0x1] sm:$0x1]  ;;  %v81_v10 = vld [vmem:[#allocation3 + $0x2] sm:$0x1] }
  0x1d   :  { %v14251_v4 = vshrl.u32 %v17381_v0, 7  ;;  %13334 = vmatpush3.bf16.msra.mxu0 %v13610_v5  ;;  %13595 = vmatpush3.bf16.msra.mxu1 %v13610_v5  ;;  %v82_v11 = vld [vmem:[#allocation3 + $0x3] sm:$0x1]  ;;  %v83_v12 = vld [vmem:[#allocation3 + $0x4] sm:$0x1]  ;;  %v2131_v14 = vcombine.low %v79_v8, %v80_v9  ;;  %vm8415_vm0 = vcmask 261120  }
  0x1e   :  { %v2137_v3 = vunpack.c.0.s8 %v2136_v2  ;;  %v84_v13 = vld [vmem:[#allocation3 + $0x5] sm:$0x1]  ;;  %13335 = vmatprep.subr.bf16.mxu0 %v13611_v6  ;;  %13594 = vmatprep.subr.bf16.mxu1 %v13611_v6  ;;  %v85_v15 = vld [vmem:[#allocation3 + $0x6] sm:$0x1]  ;;  %v86_v16 = vld [vmem:[#allocation3 + $0x7] sm:$0x1]  ;;  %v2132_v17 = vcombine.low %v81_v10, %v82_v11 }
  0x1f   :  { %v2133_v18 = vcombine.low %v83_v12, %v84_v13  ;;  %v591_v19 = vld [vmem:[#allocation3 + $0x200] sm:$0x1]  ;;  %v2134_v20 = vcombine.low %v85_v15, %v86_v16  ;;  %v592_v22 = vld [vmem:[#allocation3 + $0x201] sm:$0x1]  ;;  %v593_v23 = vld [vmem:[#allocation3 + $0x202] sm:$0x1] }
  0x20   :  { %v14254_v7 = vsub.s32 %v2137_v3, %v14251_v4  ;;  %v594_v24 = vld [vmem:[#allocation3 + $0x203] sm:$0x1]  ;;  %v595_v27 = vld [vmem:[#allocation3 + $0x204] sm:$0x1]  ;;  %v596_v28 = vld [vmem:[#allocation3 + $0x205] sm:$0x1]  ;;  %v5267_v30 = vcombine.low %v591_v19, %v592_v22 }
  0x21   :  { %v597_v29 = vld [vmem:[#allocation3 + $0x206] sm:$0x1]  ;;  %v5268_v31 = vcombine.low %v593_v23, %v594_v24  ;;  %13336 = vmatpush3.bf16.msra.mxu0 %v13611_v6  ;;  %13596 = vmatpush3.bf16.msra.mxu1 %v13611_v6  ;;  %v598_v33 = vld [vmem:[#allocation3 + $0x207] sm:$0x1]  ;;  %v5269_v34 = vcombine.low %v595_v27, %v596_v28  ;;  %v87_v35 = vld [vmem:[#allocation3 + $0x8] sm:$0x1] }
  0x22   :  { %v2141_v21 = vrot.slane %v2131_v14, %v14254_v7  ;;  %v2148_v25 = vrot.slane %v2132_v17, %v14254_v7  ;;  %v2155_v26 = vrot.slane %v2133_v18, %v14254_v7  ;;  %v2162_v32 = vrot.slane %v2134_v20, %v14254_v7  ;;  %v88_v36 = vld [vmem:[#allocation3 + $0x9] sm:$0x1]  ;;  %v89_v41 = vld [vmem:[#allocation3 + $0xa] sm:$0x1]  ;;  %v90_v42 = vld [vmem:[#allocation3 + $0xb] sm:$0x1] }
  0x23   :  { %v5270_v38 = vcombine.low %v597_v29, %v598_v33  ;;  %v5277_v39 = vrot.slane %v5267_v30, %v14254_v7  ;;  %v5284_v40 = vrot.slane %v5268_v31, %v14254_v7  ;;  %v91_v43 = vld [vmem:[#allocation3 + $0xc] sm:$0x1]  ;;  %v5291_v45 = vrot.slane %v5269_v34, %v14254_v7  ;;  %v92_v46 = vld [vmem:[#allocation3 + $0xd] sm:$0x1]  ;;  %v93_v47 = vld [vmem:[#allocation3 + $0xe] sm:$0x1] }
  0x24   :  { %v2163_v37 = vcombine.low %v2141_v21, %v2148_v25  ;;  %v2164_v44 = vcombine.low %v2155_v26, %v2162_v32  ;;  %v94_v48 = vld [vmem:[#allocation3 + $0xf] sm:$0x1]  ;;  %v2180_v49 = vcombine.low %v87_v35, %v88_v36  ;;  %v2181_v50 = vcombine.low %v89_v41, %v90_v42  ;;  %v599_v55 = vld [vmem:[#allocation3 + $0x208] sm:$0x1]  ;;  %v600_v56 = vld [vmem:[#allocation3 + $0x209] sm:$0x1] }
  0x25   :  { %v5298_v52 = vrot.slane %v5270_v38, %v14254_v7  ;;  %v5299_v53 = vcombine.low %v5277_v39, %v5284_v40  ;;  %v2182_v54 = vcombine.low %v91_v43, %v92_v46  ;;  %v601_v57 = vld [vmem:[#allocation3 + $0x20a] sm:$0x1]  ;;  %v2183_v59 = vcombine.low %v93_v47, %v94_v48  ;;  %v602_v62 = vld [vmem:[#allocation3 + $0x20b] sm:$0x1]  ;;  %v603_v63 = vld [vmem:[#allocation3 + $0x20c] sm:$0x1] }
  0x26   :  { %v2171_v51 = vrot.slane %v2163_v37, %v14254_v7  ;;  %v2178_v58 = vrot.slane %v2164_v44, %v14254_v7  ;;  %v2190_v60 = vrot.slane %v2180_v49, %v14254_v7  ;;  %v2197_v61 = vrot.slane %v2181_v50, %v14254_v7  ;;  %v604_v1 = vld [vmem:[#allocation3 + $0x20d] sm:$0x1]  ;;  %v605_v6 = vld [vmem:[#allocation3 + $0x20e] sm:$0x1]  ;;  %v606_v8 = vld [vmem:[#allocation3 + $0x20f] sm:$0x1] }
  0x27   :  { %v5300_v2 = vcombine.low %v5291_v45, %v5298_v52  ;;  %v5307_v3 = vrot.slane %v5299_v53, %v14254_v7  ;;  %v2204_v5 = vrot.slane %v2182_v54, %v14254_v7  ;;  %v5316_v9 = vcombine.low %v599_v55, %v600_v56  ;;  %v95_v10 = vld [vmem:[#allocation3 + $0x10] sm:$0x1]  ;;  %v96_v15 = vld [vmem:[#allocation3 + $0x11] sm:$0x1]  ;;  %v97_v16 = vld [vmem:[#allocation3 + $0x12] sm:$0x1] }
  0x28   :  { %v2179_v11 = vcombine.low %v2171_v51, %v2178_v58  ;;  %v2211_v12 = vrot.slane %v2183_v59, %v14254_v7  ;;  %v2212_v13 = vcombine.low %v2190_v60, %v2197_v61  ;;  %v5317_v14 = vcombine.low %v601_v57, %v602_v62  ;;  %v98_v17 = vld [vmem:[#allocation3 + $0x13] sm:$0x1]  ;;  %v99_v22 = vld [vmem:[#allocation3 + $0x14] sm:$0x1]  ;;  %v100_v23 = vld [vmem:[#allocation3 + $0x15] sm:$0x1] }
  0x29   :  { %v5314_v18 = vrot.slane %v5300_v2, %v14254_v7  ;;  %v5318_v19 = vcombine.low %v603_v63, %v604_v1  ;;  %v5319_v20 = vcombine.low %v605_v6, %v606_v8  ;;  %v5326_v21 = vrot.slane %v5316_v9, %v14254_v7  ;;  %v101_v24 = vld [vmem:[#allocation3 + $0x16] sm:$0x1]  ;;  %v102_v28 = vld [vmem:[#allocation3 + $0x17] sm:$0x1]  ;;  %v103_v30 = vld [vmem:[#allocation3 + $0x18] sm:$0x1] }
  0x2a   :  { %13337 = vmatprep.mubr.msk.bf16.mxu0 %vm8415_vm0, %v2179_v11  ;;  %v2213_v25 = vcombine.low %v2204_v5, %v2211_v12  ;;  %v2220_v26 = vrot.slane %v2212_v13, %v14254_v7  ;;  %v5333_v27 = vrot.slane %v5317_v14, %v14254_v7  ;;  %v2229_v29 = vcombine.low %v95_v10, %v96_v15  ;;  %v104_v31 = vld [vmem:[#allocation3 + $0x19] sm:$0x1]  ;;  %v105_v36 = vld [vmem:[#allocation3 + $0x1a] sm:$0x1]  ;;  %v106_v37 = vld [vmem:[#allocation3 + $0x1b] sm:$0x1] }
  0x2b   :  { %v5315_v32 = vcombine.low %v5307_v3, %v5314_v18  ;;  %v5340_v33 = vrot.slane %v5318_v19, %v14254_v7  ;;  %v5347_v34 = vrot.slane %v5319_v20, %v14254_v7  ;;  %v2230_v35 = vcombine.low %v97_v16, %v98_v17  ;;  %v107_v42 = vld [vmem:[#allocation3 + $0x1c] sm:$0x1]  ;;  %v108_v43 = vld [vmem:[#allocation3 + $0x1d] sm:$0x1]  ;;  %v109_v44 = vld [vmem:[#allocation3 + $0x1e] sm:$0x1] }
  0x2c   :  { %v2227_v38 = vrot.slane %v2213_v25, %v14254_v7  ;;  %v5348_v39 = vcombine.low %v5326_v21, %v5333_v27  ;;  %v2231_v40 = vcombine.low %v99_v22, %v100_v23  ;;  %v2232_v41 = vcombine.low %v101_v24, %v102_v28  ;;  %v110_v48 = vld [vmem:[#allocation3 + $0x1f] sm:$0x1]  ;;  %v607_v50 = vld [vmem:[#allocation3 + $0x210] sm:$0x1]  ;;  %v608_v51 = vld [vmem:[#allocation3 + $0x211] sm:$0x1] }
  0x2d   :  { %13465 = vmatprep.mubr.msk.bf16.mxu1 %vm8415_vm0, %v5315_v32  ;;  %v5349_v45 = vcombine.low %v5340_v33, %v5347_v34  ;;  %v2239_v46 = vrot.slane %v2229_v29, %v14254_v7  ;;  %v2246_v47 = vrot.slane %v2230_v35, %v14254_v7  ;;  %v2278_v49 = vcombine.low %v103_v30, %v104_v31  ;;  %v609_v56 = vld [vmem:[#allocation3 + $0x212] sm:$0x1]  ;;  %v610_v57 = vld [vmem:[#allocation3 + $0x213] sm:$0x1]  ;;  %v611_v62 = vld [vmem:[#allocation3 + $0x214] sm:$0x1] }
  0x2e   :  { %v2228_v52 = vcombine.low %v2220_v26, %v2227_v38  ;;  %v5356_v53 = vrot.slane %v5348_v39, %v14254_v7  ;;  %v2253_v54 = vrot.slane %v2231_v40, %v14254_v7  ;;  %v2260_v55 = vrot.slane %v2232_v41, %v14254_v7  ;;  %v612_v63 = vld [vmem:[#allocation3 + $0x215] sm:$0x1]  ;;  %v613_v1 = vld [vmem:[#allocation3 + $0x216] sm:$0x1]  ;;  %v614_v6 = vld [vmem:[#allocation3 + $0x217] sm:$0x1] }
  0x2f   :  { %v5363_v58 = vrot.slane %v5349_v45, %v14254_v7  ;;  %v2261_v59 = vcombine.low %v2239_v46, %v2246_v47  ;;  %v2279_v60 = vcombine.low %v105_v36, %v106_v37  ;;  %v2280_v61 = vcombine.low %v107_v42, %v108_v43  ;;  %v615_v9 = vld [vmem:[#allocation3 + $0x218] sm:$0x1]  ;;  %v616_v10 = vld [vmem:[#allocation3 + $0x219] sm:$0x1]  ;;  %v617_v15 = vld [vmem:[#allocation3 + $0x21a] sm:$0x1] }
  0x30   :  { %13338 = vmatmul.mubr.msk.bf16.vlgmr.msra.gmra.mxu0 %vm8415_vm0, %v2228_v52  ;;  %v2262_v2 = vcombine.low %v2253_v54, %v2260_v55  ;;  %v2281_v3 = vcombine.low %v109_v44, %v110_v48  ;;  %v2288_v5 = vrot.slane %v2278_v49, %v14254_v7  ;;  %v5365_v8 = vcombine.low %v607_v50, %v608_v51  ;;  %v618_v20 = vld [vmem:[#allocation3 + $0x21b] sm:$0x1]  ;;  %v619_v21 = vld [vmem:[#allocation3 + $0x21c] sm:$0x1]  ;;  %v620_v22 = vld [vmem:[#allocation3 + $0x21d] sm:$0x1] }
  0x31   :  { %v5364_v11 = vcombine.low %v5356_v53, %v5363_v58  ;;  %v2269_v12 = vrot.slane %v2261_v59, %v14254_v7  ;;  %v2295_v13 = vrot.slane %v2279_v60, %v14254_v7  ;;  %v2302_v14 = vrot.slane %v2280_v61, %v14254_v7  ;;  %v621_v26 = vld [vmem:[#allocation3 + $0x21e] sm:$0x1]  ;;  %v622_v27 = vld [vmem:[#allocation3 + $0x21f] sm:$0x1]  ;;  %v111_v33 = vld [vmem:[#allocation3 + $0x20] sm:$0x1] }
  0x32   :  { %v2276_v16 = vrot.slane %v2262_v2, %v14254_v7  ;;  %v2309_v17 = vrot.slane %v2281_v3, %v14254_v7  ;;  %v5366_v18 = vcombine.low %v609_v56, %v610_v57  ;;  %v5367_v19 = vcombine.low %v611_v62, %v612_v63  ;;  %v112_v34 = vld [vmem:[#allocation3 + $0x21] sm:$0x1]  ;;  %v113_v39 = vld [vmem:[#allocation3 + $0x22] sm:$0x1]  ;;  %v114_v40 = vld [vmem:[#allocation3 + $0x23] sm:$0x1] }
  0x33   :  { %13466 = vmatmul.mubr.msk.bf16.vlgmr.msra.gmra.mxu1 %vm8415_vm0, %v5364_v11  ;;  %v2310_v23 = vcombine.low %v2288_v5, %v2295_v13  ;;  %v5368_v24 = vcombine.low %v613_v1, %v614_v6  ;;  %v5375_v25 = vrot.slane %v5365_v8, %v14254_v7  ;;  %v5414_v28 = vcombine.low %v615_v9, %v616_v10  ;;  %v115_v41 = vld [vmem:[#allocation3 + $0x24] sm:$0x1]  ;;  %v116_v46 = vld [vmem:[#allocation3 + $0x25] sm:$0x1]  ;;  %v117_v47 = vld [vmem:[#allocation3 + $0x26] sm:$0x1] }
  0x34   :  { %v2277_v29 = vcombine.low %v2269_v12, %v2276_v16  ;;  %v2311_v30 = vcombine.low %v2302_v14, %v2309_v17  ;;  %v5382_v31 = vrot.slane %v5366_v18, %v14254_v7  ;;  %v5389_v32 = vrot.slane %v5367_v19, %v14254_v7  ;;  %v118_v48 = vld [vmem:[#allocation3 + $0x27] sm:$0x1]  ;;  %v119_v53 = vld [vmem:[#allocation3 + $0x28] sm:$0x1]  ;;  %v120_v54 = vld [vmem:[#allocation3 + $0x29] sm:$0x1] }
  0x35   :  { %v2318_v35 = vrot.slane %v2310_v23, %v14254_v7  ;;  %v5396_v36 = vrot.slane %v5368_v24, %v14254_v7  ;;  %v5415_v37 = vcombine.low %v617_v15, %v618_v20  ;;  %v5416_v38 = vcombine.low %v619_v21, %v620_v22  ;;  %v121_v59 = vld [vmem:[#allocation3 + $0x2a] sm:$0x1]  ;;  %v122_v60 = vld [vmem:[#allocation3 + $0x2b] sm:$0x1]  ;;  %v123_v2 = vld [vmem:[#allocation3 + $0x2c] sm:$0x1] }
  0x36   :  { %13341 = vmatprep.mubr.msk.bf16.mxu0 %vm8415_vm0, %v2277_v29  ;;  %v2325_v42 = vrot.slane %v2311_v30, %v14254_v7  ;;  %v5397_v43 = vcombine.low %v5375_v25, %v5382_v31  ;;  %v5417_v44 = vcombine.low %v621_v26, %v622_v27  ;;  %v5424_v45 = vrot.slane %v5414_v28, %v14254_v7  ;;  %v124_v3 = vld [vmem:[#allocation3 + $0x2d] sm:$0x1]  ;;  %v125_v5 = vld [vmem:[#allocation3 + $0x2e] sm:$0x1]  ;;  %v126_v10 = vld [vmem:[#allocation3 + $0x2f] sm:$0x1] }
  0x37   :  { %v5398_v49 = vcombine.low %v5389_v32, %v5396_v36  ;;  %v5431_v50 = vrot.slane %v5415_v37, %v14254_v7  ;;  %v5438_v51 = vrot.slane %v5416_v38, %v14254_v7  ;;  %v2327_v52 = vcombine.low %v111_v33, %v112_v34  ;;  %v623_v12 = vld [vmem:[#allocation3 + $0x220] sm:$0x1]  ;;  %v624_v13 = vld [vmem:[#allocation3 + $0x221] sm:$0x1]  ;;  %v625_v18 = vld [vmem:[#allocation3 + $0x222] sm:$0x1] }
  0x38   :  { %v2326_v55 = vcombine.low %v2318_v35, %v2325_v42  ;;  %v5405_v56 = vrot.slane %v5397_v43, %v14254_v7  ;;  %v5445_v57 = vrot.slane %v5417_v44, %v14254_v7  ;;  %v2328_v58 = vcombine.low %v113_v39, %v114_v40  ;;  %v626_v19 = vld [vmem:[#allocation3 + $0x223] sm:$0x1]  ;;  %v627_v24 = vld [vmem:[#allocation3 + $0x224] sm:$0x1]  ;;  %v628_v25 = vld [vmem:[#allocation3 + $0x225] sm:$0x1] }
  0x39   :  { %v5412_v61 = vrot.slane %v5398_v49, %v14254_v7  ;;  %v5446_v62 = vcombine.low %v5424_v45, %v5431_v50  ;;  %v2329_v63 = vcombine.low %v115_v41, %v116_v46  ;;  %v2330_v1 = vcombine.low %v117_v47, %v118_v48  ;;  %v629_v26 = vld [vmem:[#allocation3 + $0x226] sm:$0x1]  ;;  %v630_v30 = vld [vmem:[#allocation3 + $0x227] sm:$0x1]  ;;  %v631_v32 = vld [vmem:[#allocation3 + $0x228] sm:$0x1] }
  0x3a   :  { %13342 = vmatmul.mubr.msk.bf16.gmra.mxu0 %vm8415_vm0, %v2326_v55  ;;  %v5447_v6 = vcombine.low %v5438_v51, %v5445_v57  ;;  %v2337_v8 = vrot.slane %v2327_v52, %v14254_v7  ;;  %v2344_v9 = vrot.slane %v2328_v58, %v14254_v7  ;;  %v2376_v11 = vcombine.low %v119_v53, %v120_v54  ;;  %v632_v33 = vld [vmem:[#allocation3 + $0x229] sm:$0x1]  ;;  %v633_v38 = vld [vmem:[#allocation3 + $0x22a] sm:$0x1]  ;;  %v634_v43 = vld [vmem:[#allocation3 + $0x22b] sm:$0x1] }
  0x3b   :  { %v5413_v14 = vcombine.low %v5405_v56, %v5412_v61  ;;  %v5454_v15 = vrot.slane %v5446_v62, %v14254_v7  ;;  %v2351_v16 = vrot.slane %v2329_v63, %v14254_v7  ;;  %v2358_v17 = vrot.slane %v2330_v1, %v14254_v7  ;;  %v635_v44 = vld [vmem:[#allocation3 + $0x22c] sm:$0x1]  ;;  %v636_v45 = vld [vmem:[#allocation3 + $0x22d] sm:$0x1]  ;;  %v637_v49 = vld [vmem:[#allocation3 + $0x22e] sm:$0x1] }
  0x3c   :  { %v5461_v20 = vrot.slane %v5447_v6, %v14254_v7  ;;  %v2359_v21 = vcombine.low %v2337_v8, %v2344_v9  ;;  %v2377_v22 = vcombine.low %v121_v59, %v122_v60  ;;  %v2378_v23 = vcombine.low %v123_v2, %v124_v3  ;;  %v638_v50 = vld [vmem:[#allocation3 + $0x22f] sm:$0x1]  ;;  %v127_v56 = vld [vmem:[#allocation3 + $0x30] sm:$0x1]  ;;  %v128_v57 = vld [vmem:[#allocation3 + $0x31] sm:$0x1] }
  0x3d   :  { %13469 = vmatprep.mubr.msk.bf16.mxu1 %vm8415_vm0, %v5413_v14  ;;  %v2360_v27 = vcombine.low %v2351_v16, %v2358_v17  ;;  %v2379_v28 = vcombine.low %v125_v5, %v126_v10  ;;  %v2386_v29 = vrot.slane %v2376_v11, %v14254_v7  ;;  %v5463_v31 = vcombine.low %v623_v12, %v624_v13  ;;  %v129_v62 = vld [vmem:[#allocation3 + $0x32] sm:$0x1]  ;;  %v130_v63 = vld [vmem:[#allocation3 + $0x33] sm:$0x1]  ;;  %v131_v1 = vld [vmem:[#allocation3 + $0x34] sm:$0x1] }
  0x3e   :  { %v5462_v34 = vcombine.low %v5454_v15, %v5461_v20  ;;  %v2367_v35 = vrot.slane %v2359_v21, %v14254_v7  ;;  %v2393_v36 = vrot.slane %v2377_v22, %v14254_v7  ;;  %v2400_v37 = vrot.slane %v2378_v23, %v14254_v7  ;;  %v132_v8 = vld [vmem:[#allocation3 + $0x35] sm:$0x1]  ;;  %v133_v9 = vld [vmem:[#allocation3 + $0x36] sm:$0x1]  ;;  %v134_v10 = vld [vmem:[#allocation3 + $0x37] sm:$0x1] }
  0x3f   :  { %v2374_v39 = vrot.slane %v2360_v27, %v14254_v7  ;;  %v2407_v40 = vrot.slane %v2379_v28, %v14254_v7  ;;  %v5464_v41 = vcombine.low %v625_v18, %v626_v19  ;;  %v5465_v42 = vcombine.low %v627_v24, %v628_v25  ;;  %v135_v15 = vld [vmem:[#allocation3 + $0x38] sm:$0x1]  ;;  %v136_v16 = vld [vmem:[#allocation3 + $0x39] sm:$0x1]  ;;  %v137_v21 = vld [vmem:[#allocation3 + $0x3a] sm:$0x1] }
  0x40   :  { %13470 = vmatmul.mubr.msk.bf16.gmra.mxu1 %vm8415_vm0, %v5462_v34  ;;  %v2408_v46 = vcombine.low %v2386_v29, %v2393_v36  ;;  %v5466_v47 = vcombine.low %v629_v26, %v630_v30  ;;  %v5473_v48 = vrot.slane %v5463_v31, %v14254_v7  ;;  %v5512_v51 = vcombine.low %v631_v32, %v632_v33  ;;  %v138_v22 = vld [vmem:[#allocation3 + $0x3b] sm:$0x1]  ;;  %v139_v27 = vld [vmem:[#allocation3 + $0x3c] sm:$0x1]  ;;  %v140_v28 = vld [vmem:[#allocation3 + $0x3d] sm:$0x1] }
  0x41   :  { %v2375_v52 = vcombine.low %v2367_v35, %v2374_v39  ;;  %v2409_v53 = vcombine.low %v2400_v37, %v2407_v40  ;;  %v5480_v54 = vrot.slane %v5464_v41, %v14254_v7  ;;  %v5487_v55 = vrot.slane %v5465_v42, %v14254_v7  ;;  %v141_v29 = vld [vmem:[#allocation3 + $0x3e] sm:$0x1]  ;;  %v142_v33 = vld [vmem:[#allocation3 + $0x3f] sm:$0x1]  ;;  %v639_v35 = vld [vmem:[#allocation3 + $0x230] sm:$0x1] }
  0x42   :  { %v2416_v58 = vrot.slane %v2408_v46, %v14254_v7  ;;  %v5494_v59 = vrot.slane %v5466_v47, %v14254_v7  ;;  %v5513_v60 = vcombine.low %v633_v38, %v634_v43  ;;  %v5514_v61 = vcombine.low %v635_v44, %v636_v45  ;;  %v640_v36 = vld [vmem:[#allocation3 + $0x231] sm:$0x1]  ;;  %v641_v41 = vld [vmem:[#allocation3 + $0x232] sm:$0x1]  ;;  %v642_v42 = vld [vmem:[#allocation3 + $0x233] sm:$0x1] }
  0x43   :  { %13345 = vmatprep.mubr.msk.bf16.mxu0 %vm8415_vm0, %v2375_v52  ;;  %v2423_v2 = vrot.slane %v2409_v53, %v14254_v7  ;;  %v5495_v3 = vcombine.low %v5473_v48, %v5480_v54  ;;  %v5515_v5 = vcombine.low %v637_v49, %v638_v50  ;;  %v5522_v6 = vrot.slane %v5512_v51, %v14254_v7  ;;  %v643_v47 = vld [vmem:[#allocation3 + $0x234] sm:$0x1]  ;;  %v644_v48 = vld [vmem:[#allocation3 + $0x235] sm:$0x1]  ;;  %v645_v49 = vld [vmem:[#allocation3 + $0x236] sm:$0x1] }
  0x44   :  { %v5496_v11 = vcombine.low %v5487_v55, %v5494_v59  ;;  %v5529_v12 = vrot.slane %v5513_v60, %v14254_v7  ;;  %v5536_v13 = vrot.slane %v5514_v61, %v14254_v7  ;;  %v2425_v14 = vcombine.low %v127_v56, %v128_v57  ;;  %v646_v53 = vld [vmem:[#allocation3 + $0x237] sm:$0x1]  ;;  %v647_v55 = vld [vmem:[#allocation3 + $0x238] sm:$0x1]  ;;  %v648_v56 = vld [vmem:[#allocation3 + $0x239] sm:$0x1] }
  0x45   :  { %v2424_v17 = vcombine.low %v2416_v58, %v2423_v2  ;;  %v5503_v18 = vrot.slane %v5495_v3, %v14254_v7  ;;  %v5543_v19 = vrot.slane %v5515_v5, %v14254_v7  ;;  %v2426_v20 = vcombine.low %v129_v62, %v130_v63  ;;  %v649_v61 = vld [vmem:[#allocation3 + $0x23a] sm:$0x1]  ;;  %v650_v3 = vld [vmem:[#allocation3 + $0x23b] sm:$0x1]  ;;  %v651_v5 = vld [vmem:[#allocation3 + $0x23c] sm:$0x1] }
  0x46   :  { %v5510_v23 = vrot.slane %v5496_v11, %v14254_v7  ;;  %v5544_v24 = vcombine.low %v5522_v6, %v5529_v12  ;;  %v2427_v25 = vcombine.low %v131_v1, %v132_v8  ;;  %v2428_v26 = vcombine.low %v133_v9, %v134_v10  ;;  %v652_v6 = vld [vmem:[#allocation3 + $0x23d] sm:$0x1]  ;;  %v653_v11 = vld [vmem:[#allocation3 + $0x23e] sm:$0x1]  ;;  %v654_v12 = vld [vmem:[#allocation3 + $0x23f] sm:$0x1] }
  0x47   :  { %13346 = vmatmul.mubr.msk.bf16.gmra.mxu0 %vm8415_vm0, %v2424_v17  ;;  %v5545_v30 = vcombine.low %v5536_v13, %v5543_v19  ;;  %v2435_v31 = vrot.slane %v2425_v14, %v14254_v7  ;;  %v2442_v32 = vrot.slane %v2426_v20, %v14254_v7  ;;  %v2474_v34 = vcombine.low %v135_v15, %v136_v16  ;;  %v656_v19 = vld [vmem:[#allocation3 + $0x241] sm:$0x1]  ;;  %v488_v0 = vld [vmem:[#allocation3 + $0x199] sm:$0x1] }
  0x48   :  { %v5511_v37 = vcombine.low %v5503_v18, %v5510_v23  ;;  %v5552_v38 = vrot.slane %v5544_v24, %v14254_v7  ;;  %v2449_v39 = vrot.slane %v2427_v25, %v14254_v7  ;;  %v2456_v40 = vrot.slane %v2428_v26, %v14254_v7  ;;  %v655_v18 = vld [vmem:[#allocation3 + $0x240] sm:$0x1]  ;;  %v657_v24 = vld [vmem:[#allocation3 + $0x242] sm:$0x1]  ;;  %v658_v25 = vld [vmem:[#allocation3 + $0x243] sm:$0x1] }
  0x49   :  { %v5559_v43 = vrot.slane %v5545_v30, %v14254_v7  ;;  %v2457_v44 = vcombine.low %v2435_v31, %v2442_v32  ;;  %v2475_v45 = vcombine.low %v137_v21, %v138_v22  ;;  %v2476_v46 = vcombine.low %v139_v27, %v140_v28  ;;  %v659_v26 = vld [vmem:[#allocation3 + $0x244] sm:$0x1]  ;;  %v660_v31 = vld [vmem:[#allocation3 + $0x245] sm:$0x1]  ;;  %v661_v32 = vld [vmem:[#allocation3 + $0x246] sm:$0x1] }
  0x4a   :  { %13473 = vmatprep.mubr.msk.bf16.mxu1 %vm8415_vm0, %v5511_v37  ;;  %v2458_v50 = vcombine.low %v2449_v39, %v2456_v40  ;;  %v2477_v51 = vcombine.low %v141_v29, %v142_v33  ;;  %v2484_v52 = vrot.slane %v2474_v34, %v14254_v7  ;;  %v5561_v54 = vcombine.low %v639_v35, %v640_v36  ;;  %v662_v33 = vld [vmem:[#allocation3 + $0x247] sm:$0x1]  ;;  %v664_v39 = vld [vmem:[#allocation3 + $0x249] sm:$0x1] }
  0x4b   :  { %v5560_v57 = vcombine.low %v5552_v38, %v5559_v43  ;;  %v2465_v58 = vrot.slane %v2457_v44, %v14254_v7  ;;  %v2491_v59 = vrot.slane %v2475_v45, %v14254_v7  ;;  %v2498_v60 = vrot.slane %v2476_v46, %v14254_v7  ;;  %v663_v38 = vld [vmem:[#allocation3 + $0x248] sm:$0x1]  ;;  %v665_v44 = vld [vmem:[#allocation3 + $0x24a] sm:$0x1]  ;;  %v666_v45 = vld [vmem:[#allocation3 + $0x24b] sm:$0x1] }
  0x4c   :  { %v2472_v62 = vrot.slane %v2458_v50, %v14254_v7  ;;  %v2505_v63 = vrot.slane %v2477_v51, %v14254_v7  ;;  %v5562_v1 = vcombine.low %v641_v41, %v642_v42  ;;  %v5563_v2 = vcombine.low %v643_v47, %v644_v48  ;;  %v667_v50 = vld [vmem:[#allocation3 + $0x24c] sm:$0x1]  ;;  %v668_v51 = vld [vmem:[#allocation3 + $0x24d] sm:$0x1] }
  0x4d   :  { %13474 = vmatmul.mubr.msk.bf16.gmra.mxu1 %vm8415_vm0, %v5560_v57  ;;  %v2506_v8 = vcombine.low %v2484_v52, %v2491_v59  ;;  %v5564_v9 = vcombine.low %v645_v49, %v646_v53  ;;  %v5571_v10 = vrot.slane %v5561_v54, %v14254_v7  ;;  %v5610_v13 = vcombine.low %v647_v55, %v648_v56  ;;  %v669_v52 = vld [vmem:[#allocation3 + $0x24e] sm:$0x1]  ;;  %v670_v56 = vld [vmem:[#allocation3 + $0x24f] sm:$0x1]  ;;  %v144_v59 = vld [vmem:[#allocation3 + $0x41] sm:$0x1] }
  0x4e   :  { %v2473_v14 = vcombine.low %v2465_v58, %v2472_v62  ;;  %v2507_v15 = vcombine.low %v2498_v60, %v2505_v63  ;;  %v5578_v16 = vrot.slane %v5562_v1, %v14254_v7  ;;  %v5585_v17 = vrot.slane %v5563_v2, %v14254_v7  ;;  %v143_v58 = vld [vmem:[#allocation3 + $0x40] sm:$0x1]  ;;  %v145_v1 = vld [vmem:[#allocation3 + $0x42] sm:$0x1]  ;;  %v146_v2 = vld [vmem:[#allocation3 + $0x43] sm:$0x1] }
  0x4f   :  { %v2514_v20 = vrot.slane %v2506_v8, %v14254_v7  ;;  %v5592_v21 = vrot.slane %v5564_v9, %v14254_v7  ;;  %v5611_v22 = vcombine.low %v649_v61, %v650_v3  ;;  %v5612_v23 = vcombine.low %v651_v5, %v652_v6  ;;  %v147_v9 = vld [vmem:[#allocation3 + $0x44] sm:$0x1] }
  0x50   :  { %13349 = vmatprep.mubr.msk.bf16.mxu0 %vm8415_vm0, %v2473_v14  ;;  %v2521_v27 = vrot.slane %v2507_v15, %v14254_v7  ;;  %v5593_v28 = vcombine.low %v5571_v10, %v5578_v16  ;;  %v5613_v29 = vcombine.low %v653_v11, %v654_v12  ;;  %v5620_v30 = vrot.slane %v5610_v13, %v14254_v7  ;;  %v148_v10 = vld [vmem:[#allocation3 + $0x45] sm:$0x1]  ;;  %v149_v11 = vld [vmem:[#allocation3 + $0x46] sm:$0x1]  ;;  %v150_v15 = vld [vmem:[#allocation3 + $0x47] sm:$0x1] }
  0x51   :  { %v5594_v34 = vcombine.low %v5585_v17, %v5592_v21  ;;  %v5627_v35 = vrot.slane %v5611_v22, %v14254_v7  ;;  %v5634_v36 = vrot.slane %v5612_v23, %v14254_v7  ;;  %v5659_v37 = vcombine.low %v655_v18, %v656_v19  ;;  %v151_v17 = vld [vmem:[#allocation3 + $0x48] sm:$0x1]  ;;  %v152_v18 = vld [vmem:[#allocation3 + $0x49] sm:$0x1]  ;;  %v153_v23 = vld [vmem:[#allocation3 + $0x4a] sm:$0x1] }
  0x52   :  { %v2522_v40 = vcombine.low %v2514_v20, %v2521_v27  ;;  %v5601_v41 = vrot.slane %v5593_v28, %v14254_v7  ;;  %v5641_v42 = vrot.slane %v5613_v29, %v14254_v7  ;;  %v5660_v43 = vcombine.low %v657_v24, %v658_v25  ;;  %v154_v28 = vld [vmem:[#allocation3 + $0x4b] sm:$0x1]  ;;  %v155_v29 = vld [vmem:[#allocation3 + $0x4c] sm:$0x1] }
  0x53   :  { %v5608_v46 = vrot.slane %v5594_v34, %v14254_v7  ;;  %v5642_v47 = vcombine.low %v5620_v30, %v5627_v35  ;;  %v5661_v48 = vcombine.low %v659_v26, %v660_v31  ;;  %v5662_v49 = vcombine.low %v661_v32, %v662_v33  ;;  %v156_v30 = vld [vmem:[#allocation3 + $0x4d] sm:$0x1]  ;;  %v157_v34 = vld [vmem:[#allocation3 + $0x4e] sm:$0x1]  ;;  %v158_v35 = vld [vmem:[#allocation3 + $0x4f] sm:$0x1] }
  0x54   :  { %13350 = vmatmul.mubr.msk.bf16.gmra.mxu0 %vm8415_vm0, %v2522_v40  ;;  %v5643_v53 = vcombine.low %v5634_v36, %v5641_v42  ;;  %v5669_v54 = vrot.slane %v5659_v37, %v14254_v7  ;;  %v5676_v55 = vrot.slane %v5660_v43, %v14254_v7  ;;  %v5708_v57 = vcombine.low %v663_v38, %v664_v39  ;;  %v672_v42 = vld [vmem:[#allocation3 + $0x251] sm:$0x1] }
  0x55   :  { %v5609_v60 = vcombine.low %v5601_v41, %v5608_v46  ;;  %v5650_v61 = vrot.slane %v5642_v47, %v14254_v7  ;;  %v5683_v62 = vrot.slane %v5661_v48, %v14254_v7  ;;  %v5690_v63 = vrot.slane %v5662_v49, %v14254_v7  ;;  %v671_v41 = vld [vmem:[#allocation3 + $0x250] sm:$0x1]  ;;  %v673_v47 = vld [vmem:[#allocation3 + $0x252] sm:$0x1]  ;;  %v674_v48 = vld [vmem:[#allocation3 + $0x253] sm:$0x1] }
  0x56   :  { %v5657_v3 = vrot.slane %v5643_v53, %v14254_v7  ;;  %v5691_v5 = vcombine.low %v5669_v54, %v5676_v55  ;;  %v5709_v6 = vcombine.low %v665_v44, %v666_v45  ;;  %v5710_v8 = vcombine.low %v667_v50, %v668_v51  ;;  %v675_v49 = vld [vmem:[#allocation3 + $0x254] sm:$0x1]  ;;  %v676_v54 = vld [vmem:[#allocation3 + $0x255] sm:$0x1]  ;;  %v677_v55 = vld [vmem:[#allocation3 + $0x256] sm:$0x1] }
  0x57   :  { %13477 = vmatprep.mubr.msk.bf16.mxu1 %vm8415_vm0, %v5609_v60  ;;  %v5692_v12 = vcombine.low %v5683_v62, %v5690_v63  ;;  %v5711_v13 = vcombine.low %v669_v52, %v670_v56  ;;  %v5718_v14 = vrot.slane %v5708_v57, %v14254_v7  ;;  %v2523_v16 = vcombine.low %v143_v58, %v144_v59  ;;  %v678_v56 = vld [vmem:[#allocation3 + $0x257] sm:$0x1]  ;;  %v680_v62 = vld [vmem:[#allocation3 + $0x259] sm:$0x1] }
  0x58   :  { %v5658_v19 = vcombine.low %v5650_v61, %v5657_v3  ;;  %v5699_v20 = vrot.slane %v5691_v5, %v14254_v7  ;;  %v5725_v21 = vrot.slane %v5709_v6, %v14254_v7  ;;  %v5732_v22 = vrot.slane %v5710_v8, %v14254_v7  ;;  %v679_v61 = vld [vmem:[#allocation3 + $0x258] sm:$0x1]  ;;  %v681_v5 = vld [vmem:[#allocation3 + $0x25a] sm:$0x1]  ;;  %v682_v6 = vld [vmem:[#allocation3 + $0x25b] sm:$0x1] }
  0x59   :  { %v5706_v24 = vrot.slane %v5692_v12, %v14254_v7  ;;  %v5739_v25 = vrot.slane %v5711_v13, %v14254_v7  ;;  %v2524_v26 = vcombine.low %v145_v1, %v146_v2  ;;  %v2525_v27 = vcombine.low %v147_v9, %v148_v10  ;;  %v683_v12 = vld [vmem:[#allocation3 + $0x25c] sm:$0x1]  ;;  %v684_v13 = vld [vmem:[#allocation3 + $0x25d] sm:$0x1] }
  0x5a   :  { %13478 = vmatmul.mubr.msk.bf16.gmra.mxu1 %vm8415_vm0, %v5658_v19  ;;  %v5740_v31 = vcombine.low %v5718_v14, %v5725_v21  ;;  %v2526_v32 = vcombine.low %v149_v11, %v150_v15  ;;  %v2533_v33 = vrot.slane %v2523_v16, %v14254_v7  ;;  %v2572_v36 = vcombine.low %v151_v17, %v152_v18  ;;  %v685_v14 = vld [vmem:[#allocation3 + $0x25e] sm:$0x1]  ;;  %v686_v18 = vld [vmem:[#allocation3 + $0x25f] sm:$0x1]  ;;  %v160_v21 = vld [vmem:[#allocation3 + $0x51] sm:$0x1] }
  0x5b   :  { %v5707_v37 = vcombine.low %v5699_v20, %v5706_v24  ;;  %v5741_v38 = vcombine.low %v5732_v22, %v5739_v25  ;;  %v2540_v39 = vrot.slane %v2524_v26, %v14254_v7  ;;  %v2547_v40 = vrot.slane %v2525_v27, %v14254_v7  ;;  %v159_v20 = vld [vmem:[#allocation3 + $0x50] sm:$0x1]  ;;  %v161_v26 = vld [vmem:[#allocation3 + $0x52] sm:$0x1]  ;;  %v162_v27 = vld [vmem:[#allocation3 + $0x53] sm:$0x1] }
  0x5c   :  { %v5748_v43 = vrot.slane %v5740_v31, %v14254_v7  ;;  %v2554_v44 = vrot.slane %v2526_v32, %v14254_v7  ;;  %v2573_v45 = vcombine.low %v153_v23, %v154_v28  ;;  %v2574_v46 = vcombine.low %v155_v29, %v156_v30  ;;  %v163_v32 = vld [vmem:[#allocation3 + $0x54] sm:$0x1] }
  0x5d   :  { %13481 = vmatprep.mubr.msk.bf16.mxu1 %vm8415_vm0, %v5707_v37  ;;  %v5755_v50 = vrot.slane %v5741_v38, %v14254_v7  ;;  %v2555_v51 = vcombine.low %v2533_v33, %v2540_v39  ;;  %v2575_v52 = vcombine.low %v157_v34, %v158_v35  ;;  %v2582_v53 = vrot.slane %v2572_v36, %v14254_v7  ;;  %v164_v33 = vld [vmem:[#allocation3 + $0x55] sm:$0x1]  ;;  %v165_v34 = vld [vmem:[#allocation3 + $0x56] sm:$0x1]  ;;  %v166_v38 = vld [vmem:[#allocation3 + $0x57] sm:$0x1] }
  0x5e   :  { %v2556_v57 = vcombine.low %v2547_v40, %v2554_v44  ;;  %v2589_v58 = vrot.slane %v2573_v45, %v14254_v7  ;;  %v2596_v59 = vrot.slane %v2574_v46, %v14254_v7  ;;  %v5757_v60 = vcombine.low %v671_v41, %v672_v42  ;;  %v167_v40 = vld [vmem:[#allocation3 + $0x58] sm:$0x1]  ;;  %v168_v41 = vld [vmem:[#allocation3 + $0x59] sm:$0x1]  ;;  %v169_v46 = vld [vmem:[#allocation3 + $0x5a] sm:$0x1] }
  0x5f   :  { %v5756_v63 = vcombine.low %v5748_v43, %v5755_v50  ;;  %v2563_v1 = vrot.slane %v2555_v51, %v14254_v7  ;;  %v2603_v2 = vrot.slane %v2575_v52, %v14254_v7  ;;  %v5758_v3 = vcombine.low %v673_v47, %v674_v48  ;;  %v170_v51 = vld [vmem:[#allocation3 + $0x5b] sm:$0x1]  ;;  %v171_v52 = vld [vmem:[#allocation3 + $0x5c] sm:$0x1] }
  0x60   :  { %v2570_v8 = vrot.slane %v2556_v57, %v14254_v7  ;;  %v2604_v9 = vcombine.low %v2582_v53, %v2589_v58  ;;  %v5759_v10 = vcombine.low %v675_v49, %v676_v54  ;;  %v5760_v11 = vcombine.low %v677_v55, %v678_v56  ;;  %v172_v53 = vld [vmem:[#allocation3 + $0x5d] sm:$0x1]  ;;  %v173_v57 = vld [vmem:[#allocation3 + $0x5e] sm:$0x1]  ;;  %v174_v58 = vld [vmem:[#allocation3 + $0x5f] sm:$0x1] }
  0x61   :  { %v2605_v15 = vcombine.low %v2596_v59, %v2603_v2  ;;  %v5767_v16 = vrot.slane %v5757_v60, %v14254_v7  ;;  %v5774_v17 = vrot.slane %v5758_v3, %v14254_v7  ;;  %v5806_v19 = vcombine.low %v679_v61, %v680_v62  ;;  %v176_v2 = vld [vmem:[#allocation3 + $0x61] sm:$0x1] }
  0x62   :  { %13482 = vmatmul.mubr.msk.bf16.gmra.mxu1 %vm8415_vm0, %v5756_v63  ;;  %v2571_v22 = vcombine.low %v2563_v1, %v2570_v8  ;;  %v2612_v23 = vrot.slane %v2604_v9, %v14254_v7  ;;  %v5781_v24 = vrot.slane %v5759_v10, %v14254_v7  ;;  %v5788_v25 = vrot.slane %v5760_v11, %v14254_v7  ;;  %v175_v1 = vld [vmem:[#allocation3 + $0x60] sm:$0x1]  ;;  %v177_v9 = vld [vmem:[#allocation3 + $0x62] sm:$0x1]  ;;  %v178_v10 = vld [vmem:[#allocation3 + $0x63] sm:$0x1] }
  0x63   :  { %v2619_v28 = vrot.slane %v2605_v15, %v14254_v7  ;;  %v5789_v29 = vcombine.low %v5767_v16, %v5774_v17  ;;  %v5807_v30 = vcombine.low %v681_v5, %v682_v6  ;;  %v5808_v31 = vcombine.low %v683_v12, %v684_v13  ;;  %v179_v11 = vld [vmem:[#allocation3 + $0x64] sm:$0x1]  ;;  %v180_v16 = vld [vmem:[#allocation3 + $0x65] sm:$0x1]  ;;  %v181_v17 = vld [vmem:[#allocation3 + $0x66] sm:$0x1] }
  0x64   :  { %13353 = vmatprep.mubr.msk.bf16.mxu0 %vm8415_vm0, %v2571_v22  ;;  %v5790_v35 = vcombine.low %v5781_v24, %v5788_v25  ;;  %v5809_v36 = vcombine.low %v685_v14, %v686_v18  ;;  %v5816_v37 = vrot.slane %v5806_v19, %v14254_v7  ;;  %v2621_v39 = vcombine.low %v159_v20, %v160_v21  ;;  %v182_v18 = vld [vmem:[#allocation3 + $0x67] sm:$0x1]  ;;  %v184_v24 = vld [vmem:[#allocation3 + $0x69] sm:$0x1] }
  0x65   :  { %v2620_v42 = vcombine.low %v2612_v23, %v2619_v28  ;;  %v5797_v43 = vrot.slane %v5789_v29, %v14254_v7  ;;  %v5823_v44 = vrot.slane %v5807_v30, %v14254_v7  ;;  %v5830_v45 = vrot.slane %v5808_v31, %v14254_v7  ;;  %v183_v23 = vld [vmem:[#allocation3 + $0x68] sm:$0x1]  ;;  %v185_v29 = vld [vmem:[#allocation3 + $0x6a] sm:$0x1]  ;;  %v186_v30 = vld [vmem:[#allocation3 + $0x6b] sm:$0x1] }
  0x66   :  { %v5804_v47 = vrot.slane %v5790_v35, %v14254_v7  ;;  %v5837_v48 = vrot.slane %v5809_v36, %v14254_v7  ;;  %v2622_v49 = vcombine.low %v161_v26, %v162_v27  ;;  %v2623_v50 = vcombine.low %v163_v32, %v164_v33  ;;  %v187_v35 = vld [vmem:[#allocation3 + $0x6c] sm:$0x1]  ;;  %v188_v36 = vld [vmem:[#allocation3 + $0x6d] sm:$0x1] }
  0x67   :  { %13354 = vmatmul.mubr.msk.bf16.gmra.mxu0 %vm8415_vm0, %v2620_v42  ;;  %v5838_v54 = vcombine.low %v5816_v37, %v5823_v44  ;;  %v2624_v55 = vcombine.low %v165_v34, %v166_v38  ;;  %v2631_v56 = vrot.slane %v2621_v39, %v14254_v7  ;;  %v2670_v59 = vcombine.low %v167_v40, %v168_v41  ;;  %v189_v37 = vld [vmem:[#allocation3 + $0x6e] sm:$0x1]  ;;  %v190_v41 = vld [vmem:[#allocation3 + $0x6f] sm:$0x1]  ;;  %v688_v44 = vld [vmem:[#allocation3 + $0x261] sm:$0x1] }
  0x68   :  { %v5805_v60 = vcombine.low %v5797_v43, %v5804_v47  ;;  %v5839_v61 = vcombine.low %v5830_v45, %v5837_v48  ;;  %v2638_v62 = vrot.slane %v2622_v49, %v14254_v7  ;;  %v2645_v63 = vrot.slane %v2623_v50, %v14254_v7  ;;  %v687_v43 = vld [vmem:[#allocation3 + $0x260] sm:$0x1]  ;;  %v689_v49 = vld [vmem:[#allocation3 + $0x262] sm:$0x1]  ;;  %v690_v50 = vld [vmem:[#allocation3 + $0x263] sm:$0x1] }
  0x69   :  { %v5846_v3 = vrot.slane %v5838_v54, %v14254_v7  ;;  %v2652_v5 = vrot.slane %v2624_v55, %v14254_v7  ;;  %v2671_v6 = vcombine.low %v169_v46, %v170_v51  ;;  %v2672_v8 = vcombine.low %v171_v52, %v172_v53  ;;  %v691_v55 = vld [vmem:[#allocation3 + $0x264] sm:$0x1] }
  0x6a   :  { %13485 = vmatprep.mubr.msk.bf16.mxu1 %vm8415_vm0, %v5805_v60  ;;  %v5853_v12 = vrot.slane %v5839_v61, %v14254_v7  ;;  %v2653_v13 = vcombine.low %v2631_v56, %v2638_v62  ;;  %v2673_v14 = vcombine.low %v173_v57, %v174_v58  ;;  %v2680_v15 = vrot.slane %v2670_v59, %v14254_v7  ;;  %v692_v56 = vld [vmem:[#allocation3 + $0x265] sm:$0x1]  ;;  %v693_v57 = vld [vmem:[#allocation3 + $0x266] sm:$0x1]  ;;  %v694_v61 = vld [vmem:[#allocation3 + $0x267] sm:$0x1] }
  0x6b   :  { %v2654_v19 = vcombine.low %v2645_v63, %v2652_v5  ;;  %v2687_v20 = vrot.slane %v2671_v6, %v14254_v7  ;;  %v2694_v21 = vrot.slane %v2672_v8, %v14254_v7  ;;  %v2719_v22 = vcombine.low %v175_v1, %v176_v2  ;;  %v695_v63 = vld [vmem:[#allocation3 + $0x268] sm:$0x1]  ;;  %v696_v1 = vld [vmem:[#allocation3 + $0x269] sm:$0x1]  ;;  %v697_v8 = vld [vmem:[#allocation3 + $0x26a] sm:$0x1] }
  0x6c   :  { %v5854_v25 = vcombine.low %v5846_v3, %v5853_v12  ;;  %v2661_v26 = vrot.slane %v2653_v13, %v14254_v7  ;;  %v2701_v27 = vrot.slane %v2673_v14, %v14254_v7  ;;  %v2720_v28 = vcombine.low %v177_v9, %v178_v10  ;;  %v698_v13 = vld [vmem:[#allocation3 + $0x26b] sm:$0x1]  ;;  %v699_v14 = vld [vmem:[#allocation3 + $0x26c] sm:$0x1] }
  0x6d   :  { %v2668_v31 = vrot.slane %v2654_v19, %v14254_v7  ;;  %v2702_v32 = vcombine.low %v2680_v15, %v2687_v20  ;;  %v2721_v33 = vcombine.low %v179_v11, %v180_v16  ;;  %v2722_v34 = vcombine.low %v181_v17, %v182_v18  ;;  %v700_v15 = vld [vmem:[#allocation3 + $0x26d] sm:$0x1]  ;;  %v701_v19 = vld [vmem:[#allocation3 + $0x26e] sm:$0x1]  ;;  %v702_v20 = vld [vmem:[#allocation3 + $0x26f] sm:$0x1] }
  0x6e   :  { %13486 = vmatmul.mubr.msk.bf16.gmra.mxu1 %vm8415_vm0, %v5854_v25  ;;  %v2703_v38 = vcombine.low %v2694_v21, %v2701_v27  ;;  %v2729_v39 = vrot.slane %v2719_v22, %v14254_v7  ;;  %v2736_v40 = vrot.slane %v2720_v28, %v14254_v7  ;;  %v2768_v42 = vcombine.low %v183_v23, %v184_v24  ;;  %v192_v27 = vld [vmem:[#allocation3 + $0x71] sm:$0x1] }
  0x6f   :  { %v2669_v45 = vcombine.low %v2661_v26, %v2668_v31  ;;  %v2710_v46 = vrot.slane %v2702_v32, %v14254_v7  ;;  %v2743_v47 = vrot.slane %v2721_v33, %v14254_v7  ;;  %v2750_v48 = vrot.slane %v2722_v34, %v14254_v7  ;;  %v191_v26 = vld [vmem:[#allocation3 + $0x70] sm:$0x1]  ;;  %v193_v32 = vld [vmem:[#allocation3 + $0x72] sm:$0x1]  ;;  %v194_v33 = vld [vmem:[#allocation3 + $0x73] sm:$0x1] }
  0x70   :  { %v2717_v51 = vrot.slane %v2703_v38, %v14254_v7  ;;  %v2751_v52 = vcombine.low %v2729_v39, %v2736_v40  ;;  %v2769_v53 = vcombine.low %v185_v29, %v186_v30  ;;  %v2770_v54 = vcombine.low %v187_v35, %v188_v36  ;;  %v195_v34 = vld [vmem:[#allocation3 + $0x74] sm:$0x1]  ;;  %v196_v39 = vld [vmem:[#allocation3 + $0x75] sm:$0x1]  ;;  %v197_v40 = vld [vmem:[#allocation3 + $0x76] sm:$0x1] }
  0x71   :  { %13357 = vmatprep.mubr.msk.bf16.mxu0 %vm8415_vm0, %v2669_v45  ;;  %v2752_v58 = vcombine.low %v2743_v47, %v2750_v48  ;;  %v2771_v59 = vcombine.low %v189_v37, %v190_v41  ;;  %v2778_v60 = vrot.slane %v2768_v42, %v14254_v7  ;;  %v5855_v62 = vcombine.low %v687_v43, %v688_v44  ;;  %v198_v41 = vld [vmem:[#allocation3 + $0x77] sm:$0x1]  ;;  %v200_v47 = vld [vmem:[#allocation3 + $0x79] sm:$0x1] }
  0x72   :  { %v2718_v2 = vcombine.low %v2710_v46, %v2717_v51  ;;  %v2759_v3 = vrot.slane %v2751_v52, %v14254_v7  ;;  %v2785_v5 = vrot.slane %v2769_v53, %v14254_v7  ;;  %v2792_v6 = vrot.slane %v2770_v54, %v14254_v7  ;;  %v199_v46 = vld [vmem:[#allocation3 + $0x78] sm:$0x1]  ;;  %v201_v52 = vld [vmem:[#allocation3 + $0x7a] sm:$0x1]  ;;  %v202_v53 = vld [vmem:[#allocation3 + $0x7b] sm:$0x1] }
  0x73   :  { %v2766_v9 = vrot.slane %v2752_v58, %v14254_v7  ;;  %v2799_v10 = vrot.slane %v2771_v59, %v14254_v7  ;;  %v5856_v11 = vcombine.low %v689_v49, %v690_v50  ;;  %v5857_v12 = vcombine.low %v691_v55, %v692_v56  ;;  %v203_v58 = vld [vmem:[#allocation3 + $0x7c] sm:$0x1]  ;;  %v204_v59 = vld [vmem:[#allocation3 + $0x7d] sm:$0x1] }
  0x74   :  { %13358 = vmatmul.mubr.msk.bf16.gmra.mxu0 %vm8415_vm0, %v2718_v2  ;;  %v2800_v16 = vcombine.low %v2778_v60, %v2785_v5  ;;  %v5858_v17 = vcombine.low %v693_v57, %v694_v61  ;;  %v5865_v18 = vrot.slane %v5855_v62, %v14254_v7  ;;  %v5904_v21 = vcombine.low %v695_v63, %v696_v1  ;;  %v205_v60 = vld [vmem:[#allocation3 + $0x7e] sm:$0x1]  ;;  %v206_v1 = vld [vmem:[#allocation3 + $0x7f] sm:$0x1]  ;;  %v704_v5 = vld [vmem:[#allocation3 + $0x271] sm:$0x1] }
  0x75   :  { %v2767_v22 = vcombine.low %v2759_v3, %v2766_v9  ;;  %v2801_v23 = vcombine.low %v2792_v6, %v2799_v10  ;;  %v5872_v24 = vrot.slane %v5856_v11, %v14254_v7  ;;  %v5879_v25 = vrot.slane %v5857_v12, %v14254_v7  ;;  %v703_v3 = vld [vmem:[#allocation3 + $0x270] sm:$0x1]  ;;  %v705_v11 = vld [vmem:[#allocation3 + $0x272] sm:$0x1]  ;;  %v706_v12 = vld [vmem:[#allocation3 + $0x273] sm:$0x1] }
  0x76   :  { %v2808_v28 = vrot.slane %v2800_v16, %v14254_v7  ;;  %v5886_v29 = vrot.slane %v5858_v17, %v14254_v7  ;;  %v5905_v30 = vcombine.low %v697_v8, %v698_v13  ;;  %v5906_v31 = vcombine.low %v699_v14, %v700_v15  ;;  %v707_v17 = vld [vmem:[#allocation3 + $0x274] sm:$0x1] }
  0x77   :  { %13361 = vmatprep.mubr.msk.bf16.mxu0 %vm8415_vm0, %v2767_v22  ;;  %v2815_v35 = vrot.slane %v2801_v23, %v14254_v7  ;;  %v5887_v36 = vcombine.low %v5865_v18, %v5872_v24  ;;  %v5907_v37 = vcombine.low %v701_v19, %v702_v20  ;;  %v5914_v38 = vrot.slane %v5904_v21, %v14254_v7  ;;  %v708_v18 = vld [vmem:[#allocation3 + $0x275] sm:$0x1]  ;;  %v709_v19 = vld [vmem:[#allocation3 + $0x276] sm:$0x1]  ;;  %v710_v23 = vld [vmem:[#allocation3 + $0x277] sm:$0x1] }
  0x78   :  { %v5888_v42 = vcombine.low %v5879_v25, %v5886_v29  ;;  %v5921_v43 = vrot.slane %v5905_v30, %v14254_v7  ;;  %v5928_v44 = vrot.slane %v5906_v31, %v14254_v7  ;;  %v2817_v45 = vcombine.low %v191_v26, %v192_v27  ;;  %v711_v25 = vld [vmem:[#allocation3 + $0x278] sm:$0x1]  ;;  %v712_v26 = vld [vmem:[#allocation3 + $0x279] sm:$0x1]  ;;  %v713_v31 = vld [vmem:[#allocation3 + $0x27a] sm:$0x1] }
  0x79   :  { %v2816_v48 = vcombine.low %v2808_v28, %v2815_v35  ;;  %v5895_v49 = vrot.slane %v5887_v36, %v14254_v7  ;;  %v5935_v50 = vrot.slane %v5907_v37, %v14254_v7  ;;  %v2818_v51 = vcombine.low %v193_v32, %v194_v33  ;;  %v714_v36 = vld [vmem:[#allocation3 + $0x27b] sm:$0x1]  ;;  %v715_v37 = vld [vmem:[#allocation3 + $0x27c] sm:$0x1] }
  0x7a   :  { %v5902_v54 = vrot.slane %v5888_v42, %v14254_v7  ;;  %v5936_v55 = vcombine.low %v5914_v38, %v5921_v43  ;;  %v2819_v56 = vcombine.low %v195_v34, %v196_v39  ;;  %v2820_v57 = vcombine.low %v197_v40, %v198_v41  ;;  %v716_v38 = vld [vmem:[#allocation3 + $0x27d] sm:$0x1]  ;;  %v717_v42 = vld [vmem:[#allocation3 + $0x27e] sm:$0x1]  ;;  %v718_v43 = vld [vmem:[#allocation3 + $0x27f] sm:$0x1] }
  0x7b   :  { %v5937_v61 = vcombine.low %v5928_v44, %v5935_v50  ;;  %v2827_v62 = vrot.slane %v2817_v45, %v14254_v7  ;;  %v2834_v63 = vrot.slane %v2818_v51, %v14254_v7  ;;  %v2866_v2 = vcombine.low %v199_v46, %v200_v47  ;;  %v208_v50 = vld [vmem:[#allocation3 + $0x81] sm:$0x1] }
  0x7c   :  { %13362 = vmatmul.mubr.msk.bf16.gmra.mxu0 %vm8415_vm0, %v2816_v48  ;;  %v5903_v6 = vcombine.low %v5895_v49, %v5902_v54  ;;  %v5944_v8 = vrot.slane %v5936_v55, %v14254_v7  ;;  %v2841_v9 = vrot.slane %v2819_v56, %v14254_v7  ;;  %v2848_v10 = vrot.slane %v2820_v57, %v14254_v7  ;;  %v207_v49 = vld [vmem:[#allocation3 + $0x80] sm:$0x1]  ;;  %v209_v55 = vld [vmem:[#allocation3 + $0x82] sm:$0x1]  ;;  %v210_v56 = vld [vmem:[#allocation3 + $0x83] sm:$0x1] }
  0x7d   :  { %v5951_v13 = vrot.slane %v5937_v61, %v14254_v7  ;;  %v2849_v14 = vcombine.low %v2827_v62, %v2834_v63  ;;  %v2867_v15 = vcombine.low %v201_v52, %v202_v53  ;;  %v2868_v16 = vcombine.low %v203_v58, %v204_v59  ;;  %v211_v57 = vld [vmem:[#allocation3 + $0x84] sm:$0x1]  ;;  %v212_v62 = vld [vmem:[#allocation3 + $0x85] sm:$0x1]  ;;  %v213_v63 = vld [vmem:[#allocation3 + $0x86] sm:$0x1] }
  0x7e   :  { %13489 = vmatprep.mubr.msk.bf16.mxu1 %vm8415_vm0, %v5903_v6  ;;  %v2850_v20 = vcombine.low %v2841_v9, %v2848_v10  ;;  %v2869_v21 = vcombine.low %v205_v60, %v206_v1  ;;  %v2876_v22 = vrot.slane %v2866_v2, %v14254_v7  ;;  %v5953_v24 = vcombine.low %v703_v3, %v704_v5  ;;  %v214_v1 = vld [vmem:[#allocation3 + $0x87] sm:$0x1]  ;;  %v216_v9 = vld [vmem:[#allocation3 + $0x89] sm:$0x1] }
  0x7f   :  { %v5952_v27 = vcombine.low %v5944_v8, %v5951_v13  ;;  %v2857_v28 = vrot.slane %v2849_v14, %v14254_v7  ;;  %v2883_v29 = vrot.slane %v2867_v15, %v14254_v7  ;;  %v2890_v30 = vrot.slane %v2868_v16, %v14254_v7  ;;  %v215_v8 = vld [vmem:[#allocation3 + $0x88] sm:$0x1]  ;;  %v217_v14 = vld [vmem:[#allocation3 + $0x8a] sm:$0x1]  ;;  %v218_v15 = vld [vmem:[#allocation3 + $0x8b] sm:$0x1] }
  0x80   :  { %v2864_v32 = vrot.slane %v2850_v20, %v14254_v7  ;;  %v2897_v33 = vrot.slane %v2869_v21, %v14254_v7  ;;  %v5954_v34 = vcombine.low %v705_v11, %v706_v12  ;;  %v5955_v35 = vcombine.low %v707_v17, %v708_v18  ;;  %v219_v20 = vld [vmem:[#allocation3 + $0x8c] sm:$0x1]  ;;  %v220_v21 = vld [vmem:[#allocation3 + $0x8d] sm:$0x1] }
  0x81   :  { %13490 = vmatmul.mubr.msk.bf16.gmra.mxu1 %vm8415_vm0, %v5952_v27  ;;  %v2898_v39 = vcombine.low %v2876_v22, %v2883_v29  ;;  %v5956_v40 = vcombine.low %v709_v19, %v710_v23  ;;  %v5963_v41 = vrot.slane %v5953_v24, %v14254_v7  ;;  %v6002_v44 = vcombine.low %v711_v25, %v712_v26  ;;  %v221_v22 = vld [vmem:[#allocation3 + $0x8e] sm:$0x1]  ;;  %v222_v26 = vld [vmem:[#allocation3 + $0x8f] sm:$0x1]  ;;  %v720_v29 = vld [vmem:[#allocation3 + $0x281] sm:$0x1] }
  0x82   :  { %v2865_v45 = vcombine.low %v2857_v28, %v2864_v32  ;;  %v2899_v46 = vcombine.low %v2890_v30, %v2897_v33  ;;  %v5970_v47 = vrot.slane %v5954_v34, %v14254_v7  ;;  %v5977_v48 = vrot.slane %v5955_v35, %v14254_v7  ;;  %v719_v28 = vld [vmem:[#allocation3 + $0x280] sm:$0x1]  ;;  %v721_v34 = vld [vmem:[#allocation3 + $0x282] sm:$0x1]  ;;  %v722_v35 = vld [vmem:[#allocation3 + $0x283] sm:$0x1] }
  0x83   :  { %v2906_v51 = vrot.slane %v2898_v39, %v14254_v7  ;;  %v5984_v52 = vrot.slane %v5956_v40, %v14254_v7  ;;  %v6003_v53 = vcombine.low %v713_v31, %v714_v36  ;;  %v6004_v54 = vcombine.low %v715_v37, %v716_v38  ;;  %v723_v40 = vld [vmem:[#allocation3 + $0x284] sm:$0x1] }
  0x84   :  { %13365 = vmatprep.mubr.msk.bf16.mxu0 %vm8415_vm0, %v2865_v45  ;;  %v2913_v58 = vrot.slane %v2899_v46, %v14254_v7  ;;  %v5985_v59 = vcombine.low %v5963_v41, %v5970_v47  ;;  %v6005_v60 = vcombine.low %v717_v42, %v718_v43  ;;  %v6012_v61 = vrot.slane %v6002_v44, %v14254_v7  ;;  %v724_v41 = vld [vmem:[#allocation3 + $0x285] sm:$0x1]  ;;  %v725_v42 = vld [vmem:[#allocation3 + $0x286] sm:$0x1]  ;;  %v726_v46 = vld [vmem:[#allocation3 + $0x287] sm:$0x1] }
  0x85   :  { %v5986_v2 = vcombine.low %v5977_v48, %v5984_v52  ;;  %v6019_v3 = vrot.slane %v6003_v53, %v14254_v7  ;;  %v6026_v5 = vrot.slane %v6004_v54, %v14254_v7  ;;  %v2915_v6 = vcombine.low %v207_v49, %v208_v50  ;;  %v727_v48 = vld [vmem:[#allocation3 + $0x288] sm:$0x1]  ;;  %v728_v49 = vld [vmem:[#allocation3 + $0x289] sm:$0x1]  ;;  %v729_v54 = vld [vmem:[#allocation3 + $0x28a] sm:$0x1] }
  0x86   :  { %v2914_v10 = vcombine.low %v2906_v51, %v2913_v58  ;;  %v5993_v11 = vrot.slane %v5985_v59, %v14254_v7  ;;  %v6033_v12 = vrot.slane %v6005_v60, %v14254_v7  ;;  %v2916_v13 = vcombine.low %v209_v55, %v210_v56  ;;  %v730_v59 = vld [vmem:[#allocation3 + $0x28b] sm:$0x1]  ;;  %v731_v60 = vld [vmem:[#allocation3 + $0x28c] sm:$0x1] }
  0x87   :  { %v6000_v16 = vrot.slane %v5986_v2, %v14254_v7  ;;  %v6034_v17 = vcombine.low %v6012_v61, %v6019_v3  ;;  %v2917_v18 = vcombine.low %v211_v57, %v212_v62  ;;  %v2918_v19 = vcombine.low %v213_v63, %v214_v1  ;;  %v732_v61 = vld [vmem:[#allocation3 + $0x28d] sm:$0x1]  ;;  %v733_v2 = vld [vmem:[#allocation3 + $0x28e] sm:$0x1]  ;;  %v734_v3 = vld [vmem:[#allocation3 + $0x28f] sm:$0x1] }
  0x88   :  { %13366 = vmatmul.mubr.msk.bf16.gmra.mxu0 %vm8415_vm0, %v2914_v10  ;;  %v6035_v23 = vcombine.low %v6026_v5, %v6033_v12  ;;  %v2925_v24 = vrot.slane %v2915_v6, %v14254_v7  ;;  %v2932_v25 = vrot.slane %v2916_v13, %v14254_v7  ;;  %v2964_v27 = vcombine.low %v215_v8, %v216_v9  ;;  %v224_v12 = vld [vmem:[#allocation3 + $0x91] sm:$0x1] }
  0x89   :  { %v6001_v30 = vcombine.low %v5993_v11, %v6000_v16  ;;  %v6042_v31 = vrot.slane %v6034_v17, %v14254_v7  ;;  %v2939_v32 = vrot.slane %v2917_v18, %v14254_v7  ;;  %v2946_v33 = vrot.slane %v2918_v19, %v14254_v7  ;;  %v223_v11 = vld [vmem:[#allocation3 + $0x90] sm:$0x1]  ;;  %v225_v17 = vld [vmem:[#allocation3 + $0x92] sm:$0x1]  ;;  %v226_v18 = vld [vmem:[#allocation3 + $0x93] sm:$0x1] }
  0x8a   :  { %v6049_v36 = vrot.slane %v6035_v23, %v14254_v7  ;;  %v2947_v37 = vcombine.low %v2925_v24, %v2932_v25  ;;  %v2965_v38 = vcombine.low %v217_v14, %v218_v15  ;;  %v2966_v39 = vcombine.low %v219_v20, %v220_v21  ;;  %v227_v19 = vld [vmem:[#allocation3 + $0x94] sm:$0x1]  ;;  %v228_v24 = vld [vmem:[#allocation3 + $0x95] sm:$0x1]  ;;  %v229_v25 = vld [vmem:[#allocation3 + $0x96] sm:$0x1] }
  0x8b   :  { %13493 = vmatprep.mubr.msk.bf16.mxu1 %vm8415_vm0, %v6001_v30  ;;  %v2948_v43 = vcombine.low %v2939_v32, %v2946_v33  ;;  %v2967_v44 = vcombine.low %v221_v22, %v222_v26  ;;  %v2974_v45 = vrot.slane %v2964_v27, %v14254_v7  ;;  %v6051_v47 = vcombine.low %v719_v28, %v720_v29  ;;  %v230_v26 = vld [vmem:[#allocation3 + $0x97] sm:$0x1]  ;;  %v232_v32 = vld [vmem:[#allocation3 + $0x99] sm:$0x1] }
  0x8c   :  { %v6050_v50 = vcombine.low %v6042_v31, %v6049_v36  ;;  %v2955_v51 = vrot.slane %v2947_v37, %v14254_v7  ;;  %v2981_v52 = vrot.slane %v2965_v38, %v14254_v7  ;;  %v2988_v53 = vrot.slane %v2966_v39, %v14254_v7  ;;  %v231_v31 = vld [vmem:[#allocation3 + $0x98] sm:$0x1]  ;;  %v233_v37 = vld [vmem:[#allocation3 + $0x9a] sm:$0x1]  ;;  %v234_v38 = vld [vmem:[#allocation3 + $0x9b] sm:$0x1] }
  0x8d   :  { %v2962_v55 = vrot.slane %v2948_v43, %v14254_v7  ;;  %v2995_v56 = vrot.slane %v2967_v44, %v14254_v7  ;;  %v6052_v57 = vcombine.low %v721_v34, %v722_v35  ;;  %v6053_v58 = vcombine.low %v723_v40, %v724_v41  ;;  %v235_v43 = vld [vmem:[#allocation3 + $0x9c] sm:$0x1]  ;;  %v236_v44 = vld [vmem:[#allocation3 + $0x9d] sm:$0x1] }
  0x8e   :  { %13494 = vmatmul.mubr.msk.bf16.gmra.mxu1 %vm8415_vm0, %v6050_v50  ;;  %v2996_v62 = vcombine.low %v2974_v45, %v2981_v52  ;;  %v6054_v63 = vcombine.low %v725_v42, %v726_v46  ;;  %v6061_v1 = vrot.slane %v6051_v47, %v14254_v7  ;;  %v6100_v5 = vcombine.low %v727_v48, %v728_v49  ;;  %v237_v45 = vld [vmem:[#allocation3 + $0x9e] sm:$0x1]  ;;  %v238_v49 = vld [vmem:[#allocation3 + $0x9f] sm:$0x1]  ;;  %v736_v52 = vld [vmem:[#allocation3 + $0x291] sm:$0x1] }
  0x8f   :  { %v2963_v6 = vcombine.low %v2955_v51, %v2962_v55  ;;  %v2997_v8 = vcombine.low %v2988_v53, %v2995_v56  ;;  %v6068_v9 = vrot.slane %v6052_v57, %v14254_v7  ;;  %v6075_v10 = vrot.slane %v6053_v58, %v14254_v7  ;;  %v735_v51 = vld [vmem:[#allocation3 + $0x290] sm:$0x1]  ;;  %v737_v57 = vld [vmem:[#allocation3 + $0x292] sm:$0x1]  ;;  %v738_v58 = vld [vmem:[#allocation3 + $0x293] sm:$0x1] }
  0x90   :  { %v3004_v13 = vrot.slane %v2996_v62, %v14254_v7  ;;  %v6082_v14 = vrot.slane %v6054_v63, %v14254_v7  ;;  %v6101_v15 = vcombine.low %v729_v54, %v730_v59  ;;  %v6102_v16 = vcombine.low %v731_v60, %v732_v61  ;;  %v739_v63 = vld [vmem:[#allocation3 + $0x294] sm:$0x1] }
  0x91   :  { %13369 = vmatprep.mubr.msk.bf16.mxu0 %vm8415_vm0, %v2963_v6  ;;  %v3011_v20 = vrot.slane %v2997_v8, %v14254_v7  ;;  %v6083_v21 = vcombine.low %v6061_v1, %v6068_v9  ;;  %v6103_v22 = vcombine.low %v733_v2, %v734_v3  ;;  %v6110_v23 = vrot.slane %v6100_v5, %v14254_v7  ;;  %v740_v1 = vld [vmem:[#allocation3 + $0x295] sm:$0x1]  ;;  %v741_v2 = vld [vmem:[#allocation3 + $0x296] sm:$0x1]  ;;  %v742_v8 = vld [vmem:[#allocation3 + $0x297] sm:$0x1] }
  0x92   :  { %v6084_v27 = vcombine.low %v6075_v10, %v6082_v14  ;;  %v6117_v28 = vrot.slane %v6101_v15, %v14254_v7  ;;  %v6124_v29 = vrot.slane %v6102_v16, %v14254_v7  ;;  %v3013_v30 = vcombine.low %v223_v11, %v224_v12  ;;  %v743_v10 = vld [vmem:[#allocation3 + $0x298] sm:$0x1]  ;;  %v744_v11 = vld [vmem:[#allocation3 + $0x299] sm:$0x1]  ;;  %v745_v16 = vld [vmem:[#allocation3 + $0x29a] sm:$0x1] }
  0x93   :  { %v3012_v33 = vcombine.low %v3004_v13, %v3011_v20  ;;  %v6091_v34 = vrot.slane %v6083_v21, %v14254_v7  ;;  %v6131_v35 = vrot.slane %v6103_v22, %v14254_v7  ;;  %v3014_v36 = vcombine.low %v225_v17, %v226_v18  ;;  %v746_v21 = vld [vmem:[#allocation3 + $0x29b] sm:$0x1]  ;;  %v747_v22 = vld [vmem:[#allocation3 + $0x29c] sm:$0x1] }
  0x94   :  { %v6098_v39 = vrot.slane %v6084_v27, %v14254_v7  ;;  %v6132_v40 = vcombine.low %v6110_v23, %v6117_v28  ;;  %v3015_v41 = vcombine.low %v227_v19, %v228_v24  ;;  %v3016_v42 = vcombine.low %v229_v25, %v230_v26  ;;  %v748_v23 = vld [vmem:[#allocation3 + $0x29d] sm:$0x1]  ;;  %v749_v27 = vld [vmem:[#allocation3 + $0x29e] sm:$0x1]  ;;  %v750_v28 = vld [vmem:[#allocation3 + $0x29f] sm:$0x1] }
  0x95   :  { %13370 = vmatmul.mubr.msk.bf16.gmra.mxu0 %vm8415_vm0, %v3012_v33  ;;  %v6133_v46 = vcombine.low %v6124_v29, %v6131_v35  ;;  %v3023_v47 = vrot.slane %v3013_v30, %v14254_v7  ;;  %v3030_v48 = vrot.slane %v3014_v36, %v14254_v7  ;;  %v3062_v50 = vcombine.low %v231_v31, %v232_v32  ;;  %v240_v35 = vld [vmem:[#allocation3 + $0xa1] sm:$0x1] }
  0x96   :  { %v6099_v53 = vcombine.low %v6091_v34, %v6098_v39  ;;  %v6140_v54 = vrot.slane %v6132_v40, %v14254_v7  ;;  %v3037_v55 = vrot.slane %v3015_v41, %v14254_v7  ;;  %v3044_v56 = vrot.slane %v3016_v42, %v14254_v7  ;;  %v239_v34 = vld [vmem:[#allocation3 + $0xa0] sm:$0x1]  ;;  %v241_v40 = vld [vmem:[#allocation3 + $0xa2] sm:$0x1]  ;;  %v242_v41 = vld [vmem:[#allocation3 + $0xa3] sm:$0x1] }
  0x97   :  { %v6147_v59 = vrot.slane %v6133_v46, %v14254_v7  ;;  %v3045_v60 = vcombine.low %v3023_v47, %v3030_v48  ;;  %v3063_v61 = vcombine.low %v233_v37, %v234_v38  ;;  %v3064_v62 = vcombine.low %v235_v43, %v236_v44  ;;  %v243_v42 = vld [vmem:[#allocation3 + $0xa4] sm:$0x1]  ;;  %v244_v47 = vld [vmem:[#allocation3 + $0xa5] sm:$0x1]  ;;  %v245_v48 = vld [vmem:[#allocation3 + $0xa6] sm:$0x1] }
  0x98   :  { %13497 = vmatprep.mubr.msk.bf16.mxu1 %vm8415_vm0, %v6099_v53  ;;  %v3046_v3 = vcombine.low %v3037_v55, %v3044_v56  ;;  %v3065_v5 = vcombine.low %v237_v45, %v238_v49  ;;  %v3072_v6 = vrot.slane %v3062_v50, %v14254_v7  ;;  %v6149_v9 = vcombine.low %v735_v51, %v736_v52  ;;  %v246_v49 = vld [vmem:[#allocation3 + $0xa7] sm:$0x1]  ;;  %v248_v55 = vld [vmem:[#allocation3 + $0xa9] sm:$0x1] }
  0x99   :  { %v6148_v12 = vcombine.low %v6140_v54, %v6147_v59  ;;  %v3053_v13 = vrot.slane %v3045_v60, %v14254_v7  ;;  %v3079_v14 = vrot.slane %v3063_v61, %v14254_v7  ;;  %v3086_v15 = vrot.slane %v3064_v62, %v14254_v7  ;;  %v247_v54 = vld [vmem:[#allocation3 + $0xa8] sm:$0x1]  ;;  %v249_v60 = vld [vmem:[#allocation3 + $0xaa] sm:$0x1]  ;;  %v250_v61 = vld [vmem:[#allocation3 + $0xab] sm:$0x1] }
  0x9a   :  { %v3060_v17 = vrot.slane %v3046_v3, %v14254_v7  ;;  %v3093_v18 = vrot.slane %v3065_v5, %v14254_v7  ;;  %v6150_v19 = vcombine.low %v737_v57, %v738_v58  ;;  %v6151_v20 = vcombine.low %v739_v63, %v740_v1  ;;  %v251_v3 = vld [vmem:[#allocation3 + $0xac] sm:$0x1]  ;;  %v252_v5 = vld [vmem:[#allocation3 + $0xad] sm:$0x1] }
  0x9b   :  { %13498 = vmatmul.mubr.msk.bf16.gmra.mxu1 %vm8415_vm0, %v6148_v12  ;;  %v3094_v24 = vcombine.low %v3072_v6, %v3079_v14  ;;  %v6152_v25 = vcombine.low %v741_v2, %v742_v8  ;;  %v6159_v26 = vrot.slane %v6149_v9, %v14254_v7  ;;  %v6198_v29 = vcombine.low %v743_v10, %v744_v11  ;;  %v253_v6 = vld [vmem:[#allocation3 + $0xae] sm:$0x1]  ;;  %v254_v11 = vld [vmem:[#allocation3 + $0xaf] sm:$0x1]  ;;  %v752_v14 = vld [vmem:[#allocation3 + $0x2a1] sm:$0x1] }
  0x9c   :  { %v3061_v30 = vcombine.low %v3053_v13, %v3060_v17  ;;  %v3095_v31 = vcombine.low %v3086_v15, %v3093_v18  ;;  %v6166_v32 = vrot.slane %v6150_v19, %v14254_v7  ;;  %v6173_v33 = vrot.slane %v6151_v20, %v14254_v7  ;;  %v751_v13 = vld [vmem:[#allocation3 + $0x2a0] sm:$0x1]  ;;  %v753_v19 = vld [vmem:[#allocation3 + $0x2a2] sm:$0x1]  ;;  %v754_v20 = vld [vmem:[#allocation3 + $0x2a3] sm:$0x1] }
  0x9d   :  { %v3102_v36 = vrot.slane %v3094_v24, %v14254_v7  ;;  %v6180_v37 = vrot.slane %v6152_v25, %v14254_v7  ;;  %v6199_v38 = vcombine.low %v745_v16, %v746_v21  ;;  %v6200_v39 = vcombine.low %v747_v22, %v748_v23  ;;  %v755_v25 = vld [vmem:[#allocation3 + $0x2a4] sm:$0x1] }
  0x9e   :  { %13373 = vmatprep.mubr.msk.bf16.mxu0 %vm8415_vm0, %v3061_v30  ;;  %v3109_v43 = vrot.slane %v3095_v31, %v14254_v7  ;;  %v6181_v44 = vcombine.low %v6159_v26, %v6166_v32  ;;  %v6201_v45 = vcombine.low %v749_v27, %v750_v28  ;;  %v6208_v46 = vrot.slane %v6198_v29, %v14254_v7  ;;  %v756_v26 = vld [vmem:[#allocation3 + $0x2a5] sm:$0x1]  ;;  %v757_v27 = vld [vmem:[#allocation3 + $0x2a6] sm:$0x1]  ;;  %v758_v31 = vld [vmem:[#allocation3 + $0x2a7] sm:$0x1] }
  0x9f   :  { %v6182_v50 = vcombine.low %v6173_v33, %v6180_v37  ;;  %v6215_v51 = vrot.slane %v6199_v38, %v14254_v7  ;;  %v6222_v52 = vrot.slane %v6200_v39, %v14254_v7  ;;  %v3111_v53 = vcombine.low %v239_v34, %v240_v35  ;;  %v759_v33 = vld [vmem:[#allocation3 + $0x2a8] sm:$0x1]  ;;  %v760_v34 = vld [vmem:[#allocation3 + $0x2a9] sm:$0x1]  ;;  %v761_v39 = vld [vmem:[#allocation3 + $0x2aa] sm:$0x1] }
  0xa0   :  { %v3110_v56 = vcombine.low %v3102_v36, %v3109_v43  ;;  %v6189_v57 = vrot.slane %v6181_v44, %v14254_v7  ;;  %v6229_v58 = vrot.slane %v6201_v45, %v14254_v7  ;;  %v3112_v59 = vcombine.low %v241_v40, %v242_v41  ;;  %v762_v44 = vld [vmem:[#allocation3 + $0x2ab] sm:$0x1]  ;;  %v763_v45 = vld [vmem:[#allocation3 + $0x2ac] sm:$0x1] }
  0xa1   :  { %v6196_v62 = vrot.slane %v6182_v50, %v14254_v7  ;;  %v6230_v63 = vcombine.low %v6208_v46, %v6215_v51  ;;  %v3113_v1 = vcombine.low %v243_v42, %v244_v47  ;;  %v3114_v2 = vcombine.low %v245_v48, %v246_v49  ;;  %v764_v46 = vld [vmem:[#allocation3 + $0x2ad] sm:$0x1]  ;;  %v765_v50 = vld [vmem:[#allocation3 + $0x2ae] sm:$0x1]  ;;  %v766_v51 = vld [vmem:[#allocation3 + $0x2af] sm:$0x1] }
  0xa2   :  { %13374 = vmatmul.mubr.msk.bf16.gmra.mxu0 %vm8415_vm0, %v3110_v56  ;;  %v6231_v8 = vcombine.low %v6222_v52, %v6229_v58  ;;  %v3121_v9 = vrot.slane %v3111_v53, %v14254_v7  ;;  %v3128_v10 = vrot.slane %v3112_v59, %v14254_v7  ;;  %v3160_v12 = vcombine.low %v247_v54, %v248_v55  ;;  %v256_v58 = vld [vmem:[#allocation3 + $0xb1] sm:$0x1] }
  0xa3   :  { %v6197_v15 = vcombine.low %v6189_v57, %v6196_v62  ;;  %v6238_v16 = vrot.slane %v6230_v63, %v14254_v7  ;;  %v3135_v17 = vrot.slane %v3113_v1, %v14254_v7  ;;  %v3142_v18 = vrot.slane %v3114_v2, %v14254_v7  ;;  %v255_v57 = vld [vmem:[#allocation3 + $0xb0] sm:$0x1]  ;;  %v257_v63 = vld [vmem:[#allocation3 + $0xb2] sm:$0x1]  ;;  %v258_v1 = vld [vmem:[#allocation3 + $0xb3] sm:$0x1] }
  0xa4   :  { %v6245_v21 = vrot.slane %v6231_v8, %v14254_v7  ;;  %v3143_v22 = vcombine.low %v3121_v9, %v3128_v10  ;;  %v3161_v23 = vcombine.low %v249_v60, %v250_v61  ;;  %v3162_v24 = vcombine.low %v251_v3, %v252_v5  ;;  %v259_v2 = vld [vmem:[#allocation3 + $0xb4] sm:$0x1]  ;;  %v260_v9 = vld [vmem:[#allocation3 + $0xb5] sm:$0x1]  ;;  %v261_v10 = vld [vmem:[#allocation3 + $0xb6] sm:$0x1] }
  0xa5   :  { %13501 = vmatprep.mubr.msk.bf16.mxu1 %vm8415_vm0, %v6197_v15  ;;  %v3144_v28 = vcombine.low %v3135_v17, %v3142_v18  ;;  %v3163_v29 = vcombine.low %v253_v6, %v254_v11  ;;  %v3170_v30 = vrot.slane %v3160_v12, %v14254_v7  ;;  %v6247_v32 = vcombine.low %v751_v13, %v752_v14  ;;  %v262_v11 = vld [vmem:[#allocation3 + $0xb7] sm:$0x1]  ;;  %v264_v17 = vld [vmem:[#allocation3 + $0xb9] sm:$0x1] }
  0xa6   :  { %v6246_v35 = vcombine.low %v6238_v16, %v6245_v21  ;;  %v3151_v36 = vrot.slane %v3143_v22, %v14254_v7  ;;  %v3177_v37 = vrot.slane %v3161_v23, %v14254_v7  ;;  %v3184_v38 = vrot.slane %v3162_v24, %v14254_v7  ;;  %v263_v16 = vld [vmem:[#allocation3 + $0xb8] sm:$0x1]  ;;  %v265_v22 = vld [vmem:[#allocation3 + $0xba] sm:$0x1]  ;;  %v266_v23 = vld [vmem:[#allocation3 + $0xbb] sm:$0x1] }
  0xa7   :  { %v3158_v40 = vrot.slane %v3144_v28, %v14254_v7  ;;  %v3191_v41 = vrot.slane %v3163_v29, %v14254_v7  ;;  %v6248_v42 = vcombine.low %v753_v19, %v754_v20  ;;  %v6249_v43 = vcombine.low %v755_v25, %v756_v26  ;;  %v267_v28 = vld [vmem:[#allocation3 + $0xbc] sm:$0x1]  ;;  %v268_v29 = vld [vmem:[#allocation3 + $0xbd] sm:$0x1] }
  0xa8   :  { %13502 = vmatmul.mubr.msk.bf16.gmra.mxu1 %vm8415_vm0, %v6246_v35  ;;  %v3192_v47 = vcombine.low %v3170_v30, %v3177_v37  ;;  %v6250_v48 = vcombine.low %v757_v27, %v758_v31  ;;  %v6257_v49 = vrot.slane %v6247_v32, %v14254_v7  ;;  %v6296_v52 = vcombine.low %v759_v33, %v760_v34  ;;  %v269_v30 = vld [vmem:[#allocation3 + $0xbe] sm:$0x1]  ;;  %v270_v34 = vld [vmem:[#allocation3 + $0xbf] sm:$0x1]  ;;  %v768_v37 = vld [vmem:[#allocation3 + $0x2b1] sm:$0x1] }
  0xa9   :  { %v3159_v53 = vcombine.low %v3151_v36, %v3158_v40  ;;  %v3193_v54 = vcombine.low %v3184_v38, %v3191_v41  ;;  %v6264_v55 = vrot.slane %v6248_v42, %v14254_v7  ;;  %v6271_v56 = vrot.slane %v6249_v43, %v14254_v7  ;;  %v767_v36 = vld [vmem:[#allocation3 + $0x2b0] sm:$0x1]  ;;  %v769_v42 = vld [vmem:[#allocation3 + $0x2b2] sm:$0x1]  ;;  %v770_v43 = vld [vmem:[#allocation3 + $0x2b3] sm:$0x1] }
  0xaa   :  { %v3200_v59 = vrot.slane %v3192_v47, %v14254_v7  ;;  %v6278_v60 = vrot.slane %v6250_v48, %v14254_v7  ;;  %v6297_v61 = vcombine.low %v761_v39, %v762_v44  ;;  %v6298_v62 = vcombine.low %v763_v45, %v764_v46  ;;  %v771_v48 = vld [vmem:[#allocation3 + $0x2b4] sm:$0x1] }
  0xab   :  { %13377 = vmatprep.mubr.msk.bf16.mxu0 %vm8415_vm0, %v3159_v53  ;;  %v3207_v3 = vrot.slane %v3193_v54, %v14254_v7  ;;  %v6279_v5 = vcombine.low %v6257_v49, %v6264_v55  ;;  %v6299_v6 = vcombine.low %v765_v50, %v766_v51  ;;  %v6306_v8 = vrot.slane %v6296_v52, %v14254_v7  ;;  %v772_v49 = vld [vmem:[#allocation3 + $0x2b5] sm:$0x1]  ;;  %v773_v50 = vld [vmem:[#allocation3 + $0x2b6] sm:$0x1]  ;;  %v774_v54 = vld [vmem:[#allocation3 + $0x2b7] sm:$0x1] }
  0xac   :  { %v6280_v12 = vcombine.low %v6271_v56, %v6278_v60  ;;  %v6313_v13 = vrot.slane %v6297_v61, %v14254_v7  ;;  %v6320_v14 = vrot.slane %v6298_v62, %v14254_v7  ;;  %v3209_v15 = vcombine.low %v255_v57, %v256_v58  ;;  %v775_v56 = vld [vmem:[#allocation3 + $0x2b8] sm:$0x1]  ;;  %v776_v57 = vld [vmem:[#allocation3 + $0x2b9] sm:$0x1]  ;;  %v777_v62 = vld [vmem:[#allocation3 + $0x2ba] sm:$0x1] }
  0xad   :  { %v3208_v18 = vcombine.low %v3200_v59, %v3207_v3  ;;  %v6287_v19 = vrot.slane %v6279_v5, %v14254_v7  ;;  %v6327_v20 = vrot.slane %v6299_v6, %v14254_v7  ;;  %v3210_v21 = vcombine.low %v257_v63, %v258_v1  ;;  %v778_v5 = vld [vmem:[#allocation3 + $0x2bb] sm:$0x1]  ;;  %v779_v6 = vld [vmem:[#allocation3 + $0x2bc] sm:$0x1] }
  0xae   :  { %v6294_v24 = vrot.slane %v6280_v12, %v14254_v7  ;;  %v6328_v25 = vcombine.low %v6306_v8, %v6313_v13  ;;  %v3211_v26 = vcombine.low %v259_v2, %v260_v9  ;;  %v3212_v27 = vcombine.low %v261_v10, %v262_v11  ;;  %v780_v8 = vld [vmem:[#allocation3 + $0x2bd] sm:$0x1]  ;;  %v781_v12 = vld [vmem:[#allocation3 + $0x2be] sm:$0x1]  ;;  %v782_v13 = vld [vmem:[#allocation3 + $0x2bf] sm:$0x1] }
  0xaf   :  { %13378 = vmatmul.mubr.msk.bf16.gmra.mxu0 %vm8415_vm0, %v3208_v18  ;;  %v6329_v31 = vcombine.low %v6320_v14, %v6327_v20  ;;  %v3219_v32 = vrot.slane %v3209_v15, %v14254_v7  ;;  %v3226_v33 = vrot.slane %v3210_v21, %v14254_v7  ;;  %v3258_v35 = vcombine.low %v263_v16, %v264_v17  ;;  %v272_v20 = vld [vmem:[#allocation3 + $0xc1] sm:$0x1] }
  0xb0   :  { %v6295_v38 = vcombine.low %v6287_v19, %v6294_v24  ;;  %v6336_v39 = vrot.slane %v6328_v25, %v14254_v7  ;;  %v3233_v40 = vrot.slane %v3211_v26, %v14254_v7  ;;  %v3240_v41 = vrot.slane %v3212_v27, %v14254_v7  ;;  %v271_v19 = vld [vmem:[#allocation3 + $0xc0] sm:$0x1]  ;;  %v273_v25 = vld [vmem:[#allocation3 + $0xc2] sm:$0x1]  ;;  %v274_v26 = vld [vmem:[#allocation3 + $0xc3] sm:$0x1] }
  0xb1   :  { %v6343_v44 = vrot.slane %v6329_v31, %v14254_v7  ;;  %v3241_v45 = vcombine.low %v3219_v32, %v3226_v33  ;;  %v3259_v46 = vcombine.low %v265_v22, %v266_v23  ;;  %v3260_v47 = vcombine.low %v267_v28, %v268_v29  ;;  %v275_v27 = vld [vmem:[#allocation3 + $0xc4] sm:$0x1]  ;;  %v276_v32 = vld [vmem:[#allocation3 + $0xc5] sm:$0x1]  ;;  %v277_v33 = vld [vmem:[#allocation3 + $0xc6] sm:$0x1] }
  0xb2   :  { %13505 = vmatprep.mubr.msk.bf16.mxu1 %vm8415_vm0, %v6295_v38  ;;  %v3242_v51 = vcombine.low %v3233_v40, %v3240_v41  ;;  %v3261_v52 = vcombine.low %v269_v30, %v270_v34  ;;  %v3268_v53 = vrot.slane %v3258_v35, %v14254_v7  ;;  %v6345_v55 = vcombine.low %v767_v36, %v768_v37  ;;  %v278_v34 = vld [vmem:[#allocation3 + $0xc7] sm:$0x1]  ;;  %v280_v40 = vld [vmem:[#allocation3 + $0xc9] sm:$0x1] }
  0xb3   :  { %v6344_v58 = vcombine.low %v6336_v39, %v6343_v44  ;;  %v3249_v59 = vrot.slane %v3241_v45, %v14254_v7  ;;  %v3275_v60 = vrot.slane %v3259_v46, %v14254_v7  ;;  %v3282_v61 = vrot.slane %v3260_v47, %v14254_v7  ;;  %v279_v39 = vld [vmem:[#allocation3 + $0xc8] sm:$0x1]  ;;  %v281_v45 = vld [vmem:[#allocation3 + $0xca] sm:$0x1]  ;;  %v282_v46 = vld [vmem:[#allocation3 + $0xcb] sm:$0x1] }
  0xb4   :  { %v3256_v63 = vrot.slane %v3242_v51, %v14254_v7  ;;  %v3289_v1 = vrot.slane %v3261_v52, %v14254_v7  ;;  %v6346_v2 = vcombine.low %v769_v42, %v770_v43  ;;  %v6347_v3 = vcombine.low %v771_v48, %v772_v49  ;;  %v283_v51 = vld [vmem:[#allocation3 + $0xcc] sm:$0x1]  ;;  %v284_v52 = vld [vmem:[#allocation3 + $0xcd] sm:$0x1] }
  0xb5   :  { %13506 = vmatmul.mubr.msk.bf16.gmra.mxu1 %vm8415_vm0, %v6344_v58  ;;  %v3290_v9 = vcombine.low %v3268_v53, %v3275_v60  ;;  %v6348_v10 = vcombine.low %v773_v50, %v774_v54  ;;  %v6355_v11 = vrot.slane %v6345_v55, %v14254_v7  ;;  %v6394_v14 = vcombine.low %v775_v56, %v776_v57  ;;  %v285_v53 = vld [vmem:[#allocation3 + $0xce] sm:$0x1]  ;;  %v286_v57 = vld [vmem:[#allocation3 + $0xcf] sm:$0x1]  ;;  %v784_v60 = vld [vmem:[#allocation3 + $0x2c1] sm:$0x1] }
  0xb6   :  { %v3257_v15 = vcombine.low %v3249_v59, %v3256_v63  ;;  %v3291_v16 = vcombine.low %v3282_v61, %v3289_v1  ;;  %v6362_v17 = vrot.slane %v6346_v2, %v14254_v7  ;;  %v6369_v18 = vrot.slane %v6347_v3, %v14254_v7  ;;  %v783_v59 = vld [vmem:[#allocation3 + $0x2c0] sm:$0x1]  ;;  %v785_v2 = vld [vmem:[#allocation3 + $0x2c2] sm:$0x1]  ;;  %v786_v3 = vld [vmem:[#allocation3 + $0x2c3] sm:$0x1] }
  0xb7   :  { %v3298_v21 = vrot.slane %v3290_v9, %v14254_v7  ;;  %v6376_v22 = vrot.slane %v6348_v10, %v14254_v7  ;;  %v6395_v23 = vcombine.low %v777_v62, %v778_v5  ;;  %v6396_v24 = vcombine.low %v779_v6, %v780_v8  ;;  %v787_v10 = vld [vmem:[#allocation3 + $0x2c4] sm:$0x1] }
  0xb8   :  { %13381 = vmatprep.mubr.msk.bf16.mxu0 %vm8415_vm0, %v3257_v15  ;;  %v3305_v28 = vrot.slane %v3291_v16, %v14254_v7  ;;  %v6377_v29 = vcombine.low %v6355_v11, %v6362_v17  ;;  %v6397_v30 = vcombine.low %v781_v12, %v782_v13  ;;  %v6404_v31 = vrot.slane %v6394_v14, %v14254_v7  ;;  %v788_v11 = vld [vmem:[#allocation3 + $0x2c5] sm:$0x1]  ;;  %v789_v12 = vld [vmem:[#allocation3 + $0x2c6] sm:$0x1]  ;;  %v790_v16 = vld [vmem:[#allocation3 + $0x2c7] sm:$0x1] }
  0xb9   :  { %v6378_v35 = vcombine.low %v6369_v18, %v6376_v22  ;;  %v6411_v36 = vrot.slane %v6395_v23, %v14254_v7  ;;  %v6418_v37 = vrot.slane %v6396_v24, %v14254_v7  ;;  %v3307_v38 = vcombine.low %v271_v19, %v272_v20  ;;  %v791_v18 = vld [vmem:[#allocation3 + $0x2c8] sm:$0x1]  ;;  %v792_v19 = vld [vmem:[#allocation3 + $0x2c9] sm:$0x1]  ;;  %v793_v24 = vld [vmem:[#allocation3 + $0x2ca] sm:$0x1] }
  0xba   :  { %v3306_v41 = vcombine.low %v3298_v21, %v3305_v28  ;;  %v6385_v42 = vrot.slane %v6377_v29, %v14254_v7  ;;  %v6425_v43 = vrot.slane %v6397_v30, %v14254_v7  ;;  %v3308_v44 = vcombine.low %v273_v25, %v274_v26  ;;  %v794_v29 = vld [vmem:[#allocation3 + $0x2cb] sm:$0x1]  ;;  %v795_v30 = vld [vmem:[#allocation3 + $0x2cc] sm:$0x1] }
  0xbb   :  { %v6392_v47 = vrot.slane %v6378_v35, %v14254_v7  ;;  %v6426_v48 = vcombine.low %v6404_v31, %v6411_v36  ;;  %v3309_v49 = vcombine.low %v275_v27, %v276_v32  ;;  %v3310_v50 = vcombine.low %v277_v33, %v278_v34  ;;  %v796_v31 = vld [vmem:[#allocation3 + $0x2cd] sm:$0x1]  ;;  %v797_v35 = vld [vmem:[#allocation3 + $0x2ce] sm:$0x1]  ;;  %v798_v36 = vld [vmem:[#allocation3 + $0x2cf] sm:$0x1] }
  0xbc   :  { %13382 = vmatmul.mubr.msk.bf16.gmra.mxu0 %vm8415_vm0, %v3306_v41  ;;  %v6427_v54 = vcombine.low %v6418_v37, %v6425_v43  ;;  %v3317_v55 = vrot.slane %v3307_v38, %v14254_v7  ;;  %v3324_v56 = vrot.slane %v3308_v44, %v14254_v7  ;;  %v3356_v58 = vcombine.low %v279_v39, %v280_v40  ;;  %v288_v43 = vld [vmem:[#allocation3 + $0xd1] sm:$0x1] }
  0xbd   :  { %v6393_v61 = vcombine.low %v6385_v42, %v6392_v47  ;;  %v6434_v62 = vrot.slane %v6426_v48, %v14254_v7  ;;  %v3331_v63 = vrot.slane %v3309_v49, %v14254_v7  ;;  %v3338_v1 = vrot.slane %v3310_v50, %v14254_v7  ;;  %v287_v42 = vld [vmem:[#allocation3 + $0xd0] sm:$0x1]  ;;  %v289_v48 = vld [vmem:[#allocation3 + $0xd2] sm:$0x1]  ;;  %v290_v49 = vld [vmem:[#allocation3 + $0xd3] sm:$0x1] }
  0xbe   :  { %v6441_v5 = vrot.slane %v6427_v54, %v14254_v7  ;;  %v3339_v6 = vcombine.low %v3317_v55, %v3324_v56  ;;  %v3357_v8 = vcombine.low %v281_v45, %v282_v46  ;;  %v3358_v9 = vcombine.low %v283_v51, %v284_v52  ;;  %v291_v50 = vld [vmem:[#allocation3 + $0xd4] sm:$0x1]  ;;  %v292_v55 = vld [vmem:[#allocation3 + $0xd5] sm:$0x1]  ;;  %v293_v56 = vld [vmem:[#allocation3 + $0xd6] sm:$0x1] }
  0xbf   :  { %13509 = vmatprep.mubr.msk.bf16.mxu1 %vm8415_vm0, %v6393_v61  ;;  %v3340_v13 = vcombine.low %v3331_v63, %v3338_v1  ;;  %v3359_v14 = vcombine.low %v285_v53, %v286_v57  ;;  %v3366_v15 = vrot.slane %v3356_v58, %v14254_v7  ;;  %v6443_v17 = vcombine.low %v783_v59, %v784_v60  ;;  %v294_v57 = vld [vmem:[#allocation3 + $0xd7] sm:$0x1]  ;;  %v296_v63 = vld [vmem:[#allocation3 + $0xd9] sm:$0x1] }
  0xc0   :  { %v6442_v20 = vcombine.low %v6434_v62, %v6441_v5  ;;  %v3347_v21 = vrot.slane %v3339_v6, %v14254_v7  ;;  %v3373_v22 = vrot.slane %v3357_v8, %v14254_v7  ;;  %v3380_v23 = vrot.slane %v3358_v9, %v14254_v7  ;;  %v295_v62 = vld [vmem:[#allocation3 + $0xd8] sm:$0x1]  ;;  %v297_v6 = vld [vmem:[#allocation3 + $0xda] sm:$0x1]  ;;  %v298_v8 = vld [vmem:[#allocation3 + $0xdb] sm:$0x1] }
  0xc1   :  { %v3354_v25 = vrot.slane %v3340_v13, %v14254_v7  ;;  %v3387_v26 = vrot.slane %v3359_v14, %v14254_v7  ;;  %v6444_v27 = vcombine.low %v785_v2, %v786_v3  ;;  %v6445_v28 = vcombine.low %v787_v10, %v788_v11  ;;  %v299_v13 = vld [vmem:[#allocation3 + $0xdc] sm:$0x1]  ;;  %v300_v14 = vld [vmem:[#allocation3 + $0xdd] sm:$0x1] }
  0xc2   :  { %13510 = vmatmul.mubr.msk.bf16.gmra.mxu1 %vm8415_vm0, %v6442_v20  ;;  %v3388_v32 = vcombine.low %v3366_v15, %v3373_v22  ;;  %v6446_v33 = vcombine.low %v789_v12, %v790_v16  ;;  %v6453_v34 = vrot.slane %v6443_v17, %v14254_v7  ;;  %v6492_v37 = vcombine.low %v791_v18, %v792_v19  ;;  %v301_v15 = vld [vmem:[#allocation3 + $0xde] sm:$0x1]  ;;  %v302_v19 = vld [vmem:[#allocation3 + $0xdf] sm:$0x1]  ;;  %v800_v22 = vld [vmem:[#allocation3 + $0x2d1] sm:$0x1] }
  0xc3   :  { %v3355_v38 = vcombine.low %v3347_v21, %v3354_v25  ;;  %v3389_v39 = vcombine.low %v3380_v23, %v3387_v26  ;;  %v6460_v40 = vrot.slane %v6444_v27, %v14254_v7  ;;  %v6467_v41 = vrot.slane %v6445_v28, %v14254_v7  ;;  %v799_v21 = vld [vmem:[#allocation3 + $0x2d0] sm:$0x1]  ;;  %v801_v27 = vld [vmem:[#allocation3 + $0x2d2] sm:$0x1]  ;;  %v802_v28 = vld [vmem:[#allocation3 + $0x2d3] sm:$0x1] }
  0xc4   :  { %v3396_v44 = vrot.slane %v3388_v32, %v14254_v7  ;;  %v6474_v45 = vrot.slane %v6446_v33, %v14254_v7  ;;  %v6493_v46 = vcombine.low %v793_v24, %v794_v29  ;;  %v6494_v47 = vcombine.low %v795_v30, %v796_v31  ;;  %v803_v33 = vld [vmem:[#allocation3 + $0x2d4] sm:$0x1] }
  0xc5   :  { %13385 = vmatprep.mubr.msk.bf16.mxu0 %vm8415_vm0, %v3355_v38  ;;  %v3403_v51 = vrot.slane %v3389_v39, %v14254_v7  ;;  %v6475_v52 = vcombine.low %v6453_v34, %v6460_v40  ;;  %v6495_v53 = vcombine.low %v797_v35, %v798_v36  ;;  %v6502_v54 = vrot.slane %v6492_v37, %v14254_v7  ;;  %v804_v34 = vld [vmem:[#allocation3 + $0x2d5] sm:$0x1]  ;;  %v805_v35 = vld [vmem:[#allocation3 + $0x2d6] sm:$0x1]  ;;  %v806_v39 = vld [vmem:[#allocation3 + $0x2d7] sm:$0x1] }
  0xc6   :  { %v6476_v58 = vcombine.low %v6467_v41, %v6474_v45  ;;  %v6509_v59 = vrot.slane %v6493_v46, %v14254_v7  ;;  %v6516_v60 = vrot.slane %v6494_v47, %v14254_v7  ;;  %v3405_v61 = vcombine.low %v287_v42, %v288_v43  ;;  %v807_v41 = vld [vmem:[#allocation3 + $0x2d8] sm:$0x1]  ;;  %v808_v42 = vld [vmem:[#allocation3 + $0x2d9] sm:$0x1]  ;;  %v809_v47 = vld [vmem:[#allocation3 + $0x2da] sm:$0x1] }
  0xc7   :  { %v3404_v1 = vcombine.low %v3396_v44, %v3403_v51  ;;  %v6483_v2 = vrot.slane %v6475_v52, %v14254_v7  ;;  %v6523_v3 = vrot.slane %v6495_v53, %v14254_v7  ;;  %v3406_v5 = vcombine.low %v289_v48, %v290_v49  ;;  %v810_v52 = vld [vmem:[#allocation3 + $0x2db] sm:$0x1]  ;;  %v811_v53 = vld [vmem:[#allocation3 + $0x2dc] sm:$0x1] }
  0xc8   :  { %v6490_v9 = vrot.slane %v6476_v58, %v14254_v7  ;;  %v6524_v10 = vcombine.low %v6502_v54, %v6509_v59  ;;  %v3407_v11 = vcombine.low %v291_v50, %v292_v55  ;;  %v3408_v12 = vcombine.low %v293_v56, %v294_v57  ;;  %v812_v54 = vld [vmem:[#allocation3 + $0x2dd] sm:$0x1]  ;;  %v813_v58 = vld [vmem:[#allocation3 + $0x2de] sm:$0x1]  ;;  %v814_v59 = vld [vmem:[#allocation3 + $0x2df] sm:$0x1] }
  0xc9   :  { %13386 = vmatmul.mubr.msk.bf16.gmra.mxu0 %vm8415_vm0, %v3404_v1  ;;  %v6525_v16 = vcombine.low %v6516_v60, %v6523_v3  ;;  %v3415_v17 = vrot.slane %v3405_v61, %v14254_v7  ;;  %v3422_v18 = vrot.slane %v3406_v5, %v14254_v7  ;;  %v3454_v20 = vcombine.low %v295_v62, %v296_v63  ;;  %v304_v3 = vld [vmem:[#allocation3 + $0xe1] sm:$0x1] }
  0xca   :  { %v6491_v23 = vcombine.low %v6483_v2, %v6490_v9  ;;  %v6532_v24 = vrot.slane %v6524_v10, %v14254_v7  ;;  %v3429_v25 = vrot.slane %v3407_v11, %v14254_v7  ;;  %v3436_v26 = vrot.slane %v3408_v12, %v14254_v7  ;;  %v303_v2 = vld [vmem:[#allocation3 + $0xe0] sm:$0x1]  ;;  %v305_v10 = vld [vmem:[#allocation3 + $0xe2] sm:$0x1]  ;;  %v306_v11 = vld [vmem:[#allocation3 + $0xe3] sm:$0x1] }
  0xcb   :  { %v6539_v29 = vrot.slane %v6525_v16, %v14254_v7  ;;  %v3437_v30 = vcombine.low %v3415_v17, %v3422_v18  ;;  %v3455_v31 = vcombine.low %v297_v6, %v298_v8  ;;  %v3456_v32 = vcombine.low %v299_v13, %v300_v14  ;;  %v307_v12 = vld [vmem:[#allocation3 + $0xe4] sm:$0x1]  ;;  %v308_v17 = vld [vmem:[#allocation3 + $0xe5] sm:$0x1]  ;;  %v309_v18 = vld [vmem:[#allocation3 + $0xe6] sm:$0x1] }
  0xcc   :  { %13513 = vmatprep.mubr.msk.bf16.mxu1 %vm8415_vm0, %v6491_v23  ;;  %v3438_v36 = vcombine.low %v3429_v25, %v3436_v26  ;;  %v3457_v37 = vcombine.low %v301_v15, %v302_v19  ;;  %v3464_v38 = vrot.slane %v3454_v20, %v14254_v7  ;;  %v6541_v40 = vcombine.low %v799_v21, %v800_v22  ;;  %v310_v19 = vld [vmem:[#allocation3 + $0xe7] sm:$0x1]  ;;  %v312_v25 = vld [vmem:[#allocation3 + $0xe9] sm:$0x1] }
  0xcd   :  { %v6540_v43 = vcombine.low %v6532_v24, %v6539_v29  ;;  %v3445_v44 = vrot.slane %v3437_v30, %v14254_v7  ;;  %v3471_v45 = vrot.slane %v3455_v31, %v14254_v7  ;;  %v3478_v46 = vrot.slane %v3456_v32, %v14254_v7  ;;  %v311_v24 = vld [vmem:[#allocation3 + $0xe8] sm:$0x1]  ;;  %v313_v30 = vld [vmem:[#allocation3 + $0xea] sm:$0x1]  ;;  %v314_v31 = vld [vmem:[#allocation3 + $0xeb] sm:$0x1] }
  0xce   :  { %v3452_v48 = vrot.slane %v3438_v36, %v14254_v7  ;;  %v3485_v49 = vrot.slane %v3457_v37, %v14254_v7  ;;  %v6542_v50 = vcombine.low %v801_v27, %v802_v28  ;;  %v6543_v51 = vcombine.low %v803_v33, %v804_v34  ;;  %v315_v36 = vld [vmem:[#allocation3 + $0xec] sm:$0x1]  ;;  %v316_v37 = vld [vmem:[#allocation3 + $0xed] sm:$0x1] }
  0xcf   :  { %13514 = vmatmul.mubr.msk.bf16.gmra.mxu1 %vm8415_vm0, %v6540_v43  ;;  %v3486_v55 = vcombine.low %v3464_v38, %v3471_v45  ;;  %v6544_v56 = vcombine.low %v805_v35, %v806_v39  ;;  %v6551_v57 = vrot.slane %v6541_v40, %v14254_v7  ;;  %v6590_v60 = vcombine.low %v807_v41, %v808_v42  ;;  %v317_v38 = vld [vmem:[#allocation3 + $0xee] sm:$0x1]  ;;  %v318_v42 = vld [vmem:[#allocation3 + $0xef] sm:$0x1]  ;;  %v816_v45 = vld [vmem:[#allocation3 + $0x2e1] sm:$0x1] }
  0xd0   :  { %v3453_v61 = vcombine.low %v3445_v44, %v3452_v48  ;;  %v3487_v62 = vcombine.low %v3478_v46, %v3485_v49  ;;  %v6558_v63 = vrot.slane %v6542_v50, %v14254_v7  ;;  %v6565_v1 = vrot.slane %v6543_v51, %v14254_v7  ;;  %v815_v44 = vld [vmem:[#allocation3 + $0x2e0] sm:$0x1]  ;;  %v817_v50 = vld [vmem:[#allocation3 + $0x2e2] sm:$0x1]  ;;  %v818_v51 = vld [vmem:[#allocation3 + $0x2e3] sm:$0x1] }
  0xd1   :  { %v3494_v5 = vrot.slane %v3486_v55, %v14254_v7  ;;  %v6572_v6 = vrot.slane %v6544_v56, %v14254_v7  ;;  %v6591_v8 = vcombine.low %v809_v47, %v810_v52  ;;  %v6592_v9 = vcombine.low %v811_v53, %v812_v54  ;;  %v819_v56 = vld [vmem:[#allocation3 + $0x2e4] sm:$0x1] }
  0xd2   :  { %13389 = vmatprep.mubr.msk.bf16.mxu0 %vm8415_vm0, %v3453_v61  ;;  %v3501_v13 = vrot.slane %v3487_v62, %v14254_v7  ;;  %v6573_v14 = vcombine.low %v6551_v57, %v6558_v63  ;;  %v6593_v15 = vcombine.low %v813_v58, %v814_v59  ;;  %v6600_v16 = vrot.slane %v6590_v60, %v14254_v7  ;;  %v820_v57 = vld [vmem:[#allocation3 + $0x2e5] sm:$0x1]  ;;  %v821_v58 = vld [vmem:[#allocation3 + $0x2e6] sm:$0x1]  ;;  %v822_v62 = vld [vmem:[#allocation3 + $0x2e7] sm:$0x1] }
  0xd3   :  { %v6574_v20 = vcombine.low %v6565_v1, %v6572_v6  ;;  %v6607_v21 = vrot.slane %v6591_v8, %v14254_v7  ;;  %v6614_v22 = vrot.slane %v6592_v9, %v14254_v7  ;;  %v3503_v23 = vcombine.low %v303_v2, %v304_v3  ;;  %v823_v1 = vld [vmem:[#allocation3 + $0x2e8] sm:$0x1]  ;;  %v824_v2 = vld [vmem:[#allocation3 + $0x2e9] sm:$0x1]  ;;  %v825_v9 = vld [vmem:[#allocation3 + $0x2ea] sm:$0x1] }
  0xd4   :  { %v3502_v26 = vcombine.low %v3494_v5, %v3501_v13  ;;  %v6581_v27 = vrot.slane %v6573_v14, %v14254_v7  ;;  %v6621_v28 = vrot.slane %v6593_v15, %v14254_v7  ;;  %v3504_v29 = vcombine.low %v305_v10, %v306_v11  ;;  %v826_v14 = vld [vmem:[#allocation3 + $0x2eb] sm:$0x1]  ;;  %v827_v15 = vld [vmem:[#allocation3 + $0x2ec] sm:$0x1] }
  0xd5   :  { %v6588_v32 = vrot.slane %v6574_v20, %v14254_v7  ;;  %v6622_v33 = vcombine.low %v6600_v16, %v6607_v21  ;;  %v3505_v34 = vcombine.low %v307_v12, %v308_v17  ;;  %v3506_v35 = vcombine.low %v309_v18, %v310_v19  ;;  %v828_v16 = vld [vmem:[#allocation3 + $0x2ed] sm:$0x1]  ;;  %v829_v20 = vld [vmem:[#allocation3 + $0x2ee] sm:$0x1]  ;;  %v830_v21 = vld [vmem:[#allocation3 + $0x2ef] sm:$0x1] }
  0xd6   :  { %13390 = vmatmul.mubr.msk.bf16.gmra.mxu0 %vm8415_vm0, %v3502_v26  ;;  %v6623_v39 = vcombine.low %v6614_v22, %v6621_v28  ;;  %v3513_v40 = vrot.slane %v3503_v23, %v14254_v7  ;;  %v3520_v41 = vrot.slane %v3504_v29, %v14254_v7  ;;  %v3552_v43 = vcombine.low %v311_v24, %v312_v25  ;;  %v320_v28 = vld [vmem:[#allocation3 + $0xf1] sm:$0x1] }
  0xd7   :  { %v6589_v46 = vcombine.low %v6581_v27, %v6588_v32  ;;  %v6630_v47 = vrot.slane %v6622_v33, %v14254_v7  ;;  %v3527_v48 = vrot.slane %v3505_v34, %v14254_v7  ;;  %v3534_v49 = vrot.slane %v3506_v35, %v14254_v7  ;;  %v319_v27 = vld [vmem:[#allocation3 + $0xf0] sm:$0x1]  ;;  %v321_v33 = vld [vmem:[#allocation3 + $0xf2] sm:$0x1]  ;;  %v322_v34 = vld [vmem:[#allocation3 + $0xf3] sm:$0x1] }
  0xd8   :  { %v6637_v52 = vrot.slane %v6623_v39, %v14254_v7  ;;  %v3535_v53 = vcombine.low %v3513_v40, %v3520_v41  ;;  %v3553_v54 = vcombine.low %v313_v30, %v314_v31  ;;  %v3554_v55 = vcombine.low %v315_v36, %v316_v37  ;;  %v323_v35 = vld [vmem:[#allocation3 + $0xf4] sm:$0x1]  ;;  %v324_v40 = vld [vmem:[#allocation3 + $0xf5] sm:$0x1]  ;;  %v325_v41 = vld [vmem:[#allocation3 + $0xf6] sm:$0x1] }
  0xd9   :  { %13517 = vmatprep.mubr.msk.bf16.mxu1 %vm8415_vm0, %v6589_v46  ;;  %v3536_v59 = vcombine.low %v3527_v48, %v3534_v49  ;;  %v3555_v60 = vcombine.low %v317_v38, %v318_v42  ;;  %v3562_v61 = vrot.slane %v3552_v43, %v14254_v7  ;;  %v6639_v63 = vcombine.low %v815_v44, %v816_v45  ;;  %v326_v42 = vld [vmem:[#allocation3 + $0xf7] sm:$0x1]  ;;  %v328_v48 = vld [vmem:[#allocation3 + $0xf9] sm:$0x1] }
  0xda   :  { %v6638_v3 = vcombine.low %v6630_v47, %v6637_v52  ;;  %v3543_v5 = vrot.slane %v3535_v53, %v14254_v7  ;;  %v3569_v6 = vrot.slane %v3553_v54, %v14254_v7  ;;  %v3576_v8 = vrot.slane %v3554_v55, %v14254_v7  ;;  %v327_v47 = vld [vmem:[#allocation3 + $0xf8] sm:$0x1]  ;;  %v329_v53 = vld [vmem:[#allocation3 + $0xfa] sm:$0x1]  ;;  %v330_v54 = vld [vmem:[#allocation3 + $0xfb] sm:$0x1] }
  0xdb   :  { %v3550_v10 = vrot.slane %v3536_v59, %v14254_v7  ;;  %v3583_v11 = vrot.slane %v3555_v60, %v14254_v7  ;;  %v6640_v12 = vcombine.low %v817_v50, %v818_v51  ;;  %v6641_v13 = vcombine.low %v819_v56, %v820_v57  ;;  %v331_v59 = vld [vmem:[#allocation3 + $0xfc] sm:$0x1]  ;;  %v332_v60 = vld [vmem:[#allocation3 + $0xfd] sm:$0x1] }
  0xdc   :  { %13518 = vmatmul.mubr.msk.bf16.gmra.mxu1 %vm8415_vm0, %v6638_v3  ;;  %v3584_v17 = vcombine.low %v3562_v61, %v3569_v6  ;;  %v6642_v18 = vcombine.low %v821_v58, %v822_v62  ;;  %v6649_v19 = vrot.slane %v6639_v63, %v14254_v7  ;;  %v6688_v22 = vcombine.low %v823_v1, %v824_v2  ;;  %v333_v61 = vld [vmem:[#allocation3 + $0xfe] sm:$0x1]  ;;  %v334_v2 = vld [vmem:[#allocation3 + $0xff] sm:$0x1]  ;;  %v832_v6 = vld [vmem:[#allocation3 + $0x2f1] sm:$0x1] }
  0xdd   :  { %v3551_v23 = vcombine.low %v3543_v5, %v3550_v10  ;;  %v3585_v24 = vcombine.low %v3576_v8, %v3583_v11  ;;  %v6656_v25 = vrot.slane %v6640_v12, %v14254_v7  ;;  %v6663_v26 = vrot.slane %v6641_v13, %v14254_v7  ;;  %v831_v5 = vld [vmem:[#allocation3 + $0x2f0] sm:$0x1]  ;;  %v833_v12 = vld [vmem:[#allocation3 + $0x2f2] sm:$0x1]  ;;  %v834_v13 = vld [vmem:[#allocation3 + $0x2f3] sm:$0x1] }
  0xde   :  { %v3592_v29 = vrot.slane %v3584_v17, %v14254_v7  ;;  %v6670_v30 = vrot.slane %v6642_v18, %v14254_v7  ;;  %v6689_v31 = vcombine.low %v825_v9, %v826_v14  ;;  %v6690_v32 = vcombine.low %v827_v15, %v828_v16  ;;  %v835_v18 = vld [vmem:[#allocation3 + $0x2f4] sm:$0x1] }
  0xdf   :  { %13393 = vmatprep.mubr.msk.bf16.mxu0 %vm8415_vm0, %v3551_v23  ;;  %v3599_v36 = vrot.slane %v3585_v24, %v14254_v7  ;;  %v6671_v37 = vcombine.low %v6649_v19, %v6656_v25  ;;  %v6691_v38 = vcombine.low %v829_v20, %v830_v21  ;;  %v6698_v39 = vrot.slane %v6688_v22, %v14254_v7  ;;  %v836_v19 = vld [vmem:[#allocation3 + $0x2f5] sm:$0x1]  ;;  %v837_v20 = vld [vmem:[#allocation3 + $0x2f6] sm:$0x1]  ;;  %v838_v24 = vld [vmem:[#allocation3 + $0x2f7] sm:$0x1] }
  0xe0   :  { %v6672_v43 = vcombine.low %v6663_v26, %v6670_v30  ;;  %v6705_v44 = vrot.slane %v6689_v31, %v14254_v7  ;;  %v6712_v45 = vrot.slane %v6690_v32, %v14254_v7  ;;  %v3601_v46 = vcombine.low %v319_v27, %v320_v28  ;;  %v839_v26 = vld [vmem:[#allocation3 + $0x2f8] sm:$0x1]  ;;  %v840_v27 = vld [vmem:[#allocation3 + $0x2f9] sm:$0x1]  ;;  %v841_v32 = vld [vmem:[#allocation3 + $0x2fa] sm:$0x1] }
  0xe1   :  { %v3600_v49 = vcombine.low %v3592_v29, %v3599_v36  ;;  %v6679_v50 = vrot.slane %v6671_v37, %v14254_v7  ;;  %v6719_v51 = vrot.slane %v6691_v38, %v14254_v7  ;;  %v3602_v52 = vcombine.low %v321_v33, %v322_v34  ;;  %v842_v37 = vld [vmem:[#allocation3 + $0x2fb] sm:$0x1]  ;;  %v843_v38 = vld [vmem:[#allocation3 + $0x2fc] sm:$0x1] }
  0xe2   :  { %v6686_v55 = vrot.slane %v6672_v43, %v14254_v7  ;;  %v6720_v56 = vcombine.low %v6698_v39, %v6705_v44  ;;  %v3603_v57 = vcombine.low %v323_v35, %v324_v40  ;;  %v3604_v58 = vcombine.low %v325_v41, %v326_v42  ;;  %v844_v39 = vld [vmem:[#allocation3 + $0x2fd] sm:$0x1]  ;;  %v845_v43 = vld [vmem:[#allocation3 + $0x2fe] sm:$0x1]  ;;  %v846_v44 = vld [vmem:[#allocation3 + $0x2ff] sm:$0x1] }
  0xe3   :  { %13394 = vmatmul.mubr.msk.bf16.gmra.mxu0 %vm8415_vm0, %v3600_v49  ;;  %v6721_v62 = vcombine.low %v6712_v45, %v6719_v51  ;;  %v3611_v63 = vrot.slane %v3601_v46, %v14254_v7  ;;  %v3618_v1 = vrot.slane %v3602_v52, %v14254_v7  ;;  %v3650_v3 = vcombine.low %v327_v47, %v328_v48  ;;  %v336_v51 = vld [vmem:[#allocation3 + $0x101] sm:$0x1] }
  0xe4   :  { %v6687_v8 = vcombine.low %v6679_v50, %v6686_v55  ;;  %v6728_v9 = vrot.slane %v6720_v56, %v14254_v7  ;;  %v3625_v10 = vrot.slane %v3603_v57, %v14254_v7  ;;  %v3632_v11 = vrot.slane %v3604_v58, %v14254_v7  ;;  %v335_v50 = vld [vmem:[#allocation3 + $0x100] sm:$0x1]  ;;  %v337_v56 = vld [vmem:[#allocation3 + $0x102] sm:$0x1]  ;;  %v338_v57 = vld [vmem:[#allocation3 + $0x103] sm:$0x1] }
  0xe5   :  { %v6735_v14 = vrot.slane %v6721_v62, %v14254_v7  ;;  %v3633_v15 = vcombine.low %v3611_v63, %v3618_v1  ;;  %v3651_v16 = vcombine.low %v329_v53, %v330_v54  ;;  %v3652_v17 = vcombine.low %v331_v59, %v332_v60  ;;  %v339_v58 = vld [vmem:[#allocation3 + $0x104] sm:$0x1]  ;;  %v340_v63 = vld [vmem:[#allocation3 + $0x105] sm:$0x1]  ;;  %v341_v1 = vld [vmem:[#allocation3 + $0x106] sm:$0x1] }
  0xe6   :  { %13521 = vmatprep.mubr.msk.bf16.mxu1 %vm8415_vm0, %v6687_v8  ;;  %v3634_v21 = vcombine.low %v3625_v10, %v3632_v11  ;;  %v3653_v22 = vcombine.low %v333_v61, %v334_v2  ;;  %v3660_v23 = vrot.slane %v3650_v3, %v14254_v7  ;;  %v6737_v25 = vcombine.low %v831_v5, %v832_v6  ;;  %v342_v2 = vld [vmem:[#allocation3 + $0x107] sm:$0x1]  ;;  %v344_v10 = vld [vmem:[#allocation3 + $0x109] sm:$0x1] }
  0xe7   :  { %v6736_v28 = vcombine.low %v6728_v9, %v6735_v14  ;;  %v3641_v29 = vrot.slane %v3633_v15, %v14254_v7  ;;  %v3667_v30 = vrot.slane %v3651_v16, %v14254_v7  ;;  %v3674_v31 = vrot.slane %v3652_v17, %v14254_v7  ;;  %v343_v9 = vld [vmem:[#allocation3 + $0x108] sm:$0x1]  ;;  %v14699_v11 = vld [vmem:[%s17374_s0] sm:$0xff] }
  0xe8   :  { %v3648_v33 = vrot.slane %v3634_v21, %v14254_v7  ;;  %v3681_v34 = vrot.slane %v3653_v22, %v14254_v7  ;;  %v6738_v35 = vcombine.low %v833_v12, %v834_v13  ;;  %v6739_v36 = vcombine.low %v835_v18, %v836_v19  ;;  %v346_v21 = vld [vmem:[#allocation3 + $0x10b] sm:$0x1]  ;;  %v347_v22 = vld [vmem:[#allocation3 + $0x10c] sm:$0x1] }
  0xe9   :  { %13522 = vmatmul.mubr.msk.bf16.gmra.mxu1 %vm8415_vm0, %v6736_v28  ;;  %v3682_v40 = vcombine.low %v3660_v23, %v3667_v30  ;;  %v6740_v41 = vcombine.low %v837_v20, %v838_v24  ;;  %v6747_v42 = vrot.slane %v6737_v25, %v14254_v7  ;;  %v6786_v45 = vcombine.low %v839_v26, %v840_v27  ;;  %v345_v20 = vld [vmem:[#allocation3 + $0x10a] sm:$0x1]  ;;  %v348_v27 = vld [vmem:[#allocation3 + $0x10d] sm:$0x1]  ;;  %v349_v28 = vld [vmem:[#allocation3 + $0x10e] sm:$0x1] }
  0xea   :  { %v3649_v46 = vcombine.low %v3641_v29, %v3648_v33  ;;  %v3683_v47 = vcombine.low %v3674_v31, %v3681_v34  ;;  %v6754_v48 = vrot.slane %v6738_v35, %v14254_v7  ;;  %v6761_v49 = vrot.slane %v6739_v36, %v14254_v7  ;;  %v350_v29 = vld [vmem:[#allocation3 + $0x10f] sm:$0x1] }
  0xeb   :  { %v3690_v52 = vrot.slane %v3682_v40, %v14254_v7  ;;  %v6768_v53 = vrot.slane %v6740_v41, %v14254_v7  ;;  %v6787_v54 = vcombine.low %v841_v32, %v842_v37  ;;  %v6788_v55 = vcombine.low %v843_v38, %v844_v39  ;;  %v14713_v36 = vld [vmem:[%s17374_s0 + $0x8] sm:$0xff] }
  0xec   :  { %13397 = vmatprep.mubr.msk.bf16.mxu0 %vm8415_vm0, %v3649_v46  ;;  %v3697_v59 = vrot.slane %v3683_v47, %v14254_v7  ;;  %v6769_v60 = vcombine.low %v6747_v42, %v6754_v48  ;;  %v6789_v61 = vcombine.low %v845_v43, %v846_v44  ;;  %v6796_v62 = vrot.slane %v6786_v45, %v14254_v7 }
  0xed   :  { %v6770_v3 = vcombine.low %v6761_v49, %v6768_v53  ;;  %v6803_v5 = vrot.slane %v6787_v54, %v14254_v7  ;;  %v6810_v6 = vrot.slane %v6788_v55, %v14254_v7  ;;  %v3699_v8 = vcombine.low %v335_v50, %v336_v51  ;;  %v847_v54 = vld [vmem:[#allocation3 + $0x300] sm:$0x1]  ;;  %v848_v55 = vld [vmem:[#allocation3 + $0x301] sm:$0x1] }
  0xee   :  { %v3698_v12 = vcombine.low %v3690_v52, %v3697_v59  ;;  %v6777_v13 = vrot.slane %v6769_v60, %v14254_v7  ;;  %v6817_v14 = vrot.slane %v6789_v61, %v14254_v7  ;;  %v3700_v15 = vcombine.low %v337_v56, %v338_v57  ;;  %v849_v60 = vld [vmem:[#allocation3 + $0x302] sm:$0x1]  ;;  %v850_v61 = vld [vmem:[#allocation3 + $0x303] sm:$0x1] }
  0xef   :  { %v6784_v16 = vrot.slane %v6770_v3, %v14254_v7  ;;  %v6818_v17 = vcombine.low %v6796_v62, %v6803_v5  ;;  %v3701_v18 = vcombine.low %v339_v58, %v340_v63  ;;  %v3702_v19 = vcombine.low %v341_v1, %v342_v2  ;;  %v851_v62 = vld [vmem:[#allocation3 + $0x304] sm:$0x1]  ;;  %v852_v5 = vld [vmem:[#allocation3 + $0x305] sm:$0x1] }
  0xf0   :  { %v13339_v23 = vpop.f32.mrf.mxu0  ;;  %13398 = vmatmul.mubr.msk.bf16.gmra.mxu0 %vm8415_vm0, %v3698_v12  ;;  %v6819_v24 = vcombine.low %v6810_v6, %v6817_v14  ;;  %v3709_v25 = vrot.slane %v3699_v8, %v14254_v7  ;;  %v3716_v26 = vrot.slane %v3700_v15, %v14254_v7  ;;  %v3748_v30 = vcombine.low %v343_v9, %v344_v10  ;;  %v853_v6 = vld [vmem:[#allocation3 + $0x306] sm:$0x1]  ;;  %v854_v8 = vld [vmem:[#allocation3 + $0x307] sm:$0x1] }
  0xf1   :  { %v9861_v31 = vadd.f32 %v13339_v23, %v14699_v11  ;;  %v6785_v32 = vcombine.low %v6777_v13, %v6784_v16  ;;  %v6826_v33 = vrot.slane %v6818_v17, %v14254_v7  ;;  %v3723_v34 = vrot.slane %v3701_v18, %v14254_v7  ;;  %v855_v17 = vld [vmem:[#allocation3 + $0x308] sm:$0x1]  ;;  %v856_v18 = vld [vmem:[#allocation3 + $0x309] sm:$0x1]  ;;  %v857_v23 = vld [vmem:[#allocation3 + $0x30a] sm:$0x1] }
  0xf2   :  { %v8834_v35 = vpop.f32.mrf.mxu0  ;;  %v6833_v37 = vrot.slane %v6819_v24, %v14254_v7  ;;  %v3730_v38 = vrot.slane %v3702_v19, %v14254_v7  ;;  %v3731_v39 = vcombine.low %v3709_v25, %v3716_v26  ;;  %v3749_v40 = vcombine.low %v345_v20, %v346_v21  ;;  %v858_v24 = vld [vmem:[#allocation3 + $0x30b] sm:$0x1]  ;;  %v859_v25 = vld [vmem:[#allocation3 + $0x30c] sm:$0x1] }
  0xf3   :  { %13612 = vtanh.f32 %v9861_v31  ;;  %v13467_v41 = vpop.f32.mrf.mxu1  ;;  %v9859_v42 = vadd.f32 %v14699_v11, %v8834_v35  ;;  %13525 = vmatprep.mubr.msk.bf16.mxu1 %vm8415_vm0, %v6785_v32  ;;  %v3750_v43 = vcombine.low %v347_v22, %v348_v27  ;;  %v3751_v44 = vcombine.low %v349_v28, %v350_v29  ;;  %v861_v31 = vld [vmem:[#allocation3 + $0x30e] sm:$0x1]  ;;  %v862_v32 = vld [vmem:[#allocation3 + $0x30f] sm:$0x1] }
  0xf4   :  { %v9989_v45 = vadd.f32 %v13467_v41, %v14699_v11  ;;  %v13340_v46 = vpop.f32.mrf.mxu0  ;;  %v6834_v47 = vcombine.low %v6826_v33, %v6833_v37  ;;  %v3732_v48 = vcombine.low %v3723_v34, %v3730_v38  ;;  %v3739_v49 = vrot.slane %v3731_v39, %v14254_v7  ;;  %v14743_v41 = vld [vmem:[%s17377_s3] ss:$0 sm:$0xff] }
  0xf5   :  { %13614 = vtanh.f32 %v9859_v42  ;;  %v9346_v50 = vpop.f32.mrf.mxu1  ;;  %v9862_v51 = vadd.f32 %v13340_v46, %v14713_v36  ;;  %v3758_v52 = vrot.slane %v3748_v30, %v14254_v7  ;;  %v3765_v53 = vrot.slane %v3749_v40, %v14254_v7  ;;  %v860_v30 = vld [vmem:[#allocation3 + $0x30d] sm:$0x1] }
  0xf6   :  { %13616 = vtanh.f32 %v9989_v45  ;;  %v9987_v56 = vadd.f32 %v14699_v11, %v9346_v50  ;;  %v8837_v57 = vpop.f32.mrf.mxu0  ;;  %13526 = vmatmul.mubr.msk.bf16.gmra.mxu1 %vm8415_vm0, %v6834_v47  ;;  %v3746_v58 = vrot.slane %v3732_v48, %v14254_v7  ;;  %v3772_v59 = vrot.slane %v3750_v43, %v14254_v7 }
  0xf7   :  { %13618 = vtanh.f32 %v9862_v51  ;;  %v13468_v63 = vpop.f32.mrf.mxu1  ;;  %v9860_v1 = vadd.f32 %v14713_v36, %v8837_v57  ;;  %v3779_v2 = vrot.slane %v3751_v44, %v14254_v7  ;;  %v3780_v3 = vcombine.low %v3758_v52, %v3765_v53 }
  0xf8   :  { %13620 = vtanh.f32 %v9987_v56  ;;  %v9990_v9 = vadd.f32 %v13468_v63, %v14713_v36  ;;  %v3747_v10 = vcombine.low %v3739_v49, %v3746_v58  ;;  %v6835_v12 = vcombine.low %v847_v54, %v848_v55 }
  0xf9   :  { %13622 = vtanh.f32 %v9860_v1  ;;  %v9349_v13 = vpop.f32.mrf.mxu1  ;;  %v3781_v14 = vcombine.low %v3772_v59, %v3779_v2  ;;  %v3788_v15 = vrot.slane %v3780_v3, %v14254_v7  ;;  %v6836_v16 = vcombine.low %v849_v60, %v850_v61  ;;  %v351_v2 = vld [vmem:[#allocation3 + $0x110] sm:$0x1]  ;;  %v352_v3 = vld [vmem:[#allocation3 + $0x111] sm:$0x1] }
  0xfa   :  { %13624 = vtanh.f32 %v9990_v9  ;;  %v9988_v19 = vadd.f32 %v14713_v36, %v9349_v13  ;;  %v13343_v20 = vpop.f32.mrf.mxu0  ;;  %13401 = vmatprep.mubr.msk.bf16.mxu0 %vm8415_vm0, %v3747_v10  ;;  %v6837_v21 = vcombine.low %v851_v62, %v852_v5  ;;  %v6838_v22 = vcombine.low %v853_v6, %v854_v8 }
  0xfb   :  { %v9865_v26 = vadd.f32 %v13343_v20, %v14699_v11  ;;  %v3795_v27 = vrot.slane %v3781_v14, %v14254_v7  ;;  %v6845_v28 = vrot.slane %v6835_v12, %v14254_v7  ;;  %v6852_v29 = vrot.slane %v6836_v16, %v14254_v7  ;;  %v354_v16 = vld [vmem:[#allocation3 + $0x113] sm:$0x1]  ;;  %v355_v20 = vld [vmem:[#allocation3 + $0x114] sm:$0x1] }
  0xfc   :  { %13626 = vtanh.f32 %v9988_v19  ;;  %v8850_v33 = vpop.f32.mrf.mxu0  ;;  %v6859_v34 = vrot.slane %v6837_v21, %v14254_v7  ;;  %v6866_v35 = vrot.slane %v6838_v22, %v14254_v7  ;;  %v6884_v37 = vcombine.low %v855_v17, %v856_v18  ;;  %v356_v21 = vld [vmem:[#allocation3 + $0x115] sm:$0x1] }
  0xfd   :  { %13628 = vtanh.f32 %v9865_v26  ;;  %v3796_v38 = vcombine.low %v3788_v15, %v3795_v27  ;;  %v6867_v39 = vcombine.low %v6845_v28, %v6852_v29  ;;  %v6885_v43 = vcombine.low %v857_v23, %v858_v24  ;;  %v353_v15 = vld [vmem:[#allocation3 + $0x112] sm:$0x1]  ;;  %v357_v29 = vld [vmem:[#allocation3 + $0x116] sm:$0x1] }
  0xfe   :  { %v13344_v40 = vpop.f32.mrf.mxu0  ;;  %v6868_v42 = vcombine.low %v6859_v34, %v6866_v35  ;;  %v6886_v44 = vcombine.low %v859_v25, %v860_v30  ;;  %v6887_v45 = vcombine.low %v861_v31, %v862_v32  ;;  %v9863_v46 = vadd.f32 %v14699_v11, %v8850_v33  ;;  %v358_v30 = vld [vmem:[#allocation3 + $0x117] sm:$0x1] }
  0xff   :  { %v9866_v47 = vadd.f32 %v13344_v40, %v14713_v36  ;;  %13402 = vmatmul.mubr.msk.bf16.gmra.mxu0 %vm8415_vm0, %v3796_v38  ;;  %v6875_v48 = vrot.slane %v6867_v39, %v14254_v7  ;;  %v6894_v49 = vrot.slane %v6884_v37, %v14254_v7  ;;  %v6901_v54 = vrot.slane %v6885_v43, %v14254_v7 }
 0x100   :  { %v13613_v50 = vpop.eup %13612  ;;  %v13471_v51 = vpop.f32.mrf.mxu1  ;;  %v6882_v53 = vrot.slane %v6868_v42, %v14254_v7  ;;  %v6908_v55 = vrot.slane %v6886_v44, %v14254_v7  ;;  %v6915_v56 = vrot.slane %v6887_v45, %v14254_v7  ;;  %v3797_v22 = vcombine.low %v351_v2, %v352_v3 }
 0x101   :  { %v8853_v52 = vpop.f32.mrf.mxu0  ;;  %v9993_v57 = vadd.f32 %v13471_v51, %v14699_v11  ;;  %13630 = vtanh.f32 %v9866_v47  ;;  %v10380_v59 = vmul.f32 %v13613_v50, %v14743_v41  ;;  %v6916_v63 = vcombine.low %v6894_v49, %v6901_v54  ;;  %v359_v49 = vld [vmem:[#allocation3 + $0x118] sm:$0x1]  ;;  %v360_v50 = vld [vmem:[#allocation3 + $0x119] sm:$0x1] }
 0x102   :  { %v9864_v58 = vadd.f32 %v14713_v36, %v8853_v52  ;;  %v13615_v60 = vpop.eup %13614  ;;  %v9362_v61 = vpop.f32.mrf.mxu1  ;;  %v6883_v62 = vcombine.low %v6875_v48, %v6882_v53  ;;  %v6917_v1 = vcombine.low %v6908_v55, %v6915_v56  ;;  %v3798_v35 = vcombine.low %v353_v15, %v354_v16  ;;  %v361_v56 = vld [vmem:[#allocation3 + $0x11a] sm:$0x1] }
 0x103   :  { %v13617_v5 = vpop.eup %13616  ;;  %13632 = vtanh.f32 %v9993_v57  ;;  %v9991_v6 = vadd.f32 %v14699_v11, %v9362_v61  ;;  %v10640_v8 = vsel %vm8415_vm0, %v10380_v59, 0.0  ;;  %v6924_v13 = vrot.slane %v6916_v63, %v14254_v7  ;;  %v362_v57 = vld [vmem:[#allocation3 + $0x11b] sm:$0x1]  ;;  %v363_v61 = vld [vmem:[#allocation3 + $0x11c] sm:$0x1] }
 0x104   :  { %v13619_v9 = vpop.eup %13618  ;;  %13634 = vtanh.f32 %v9863_v46  ;;  %v13472_v10 = vpop.f32.mrf.mxu1  ;;  %v10508_v12 = vmul.f32 %v13617_v5, %v14743_v41  ;;  %10641 = vadd.xlane.f32.xlu1 %v10640_v8  ;;  %13529 = vmatprep.mubr.msk.bf16.mxu1 %vm8415_vm0, %v6883_v62  ;;  %v6931_v14 = vrot.slane %v6917_v1, %v14254_v7  ;;  %v10378_v26 = vmul.f32 %v13615_v60, %v14743_v41  ;;  %v364_v62 = vld [vmem:[#allocation3 + $0x11d] sm:$0x1]  ;;  %v365_v8 = vld [vmem:[#allocation3 + $0x11e] sm:$0x1] }
 0x105   :  { %v13621_v17 = vpop.eup %13620  ;;  %13636 = vtanh.f32 %v9864_v58  ;;  %v9994_v18 = vadd.f32 %v13472_v10, %v14713_v36  ;;  %v10381_v19 = vmul.f32 %v13619_v9, %v14743_v41  ;;  %v3799_v39 = vcombine.low %v355_v20, %v356_v21  ;;  %v366_v9 = vld [vmem:[#allocation3 + $0x11f] sm:$0x1] }
 0x106   :  { %v13623_v23 = vpop.eup %13622  ;;  %v9365_v24 = vpop.f32.mrf.mxu1  ;;  %v11024_v25 = vsel %vm8415_vm0, %v10508_v12, 0.0  ;;  %v10506_v27 = vmul.f32 %v13621_v17, %v14743_v41  ;;  %v6932_v28 = vcombine.low %v6924_v13, %v6931_v14  ;;  %v3800_v43 = vcombine.low %v357_v29, %v358_v30 }
 0x107   :  { %v13625_v31 = vpop.eup %13624  ;;  %13638 = vtanh.f32 %v9994_v18  ;;  %v9992_v32 = vadd.f32 %v14713_v36, %v9365_v24  ;;  %11025 = vadd.xlane.f32.xlu0 %v11024_v25  ;;  %v13347_v33 = vpop.f32.mrf.mxu0  ;;  %v10643_v34 = vsel %vm8415_vm0, %v10381_v19, 0.0  ;;  %v3807_v44 = vrot.slane %v3797_v22, %v14254_v7 }
 0x108   :  { %13640 = vtanh.f32 %v9991_v6  ;;  %v9869_v37 = vadd.f32 %v13347_v33, %v14699_v11  ;;  %10644 = vadd.xlane.f32.xlu1 %v10643_v34  ;;  %v10509_v38 = vmul.f32 %v13625_v31, %v14743_v41  ;;  %13530 = vmatmul.mubr.msk.bf16.gmra.mxu1 %vm8415_vm0, %v6932_v28  ;;  %v10634_v46 = vsel %vm8415_vm0, %v10378_v26, 0.0 }
 0x109   :  { %v13627_v40 = vpop.eup %13626  ;;  %v8866_v42 = vpop.f32.mrf.mxu0  ;;  %13642 = vtanh.f32 %v9992_v32  ;;  %v10379_v48 = vmul.f32 %v13623_v23, %v14743_v41  ;;  %v3814_v53 = vrot.slane %v3798_v35, %v14254_v7  ;;  %v3821_v54 = vrot.slane %v3799_v39, %v14254_v7 }
 0x10a   :  { %v13629_v45 = vpop.eup %13628  ;;  %v10507_v47 = vmul.f32 %v13627_v40, %v14743_v41  ;;  %v11027_v52 = vsel %vm8415_vm0, %v10509_v38, 0.0  ;;  %v3828_v55 = vrot.slane %v3800_v43, %v14254_v7  ;;  %13644 = vtanh.f32 %v9869_v37  ;;  %v863_v37 = vld [vmem:[#allocation3 + $0x310] sm:$0x1]  ;;  %v864_v38 = vld [vmem:[#allocation3 + $0x311] sm:$0x1] }
 0x10b   :  { %10635 = vadd.xlane.f32.xlu0 %v10634_v46  ;;  %v13348_v51 = vpop.f32.mrf.mxu0  ;;  %v9867_v58 = vadd.f32 %v14699_v11, %v8866_v42  ;;  %v11018_v60 = vsel %vm8415_vm0, %v10506_v27, 0.0  ;;  %v10384_v3 = vmul.f32 %v13629_v45, %v14743_v41  ;;  %v3829_v5 = vcombine.low %v3807_v44, %v3814_v53  ;;  %v865_v45 = vld [vmem:[#allocation3 + $0x312] sm:$0x1]  ;;  %v866_v46 = vld [vmem:[#allocation3 + $0x313] sm:$0x1] }
 0x10c   :  { %v9870_v59 = vadd.f32 %v13348_v51, %v14713_v36  ;;  %11028 = vadd.xlane.f32.xlu1 %v11027_v52  ;;  %v11021_v2 = vsel %vm8415_vm0, %v10507_v47, 0.0  ;;  %v3830_v6 = vcombine.low %v3821_v54, %v3828_v55  ;;  %v3846_v14 = vcombine.low %v359_v49, %v360_v50  ;;  %v867_v52 = vld [vmem:[#allocation3 + $0x314] sm:$0x1]  ;;  %v868_v53 = vld [vmem:[#allocation3 + $0x315] sm:$0x1] }
 0x10d   :  { %v13475_v63 = vpop.f32.mrf.mxu1  ;;  %v8869_v1 = vpop.f32.mrf.mxu0  ;;  %v3837_v17 = vrot.slane %v3829_v5, %v14254_v7  ;;  %v3847_v19 = vcombine.low %v361_v56, %v362_v57  ;;  %v3848_v22 = vcombine.low %v363_v61, %v364_v62  ;;  %v3849_v23 = vcombine.low %v365_v8, %v366_v9 }
 0x10e   :  { %v13631_v10 = vpop.eup %13630  ;;  %13646 = vtanh.f32 %v9870_v59  ;;  %v9997_v12 = vadd.f32 %v13475_v63, %v14699_v11  ;;  %v9868_v13 = vadd.f32 %v14713_v36, %v8869_v1  ;;  %v3844_v18 = vrot.slane %v3830_v6, %v14254_v7  ;;  %v870_v59 = vld [vmem:[#allocation3 + $0x317] sm:$0x1] }
 0x10f   :  { %v9378_v15 = vpop.f32.mrf.mxu1  ;;  %11019 = vadd.xlane.f32.xlu0 %v11018_v60  ;;  %v10385_v16 = vmul.f32 %v13631_v10, %v14743_v41  ;;  %13648 = vtanh.f32 %v9867_v58  ;;  %v10637_v26 = vsel %vm8415_vm0, %v10379_v48, 0.0  ;;  %v3856_v31 = vrot.slane %v3846_v14, %v14254_v7  ;;  %v869_v58 = vld [vmem:[#allocation3 + $0x316] sm:$0x1] }
 0x110   :  { %v13633_v20 = vpop.eup %13632  ;;  %v9995_v21 = vadd.f32 %v14699_v11, %v9378_v15  ;;  %11022 = vadd.xlane.f32.xlu1 %v11021_v2  ;;  %13650 = vtanh.f32 %v9997_v12  ;;  %v3845_v27 = vcombine.low %v3837_v17, %v3844_v18  ;;  %v3863_v34 = vrot.slane %v3847_v19, %v14254_v7 }
 0x111   :  { %v13635_v24 = vpop.eup %13634  ;;  %v13476_v25 = vpop.f32.mrf.mxu1  ;;  %13652 = vtanh.f32 %v9868_v13  ;;  %v10512_v30 = vmul.f32 %v13633_v20, %v14743_v41  ;;  %v10655_v33 = vsel %vm8415_vm0, %v10385_v16, 0.0  ;;  %v3870_v35 = vrot.slane %v3848_v22, %v14254_v7 }
 0x112   :  { %v13637_v28 = vpop.eup %13636  ;;  %v9998_v29 = vadd.f32 %v13476_v25, %v14713_v36  ;;  %13654 = vtanh.f32 %v9995_v21  ;;  %13405 = vmatprep.mubr.msk.bf16.mxu0 %vm8415_vm0, %v3845_v27  ;;  %v10652_v42 = vsel %vm8415_vm0, %v10384_v3, 0.0  ;;  %v3877_v44 = vrot.slane %v3849_v23, %v14254_v7  ;;  %v871_v27 = vld [vmem:[#allocation3 + $0x318] sm:$0x1] }
 0x113   :  { %v9381_v32 = vpop.f32.mrf.mxu1  ;;  %10638 = vadd.xlane.f32.xlu0 %v10637_v26  ;;  %v10383_v50 = vmul.f32 %v13637_v28, %v14743_v41  ;;  %v3878_v51 = vcombine.low %v3856_v31, %v3863_v34  ;;  %v11036_v54 = vsel %vm8415_vm0, %v10512_v30, 0.0  ;;  %v10382_v56 = vmul.f32 %v13635_v24, %v14743_v41  ;;  %v872_v28 = vld [vmem:[#allocation3 + $0x319] sm:$0x1]  ;;  %v874_v34 = vld [vmem:[#allocation3 + $0x31b] sm:$0x1] }
 0x114   :  { %v13639_v39 = vpop.eup %13638  ;;  %13656 = vtanh.f32 %v9998_v29  ;;  %v9996_v40 = vadd.f32 %v14713_v36, %v9381_v32  ;;  %10656 = vadd.xlane.f32.xlu1 %v10655_v33  ;;  %v13351_v43 = vpop.f32.mrf.mxu0  ;;  %v3879_v57 = vcombine.low %v3870_v35, %v3877_v44  ;;  %v6933_v60 = vcombine.low %v863_v37, %v864_v38  ;;  %v873_v33 = vld [vmem:[#allocation3 + $0x31a] sm:$0x1] }
 0x115   :  { %v13641_v47 = vpop.eup %13640  ;;  %v9873_v48 = vadd.f32 %v13351_v43, %v14699_v11  ;;  %v10513_v49 = vmul.f32 %v13639_v39, %v14743_v41  ;;  %v6934_v1 = vcombine.low %v865_v45, %v866_v46  ;;  %v3886_v5 = vrot.slane %v3878_v51, %v14254_v7  ;;  %v876_v43 = vld [vmem:[#allocation3 + $0x31d] sm:$0x1] }
 0x116   :  { %v8882_v55 = vpop.f32.mrf.mxu0  ;;  %v13643_v61 = vpop.eup %13642  ;;  %13658 = vtanh.f32 %v9996_v40  ;;  %v10510_v3 = vmul.f32 %v13641_v47, %v14743_v41  ;;  %v3893_v6 = vrot.slane %v3879_v57, %v14254_v7  ;;  %v6935_v8 = vcombine.low %v867_v52, %v868_v53 }
 0x117   :  { %10653 = vadd.xlane.f32.xlu0 %v10652_v42  ;;  %v11039_v62 = vsel %vm8415_vm0, %v10513_v49, 0.0  ;;  %v9871_v63 = vadd.f32 %v14699_v11, %v8882_v55  ;;  %v13645_v9 = vpop.eup %13644  ;;  %13660 = vtanh.f32 %v9873_v48  ;;  %v10649_v12 = vsel %vm8415_vm0, %v10383_v50, 0.0  ;;  %v875_v42 = vld [vmem:[#allocation3 + $0x31c] sm:$0x1]  ;;  %v877_v48 = vld [vmem:[#allocation3 + $0x31e] sm:$0x1] }
 0x118   :  { %11040 = vadd.xlane.f32.xlu1 %v11039_v62  ;;  %v13352_v2 = vpop.f32.mrf.mxu0  ;;  %v6936_v13 = vcombine.low %v869_v58, %v870_v59  ;;  %v10511_v16 = vmul.f32 %v13643_v61, %v14743_v41  ;;  %v3894_v17 = vcombine.low %v3886_v5, %v3893_v6  ;;  %v6943_v18 = vrot.slane %v6933_v60, %v14254_v7  ;;  %v878_v49 = vld [vmem:[#allocation3 + $0x31f] sm:$0x1] }
 0x119   :  { %v9874_v10 = vadd.f32 %v13352_v2, %v14713_v36  ;;  %13662 = vtanh.f32 %v9871_v63  ;;  %v6950_v22 = vrot.slane %v6934_v1, %v14254_v7  ;;  %v6957_v25 = vrot.slane %v6935_v8, %v14254_v7  ;;  %v367_v8 = vld [vmem:[#allocation3 + $0x120] sm:$0x1] }
 0x11a   :  { %v13479_v14 = vpop.f32.mrf.mxu1  ;;  %v8885_v15 = vpop.f32.mrf.mxu0  ;;  %13406 = vmatmul.mubr.msk.bf16.gmra.mxu0 %vm8415_vm0, %v3894_v17  ;;  %v6964_v26 = vrot.slane %v6936_v13, %v14254_v7  ;;  %v10646_v31 = vsel %vm8415_vm0, %v10382_v56, 0.0  ;;  %v11030_v38 = vsel %vm8415_vm0, %v10510_v3, 0.0  ;;  %v10388_v39 = vmul.f32 %v13645_v9, %v14743_v41  ;;  %v368_v9 = vld [vmem:[#allocation3 + $0x121] sm:$0x1]  ;;  %v369_v17 = vld [vmem:[#allocation3 + $0x122] sm:$0x1] }
 0x11b   :  { %v13647_v19 = vpop.eup %13646  ;;  %11037 = vadd.xlane.f32.xlu0 %v11036_v54  ;;  %13664 = vtanh.f32 %v9874_v10  ;;  %v10001_v20 = vadd.f32 %v13479_v14, %v14699_v11  ;;  %v9872_v21 = vadd.f32 %v14713_v36, %v8885_v15  ;;  %v6965_v32 = vcombine.low %v6943_v18, %v6950_v22  ;;  %v370_v18 = vld [vmem:[#allocation3 + $0x123] sm:$0x1]  ;;  %v371_v22 = vld [vmem:[#allocation3 + $0x124] sm:$0x1] }
 0x11c   :  { %v9394_v23 = vpop.f32.mrf.mxu1  ;;  %10650 = vadd.xlane.f32.xlu1 %v10649_v12  ;;  %v10389_v24 = vmul.f32 %v13647_v19, %v14743_v41  ;;  %v13649_v29 = vpop.eup %13648  ;;  %v6966_v40 = vcombine.low %v6957_v25, %v6964_v26  ;;  %v11033_v46 = vsel %vm8415_vm0, %v10511_v16, 0.0  ;;  %v6982_v50 = vcombine.low %v871_v27, %v872_v28 }
 0x11d   :  { %13666 = vtanh.f32 %v10001_v20  ;;  %v9999_v30 = vadd.f32 %v14699_v11, %v9394_v23  ;;  %v13651_v35 = vpop.eup %13650  ;;  %v6973_v47 = vrot.slane %v6965_v32, %v14254_v7  ;;  %v10386_v54 = vmul.f32 %v13649_v29, %v14743_v41  ;;  %v372_v23 = vld [vmem:[#allocation3 + $0x125] sm:$0x1]  ;;  %v373_v29 = vld [vmem:[#allocation3 + $0x126] sm:$0x1] }
 0x11e   :  { %13668 = vtanh.f32 %v9872_v21  ;;  %v13480_v37 = vpop.f32.mrf.mxu1  ;;  %v13653_v44 = vpop.eup %13652  ;;  %v10667_v53 = vsel %vm8415_vm0, %v10389_v24, 0.0  ;;  %v6980_v55 = vrot.slane %v6966_v40, %v14254_v7  ;;  %v6983_v56 = vcombine.low %v873_v33, %v874_v34 }
 0x11f   :  { %10647 = vadd.xlane.f32.xlu0 %v10646_v31  ;;  %v10002_v45 = vadd.f32 %v13480_v37, %v14713_v36  ;;  %v13655_v51 = vpop.eup %13654  ;;  %13670 = vtanh.f32 %v9999_v30  ;;  %v10516_v59 = vmul.f32 %v13651_v35, %v14743_v41  ;;  %v6984_v60 = vcombine.low %v875_v42, %v876_v43  ;;  %v374_v30 = vld [vmem:[#allocation3 + $0x127] sm:$0x1] }
 0x120   :  { %v9397_v52 = vpop.f32.mrf.mxu1  ;;  %11034 = vadd.xlane.f32.xlu1 %v11033_v46  ;;  %v10387_v62 = vmul.f32 %v13653_v44, %v14743_v41  ;;  %v6981_v63 = vcombine.low %v6973_v47, %v6980_v55  ;;  %v6985_v1 = vcombine.low %v877_v48, %v878_v49  ;;  %v6992_v5 = vrot.slane %v6982_v50, %v14254_v7 }
 0x121   :  { %v13657_v57 = vpop.eup %13656  ;;  %v10000_v58 = vadd.f32 %v14713_v36, %v9397_v52  ;;  %13672 = vtanh.f32 %v10002_v45  ;;  %v6999_v6 = vrot.slane %v6983_v56, %v14254_v7  ;;  %v10664_v12 = vsel %vm8415_vm0, %v10388_v39, 0.0 }
 0x122   :  { %v13483_v61 = vpop.f32.mrf.mxu1  ;;  %v10517_v2 = vmul.f32 %v13657_v57, %v14743_v41  ;;  %v14843_v14 = vsel %vm8415_vm0, %v10386_v54, 0.0  ;;  %13533 = vmatprep.mubr.msk.bf16.mxu1 %vm8415_vm0, %v6981_v63  ;;  %v7006_v15 = vrot.slane %v6984_v60, %v14254_v7  ;;  %v7013_v16 = vrot.slane %v6985_v1, %v14254_v7 }
 0x123   :  { %11031 = vadd.xlane.f32.xlu0 %v11030_v38  ;;  %v10005_v3 = vadd.f32 %v13483_v61, %v14699_v11  ;;  %v13659_v10 = vpop.eup %13658  ;;  %13674 = vtanh.f32 %v10000_v58  ;;  %v11048_v19 = vsel %vm8415_vm0, %v10516_v59, 0.0  ;;  %v10514_v20 = vmul.f32 %v13655_v51, %v14743_v41 }
 0x124   :  { %10668 = vadd.xlane.f32.xlu1 %v10667_v53  ;;  %v9410_v13 = vpop.f32.mrf.mxu1  ;;  %v7014_v21 = vcombine.low %v6992_v5, %v6999_v6  ;;  %v13661_v24 = vpop.eup %13660  ;;  %v10661_v26 = vsel %vm8415_vm0, %v10387_v62, 0.0  ;;  %v7015_v28 = vcombine.low %v7006_v15, %v7013_v16  ;;  %v11051_v32 = vsel %vm8415_vm0, %v10517_v2, 0.0  ;;  %v375_v62 = vld [vmem:[#allocation3 + $0x128] sm:$0x1]  ;;  %v376_v6 = vld [vmem:[#allocation3 + $0x129] sm:$0x1] }
 0x125   :  { %13676 = vtanh.f32 %v10005_v3  ;;  %v10003_v25 = vadd.f32 %v14699_v11, %v9410_v13  ;;  %v10515_v34 = vmul.f32 %v13659_v10, %v14743_v41  ;;  %v3895_v37 = vcombine.low %v367_v8, %v368_v9  ;;  %v377_v8 = vld [vmem:[#allocation3 + $0x12a] sm:$0x1]  ;;  %v378_v9 = vld [vmem:[#allocation3 + $0x12b] sm:$0x1] }
 0x126   :  { %v13484_v27 = vpop.f32.mrf.mxu1  ;;  %v13663_v31 = vpop.eup %13662  ;;  %v7022_v35 = vrot.slane %v7014_v21, %v14254_v7  ;;  %v7029_v43 = vrot.slane %v7015_v28, %v14254_v7  ;;  %v3896_v44 = vcombine.low %v369_v17, %v370_v18  ;;  %v14859_v45 = vsel %vm8415_vm0, %v10514_v20, 0.0  ;;  %v379_v17 = vld [vmem:[#allocation3 + $0x12c] sm:$0x1]  ;;  %v380_v18 = vld [vmem:[#allocation3 + $0x12d] sm:$0x1] }
 0x127   :  { %10665 = vadd.xlane.f32.xlu0 %v10664_v12  ;;  %v13355_v33 = vpop.f32.mrf.mxu0  ;;  %v10006_v40 = vadd.f32 %v13484_v27, %v14713_v36  ;;  %v10392_v47 = vmul.f32 %v13661_v24, %v14743_v41  ;;  %v3897_v48 = vcombine.low %v371_v22, %v372_v23  ;;  %v3898_v49 = vcombine.low %v373_v29, %v374_v30  ;;  %v381_v23 = vld [vmem:[#allocation3 + $0x12e] sm:$0x1]  ;;  %v382_v24 = vld [vmem:[#allocation3 + $0x12f] sm:$0x1] }
 0x128   :  { %v13665_v38 = vpop.eup %13664  ;;  %11052 = vadd.xlane.f32.xlu1 %v11051_v32  ;;  %v9877_v39 = vadd.f32 %v13355_v33, %v14699_v11  ;;  %v9413_v42 = vpop.f32.mrf.mxu1  ;;  %13678 = vtanh.f32 %v10003_v25  ;;  %v7030_v52 = vcombine.low %v7022_v35, %v7029_v43  ;;  %v10390_v53 = vmul.f32 %v13663_v31, %v14743_v41 }
 0x129   :  { %v8898_v46 = vpop.f32.mrf.mxu0  ;;  %v10004_v51 = vadd.f32 %v14713_v36, %v9413_v42  ;;  %v10393_v57 = vmul.f32 %v13665_v38, %v14743_v41  ;;  %v3905_v58 = vrot.slane %v3895_v37, %v14254_v7  ;;  %v11045_v59 = vsel %vm8415_vm0, %v10515_v34, 0.0 }
 0x12a   :  { %v13667_v50 = vpop.eup %13666  ;;  %13680 = vtanh.f32 %v9877_v39  ;;  %v9875_v55 = vadd.f32 %v14699_v11, %v8898_v46  ;;  %13534 = vmatmul.mubr.msk.bf16.gmra.mxu1 %vm8415_vm0, %v7030_v52  ;;  %v3912_v61 = vrot.slane %v3896_v44, %v14254_v7  ;;  %v3919_v3 = vrot.slane %v3897_v48, %v14254_v7  ;;  %v879_v44 = vld [vmem:[#allocation3 + $0x320] sm:$0x1]  ;;  %v880_v46 = vld [vmem:[#allocation3 + $0x321] sm:$0x1] }
 0x12b   :  { %v13669_v54 = vpop.eup %13668  ;;  %11049 = vadd.xlane.f32.xlu0 %v11048_v19  ;;  %v13356_v56 = vpop.f32.mrf.mxu0  ;;  %13682 = vtanh.f32 %v10006_v40  ;;  %v10520_v60 = vmul.f32 %v13667_v50, %v14743_v41  ;;  %v3926_v5 = vrot.slane %v3898_v49, %v14254_v7  ;;  %v10676_v12 = vsel %vm8415_vm0, %v10392_v47, 0.0  ;;  %v881_v47 = vld [vmem:[#allocation3 + $0x322] sm:$0x1] }
 0x12c   :  { %10662 = vadd.xlane.f32.xlu1 %v10661_v26  ;;  %v9878_v63 = vadd.f32 %v13356_v56, %v14713_v36  ;;  %v10391_v2 = vmul.f32 %v13669_v54, %v14743_v41  ;;  %v13671_v10 = vpop.eup %13670  ;;  %13684 = vtanh.f32 %v10004_v51  ;;  %v14877_v15 = vsel %vm8415_vm0, %v10390_v53, 0.0  ;;  %v883_v53 = vld [vmem:[#allocation3 + $0x324] sm:$0x1]  ;;  %v884_v54 = vld [vmem:[#allocation3 + $0x325] sm:$0x1] }
 0x12d   :  { %v8901_v1 = vpop.f32.mrf.mxu0  ;;  %v3927_v16 = vcombine.low %v3905_v58, %v3912_v61  ;;  %13686 = vtanh.f32 %v9875_v55  ;;  %v10679_v20 = vsel %vm8415_vm0, %v10393_v57, 0.0  ;;  %v3928_v22 = vcombine.low %v3919_v3, %v3926_v5 }
 0x12e   :  { %v13487_v13 = vpop.f32.mrf.mxu1  ;;  %v13673_v19 = vpop.eup %13672  ;;  %v9876_v21 = vadd.f32 %v14713_v36, %v8901_v1  ;;  %v14883_v25 = vsel %vm8415_vm0, %v10520_v60, 0.0  ;;  %v3944_v28 = vcombine.low %v375_v62, %v376_v6  ;;  %v3945_v29 = vcombine.low %v377_v8, %v378_v9  ;;  %v886_v1 = vld [vmem:[#allocation3 + $0x327] sm:$0x1] }
 0x12f   :  { %10659 = vadd.xlane.f32.xlu0 %v14843_v14  ;;  %v3935_v27 = vrot.slane %v3927_v16, %v14254_v7  ;;  %13688 = vtanh.f32 %v9878_v63  ;;  %v10009_v14 = vadd.f32 %v13487_v13, %v14699_v11  ;;  %v14888_v30 = vsel %vm8415_vm0, %v10391_v2, 0.0  ;;  %v885_v63 = vld [vmem:[#allocation3 + $0x326] sm:$0x1] }
 0x130   :  { %11046 = vadd.xlane.f32.xlu1 %v11045_v59  ;;  %v9426_v26 = vpop.f32.mrf.mxu1  ;;  %v10518_v31 = vmul.f32 %v13671_v10, %v14743_v41  ;;  %v13675_v32 = vpop.eup %13674  ;;  %v3942_v34 = vrot.slane %v3928_v22, %v14254_v7  ;;  %v3946_v35 = vcombine.low %v379_v17, %v380_v18  ;;  %v3947_v37 = vcombine.low %v381_v23, %v382_v24  ;;  %v887_v18 = vld [vmem:[#allocation3 + $0x328] sm:$0x1]  ;;  %v889_v23 = vld [vmem:[#allocation3 + $0x32a] sm:$0x1]  ;;  %v890_v24 = vld [vmem:[#allocation3 + $0x32b] sm:$0x1] }
 0x131   :  { %v3954_v38 = vrot.slane %v3944_v28, %v14254_v7  ;;  %13690 = vtanh.f32 %v9876_v21  ;;  %v10521_v40 = vmul.f32 %v13673_v19, %v14743_v41  ;;  %v10007_v42 = vadd.f32 %v14699_v11, %v9426_v26  ;;  %v888_v19 = vld [vmem:[#allocation3 + $0x329] sm:$0x1] }
 0x132   :  { %v13488_v33 = vpop.f32.mrf.mxu1  ;;  %v13677_v39 = vpop.eup %13676  ;;  %v3943_v49 = vcombine.low %v3935_v27, %v3942_v34  ;;  %v3961_v50 = vrot.slane %v3945_v29, %v14254_v7  ;;  %v3968_v51 = vrot.slane %v3946_v35, %v14254_v7  ;;  %v3975_v52 = vrot.slane %v3947_v37, %v14254_v7 }
 0x133   :  { %11043 = vadd.xlane.f32.xlu0 %v14859_v45  ;;  %v10010_v43 = vadd.f32 %v13488_v33, %v14713_v36  ;;  %v882_v45 = vld [vmem:[#allocation3 + $0x323] sm:$0x1]  ;;  %13692 = vtanh.f32 %v10009_v14  ;;  %v14902_v57 = vsel %vm8415_vm0, %v10518_v31, 0.0  ;;  %v10519_v58 = vmul.f32 %v13675_v32, %v14743_v41  ;;  %v891_v31 = vld [vmem:[#allocation3 + $0x32c] sm:$0x1] }
 0x134   :  { %10680 = vadd.xlane.f32.xlu1 %v10679_v20  ;;  %v13359_v48 = vpop.f32.mrf.mxu0  ;;  %v9429_v56 = vpop.f32.mrf.mxu1  ;;  %v10524_v60 = vmul.f32 %v13677_v39, %v14743_v41  ;;  %13409 = vmatprep.mubr.msk.bf16.mxu0 %vm8415_vm0, %v3943_v49  ;;  %v3976_v61 = vcombine.low %v3954_v38, %v3961_v50  ;;  %v3977_v62 = vcombine.low %v3968_v51, %v3975_v52  ;;  %v11063_v5 = vsel %vm8415_vm0, %v10521_v40, 0.0  ;;  %v892_v32 = vld [vmem:[#allocation3 + $0x32d] sm:$0x1]  ;;  %v893_v38 = vld [vmem:[#allocation3 + $0x32e] sm:$0x1] }
 0x135   :  { %v9881_v55 = vadd.f32 %v13359_v48, %v14699_v11  ;;  %v7031_v2 = vcombine.low %v879_v44, %v880_v46  ;;  %v13679_v3 = vpop.eup %13678  ;;  %13694 = vtanh.f32 %v10007_v42  ;;  %v7032_v6 = vcombine.low %v881_v47, %v882_v45  ;;  %v894_v39 = vld [vmem:[#allocation3 + $0x32f] sm:$0x1] }
 0x136   :  { %v8914_v59 = vpop.f32.mrf.mxu0  ;;  %v7033_v8 = vcombine.low %v883_v53, %v884_v54  ;;  %13696 = vtanh.f32 %v10010_v43  ;;  %v10008_v13 = vadd.f32 %v14713_v36, %v9429_v56  ;;  %v3984_v16 = vrot.slane %v3976_v61, %v14254_v7  ;;  %v14935_v53 = vld [vmem:[%s17374_s0] sm:$0xff] }
 0x137   :  { %10677 = vadd.xlane.f32.xlu0 %v10676_v12  ;;  %v13681_v9 = vpop.eup %13680  ;;  %v3991_v17 = vrot.slane %v3977_v62, %v14254_v7  ;;  %13698 = vtanh.f32 %v9881_v55  ;;  %v9879_v12 = vadd.f32 %v14699_v11, %v8914_v59  ;;  %v11057_v21 = vsel %vm8415_vm0, %v10519_v58, 0.0 }
 0x138   :  { %11064 = vadd.xlane.f32.xlu1 %v11063_v5  ;;  %v13360_v10 = vpop.f32.mrf.mxu0  ;;  %v13683_v20 = vpop.eup %13682  ;;  %v7034_v22 = vcombine.low %v885_v63, %v886_v1  ;;  %v14914_v27 = vsel %vm8415_vm0, %v10524_v60, 0.0  ;;  %v14917_v29 = vmul.f32 %v13679_v3, %v14743_v41  ;;  %v7041_v14 = vrot.slane %v7031_v2, %v14254_v7  ;;  %v14947_v63 = vld [vmem:[%s17374_s0 + $0x8] sm:$0xff] }
 0x139   :  { %v3992_v28 = vcombine.low %v3984_v16, %v3991_v17  ;;  %v13685_v33 = vpop.eup %13684  ;;  %v9882_v11 = vadd.f32 %v13360_v10, %v14713_v36  ;;  %v10396_v34 = vmul.f32 %v13681_v9, %v14743_v41  ;;  %v7048_v35 = vrot.slane %v7032_v6, %v14254_v7  ;;  %v383_v16 = vld [vmem:[#allocation3 + $0x130] sm:$0x1]  ;;  %v384_v17 = vld [vmem:[#allocation3 + $0x131] sm:$0x1] }
 0x13a   :  { %v8917_v26 = vpop.f32.mrf.mxu0  ;;  %v7055_v37 = vrot.slane %v7033_v8, %v14254_v7  ;;  %v13687_v40 = vpop.eup %13686  ;;  %13700 = vtanh.f32 %v10008_v13  ;;  %v7062_v43 = vrot.slane %v7034_v22, %v14254_v7  ;;  %v7081_v44 = vcombine.low %v889_v23, %v890_v24  ;;  %v387_v22 = vld [vmem:[#allocation3 + $0x134] sm:$0x1]  ;;  %v388_v23 = vld [vmem:[#allocation3 + $0x135] sm:$0x1] }
 0x13b   :  { %11061 = vadd.xlane.f32.xlu0 %v14883_v25  ;;  %13410 = vmatmul.mubr.msk.bf16.gmra.mxu0 %vm8415_vm0, %v3992_v28  ;;  %v7080_v25 = vcombine.low %v887_v18, %v888_v19  ;;  %13702 = vtanh.f32 %v9879_v12  ;;  %v9880_v46 = vadd.f32 %v14713_v36, %v8917_v26  ;;  %v7063_v47 = vcombine.low %v7041_v14, %v7048_v35  ;;  %v385_v18 = vld [vmem:[#allocation3 + $0x132] sm:$0x1]  ;;  %v389_v14 = vld [vmem:[#allocation3 + $0x136] sm:$0x1] }
 0x13c   :  { %10674 = vadd.xlane.f32.xlu1 %v14888_v30  ;;  %v13363_v42 = vpop.f32.mrf.mxu0  ;;  %v7082_v48 = vcombine.low %v891_v31, %v892_v32  ;;  %v13689_v49 = vpop.eup %13688  ;;  %v7064_v51 = vcombine.low %v7055_v37, %v7062_v43  ;;  %v7083_v52 = vcombine.low %v893_v38, %v894_v39  ;;  %v7097_v30 = vrot.slane %v7081_v44, %v14254_v7  ;;  %v390_v31 = vld [vmem:[#allocation3 + $0x137] sm:$0x1]  ;;  %v393_v43 = vld [vmem:[#allocation3 + $0x13a] sm:$0x1] }
 0x13d   :  { %v7090_v45 = vrot.slane %v7080_v25, %v14254_v7  ;;  %13704 = vtanh.f32 %v9882_v11  ;;  %v9885_v36 = vadd.f32 %v14935_v53, %v13363_v42  ;;  %v7071_v54 = vrot.slane %v7063_v47, %v14254_v7  ;;  %v392_v42 = vld [vmem:[#allocation3 + $0x139] sm:$0x1]  ;;  %v394_v47 = vld [vmem:[#allocation3 + $0x13b] sm:$0x1] }
 0x13e   :  { %v8930_v50 = vpop.f32.mrf.mxu0  ;;  %v7104_v55 = vrot.slane %v7082_v48, %v14254_v7  ;;  %v13691_v56 = vpop.eup %13690  ;;  %v7078_v59 = vrot.slane %v7064_v51, %v14254_v7  ;;  %13706 = vtanh.f32 %v9880_v46  ;;  %v10394_v62 = vmul.f32 %v13687_v40, %v14743_v41  ;;  %v395_v48 = vld [vmem:[#allocation3 + $0x13c] sm:$0x1] }
 0x13f   :  { %10671 = vadd.xlane.f32.xlu0 %v14877_v15  ;;  %v9883_v58 = vadd.f32 %v14935_v53, %v8930_v50  ;;  %v7111_v15 = vrot.slane %v7083_v52, %v14254_v7  ;;  %v7112_v61 = vcombine.low %v7090_v45, %v7097_v30  ;;  %v10525_v3 = vmul.f32 %v13683_v20, %v14743_v41  ;;  %v396_v52 = vld [vmem:[#allocation3 + $0x13d] sm:$0x1]  ;;  %v397_v45 = vld [vmem:[#allocation3 + $0x13e] sm:$0x1]  ;;  %v398_v30 = vld [vmem:[#allocation3 + $0x13f] sm:$0x1] }
 0x140   :  { %11058 = vadd.xlane.f32.xlu1 %v11057_v21  ;;  %v13364_v60 = vpop.f32.mrf.mxu0  ;;  %v14951_v5 = vpop.eup %13692  ;;  %v7079_v6 = vcombine.low %v7071_v54, %v7078_v59  ;;  %v10397_v10 = vmul.f32 %v13689_v49, %v14743_v41  ;;  %13708 = vtanh.f32 %v9885_v36  ;;  %v10523_v20 = vmul.f32 %v13685_v33, %v14743_v41  ;;  %v386_v21 = vld [vmem:[#allocation3 + $0x133] sm:$0x1] }
 0x141   :  { %v9886_v1 = vadd.f32 %v14947_v63, %v13364_v60  ;;  %v13491_v2 = vpop.f32.mrf.mxu1  ;;  %v7113_v8 = vcombine.low %v7104_v55, %v7111_v15  ;;  %v7120_v9 = vrot.slane %v7112_v61, %v14254_v7  ;;  %v10688_v26 = vsel %vm8415_vm0, %v10396_v34, 0.0  ;;  %v391_v34 = vld [vmem:[#allocation3 + $0x138] sm:$0x1] }
 0x142   :  { %v8933_v13 = vpop.f32.mrf.mxu0  ;;  %v10013_v19 = vadd.f32 %v14935_v53, %v13491_v2  ;;  %v13695_v24 = vpop.eup %13694  ;;  %13710 = vtanh.f32 %v9883_v58  ;;  %13537 = vmatprep.mubr.msk.bf16.mxu1 %vm8415_vm0, %v7079_v6  ;;  %v11066_v33 = vsel %vm8415_vm0, %v14917_v29, 0.0  ;;  %v10682_v11 = vsel %vm8415_vm0, %v10394_v62, 0.0  ;;  %v895_v6 = vld [vmem:[#allocation3 + $0x330] sm:$0x1] }
 0x143   :  { %11055 = vadd.xlane.f32.xlu0 %v14902_v57  ;;  %v9442_v12 = vpop.f32.mrf.mxu1  ;;  %v7127_v28 = vrot.slane %v7113_v8, %v14254_v7  ;;  %v9884_v57 = vadd.f32 %v14947_v63, %v8933_v13  ;;  %v14963_v32 = vpop.eup %13696  ;;  %13712 = vtanh.f32 %v9886_v1  ;;  %v10691_v39 = vsel %vm8415_vm0, %v10397_v10, 0.0  ;;  %v896_v8 = vld [vmem:[#allocation3 + $0x331] sm:$0x1] }
 0x144   :  { %11073 = vadd.xlane.f32.xlu1 %v14914_v27  ;;  %v14969_v27 = vsel %vm8415_vm0, %v10525_v3, 0.0  ;;  %v13699_v35 = vpop.eup %13698  ;;  %v10011_v38 = vadd.f32 %v14935_v53, %v9442_v12  ;;  %v3993_v40 = vcombine.low %v383_v16, %v384_v17  ;;  %13714 = vtanh.f32 %v10013_v19  ;;  %v898_v19 = vld [vmem:[#allocation3 + $0x333] sm:$0x1] }
 0x145   :  { %v7128_v37 = vcombine.low %v7120_v9, %v7127_v28  ;;  %v13492_v25 = vpop.f32.mrf.mxu1  ;;  %v14974_v29 = vsel %vm8415_vm0, %v10523_v20, 0.0  ;;  %v10395_v44 = vmul.f32 %v13691_v56, %v14743_v41  ;;  %v3994_v46 = vcombine.low %v385_v18, %v386_v21  ;;  %v897_v18 = vld [vmem:[#allocation3 + $0x332] sm:$0x1] }
 0x146   :  { %13716 = vtanh.f32 %v9884_v57  ;;  %v10526_v49 = vmul.f32 %v13695_v24, %v14743_v41  ;;  %v3995_v50 = vcombine.low %v387_v22, %v388_v23  ;;  %v3996_v51 = vcombine.low %v389_v14, %v390_v31  ;;  %v899_v24 = vld [vmem:[#allocation3 + $0x334] sm:$0x1] }
 0x147   :  { %10689 = vadd.xlane.f32.xlu0 %v10688_v26  ;;  %13538 = vmatmul.mubr.msk.bf16.gmra.mxu1 %vm8415_vm0, %v7128_v37  ;;  %v14979_v36 = vpop.eup %13700  ;;  %v10400_v54 = vmul.f32 %v13699_v35, %v14743_v41  ;;  %v4003_v55 = vrot.slane %v3993_v40, %v14254_v7  ;;  %v4010_v56 = vrot.slane %v3994_v46, %v14254_v7  ;;  %13718 = vtanh.f32 %v10011_v38  ;;  %v9445_v1 = vpop.f32.mrf.mxu1  ;;  %v900_v26 = vld [vmem:[#allocation3 + $0x335] sm:$0x1]  ;;  %v904_v40 = vld [vmem:[#allocation3 + $0x339] sm:$0x1] }
 0x148   :  { %11067 = vadd.xlane.f32.xlu1 %v11066_v33  ;;  %v4042_v58 = vcombine.low %v391_v34, %v392_v42  ;;  %v14984_v59 = vpop.eup %13702  ;;  %v4017_v60 = vrot.slane %v3995_v50, %v14254_v7  ;;  %v4024_v15 = vrot.slane %v3996_v51, %v14254_v7  ;;  %v4043_v61 = vcombine.low %v393_v43, %v394_v47  ;;  %v13367_v21 = vpop.f32.mrf.mxu0  ;;  %v902_v34 = vld [vmem:[#allocation3 + $0x337] sm:$0x1]  ;;  %v905_v47 = vld [vmem:[#allocation3 + $0x33a] sm:$0x1] }
 0x149   :  { %v10014_v62 = vadd.f32 %v14947_v63, %v13492_v25  ;;  %v4025_v2 = vcombine.low %v4003_v55, %v4010_v56  ;;  %v4044_v3 = vcombine.low %v395_v48, %v396_v52  ;;  %v4045_v41 = vcombine.low %v397_v45, %v398_v30  ;;  %v906_v48 = vld [vmem:[#allocation3 + $0x33b] sm:$0x1]  ;;  %v909_v55 = vld [vmem:[#allocation3 + $0x33e] sm:$0x1]  ;;  %v910_v56 = vld [vmem:[#allocation3 + $0x33f] sm:$0x1] }
 0x14a   :  { %v13705_v9 = vpop.eup %13704  ;;  %v10685_v10 = vsel %vm8415_vm0, %v10395_v44, 0.0  ;;  %v4026_v13 = vcombine.low %v4017_v60, %v4024_v15  ;;  %v4052_v16 = vrot.slane %v4042_v58, %v14254_v7  ;;  %v4059_v17 = vrot.slane %v4043_v61, %v14254_v7  ;;  %v8946_v51 = vpop.f32.mrf.mxu0  ;;  %v15017_v60 = vld [vmem:[%s17377_s3] ss:$0 sm:$0xff] }
 0x14b   :  { %10683 = vadd.xlane.f32.xlu0 %v10682_v11  ;;  %v11078_v12 = vsel %vm8415_vm0, %v10526_v49, 0.0  ;;  %v4033_v20 = vrot.slane %v4025_v2, %v14254_v7  ;;  %v4066_v22 = vrot.slane %v4044_v3, %v14254_v7  ;;  %v4073_v23 = vrot.slane %v4045_v41, %v14254_v7  ;;  %v14996_v28 = vpop.eup %13706  ;;  %v901_v11 = vld [vmem:[#allocation3 + $0x336] sm:$0x1]  ;;  %v907_v49 = vld [vmem:[#allocation3 + $0x33c] sm:$0x1] }
 0x14c   :  { %10692 = vadd.xlane.f32.xlu1 %v10691_v39  ;;  %v10012_v57 = vadd.f32 %v14947_v63, %v9445_v1  ;;  %v10700_v14 = vsel %vm8415_vm0, %v10400_v54, 0.0  ;;  %v4040_v31 = vrot.slane %v4026_v13, %v14254_v7  ;;  %v4074_v33 = vcombine.low %v4052_v16, %v4059_v17  ;;  %v903_v39 = vld [vmem:[#allocation3 + $0x338] sm:$0x1]  ;;  %v908_v54 = vld [vmem:[#allocation3 + $0x33d] sm:$0x1] }
 0x14d   :  { %13720 = vtanh.f32 %v10014_v62  ;;  %v4075_v35 = vcombine.low %v4066_v22, %v4073_v23  ;;  %v7129_v37 = vcombine.low %v895_v6, %v896_v8  ;;  %v7130_v38 = vcombine.low %v897_v18, %v898_v19  ;;  %v15002_v42 = vpop.eup %13708  ;;  %v13368_v19 = vpop.f32.mrf.mxu0 }
 0x14e   :  { %v4041_v43 = vcombine.low %v4033_v20, %v4040_v31  ;;  %v9889_v25 = vadd.f32 %v14935_v53, %v13367_v21  ;;  %v4082_v44 = vrot.slane %v4074_v33, %v14254_v7  ;;  %v7131_v46 = vcombine.low %v899_v24, %v900_v26  ;;  %v13495_v21 = vpop.f32.mrf.mxu1 }
 0x14f   :  { %11076 = vadd.xlane.f32.xlu0 %v14969_v27  ;;  %v15006_v50 = vpop.eup %13710  ;;  %v4089_v27 = vrot.slane %v4075_v35, %v14254_v7  ;;  %v7132_v52 = vcombine.low %v901_v11, %v902_v34  ;;  %v7139_v45 = vrot.slane %v7129_v37, %v14254_v7  ;;  %v7146_v30 = vrot.slane %v7130_v38, %v14254_v7  ;;  %v399_v11 = vld [vmem:[#allocation3 + $0x140] sm:$0x1]  ;;  %v400_v35 = vld [vmem:[#allocation3 + $0x141] sm:$0x1]  ;;  %v401_v37 = vld [vmem:[#allocation3 + $0x142] sm:$0x1] }
 0x150   :  { %10686 = vadd.xlane.f32.xlu1 %v10685_v10  ;;  %v15011_v58 = vpop.eup %13712  ;;  %13722 = vtanh.f32 %v10012_v57  ;;  %13413 = vmatprep.mubr.msk.bf16.mxu0 %vm8415_vm0, %v4041_v43  ;;  %v10401_v15 = vmul.f32 %v15017_v60, %v13705_v9  ;;  %v7153_v61 = vrot.slane %v7131_v46, %v14254_v7  ;;  %v7178_v62 = vcombine.low %v903_v39, %v904_v40  ;;  %v402_v38 = vld [vmem:[#allocation3 + $0x143] sm:$0x1]  ;;  %v8949_v43 = vpop.f32.mrf.mxu0  ;;  %v404_v46 = vld [vmem:[#allocation3 + $0x145] sm:$0x1] }
 0x151   :  { %v4090_v1 = vcombine.low %v4082_v44, %v4089_v27  ;;  %v7160_v2 = vrot.slane %v7132_v52, %v14254_v7  ;;  %v7161_v3 = vcombine.low %v7139_v45, %v7146_v30  ;;  %v7179_v41 = vcombine.low %v905_v47, %v906_v48  ;;  %v15023_v6 = vpop.eup %13714  ;;  %v403_v44 = vld [vmem:[#allocation3 + $0x144] sm:$0x1]  ;;  %v405_v47 = vld [vmem:[#allocation3 + $0x146] sm:$0x1]  ;;  %v406_v48 = vld [vmem:[#allocation3 + $0x147] sm:$0x1]  ;;  %v9458_v27 = vpop.f32.mrf.mxu1 }
 0x152   :  { %v10528_v8 = vmul.f32 %v15017_v60, %v14951_v5  ;;  %v7180_v10 = vcombine.low %v907_v49, %v908_v54  ;;  %v7181_v13 = vcombine.low %v909_v55, %v910_v56  ;;  %v7188_v9 = vrot.slane %v7178_v62, %v14254_v7  ;;  %v407_v49 = vld [vmem:[#allocation3 + $0x148] sm:$0x1]  ;;  %v408_v52 = vld [vmem:[#allocation3 + $0x149] sm:$0x1]  ;;  %v409_v45 = vld [vmem:[#allocation3 + $0x14a] sm:$0x1] }
 0x153   :  { %11070 = vadd.xlane.f32.xlu0 %v14974_v29  ;;  %v15028_v16 = vpop.eup %13716  ;;  %13414 = vmatmul.mubr.msk.bf16.gmra.mxu0 %vm8415_vm0, %v4090_v1  ;;  %v9887_v29 = vadd.f32 %v14935_v53, %v8946_v51  ;;  %v7162_v17 = vcombine.low %v7153_v61, %v7160_v2  ;;  %v7169_v18 = vrot.slane %v7161_v3, %v14254_v7  ;;  %13724 = vtanh.f32 %v9889_v25  ;;  %v410_v61 = vld [vmem:[#allocation3 + $0x14b] sm:$0x1]  ;;  %v411_v62 = vld [vmem:[#allocation3 + $0x14c] sm:$0x1]  ;;  %v412_v1 = vld [vmem:[#allocation3 + $0x14d] sm:$0x1] }
 0x154   :  { %11079 = vadd.xlane.f32.xlu1 %v11078_v12  ;;  %v7195_v20 = vrot.slane %v7179_v41, %v14254_v7  ;;  %v10703_v12 = vsel %vm8415_vm0, %v10401_v15, 0.0  ;;  %v9890_v5 = vadd.f32 %v14947_v63, %v13368_v19  ;;  %v7202_v22 = vrot.slane %v7180_v10, %v14254_v7  ;;  %v15038_v24 = vpop.eup %13718  ;;  %v414_v10 = vld [vmem:[#allocation3 + $0x14f] sm:$0x1] }
 0x155   :  { %v7209_v23 = vrot.slane %v7181_v13, %v14254_v7  ;;  %v7176_v26 = vrot.slane %v7162_v17, %v14254_v7  ;;  %v10017_v57 = vadd.f32 %v14935_v53, %v13495_v21  ;;  %v10529_v33 = vmul.f32 %v15017_v60, %v14963_v32 }
 0x156   :  { %v7210_v31 = vcombine.low %v7188_v9, %v7195_v20  ;;  %13726 = vtanh.f32 %v9887_v29  ;;  %v11084_v32 = vsel %vm8415_vm0, %v10528_v8, 0.0  ;;  %v15054_v55 = vadd.f32 %v14935_v53, %v9458_v27  ;;  %v413_v8 = vld [vmem:[#allocation3 + $0x14e] sm:$0x1] }
 0x157   :  { %10701 = vadd.xlane.f32.xlu0 %v10700_v14  ;;  %v7211_v34 = vcombine.low %v7202_v22, %v7209_v23  ;;  %v7177_v39 = vcombine.low %v7169_v18, %v7176_v26  ;;  %v10398_v14 = vmul.f32 %v15017_v60, %v14984_v59  ;;  %13728 = vtanh.f32 %v9890_v5  ;;  %v911_v23 = vld [vmem:[#allocation3 + $0x340] sm:$0x1]  ;;  %v912_v26 = vld [vmem:[#allocation3 + $0x341] sm:$0x1] }
 0x158   :  { %10704 = vadd.xlane.f32.xlu1 %v10703_v12  ;;  %v7218_v40 = vrot.slane %v7210_v31, %v14254_v7  ;;  %13730 = vtanh.f32 %v10017_v57  ;;  %v11087_v51 = vsel %vm8415_vm0, %v10529_v33, 0.0  ;;  %v10399_v59 = vmul.f32 %v15017_v60, %v14996_v28 }
 0x159   :  { %v7225_v25 = vrot.slane %v7211_v34, %v14254_v7  ;;  %13541 = vmatprep.mubr.msk.bf16.mxu1 %vm8415_vm0, %v7177_v39  ;;  %v15057_v56 = vadd.f32 %v14947_v63, %v8949_v43  ;;  %v4091_v15 = vcombine.low %v399_v11, %v400_v35  ;;  %v10694_v2 = vsel %vm8415_vm0, %v10398_v14, 0.0  ;;  %v913_v34 = vld [vmem:[#allocation3 + $0x342] sm:$0x1]  ;;  %v914_v35 = vld [vmem:[#allocation3 + $0x343] sm:$0x1] }
 0x15a   :  { %v13721_v30 = vpop.eup %13720  ;;  %v10527_v28 = vmul.f32 %v15017_v60, %v14979_v36  ;;  %v10405_v3 = vmul.f32 %v15017_v60, %v15011_v58  ;;  %v4092_v41 = vcombine.low %v401_v37, %v402_v38  ;;  %v10697_v13 = vsel %vm8415_vm0, %v10399_v59, 0.0  ;;  %v13496_v37 = vpop.f32.mrf.mxu1  ;;  %v915_v14 = vld [vmem:[#allocation3 + $0x344] sm:$0x1]  ;;  %v916_v43 = vld [vmem:[#allocation3 + $0x345] sm:$0x1] }
 0x15b   :  { %11085 = vadd.xlane.f32.xlu0 %v11084_v32  ;;  %v7226_v54 = vcombine.low %v7218_v40, %v7225_v25  ;;  %v4093_v9 = vcombine.low %v403_v44, %v404_v46  ;;  %v4094_v29 = vcombine.low %v405_v47, %v406_v48  ;;  %v4101_v17 = vrot.slane %v4091_v15, %v14254_v7  ;;  %v917_v32 = vld [vmem:[#allocation3 + $0x346] sm:$0x1]  ;;  %v918_v25 = vld [vmem:[#allocation3 + $0x347] sm:$0x1] }
 0x15c   :  { %11088 = vadd.xlane.f32.xlu1 %v11087_v51  ;;  %v4108_v19 = vrot.slane %v4092_v41, %v14254_v7  ;;  %v4140_v36 = vcombine.low %v407_v49, %v408_v52  ;;  %v4141_v20 = vcombine.low %v409_v45, %v410_v61  ;;  %v4142_v12 = vcombine.low %v411_v62, %v412_v1  ;;  %v919_v61 = vld [vmem:[#allocation3 + $0x348] sm:$0x1]  ;;  %v920_v62 = vld [vmem:[#allocation3 + $0x349] sm:$0x1]  ;;  %v921_v1 = vld [vmem:[#allocation3 + $0x34a] sm:$0x1]  ;;  %v13371_v41 = vpop.f32.mrf.mxu0 }
 0x15d   :  { %13542 = vmatmul.mubr.msk.bf16.gmra.mxu1 %vm8415_vm0, %v7226_v54  ;;  %v15067_v18 = vpop.eup %13722  ;;  %v10404_v58 = vmul.f32 %v15017_v60, %v15002_v42  ;;  %v4115_v5 = vrot.slane %v4093_v9, %v14254_v7  ;;  %v4122_v21 = vrot.slane %v4094_v29, %v14254_v7  ;;  %v4143_v22 = vcombine.low %v413_v8, %v414_v10  ;;  %v922_v9 = vld [vmem:[#allocation3 + $0x34b] sm:$0x1]  ;;  %v923_v29 = vld [vmem:[#allocation3 + $0x34c] sm:$0x1] }
 0x15e   :  { %v4123_v57 = vcombine.low %v4101_v17, %v4108_v19  ;;  %v4150_v31 = vrot.slane %v4140_v36, %v14254_v7  ;;  %v4157_v33 = vrot.slane %v4141_v20, %v14254_v7  ;;  %v4164_v11 = vrot.slane %v4142_v12, %v14254_v7  ;;  %v924_v17 = vld [vmem:[#allocation3 + $0x34d] sm:$0x1]  ;;  %v925_v12 = vld [vmem:[#allocation3 + $0x34e] sm:$0x1] }
 0x15f   :  { %10695 = vadd.xlane.f32.xlu0 %v10694_v2  ;;  %v11081_v38 = vsel %vm8415_vm0, %v10527_v28, 0.0  ;;  %v10715_v42 = vsel %vm8415_vm0, %v10405_v3, 0.0  ;;  %v4124_v39 = vcombine.low %v4115_v5, %v4122_v21  ;;  %v4171_v40 = vrot.slane %v4143_v22, %v14254_v7  ;;  %v9461_v28 = vpop.f32.mrf.mxu1 }
 0x160   :  { %10698 = vadd.xlane.f32.xlu1 %v10697_v13  ;;  %v4131_v44 = vrot.slane %v4123_v57, %v14254_v7  ;;  %v4172_v46 = vcombine.low %v4150_v31, %v4157_v33  ;;  %v10533_v47 = vmul.f32 %v15017_v60, %v13721_v30  ;;  %v7227_v48 = vcombine.low %v911_v23, %v912_v26  ;;  %v15085_v52 = vpop.eup %13724 }
 0x161   :  { %v10018_v49 = vadd.f32 %v14947_v63, %v13496_v37  ;;  %v10712_v27 = vsel %vm8415_vm0, %v10404_v58, 0.0  ;;  %v4138_v51 = vrot.slane %v4124_v39, %v14254_v7  ;;  %v4173_v59 = vcombine.low %v4164_v11, %v4171_v40  ;;  %v926_v58 = vld [vmem:[#allocation3 + $0x34f] sm:$0x1]  ;;  %v8962_v11 = vpop.f32.mrf.mxu0 }
 0x162   :  { %v4180_v45 = vrot.slane %v4172_v46, %v14254_v7  ;;  %v10532_v54 = vmul.f32 %v15017_v60, %v15023_v6  ;;  %v7228_v15 = vcombine.low %v913_v34, %v914_v35  ;;  %v7229_v30 = vcombine.low %v915_v14, %v916_v43 }
 0x163   :  { %11082 = vadd.xlane.f32.xlu0 %v11081_v38  ;;  %v15090_v2 = vpop.eup %13726  ;;  %v4139_v3 = vcombine.low %v4131_v44, %v4138_v51  ;;  %v4187_v8 = vrot.slane %v4173_v59, %v14254_v7  ;;  %v7230_v10 = vcombine.low %v917_v32, %v918_v25  ;;  %v7237_v13 = vrot.slane %v7227_v48, %v14254_v7  ;;  %v416_v25 = vld [vmem:[#allocation3 + $0x151] sm:$0x1]  ;;  %v417_v48 = vld [vmem:[#allocation3 + $0x152] sm:$0x1]  ;;  %v13372_v51 = vpop.f32.mrf.mxu0 }
 0x164   :  { %10716 = vadd.xlane.f32.xlu1 %v10715_v42  ;;  %v15094_v19 = vpop.eup %13728  ;;  %13732 = vtanh.f32 %v15054_v55  ;;  %v11099_v6 = vsel %vm8415_vm0, %v10533_v47, 0.0  ;;  %v7244_v36 = vrot.slane %v7228_v15, %v14254_v7  ;;  %v7251_v20 = vrot.slane %v7229_v30, %v14254_v7  ;;  %v415_v47 = vld [vmem:[#allocation3 + $0x150] sm:$0x1]  ;;  %v419_v15 = vld [vmem:[#allocation3 + $0x154] sm:$0x1] }
 0x165   :  { %v15100_v5 = vpop.eup %13730  ;;  %13734 = vtanh.f32 %v10018_v49  ;;  %13417 = vmatprep.mubr.msk.bf16.mxu0 %vm8415_vm0, %v4139_v3  ;;  %v4188_v21 = vcombine.low %v4180_v45, %v4187_v8  ;;  %v7258_v22 = vrot.slane %v7230_v10, %v14254_v7  ;;  %v7276_v23 = vcombine.low %v919_v61, %v920_v62  ;;  %v418_v49 = vld [vmem:[#allocation3 + $0x153] sm:$0x1]  ;;  %v420_v30 = vld [vmem:[#allocation3 + $0x155] sm:$0x1]  ;;  %v421_v61 = vld [vmem:[#allocation3 + $0x156] sm:$0x1] }
 0x166   :  { %v10016_v55 = vadd.f32 %v14947_v63, %v9461_v28  ;;  %v7259_v26 = vcombine.low %v7237_v13, %v7244_v36  ;;  %v7277_v57 = vcombine.low %v921_v1, %v922_v9  ;;  %v7278_v31 = vcombine.low %v923_v29, %v924_v17  ;;  %v422_v62 = vld [vmem:[#allocation3 + $0x157] sm:$0x1]  ;;  %v423_v1 = vld [vmem:[#allocation3 + $0x158] sm:$0x1]  ;;  %v13499_v28 = vpop.f32.mrf.mxu1  ;;  %v424_v10 = vld [vmem:[#allocation3 + $0x159] sm:$0x1] }
 0x167   :  { %10713 = vadd.xlane.f32.xlu0 %v10712_v27  ;;  %13418 = vmatmul.mubr.msk.bf16.gmra.mxu0 %vm8415_vm0, %v4188_v21  ;;  %v11096_v33 = vsel %vm8415_vm0, %v10532_v54, 0.0  ;;  %v7260_v34 = vcombine.low %v7251_v20, %v7258_v22  ;;  %v7279_v35 = vcombine.low %v925_v12, %v926_v58  ;;  %v7286_v37 = vrot.slane %v7276_v23, %v14254_v7  ;;  %v425_v13 = vld [vmem:[#allocation3 + $0x15a] sm:$0x1]  ;;  %v426_v9 = vld [vmem:[#allocation3 + $0x15b] sm:$0x1] }
 0x168   :  { %11100 = vadd.xlane.f32.xlu1 %v11099_v6  ;;  %v9893_v38 = vadd.f32 %v14935_v53, %v13371_v41  ;;  %v7267_v42 = vrot.slane %v7259_v26, %v14254_v7  ;;  %v7293_v39 = vrot.slane %v7277_v57, %v14254_v7  ;;  %v7300_v40 = vrot.slane %v7278_v31, %v14254_v7  ;;  %v427_v36 = vld [vmem:[#allocation3 + $0x15c] sm:$0x1]  ;;  %v428_v20 = vld [vmem:[#allocation3 + $0x15d] sm:$0x1]  ;;  %v429_v21 = vld [vmem:[#allocation3 + $0x15e] sm:$0x1]  ;;  %v15145_v31 = vpop.f32.mrf.mxu1 }
 0x169   :  { %v7274_v14 = vrot.slane %v7260_v34, %v14254_v7  ;;  %v7307_v43 = vrot.slane %v7279_v35, %v14254_v7  ;;  %v10402_v44 = vmul.f32 %v15017_v60, %v15006_v50  ;;  %v10403_v46 = vmul.f32 %v15017_v60, %v15028_v16  ;;  %v430_v22 = vld [vmem:[#allocation3 + $0x15f] sm:$0x1] }
 0x16a   :  { %13736 = vtanh.f32 %v15057_v56  ;;  %v7308_v32 = vcombine.low %v7286_v37, %v7293_v39  ;;  %v9894_v50 = vadd.f32 %v14947_v63, %v13372_v51  ;;  %v10530_v56 = vmul.f32 %v15017_v60, %v15038_v24  ;;  %v13500_v51 = vpop.f32.mrf.mxu1 }
 0x16b   :  { %11097 = vadd.xlane.f32.xlu0 %v11096_v33  ;;  %v7275_v27 = vcombine.low %v7267_v42, %v7274_v14  ;;  %v7309_v59 = vcombine.low %v7300_v40, %v7307_v43  ;;  %v10706_v45 = vsel %vm8415_vm0, %v10402_v44, 0.0  ;;  %v10709_v54 = vsel %vm8415_vm0, %v10403_v46, 0.0  ;;  %v927_v46 = vld [vmem:[#allocation3 + $0x350] sm:$0x1] }
 0x16c   :  { %13738 = vtanh.f32 %v10016_v55  ;;  %v7316_v16 = vrot.slane %v7308_v32, %v14254_v7  ;;  %10710 = vadd.xlane.f32.xlu1 %v10709_v54  ;;  %v10531_v41 = vmul.f32 %v15017_v60, %v15067_v18  ;;  %v10408_v8 = vmul.f32 %v15017_v60, %v15085_v52 }
 0x16d   :  { %13740 = vtanh.f32 %v9893_v38  ;;  %13545 = vmatprep.mubr.msk.bf16.mxu1 %vm8415_vm0, %v7275_v27  ;;  %v7323_v3 = vrot.slane %v7309_v59, %v14254_v7  ;;  %v15132_v24 = vadd.f32 %v14935_v53, %v8962_v11  ;;  %v15135_v29 = vadd.f32 %v14935_v53, %v13499_v28  ;;  %v930_v27 = vld [vmem:[#allocation3 + $0x353] sm:$0x1] }
 0x16e   :  { %v11090_v17 = vsel %vm8415_vm0, %v10530_v56, 0.0  ;;  %v4189_v6 = vcombine.low %v415_v47, %v416_v25  ;;  %v11093_v18 = vsel %vm8415_vm0, %v10531_v41, 0.0  ;;  %v10409_v52 = vmul.f32 %v15017_v60, %v15094_v19  ;;  %v928_v47 = vld [vmem:[#allocation3 + $0x351] sm:$0x1] }
 0x16f   :  { %10707 = vadd.xlane.f32.xlu0 %v10706_v45  ;;  %v7324_v12 = vcombine.low %v7316_v16, %v7323_v3  ;;  %v4190_v58 = vcombine.low %v417_v48, %v418_v49  ;;  %13742 = vtanh.f32 %v9894_v50  ;;  %v4191_v23 = vcombine.low %v419_v15, %v420_v30  ;;  %v929_v49 = vld [vmem:[#allocation3 + $0x352] sm:$0x1]  ;;  %v931_v30 = vld [vmem:[#allocation3 + $0x354] sm:$0x1]  ;;  %v932_v50 = vld [vmem:[#allocation3 + $0x355] sm:$0x1] }
 0x170   :  { %11094 = vadd.xlane.f32.xlu1 %v11093_v18  ;;  %v4192_v55 = vcombine.low %v421_v61, %v422_v62  ;;  %v4199_v26 = vrot.slane %v4189_v6, %v14254_v7  ;;  %v10724_v33 = vsel %vm8415_vm0, %v10408_v8, 0.0  ;;  %v4238_v11 = vcombine.low %v423_v1, %v424_v10  ;;  %v933_v62 = vld [vmem:[#allocation3 + $0x356] sm:$0x1]  ;;  %v934_v1 = vld [vmem:[#allocation3 + $0x357] sm:$0x1] }
 0x171   :  { %v15142_v57 = vpop.eup %13732  ;;  %13546 = vmatmul.mubr.msk.bf16.gmra.mxu1 %vm8415_vm0, %v7324_v12  ;;  %v4206_v19 = vrot.slane %v4190_v58, %v14254_v7  ;;  %v4239_v34 = vcombine.low %v425_v13, %v426_v9  ;;  %v4213_v37 = vrot.slane %v4191_v23, %v14254_v7  ;;  %v4240_v42 = vcombine.low %v427_v36, %v428_v20  ;;  %v935_v13 = vld [vmem:[#allocation3 + $0x358] sm:$0x1]  ;;  %v936_v9 = vld [vmem:[#allocation3 + $0x359] sm:$0x1]  ;;  %v937_v12 = vld [vmem:[#allocation3 + $0x35a] sm:$0x1] }
 0x172   :  { %v13735_v35 = vpop.eup %13734  ;;  %v4220_v38 = vrot.slane %v4192_v55, %v14254_v7  ;;  %v4241_v39 = vcombine.low %v429_v21, %v430_v22  ;;  %v10727_v40 = vsel %vm8415_vm0, %v10409_v52, 0.0  ;;  %v4248_v43 = vrot.slane %v4238_v11, %v14254_v7  ;;  %v938_v18 = vld [vmem:[#allocation3 + $0x35b] sm:$0x1]  ;;  %v939_v52 = vld [vmem:[#allocation3 + $0x35c] sm:$0x1]  ;;  %v9477_v11 = vpop.f32.mrf.mxu1 }
 0x173   :  { %11091 = vadd.xlane.f32.xlu0 %v11090_v17  ;;  %v4221_v14 = vcombine.low %v4199_v26, %v4206_v19  ;;  %v4255_v44 = vrot.slane %v4239_v34, %v14254_v7  ;;  %v4262_v25 = vrot.slane %v4240_v42, %v14254_v7  ;;  %v10536_v54 = vmul.f32 %v15017_v60, %v15100_v5  ;;  %v8965_v17 = vpop.f32.mrf.mxu0  ;;  %v940_v55 = vld [vmem:[#allocation3 + $0x35d] sm:$0x1]  ;;  %v941_v26 = vld [vmem:[#allocation3 + $0x35e] sm:$0x1] }
 0x174   :  { %10728 = vadd.xlane.f32.xlu1 %v10727_v40  ;;  %v4222_v32 = vcombine.low %v4213_v37, %v4220_v38  ;;  %v4269_v48 = vrot.slane %v4241_v39, %v14254_v7  ;;  %v10537_v15 = vmul.f32 %v15017_v60, %v13735_v35  ;;  %v10022_v16 = vadd.f32 %v14947_v63, %v13500_v51 }
 0x175   :  { %v4229_v59 = vrot.slane %v4221_v14, %v14254_v7  ;;  %v4270_v45 = vcombine.low %v4248_v43, %v4255_v44  ;;  %v7325_v28 = vcombine.low %v927_v46, %v928_v47  ;;  %v11108_v8 = vsel %vm8415_vm0, %v10536_v54, 0.0  ;;  %v13375_v34 = vpop.f32.mrf.mxu0 }
 0x176   :  { %v4236_v56 = vrot.slane %v4222_v32, %v14254_v7  ;;  %v4271_v61 = vcombine.low %v4262_v25, %v4269_v48  ;;  %v11111_v10 = vsel %vm8415_vm0, %v10537_v15, 0.0  ;;  %v7326_v5 = vcombine.low %v929_v49, %v930_v27 }
 0x177   :  { %10725 = vadd.xlane.f32.xlu0 %v10724_v33  ;;  %v13737_v3 = vpop.eup %13736  ;;  %v4278_v41 = vrot.slane %v4270_v45, %v14254_v7  ;;  %v7327_v20 = vcombine.low %v931_v30, %v932_v50  ;;  %13744 = vtanh.f32 %v15135_v29  ;;  %v7328_v21 = vcombine.low %v933_v62, %v934_v1  ;;  %v942_v33 = vld [vmem:[#allocation3 + $0x35f] sm:$0x1]  ;;  %v15180_v49 = vpop.f32.mrf.mxu0  ;;  %v431_v30 = vld [vmem:[#allocation3 + $0x160] sm:$0x1]  ;;  %v433_v62 = vld [vmem:[#allocation3 + $0x162] sm:$0x1] }
 0x178   :  { %v4237_v6 = vcombine.low %v4229_v59, %v4236_v56  ;;  %v4285_v36 = vrot.slane %v4271_v61, %v14254_v7  ;;  %11112 = vadd.xlane.f32.xlu1 %v11111_v10  ;;  %v7335_v22 = vrot.slane %v7325_v28, %v14254_v7  ;;  %v7342_v23 = vrot.slane %v7326_v5, %v14254_v7  ;;  %v432_v61 = vld [vmem:[#allocation3 + $0x161] sm:$0x1]  ;;  %v13503_v10 = vpop.f32.mrf.mxu1 }
 0x179   :  { %v13739_v58 = vpop.eup %13738  ;;  %13746 = vtanh.f32 %v10022_v16  ;;  %v7349_v37 = vrot.slane %v7327_v20, %v14254_v7  ;;  %v7374_v38 = vcombine.low %v935_v13, %v936_v9  ;;  %v10019_v29 = vadd.f32 %v14935_v53, %v15145_v31 }
 0x17a   :  { %v13741_v19 = vpop.eup %13740  ;;  %13421 = vmatprep.mubr.msk.bf16.mxu0 %vm8415_vm0, %v4237_v6  ;;  %v4286_v35 = vcombine.low %v4278_v41, %v4285_v36  ;;  %v7356_v42 = vrot.slane %v7328_v21, %v14254_v7  ;;  %v7357_v39 = vcombine.low %v7335_v22, %v7342_v23  ;;  %v7375_v40 = vcombine.low %v937_v12, %v938_v18  ;;  %v436_v41 = vld [vmem:[#allocation3 + $0x165] sm:$0x1]  ;;  %v438_v6 = vld [vmem:[#allocation3 + $0x167] sm:$0x1]  ;;  %v439_v36 = vld [vmem:[#allocation3 + $0x168] sm:$0x1] }
 0x17b   :  { %11109 = vadd.xlane.f32.xlu0 %v11108_v8  ;;  %v9892_v14 = vadd.f32 %v14947_v63, %v8965_v17  ;;  %v7376_v43 = vcombine.low %v939_v52, %v940_v55  ;;  %v7377_v44 = vcombine.low %v941_v26, %v942_v33  ;;  %v7384_v46 = vrot.slane %v7374_v38, %v14254_v7  ;;  %v13376_v8 = vpop.f32.mrf.mxu0  ;;  %v437_v17 = vld [vmem:[#allocation3 + $0x166] sm:$0x1]  ;;  %v440_v21 = vld [vmem:[#allocation3 + $0x169] sm:$0x1]  ;;  %v441_v22 = vld [vmem:[#allocation3 + $0x16a] sm:$0x1] }
 0x17c   :  { %13422 = vmatmul.mubr.msk.bf16.gmra.mxu0 %vm8415_vm0, %v4286_v35  ;;  %v13743_v47 = vpop.eup %13742  ;;  %v10020_v32 = vadd.f32 %v14947_v63, %v9477_v11  ;;  %v7358_v25 = vcombine.low %v7349_v37, %v7356_v42  ;;  %v7365_v48 = vrot.slane %v7357_v39, %v14254_v7  ;;  %v7391_v31 = vrot.slane %v7375_v40, %v14254_v7  ;;  %v442_v23 = vld [vmem:[#allocation3 + $0x16b] sm:$0x1]  ;;  %v443_v33 = vld [vmem:[#allocation3 + $0x16c] sm:$0x1]  ;;  %v444_v11 = vld [vmem:[#allocation3 + $0x16d] sm:$0x1] }
 0x17d   :  { %v7398_v27 = vrot.slane %v7376_v43, %v14254_v7  ;;  %v7405_v51 = vrot.slane %v7377_v44, %v14254_v7  ;;  %v10406_v59 = vmul.f32 %v15017_v60, %v15090_v2  ;;  %v10407_v45 = vmul.f32 %v15017_v60, %v13737_v3  ;;  %v435_v3 = vld [vmem:[#allocation3 + $0x164] sm:$0x1]  ;;  %v445_v35 = vld [vmem:[#allocation3 + $0x16e] sm:$0x1]  ;;  %v446_v37 = vld [vmem:[#allocation3 + $0x16f] sm:$0x1] }
 0x17e   :  { %13748 = vtanh.f32 %v15132_v24  ;;  %v7372_v54 = vrot.slane %v7358_v25, %v14254_v7  ;;  %v7406_v15 = vcombine.low %v7384_v46, %v7391_v31  ;;  %v9897_v1 = vadd.f32 %v14935_v53, %v13375_v34  ;;  %v434_v24 = vld [vmem:[#allocation3 + $0x163] sm:$0x1] }
 0x17f   :  { %13750 = vtanh.f32 %v10019_v29  ;;  %v7407_v50 = vcombine.low %v7398_v27, %v7405_v51  ;;  %v10718_v16 = vsel %vm8415_vm0, %v10406_v59, 0.0  ;;  %v10721_v56 = vsel %vm8415_vm0, %v10407_v45, 0.0  ;;  %v15207_v29 = vpop.f32.mrf.mxu1  ;;  %v943_v27 = vld [vmem:[#allocation3 + $0x360] sm:$0x1]  ;;  %v944_v51 = vld [vmem:[#allocation3 + $0x361] sm:$0x1] }
 0x180   :  { %13752 = vtanh.f32 %v9892_v14  ;;  %v7373_v2 = vcombine.low %v7365_v48, %v7372_v54  ;;  %v7414_v28 = vrot.slane %v7406_v15, %v14254_v7  ;;  %10719 = vadd.xlane.f32.xlu0 %v10718_v16  ;;  %10722 = vadd.xlane.f32.xlu1 %v10721_v56  ;;  %v10534_v13 = vmul.f32 %v15017_v60, %v15142_v57  ;;  %v945_v15 = vld [vmem:[#allocation3 + $0x362] sm:$0x1] }
 0x181   :  { %13754 = vtanh.f32 %v10020_v32  ;;  %v7421_v5 = vrot.slane %v7407_v50, %v14254_v7  ;;  %v10535_v9 = vmul.f32 %v15017_v60, %v13739_v58  ;;  %v9898_v20 = vadd.f32 %v14947_v63, %v13376_v8  ;;  %v13504_v50 = vpop.f32.mrf.mxu1 }
 0x182   :  { %13549 = vmatprep.mubr.msk.bf16.mxu1 %vm8415_vm0, %v7373_v2  ;;  %v10412_v12 = vmul.f32 %v15017_v60, %v13741_v19  ;;  %v10413_v18 = vmul.f32 %v15017_v60, %v13743_v47  ;;  %v4287_v52 = vcombine.low %v431_v30, %v432_v61  ;;  %v11102_v57 = vsel %vm8415_vm0, %v10534_v13, 0.0  ;;  %v946_v30 = vld [vmem:[#allocation3 + $0x363] sm:$0x1]  ;;  %v948_v2 = vld [vmem:[#allocation3 + $0x365] sm:$0x1] }
 0x183   :  { %v7422_v55 = vcombine.low %v7414_v28, %v7421_v5  ;;  %v11105_v58 = vsel %vm8415_vm0, %v10535_v9, 0.0  ;;  %v4288_v26 = vcombine.low %v433_v62, %v434_v24  ;;  %13756 = vtanh.f32 %v9897_v1  ;;  %v947_v1 = vld [vmem:[#allocation3 + $0x364] sm:$0x1]  ;;  %v15227_v24 = vld [vmem:[%s17374_s0 + $0x8] sm:$0xff]  ;;  %v950_v5 = vld [vmem:[#allocation3 + $0x367] sm:$0x1] }
 0x184   :  { %v15204_v34 = vadd.f32 %v14935_v53, %v13503_v10  ;;  %11103 = vadd.xlane.f32.xlu0 %v11102_v57  ;;  %11106 = vadd.xlane.f32.xlu1 %v11105_v58  ;;  %v4289_v63 = vcombine.low %v435_v3, %v436_v41  ;;  %v4290_v19 = vcombine.low %v437_v17, %v438_v6  ;;  %v13745_v38 = vpop.eup %13744  ;;  %v10736_v42 = vsel %vm8415_vm0, %v10412_v12, 0.0  ;;  %v949_v10 = vld [vmem:[#allocation3 + $0x366] sm:$0x1]  ;;  %v951_v12 = vld [vmem:[#allocation3 + $0x368] sm:$0x1] }
 0x185   :  { %13550 = vmatmul.mubr.msk.bf16.gmra.mxu1 %vm8415_vm0, %v7422_v55  ;;  %v4297_v39 = vrot.slane %v4287_v52, %v14254_v7  ;;  %v4304_v40 = vrot.slane %v4288_v26, %v14254_v7  ;;  %v4336_v14 = vcombine.low %v439_v36, %v440_v21  ;;  %v4337_v46 = vcombine.low %v441_v22, %v442_v23  ;;  %v953_v55 = vld [vmem:[#allocation3 + $0x36a] sm:$0x1]  ;;  %v954_v57 = vld [vmem:[#allocation3 + $0x36b] sm:$0x1]  ;;  %v955_v58 = vld [vmem:[#allocation3 + $0x36c] sm:$0x1] }
 0x186   :  { %v13747_v53 = vpop.eup %13746  ;;  %v4311_v43 = vrot.slane %v4289_v63, %v14254_v7  ;;  %v4318_v44 = vrot.slane %v4290_v19, %v14254_v7  ;;  %v4338_v47 = vcombine.low %v443_v33, %v444_v11  ;;  %v10739_v32 = vsel %vm8415_vm0, %v10413_v18, 0.0  ;;  %v952_v18 = vld [vmem:[#allocation3 + $0x369] sm:$0x1] }
 0x187   :  { %v4319_v25 = vcombine.low %v4297_v39, %v4304_v40  ;;  %v4339_v48 = vcombine.low %v445_v35, %v446_v37  ;;  %v4346_v31 = vrot.slane %v4336_v14, %v14254_v7  ;;  %13758 = vtanh.f32 %v9898_v20  ;;  %v956_v37 = vld [vmem:[#allocation3 + $0x36d] sm:$0x1] }
 0x188   :  { %10737 = vadd.xlane.f32.xlu0 %v10736_v42  ;;  %10740 = vadd.xlane.f32.xlu1 %v10739_v32  ;;  %v4320_v59 = vcombine.low %v4311_v43, %v4318_v44  ;;  %v4353_v45 = vrot.slane %v4337_v46, %v14254_v7  ;;  %v4360_v54 = vrot.slane %v4338_v47, %v14254_v7  ;;  %v958_v42 = vld [vmem:[#allocation3 + $0x36f] sm:$0x1]  ;;  %13760 = vtanh.f32 %v15204_v34 }
 0x189   :  { %v4327_v16 = vrot.slane %v4319_v25, %v14254_v7  ;;  %v4367_v56 = vrot.slane %v4339_v48, %v14254_v7  ;;  %v10540_v61 = vmul.f32 %v15017_v60, %v13745_v38  ;;  %v10541_v62 = vmul.f32 %v15017_v60, %v13747_v53  ;;  %v957_v38 = vld [vmem:[#allocation3 + $0x36e] sm:$0x1] }
 0x18a   :  { %v10026_v3 = vadd.f32 %v15227_v24, %v13504_v50  ;;  %v4334_v41 = vrot.slane %v4320_v59, %v14254_v7  ;;  %v4368_v8 = vcombine.low %v4346_v31, %v4353_v45  ;;  %v7423_v13 = vcombine.low %v943_v27, %v944_v51 }
 0x18b   :  { %v13749_v9 = vpop.eup %13748  ;;  %v4369_v17 = vcombine.low %v4360_v54, %v4367_v56  ;;  %v11120_v6 = vsel %vm8415_vm0, %v10540_v61, 0.0  ;;  %v11123_v36 = vsel %vm8415_vm0, %v10541_v62, 0.0  ;;  %v7424_v20 = vcombine.low %v945_v15, %v946_v30  ;;  %v15263_v61 = vld [vmem:[%s17374_s0] sm:$0xff] }
 0x18c   :  { %v15233_v52 = vpop.eup %13750  ;;  %v4335_v21 = vcombine.low %v4327_v16, %v4334_v41  ;;  %v4376_v22 = vrot.slane %v4368_v8, %v14254_v7  ;;  %11121 = vadd.xlane.f32.xlu0 %v11120_v6  ;;  %11124 = vadd.xlane.f32.xlu1 %v11123_v36  ;;  %v7425_v23 = vcombine.low %v947_v1, %v948_v2  ;;  %13762 = vtanh.f32 %v10026_v3  ;;  %v8981_v1 = vpop.f32.mrf.mxu0 }
 0x18d   :  { %v15222_v28 = vpop.xlane.xlu1 %10641  ;;  %v13753_v33 = vpop.eup %13752  ;;  %v4383_v11 = vrot.slane %v4369_v17, %v14254_v7  ;;  %v7426_v63 = vcombine.low %v949_v10, %v950_v5  ;;  %v7433_v19 = vrot.slane %v7423_v13, %v14254_v7  ;;  %v7440_v35 = vrot.slane %v7424_v20, %v14254_v7  ;;  %v447_v20 = vld [vmem:[#allocation3 + $0x170] sm:$0x1] }
 0x18e   :  { %v13755_v40 = vpop.eup %13754  ;;  %13425 = vmatprep.mubr.msk.bf16.mxu0 %vm8415_vm0, %v4335_v21  ;;  %v7447_v14 = vrot.slane %v7425_v23, %v14254_v7  ;;  %v7472_v53 = vcombine.low %v951_v12, %v952_v18  ;;  %v7473_v47 = vcombine.low %v953_v55, %v954_v57  ;;  %v7474_v32 = vcombine.low %v955_v58, %v956_v37  ;;  %v9493_v5 = vpop.f32.mrf.mxu1  ;;  %v448_v12 = vld [vmem:[#allocation3 + $0x171] sm:$0x1]  ;;  %v450_v23 = vld [vmem:[#allocation3 + $0x173] sm:$0x1]  ;;  %v451_v55 = vld [vmem:[#allocation3 + $0x174] sm:$0x1] }
 0x18f   :  { %v4384_v43 = vcombine.low %v4376_v22, %v4383_v11  ;;  %v7454_v44 = vrot.slane %v7426_v63, %v14254_v7  ;;  %v7455_v46 = vcombine.low %v7433_v19, %v7440_v35  ;;  %v7475_v25 = vcombine.low %v957_v38, %v958_v42  ;;  %v449_v22 = vld [vmem:[#allocation3 + $0x172] sm:$0x1]  ;;  %v453_v11 = vld [vmem:[#allocation3 + $0x176] sm:$0x1]  ;;  %v454_v63 = vld [vmem:[#allocation3 + $0x177] sm:$0x1] }
 0x190   :  { %v15236_v26 = vpop.xlane.xlu0 %11025  ;;  %v7482_v48 = vrot.slane %v7472_v53, %v14254_v7  ;;  %v13757_v27 = vpop.eup %13756  ;;  %v7489_v45 = vrot.slane %v7473_v47, %v14254_v7  ;;  %v7496_v15 = vrot.slane %v7474_v32, %v14254_v7  ;;  %v10410_v30 = vmul.f32 %v15017_v60, %v13749_v9 }
 0x191   :  { %17390 = vst [vmem:[#allocation14_spill] sm:$0xff] %v15236_v26  ;;  %v15241_v39 = vpop.xlane.xlu1 %10644  ;;  %13426 = vmatmul.mubr.msk.bf16.gmra.mxu0 %vm8415_vm0, %v4384_v43  ;;  %v7456_v51 = vcombine.low %v7447_v14, %v7454_v44  ;;  %v7463_v59 = vrot.slane %v7455_v46, %v14254_v7  ;;  %v7503_v34 = vrot.slane %v7475_v25, %v14254_v7  ;;  %v456_v44 = vld [vmem:[#allocation3 + $0x179] sm:$0x1]  ;;  %v457_v46 = vld [vmem:[#allocation3 + $0x17a] sm:$0x1]  ;;  %vm11669_vm1 = vcmask 130112  }
 0x192   :  { %v7504_v16 = vcombine.low %v7482_v48, %v7489_v45  ;;  %v10411_v56 = vmul.f32 %v15017_v60, %v13753_v33  ;;  %v9895_v62 = vadd.f32 %v15263_v61, %v15180_v49  ;;  %v10730_v3 = vsel %vm8415_vm0, %v10410_v30, 0.0  ;;  %v13379_v49 = vpop.f32.mrf.mxu0  ;;  %v452_v33 = vld [vmem:[#allocation3 + $0x175] sm:$0x1]  ;;  %v458_v25 = vld [vmem:[#allocation3 + $0x17b] sm:$0x1] }
 0x193   :  { %v7470_v50 = vrot.slane %v7456_v51, %v14254_v7  ;;  %v7505_v2 = vcombine.low %v7496_v15, %v7503_v34  ;;  %v10023_v10 = vadd.f32 %v15263_v61, %v15207_v29  ;;  %10731 = vadd.xlane.f32.xlu0 %v10730_v3  ;;  %v9896_v18 = vadd.f32 %v15227_v24, %v8981_v1  ;;  %v459_v48 = vld [vmem:[#allocation3 + $0x17c] sm:$0x1]  ;;  %v461_v15 = vld [vmem:[#allocation3 + $0x17e] sm:$0x1] }
 0x194   :  { %v15248_v31 = vpop.xlane.xlu0 %10635  ;;  %v13759_v8 = vpop.eup %13758  ;;  %v7512_v9 = vrot.slane %v7504_v16, %v14254_v7  ;;  %v10733_v17 = vsel %vm8415_vm0, %v10411_v56, 0.0  ;;  %v10538_v29 = vmul.f32 %v15017_v60, %v15233_v52  ;;  %v10539_v21 = vmul.f32 %v15017_v60, %v13755_v40  ;;  %v455_v52 = vld [vmem:[#allocation3 + $0x178] sm:$0x1] }
 0x195   :  { %v15253_v54 = vpop.xlane.xlu1 %11028  ;;  %v7471_v13 = vcombine.low %v7463_v59, %v7470_v50  ;;  %v7519_v36 = vrot.slane %v7505_v2, %v14254_v7  ;;  %10734 = vadd.xlane.f32.xlu1 %v10733_v17  ;;  %13764 = vtanh.f32 %v9895_v62  ;;  %v10024_v57 = vadd.f32 %v15227_v24, %v9493_v5  ;;  %v15289_v42 = vpop.f32.mrf.mxu0  ;;  %v959_v17 = vld [vmem:[#allocation3 + $0x370] sm:$0x1] }
 0x196   :  { %17391 = vst [vmem:[#allocation15_spill] sm:$0xff] %v15253_v54  ;;  %13766 = vtanh.f32 %v10023_v10  ;;  %v11114_v35 = vsel %vm8415_vm0, %v10538_v29, 0.0  ;;  %v10416_v37 = vmul.f32 %v15017_v60, %v13757_v27  ;;  %v11117_v40 = vsel %vm8415_vm0, %v10539_v21, 0.0  ;;  %v460_v27 = vld [vmem:[#allocation3 + $0x17d] sm:$0x1]  ;;  %v13761_v30 = vpop.eup %13760  ;;  %v13507_v50 = vpop.f32.mrf.mxu1 }
 0x197   :  { %13553 = vmatprep.mubr.msk.bf16.mxu1 %vm8415_vm0, %v7471_v13  ;;  %v7520_v58 = vcombine.low %v7512_v9, %v7519_v36  ;;  %11115 = vadd.xlane.f32.xlu0 %v11114_v35  ;;  %v10417_v14 = vmul.f32 %v15017_v60, %v13759_v8  ;;  %v4385_v53 = vcombine.low %v447_v20, %v448_v12  ;;  %13768 = vtanh.f32 %v9896_v18  ;;  %v462_v60 = vld [vmem:[#allocation3 + $0x17f] sm:$0x1]  ;;  %v13380_v8 = vpop.f32.mrf.mxu0  ;;  %v960_v18 = vld [vmem:[#allocation3 + $0x371] sm:$0x1]  ;;  %v961_v29 = vld [vmem:[#allocation3 + $0x372] sm:$0x1] }
 0x198   :  { %v15268_v41 = vpop.xlane.xlu0 %11019  ;;  %v4386_v43 = vcombine.low %v449_v22, %v450_v23  ;;  %v4387_v47 = vcombine.low %v451_v55, %v452_v33  ;;  %v4388_v32 = vcombine.low %v453_v11, %v454_v63  ;;  %13770 = vtanh.f32 %v10024_v57  ;;  %v962_v21 = vld [vmem:[#allocation3 + $0x373] sm:$0x1]  ;;  %v15313_v57 = vld [vmem:[%s17377_s3] ss:$0 sm:$0xff]  ;;  %v963_v33 = vld [vmem:[#allocation3 + $0x374] sm:$0x1]  ;;  %v15318_v63 = vpop.f32.mrf.mxu1 }
 0x199   :  { %17392 = vst [vmem:[#allocation16_spill] sm:$0xff] %v15268_v41  ;;  %v15274_v6 = vpop.xlane.xlu1 %11022  ;;  %13554 = vmatmul.mubr.msk.bf16.gmra.mxu1 %vm8415_vm0, %v7520_v58  ;;  %11118 = vadd.xlane.f32.xlu1 %v11117_v40  ;;  %v9901_v51 = vadd.f32 %v15263_v61, %v13379_v49  ;;  %v4395_v59 = vrot.slane %v4385_v53, %v14254_v7  ;;  %v10748_v16 = vsel %vm8415_vm0, %v10416_v37, 0.0  ;;  %v13763_v3 = vpop.eup %13762  ;;  %v10751_v10 = vsel %vm8415_vm0, %v10417_v14, 0.0  ;;  %v964_v40 = vld [vmem:[#allocation3 + $0x375] sm:$0x1] }
 0x19a   :  { %17393 = vst [vmem:[#allocation17_spill] sm:$0xff] %v15274_v6  ;;  %v4402_v45 = vrot.slane %v4386_v43, %v14254_v7  ;;  %v4409_v56 = vrot.slane %v4387_v47, %v14254_v7  ;;  %v4416_v62 = vrot.slane %v4388_v32, %v14254_v7  ;;  %v4434_v1 = vcombine.low %v455_v52, %v456_v44  ;;  %v965_v14 = vld [vmem:[#allocation3 + $0x376] sm:$0x1]  ;;  %v966_v53 = vld [vmem:[#allocation3 + $0x377] sm:$0x1] }
 0x19b   :  { %10749 = vadd.xlane.f32.xlu0 %v10748_v16  ;;  %v4435_v13 = vcombine.low %v457_v46, %v458_v25  ;;  %v4436_v9 = vcombine.low %v459_v48, %v460_v27  ;;  %v9902_v49 = vadd.f32 %v15227_v24, %v13380_v8  ;;  %v4437_v20 = vcombine.low %v461_v15, %v462_v60  ;;  %v968_v8 = vld [vmem:[#allocation3 + $0x379] sm:$0x1]  ;;  %v509_v54 = vld [vmem:[#allocation3 + $0x1ae] sm:$0x1]  ;;  %v510_v41 = vld [vmem:[#allocation3 + $0x1af] sm:$0x1] }
 0x19c   :  { %v15283_v19 = vpop.xlane.xlu0 %10638  ;;  %v4417_v5 = vcombine.low %v4395_v59, %v4402_v45  ;;  %v4418_v36 = vcombine.low %v4409_v56, %v4416_v62  ;;  %v4444_v12 = vrot.slane %v4434_v1, %v14254_v7  ;;  %v10544_v58 = vmul.f32 %v15313_v57, %v13761_v30  ;;  %v13508_v56 = vpop.f32.mrf.mxu1  ;;  %v527_v6 = vld [vmem:[#allocation3 + $0x1c0] sm:$0x1] }
 0x19d   :  { %v15287_v38 = vpop.xlane.xlu1 %10656  ;;  %10752 = vadd.xlane.f32.xlu1 %v10751_v10  ;;  %v4451_v23 = vrot.slane %v4435_v13, %v14254_v7  ;;  %v4458_v55 = vrot.slane %v4436_v9, %v14254_v7  ;;  %13772 = vtanh.f32 %v9901_v51  ;;  %v4465_v37 = vrot.slane %v4437_v20, %v14254_v7 }
 0x19e   :  { %v4425_v22 = vrot.slane %v4417_v5, %v14254_v7  ;;  %v4432_v35 = vrot.slane %v4418_v36, %v14254_v7  ;;  %v10545_v52 = vmul.f32 %v15313_v57, %v13763_v3  ;;  %v11132_v46 = vsel %vm8415_vm0, %v10544_v58, 0.0  ;;  %v967_v3 = vld [vmem:[#allocation3 + $0x378] sm:$0x1]  ;;  %v971_v36 = vld [vmem:[#allocation3 + $0x37c] sm:$0x1] }
 0x19f   :  { %v4466_v44 = vcombine.low %v4444_v12, %v4451_v23  ;;  %v7521_v47 = vcombine.low %v959_v17, %v960_v18  ;;  %v7522_v32 = vcombine.low %v961_v29, %v962_v21  ;;  %13774 = vtanh.f32 %v9902_v49  ;;  %11133 = vadd.xlane.f32.xlu0 %v11132_v46  ;;  %v969_v49 = vld [vmem:[#allocation3 + $0x37a] sm:$0x1]  ;;  %v972_v18 = vld [vmem:[#allocation3 + $0x37d] sm:$0x1]  ;;  %v973_v29 = vld [vmem:[#allocation3 + $0x37e] sm:$0x1] }
 0x1a0   :  { %v15297_v34 = vpop.xlane.xlu0 %10653  ;;  %v4433_v25 = vcombine.low %v4425_v22, %v4432_v35  ;;  %v4467_v48 = vcombine.low %v4458_v55, %v4465_v37  ;;  %v11135_v27 = vsel %vm8415_vm0, %v10545_v52, 0.0  ;;  %v7523_v59 = vcombine.low %v963_v33, %v964_v40  ;;  %v974_v21 = vld [vmem:[#allocation3 + $0x37f] sm:$0x1] }
 0x1a1   :  { %v15302_v2 = vpop.xlane.xlu1 %11040  ;;  %v4474_v51 = vrot.slane %v4466_v44, %v14254_v7  ;;  %11136 = vadd.xlane.f32.xlu1 %v11135_v27  ;;  %v7524_v45 = vcombine.low %v965_v14, %v966_v53  ;;  %v7531_v15 = vrot.slane %v7521_v47, %v14254_v7  ;;  %v10029_v16 = vadd.f32 %v15263_v61, %v13507_v50  ;;  %v970_v50 = vld [vmem:[#allocation3 + $0x37b] sm:$0x1] }
 0x1a2   :  { %17394 = vst [vmem:[#allocation18_spill] sm:$0xff] %v15302_v2  ;;  %v13765_v30 = vpop.eup %13764  ;;  %13429 = vmatprep.mubr.msk.bf16.mxu0 %vm8415_vm0, %v4433_v25  ;;  %v4481_v62 = vrot.slane %v4467_v48, %v14254_v7  ;;  %v7538_v1 = vrot.slane %v7522_v32, %v14254_v7  ;;  %v10030_v13 = vadd.f32 %v15227_v24, %v13508_v56  ;;  %v8997_v25 = vpop.f32.mrf.mxu0  ;;  %v505_v2 = vld [vmem:[#allocation3 + $0x1aa] sm:$0x1]  ;;  %vm12814_vm2 = vcmask 1041409  }
 0x1a3   :  { %v13767_v5 = vpop.eup %13766  ;;  %v7545_v9 = vrot.slane %v7523_v59, %v14254_v7  ;;  %v7552_v17 = vrot.slane %v7524_v45, %v14254_v7  ;;  %13776 = vtanh.f32 %v10029_v16  ;;  %v7570_v35 = vcombine.low %v967_v3, %v968_v8 }
 0x1a4   :  { %v15316_v11 = vpop.xlane.xlu0 %11037  ;;  %v4482_v20 = vcombine.low %v4474_v51, %v4481_v62  ;;  %v7553_v12 = vcombine.low %v7531_v15, %v7538_v1  ;;  %v13769_v22 = vpop.eup %13768  ;;  %v7571_v37 = vcombine.low %v969_v49, %v970_v50  ;;  %13778 = vtanh.f32 %v10030_v13 }
 0x1a5   :  { %17395 = vst [vmem:[#allocation19_spill] sm:$0xff] %v15316_v11  ;;  %v15323_v43 = vpop.xlane.xlu1 %10650  ;;  %v7554_v23 = vcombine.low %v7545_v9, %v7552_v17  ;;  %v13771_v58 = vpop.eup %13770  ;;  %v7572_v14 = vcombine.low %v971_v36, %v972_v18  ;;  %v7573_v53 = vcombine.low %v973_v29, %v974_v21  ;;  %v7580_v44 = vrot.slane %v7570_v35, %v14254_v7  ;;  %v463_v9 = vld [vmem:[#allocation3 + $0x180] sm:$0x1]  ;;  %v464_v17 = vld [vmem:[#allocation3 + $0x181] sm:$0x1] }
 0x1a6   :  { %13430 = vmatmul.mubr.msk.bf16.gmra.mxu0 %vm8415_vm0, %v4482_v20  ;;  %v7561_v33 = vrot.slane %v7553_v12, %v14254_v7  ;;  %v7587_v46 = vrot.slane %v7571_v37, %v14254_v7  ;;  %v10414_v47 = vmul.f32 %v15313_v57, %v13765_v30  ;;  %v10415_v32 = vmul.f32 %v15313_v57, %v13769_v22  ;;  %v13383_v30 = vpop.f32.mrf.mxu0  ;;  %v9509_v50 = vpop.f32.mrf.mxu1  ;;  %v465_v12 = vld [vmem:[#allocation3 + $0x182] sm:$0x1]  ;;  %v466_v18 = vld [vmem:[#allocation3 + $0x183] sm:$0x1]  ;;  %v467_v29 = vld [vmem:[#allocation3 + $0x184] sm:$0x1] }
 0x1a7   :  { %v7568_v40 = vrot.slane %v7554_v23, %v14254_v7  ;;  %v7594_v27 = vrot.slane %v7572_v14, %v14254_v7  ;;  %v7601_v51 = vrot.slane %v7573_v53, %v14254_v7  ;;  %v9899_v62 = vadd.f32 %v15263_v61, %v15289_v42  ;;  %v469_v35 = vld [vmem:[#allocation3 + $0x186] sm:$0x1]  ;;  %v470_v37 = vld [vmem:[#allocation3 + $0x187] sm:$0x1] }
 0x1a8   :  { %v15329_v60 = vpop.xlane.xlu0 %10647  ;;  %v7602_v45 = vcombine.low %v7580_v44, %v7587_v46  ;;  %v10742_v15 = vsel %vm8415_vm0, %v10414_v47, 0.0  ;;  %v10745_v3 = vsel %vm8415_vm0, %v10415_v32, 0.0  ;;  %v9900_v8 = vadd.f32 %v15227_v24, %v8997_v25  ;;  %v15374_v14 = vpop.f32.mrf.mxu0  ;;  %v471_v47 = vld [vmem:[#allocation3 + $0x188] sm:$0x1]  ;;  %v472_v32 = vld [vmem:[#allocation3 + $0x189] sm:$0x1] }
 0x1a9   :  { %v15335_v10 = vpop.xlane.xlu1 %11034  ;;  %v7569_v48 = vcombine.low %v7561_v33, %v7568_v40  ;;  %v7603_v1 = vcombine.low %v7594_v27, %v7601_v51  ;;  %10743 = vadd.xlane.f32.xlu0 %v10742_v15  ;;  %10746 = vadd.xlane.f32.xlu1 %v10745_v3  ;;  %v10542_v42 = vmul.f32 %v15313_v57, %v13767_v5  ;;  %v468_v33 = vld [vmem:[#allocation3 + $0x185] sm:$0x1]  ;;  %13780 = vtanh.f32 %v9899_v62  ;;  %v473_v25 = vld [vmem:[#allocation3 + $0x18a] sm:$0x1]  ;;  %v474_v15 = vld [vmem:[#allocation3 + $0x18b] sm:$0x1]  ;;  %v13511_v3 = vpop.f32.mrf.mxu1 }
 0x1aa   :  { %17396 = vst [vmem:[#allocation20_spill] sm:$0xff] %v15335_v10  ;;  %v13773_v56 = vpop.eup %13772  ;;  %v7610_v13 = vrot.slane %v7602_v45, %v14254_v7  ;;  %v10543_v20 = vmul.f32 %v15313_v57, %v13771_v58  ;;  %v10027_v22 = vadd.f32 %v15263_v61, %v15318_v63  ;;  %13782 = vtanh.f32 %v9900_v8  ;;  %v476_v62 = vld [vmem:[#allocation3 + $0x18d] sm:$0x1] }
 0x1ab   :  { %13557 = vmatprep.mubr.msk.bf16.mxu1 %vm8415_vm0, %v7569_v48  ;;  %v7617_v36 = vrot.slane %v7603_v1, %v14254_v7  ;;  %v10420_v23 = vmul.f32 %v15313_v57, %v13773_v56  ;;  %v11126_v58 = vsel %vm8415_vm0, %v10542_v42, 0.0  ;;  %v10028_v44 = vadd.f32 %v15227_v24, %v9509_v50  ;;  %v475_v56 = vld [vmem:[#allocation3 + $0x18c] sm:$0x1] }
 0x1ac   :  { %v15340_v55 = vpop.xlane.xlu0 %11031  ;;  %v13775_v49 = vpop.eup %13774  ;;  %v11129_v53 = vsel %vm8415_vm0, %v10543_v20, 0.0  ;;  %v4483_v46 = vcombine.low %v463_v9, %v464_v17  ;;  %v9905_v48 = vadd.f32 %v15263_v61, %v13383_v30  ;;  %v4484_v27 = vcombine.low %v465_v12, %v466_v18  ;;  %v477_v17 = vld [vmem:[#allocation3 + $0x18e] sm:$0x1]  ;;  %v478_v30 = vld [vmem:[#allocation3 + $0x18f] sm:$0x1] }
 0x1ad   :  { %17397 = vst [vmem:[#allocation21_spill] sm:$0xff] %v15340_v55  ;;  %v15344_v52 = vpop.xlane.xlu1 %10668  ;;  %v7618_v5 = vcombine.low %v7610_v13, %v7617_v36  ;;  %11127 = vadd.xlane.f32.xlu0 %v11126_v58  ;;  %11130 = vadd.xlane.f32.xlu1 %v11129_v53  ;;  %v10421_v63 = vmul.f32 %v15313_v57, %v13775_v49  ;;  %13784 = vtanh.f32 %v10027_v22  ;;  %v10760_v8 = vsel %vm8415_vm0, %v10420_v23, 0.0  ;;  %v13384_v36 = vpop.f32.mrf.mxu0  ;;  %v975_v58 = vld [vmem:[#allocation3 + $0x380] sm:$0x1]  ;;  %v976_v53 = vld [vmem:[#allocation3 + $0x381] sm:$0x1] }
 0x1ae   :  { %v4485_v51 = vcombine.low %v467_v29, %v468_v33  ;;  %v4486_v45 = vcombine.low %v469_v35, %v470_v37  ;;  %v4493_v9 = vrot.slane %v4483_v46, %v14254_v7  ;;  %v4500_v42 = vrot.slane %v4484_v27, %v14254_v7  ;;  %v15395_v46 = vpop.f32.mrf.mxu1 }
 0x1af   :  { %13558 = vmatmul.mubr.msk.bf16.gmra.mxu1 %vm8415_vm0, %v7618_v5  ;;  %v10763_v13 = vsel %vm8415_vm0, %v10421_v63, 0.0  ;;  %v4532_v18 = vcombine.low %v471_v47, %v472_v32  ;;  %13786 = vtanh.f32 %v10028_v44  ;;  %v9906_v22 = vadd.f32 %v15227_v24, %v13384_v36 }
 0x1b0   :  { %v15353_v59 = vpop.xlane.xlu0 %10665  ;;  %v13777_v50 = vpop.eup %13776  ;;  %v4507_v20 = vrot.slane %v4485_v51, %v14254_v7  ;;  %v4514_v12 = vrot.slane %v4486_v45, %v14254_v7  ;;  %v4533_v23 = vcombine.low %v473_v25, %v474_v15  ;;  %v4534_v33 = vcombine.low %v475_v56, %v476_v62  ;;  %v977_v25 = vld [vmem:[#allocation3 + $0x382] sm:$0x1]  ;;  %v978_v51 = vld [vmem:[#allocation3 + $0x383] sm:$0x1] }
 0x1b1   :  { %v15356_v16 = vpop.xlane.xlu1 %11052  ;;  %v13779_v29 = vpop.eup %13778  ;;  %10761 = vadd.xlane.f32.xlu0 %v10760_v8  ;;  %10764 = vadd.xlane.f32.xlu1 %v10763_v13  ;;  %13788 = vtanh.f32 %v9905_v48  ;;  %v4515_v35 = vcombine.low %v4493_v9, %v4500_v42  ;;  %v4535_v5 = vcombine.low %v477_v17, %v478_v30  ;;  %v4542_v47 = vrot.slane %v4532_v18, %v14254_v7  ;;  %v979_v48 = vld [vmem:[#allocation3 + $0x384] sm:$0x1]  ;;  %v980_v13 = vld [vmem:[#allocation3 + $0x385] sm:$0x1]  ;;  %v981_v9 = vld [vmem:[#allocation3 + $0x386] sm:$0x1] }
 0x1b2   :  { %17398 = vst [vmem:[#allocation22_spill] sm:$0xff] %v15356_v16  ;;  %v4516_v37 = vcombine.low %v4507_v20, %v4514_v12  ;;  %v4549_v44 = vrot.slane %v4533_v23, %v14254_v7  ;;  %v4556_v32 = vrot.slane %v4534_v33, %v14254_v7  ;;  %v10548_v27 = vmul.f32 %v15313_v57, %v13777_v50  ;;  %v982_v17 = vld [vmem:[#allocation3 + $0x387] sm:$0x1] }
 0x1b3   :  { %v4523_v15 = vrot.slane %v4515_v35, %v14254_v7  ;;  %v4563_v62 = vrot.slane %v4535_v5, %v14254_v7  ;;  %v10549_v8 = vmul.f32 %v15313_v57, %v13779_v29  ;;  %13790 = vtanh.f32 %v9906_v22  ;;  %v13512_v35 = vpop.f32.mrf.mxu1  ;;  %v983_v5 = vld [vmem:[#allocation3 + $0x388] sm:$0x1] }
 0x1b4   :  { %v15367_v21 = vpop.xlane.xlu0 %11049  ;;  %v4530_v56 = vrot.slane %v4516_v37, %v14254_v7  ;;  %v4564_v30 = vcombine.low %v4542_v47, %v4549_v44  ;;  %v11144_v50 = vsel %vm8415_vm0, %v10548_v27, 0.0  ;;  %v7619_v36 = vcombine.low %v975_v58, %v976_v53  ;;  %v984_v47 = vld [vmem:[#allocation3 + $0x389] sm:$0x1]  ;;  %v985_v27 = vld [vmem:[#allocation3 + $0x38a] sm:$0x1] }
 0x1b5   :  { %17399 = vst [vmem:[#allocation23_spill] sm:$0xff] %v15367_v21  ;;  %v15372_v40 = vpop.xlane.xlu1 %10662  ;;  %v4565_v20 = vcombine.low %v4556_v32, %v4563_v62  ;;  %11145 = vadd.xlane.f32.xlu0 %v11144_v50  ;;  %v11147_v12 = vsel %vm8415_vm0, %v10549_v8, 0.0  ;;  %v7620_v18 = vcombine.low %v977_v25, %v978_v51  ;;  %v10033_v33 = vadd.f32 %v15263_v61, %v13511_v3  ;;  %v986_v25 = vld [vmem:[#allocation3 + $0x38b] sm:$0x1]  ;;  %v988_v62 = vld [vmem:[#allocation3 + $0x38d] sm:$0x1] }
 0x1b6   :  { %v4531_v42 = vcombine.low %v4523_v15, %v4530_v56  ;;  %v4572_v29 = vrot.slane %v4564_v30, %v14254_v7  ;;  %11148 = vadd.xlane.f32.xlu1 %v11147_v12  ;;  %v7621_v37 = vcombine.low %v979_v48, %v980_v13  ;;  %v7622_v22 = vcombine.low %v981_v9, %v982_v17  ;;  %v13781_v51 = vpop.eup %13780  ;;  %v987_v56 = vld [vmem:[#allocation3 + $0x38c] sm:$0x1]  ;;  %v989_v17 = vld [vmem:[#allocation3 + $0x38e] sm:$0x1]  ;;  %v990_v30 = vld [vmem:[#allocation3 + $0x38f] sm:$0x1] }
 0x1b7   :  { %v10034_v58 = vadd.f32 %v15227_v24, %v13512_v35  ;;  %v4579_v53 = vrot.slane %v4565_v20, %v14254_v7  ;;  %v7629_v32 = vrot.slane %v7619_v36, %v14254_v7  ;;  %v7636_v3 = vrot.slane %v7620_v18, %v14254_v7  ;;  %v13783_v8 = vpop.eup %13782  ;;  %v9013_v36 = vpop.f32.mrf.mxu0 }
 0x1b8   :  { %v15382_v1 = vpop.xlane.xlu0 %10659  ;;  %13433 = vmatprep.mubr.msk.bf16.mxu0 %vm8415_vm0, %v4531_v42  ;;  %v7643_v48 = vrot.slane %v7621_v37, %v14254_v7  ;;  %v7650_v15 = vrot.slane %v7622_v22, %v14254_v7  ;;  %v7668_v50 = vcombine.low %v983_v5, %v984_v47  ;;  %13792 = vtanh.f32 %v10033_v33 }
 0x1b9   :  { %v15387_v49 = vpop.xlane.xlu1 %11046  ;;  %v4580_v13 = vcombine.low %v4572_v29, %v4579_v53  ;;  %v7651_v9 = vcombine.low %v7629_v32, %v7636_v3  ;;  %v7669_v12 = vcombine.low %v985_v27, %v986_v25  ;;  %13794 = vtanh.f32 %v10034_v58  ;;  %v13387_v29 = vpop.f32.mrf.mxu0 }
 0x1ba   :  { %17400 = vst [vmem:[#allocation24_spill] sm:$0xff] %v15387_v49  ;;  %v7652_v20 = vcombine.low %v7643_v48, %v7650_v15  ;;  %v13785_v35 = vpop.eup %13784  ;;  %v7670_v22 = vcombine.low %v987_v56, %v988_v62  ;;  %v7671_v32 = vcombine.low %v989_v17, %v990_v30  ;;  %v7678_v5 = vrot.slane %v7668_v50, %v14254_v7  ;;  %v9525_v27 = vpop.f32.mrf.mxu1 }
 0x1bb   :  { %13434 = vmatmul.mubr.msk.bf16.gmra.mxu0 %vm8415_vm0, %v4580_v13  ;;  %v7659_v37 = vrot.slane %v7651_v9, %v14254_v7  ;;  %v7685_v33 = vrot.slane %v7669_v12, %v14254_v7  ;;  %v9903_v3 = vadd.f32 %v15263_v61, %v15374_v14  ;;  %v10418_v25 = vmul.f32 %v15313_v57, %v13781_v51 }
 0x1bc   :  { %v15393_v63 = vpop.xlane.xlu0 %11043  ;;  %v7666_v53 = vrot.slane %v7652_v20, %v14254_v7  ;;  %v13787_v47 = vpop.eup %13786  ;;  %v7692_v58 = vrot.slane %v7670_v22, %v14254_v7  ;;  %v10419_v48 = vmul.f32 %v15313_v57, %v13783_v8  ;;  %v10031_v62 = vadd.f32 %v15263_v61, %v15395_v46 }
 0x1bd   :  { %17401 = vst [vmem:[#allocation25_spill] sm:$0xff] %v15393_v63  ;;  %v15401_v45 = vpop.xlane.xlu1 %10680  ;;  %v7699_v9 = vrot.slane %v7671_v32, %v14254_v7  ;;  %v7700_v17 = vcombine.low %v7678_v5, %v7685_v33  ;;  %v9904_v14 = vadd.f32 %v15227_v24, %v9013_v36  ;;  %v10754_v50 = vsel %vm8415_vm0, %v10418_v25, 0.0  ;;  %v15446_v20 = vpop.f32.mrf.mxu0  ;;  %v480_v32 = vld [vmem:[#allocation3 + $0x191] sm:$0x1]  ;;  %v481_v5 = vld [vmem:[#allocation3 + $0x192] sm:$0x1] }
 0x1be   :  { %v13789_v56 = vpop.eup %13788  ;;  %v7667_v13 = vcombine.low %v7659_v37, %v7666_v53  ;;  %v10032_v51 = vadd.f32 %v15227_v24, %v9525_v27  ;;  %10755 = vadd.xlane.f32.xlu0 %v10754_v50  ;;  %v10757_v46 = vsel %vm8415_vm0, %v10419_v48, 0.0  ;;  %13796 = vtanh.f32 %v9903_v3  ;;  %v479_v53 = vld [vmem:[#allocation3 + $0x190] sm:$0x1]  ;;  %v482_v25 = vld [vmem:[#allocation3 + $0x193] sm:$0x1] }
 0x1bf   :  { %v7701_v8 = vcombine.low %v7692_v58, %v7699_v9  ;;  %v7708_v12 = vrot.slane %v7700_v17, %v14254_v7  ;;  %10758 = vadd.xlane.f32.xlu1 %v10757_v46  ;;  %v10546_v22 = vmul.f32 %v15313_v57, %v13785_v35  ;;  %v10547_v36 = vmul.f32 %v15313_v57, %v13787_v47  ;;  %v484_v48 = vld [vmem:[#allocation3 + $0x195] sm:$0x1]  ;;  %v485_v3 = vld [vmem:[#allocation3 + $0x196] sm:$0x1]  ;;  %v486_v17 = vld [vmem:[#allocation3 + $0x197] sm:$0x1]  ;;  %v13388_v50 = vpop.f32.mrf.mxu0 }
 0x1c0   :  { %v15409_v23 = vpop.xlane.xlu0 %10677  ;;  %13561 = vmatprep.mubr.msk.bf16.mxu1 %vm8415_vm0, %v7667_v13  ;;  %v13791_v37 = vpop.eup %13790  ;;  %13798 = vtanh.f32 %v10031_v62  ;;  %v9909_v27 = vadd.f32 %v15263_v61, %v13387_v29  ;;  %v483_v13 = vld [vmem:[#allocation3 + $0x194] sm:$0x1]  ;;  %v10424_v47 = vmul.f32 %v15313_v57, %v13789_v56  ;;  %v489_v56 = vld [vmem:[#allocation3 + $0x19a] sm:$0x1]  ;;  %vm12816_vm3 = vcmask 1042434  }
 0x1c1   :  { %v15413_v44 = vpop.xlane.xlu1 %11064  ;;  %v7715_v58 = vrot.slane %v7701_v8, %v14254_v7  ;;  %13800 = vtanh.f32 %v9904_v14  ;;  %v11138_v35 = vsel %vm8415_vm0, %v10546_v22, 0.0  ;;  %v11141_v29 = vsel %vm8415_vm0, %v10547_v36, 0.0  ;;  %v487_v8 = vld [vmem:[#allocation3 + $0x198] sm:$0x1]  ;;  %v492_v36 = vld [vmem:[#allocation3 + $0x19d] sm:$0x1] }
 0x1c2   :  { %17402 = vst [vmem:[#allocation26_spill] sm:$0xff] %v15413_v44  ;;  %13802 = vtanh.f32 %v10032_v51  ;;  %11139 = vadd.xlane.f32.xlu0 %v11138_v35  ;;  %v10425_v62 = vmul.f32 %v15313_v57, %v13791_v37  ;;  %v4581_v14 = vcombine.low %v479_v53, %v480_v32  ;;  %v4582_v22 = vcombine.low %v481_v5, %v482_v25  ;;  %v493_v37 = vld [vmem:[#allocation3 + $0x19e] sm:$0x1] }
 0x1c3   :  { %v7716_v46 = vcombine.low %v7708_v12, %v7715_v58  ;;  %11142 = vadd.xlane.f32.xlu1 %v11141_v29  ;;  %v4583_v44 = vcombine.low %v483_v13, %v484_v48  ;;  %13804 = vtanh.f32 %v9909_v27  ;;  %v4584_v12 = vcombine.low %v485_v3, %v486_v17  ;;  %v494_v58 = vld [vmem:[#allocation3 + $0x19f] sm:$0x1] }
 0x1c4   :  { %v15422_v42 = vpop.xlane.xlu0 %11061  ;;  %v10772_v29 = vsel %vm8415_vm0, %v10424_v47, 0.0  ;;  %v4591_v53 = vrot.slane %v4581_v14, %v14254_v7  ;;  %v4598_v32 = vrot.slane %v4582_v22, %v14254_v7  ;;  %v10775_v27 = vsel %vm8415_vm0, %v10425_v62, 0.0  ;;  %v991_v14 = vld [vmem:[#allocation3 + $0x390] sm:$0x1] }
 0x1c5   :  { %17403 = vst [vmem:[#allocation27_spill] sm:$0xff] %v15422_v42  ;;  %v15424_v18 = vpop.xlane.xlu1 %10674  ;;  %v490_v42 = vld [vmem:[#allocation3 + $0x19b] sm:$0x1]  ;;  %13562 = vmatmul.mubr.msk.bf16.gmra.mxu1 %vm8415_vm0, %v7716_v46  ;;  %v4605_v5 = vrot.slane %v4583_v44, %v14254_v7  ;;  %v4612_v13 = vrot.slane %v4584_v12, %v14254_v7  ;;  %v4630_v48 = vcombine.low %v487_v8, %v488_v0  ;;  %v992_v12 = vld [vmem:[#allocation3 + $0x391] sm:$0x1]  ;;  %vm12818_vm4 = vcmask 1043459  }
 0x1c6   :  { %17404 = vst [vmem:[#allocation28_spill] sm:$0xff] %v15424_v18  ;;  %10773 = vadd.xlane.f32.xlu0 %v10772_v29  ;;  %v4631_v3 = vcombine.low %v489_v56, %v490_v42  ;;  %v4613_v46 = vcombine.low %v4591_v53, %v4598_v32  ;;  %v993_v0 = vld [vmem:[#allocation3 + $0x392] sm:$0x1]  ;;  %v994_v42 = vld [vmem:[#allocation3 + $0x393] sm:$0x1]  ;;  %vm12820_vm5 = vcmask 1044484  }
 0x1c7   :  { %10776 = vadd.xlane.f32.xlu1 %v10775_v27  ;;  %v4614_v22 = vcombine.low %v4605_v5, %v4612_v13  ;;  %v4640_v44 = vrot.slane %v4630_v48, %v14254_v7  ;;  %v997_v27 = vld [vmem:[#allocation3 + $0x396] sm:$0x1]  ;;  %v998_v13 = vld [vmem:[#allocation3 + $0x397] sm:$0x1]  ;;  %vm12822_vm6 = vcmask 1045509   ;;  %vm12824_vm7 = vcmask 1046534  }
 0x1c8   :  { %v15436_v15 = vpop.xlane.xlu0 %10671  ;;  %v4647_v29 = vrot.slane %v4631_v3, %v14254_v7  ;;  %v4621_v8 = vrot.slane %v4613_v46, %v14254_v7  ;;  %vm12826_vm8 = vcmask 1047559  }
 0x1c9   :  { %v15441_v30 = vpop.xlane.xlu1 %11058  ;;  %v4628_v32 = vrot.slane %v4614_v22, %v14254_v7 }
 0x1ca   :  { %17405 = vst [vmem:[#allocation29_spill] sm:$0xff] %v15441_v30  ;;  %v9910_v30 = vadd.f32 %v15227_v24, %v13388_v50  ;;  %v13793_v50 = vpop.eup %13792 }
 0x1cb   :  { %v13795_v25 = vpop.eup %13794  ;;  %v10552_v62 = vmul.f32 %v15313_v57, %v13793_v50  ;;  %v4662_v50 = vcombine.low %v4640_v44, %v4647_v29  ;;  %v999_v29 = vld [vmem:[#allocation3 + $0x398] sm:$0x1] }
 0x1cc   :  { %v15453_v33 = vpop.xlane.xlu0 %11055  ;;  %13806 = vtanh.f32 %v9910_v30 }
 0x1cd   :  { %17406 = vst [vmem:[#allocation30_spill] sm:$0xff] %v15453_v33  ;;  %v15457_v9 = vpop.xlane.xlu1 %11073  ;;  %v13515_v33 = vpop.f32.mrf.mxu1  ;;  %v11156_v5 = vsel %vm8415_vm0, %v10552_v62, 0.0  ;;  %v4670_v22 = vrot.slane %v4662_v50, %v14254_v7 }
 0x1ce   :  { %17407 = vst [vmem:[#allocation31_spill] sm:$0xff] %v15457_v9  ;;  %v491_v9 = vld [vmem:[#allocation3 + $0x19c] sm:$0x1]  ;;  %v10037_v53 = vadd.f32 %v15263_v61, %v13515_v33  ;;  %11157 = vadd.xlane.f32.xlu0 %v11156_v5  ;;  %v4629_v33 = vcombine.low %v4621_v8, %v4628_v32 }
 0x1cf   :  { %v15475_v17 = vpop.f32.mrf.mxu1  ;;  %v4632_v47 = vcombine.low %v491_v9, %v492_v36  ;;  %v10553_v36 = vmul.f32 %v15313_v57, %v13795_v25  ;;  %v13797_v25 = vpop.eup %13796 }
 0x1d0   :  { %v15464_v51 = vpop.xlane.xlu0 %10689  ;;  %v13799_v21 = vpop.eup %13798  ;;  %13437 = vmatprep.mubr.msk.bf16.mxu0 %vm8415_vm0, %v4629_v33  ;;  %13808 = vtanh.f32 %v10037_v53 }
 0x1d1   :  { %v15467_v35 = vpop.xlane.xlu1 %11067  ;;  %v4654_v9 = vrot.slane %v4632_v47, %v14254_v7  ;;  %v13516_v48 = vpop.f32.mrf.mxu1  ;;  %v11159_v46 = vsel %vm8415_vm0, %v10553_v36, 0.0  ;;  %v7717_v47 = vcombine.low %v991_v14, %v992_v12  ;;  %v1002_v36 = vld [vmem:[#allocation3 + $0x39b] sm:$0x1] }
 0x1d2   :  { %17408 = vst [vmem:[#allocation32_spill] sm:$0xff] %v15467_v35  ;;  %v4633_v35 = vcombine.low %v493_v37, %v494_v58  ;;  %v995_v37 = vld [vmem:[#allocation3 + $0x394] sm:$0x1]  ;;  %v996_v58 = vld [vmem:[#allocation3 + $0x395] sm:$0x1]  ;;  %v10038_v16 = vadd.f32 %v15227_v24, %v13516_v48  ;;  %11160 = vadd.xlane.f32.xlu1 %v11159_v46  ;;  %v13801_v24 = vpop.eup %13800  ;;  %v9029_v46 = vpop.f32.mrf.mxu0 }
 0x1d3   :  { %v7719_v44 = vcombine.low %v995_v37, %v996_v58  ;;  %v7727_v14 = vrot.slane %v7717_v47, %v14254_v7  ;;  %v1003_v37 = vld [vmem:[#allocation3 + $0x39c] sm:$0x1]  ;;  %v1004_v58 = vld [vmem:[#allocation3 + $0x39d] sm:$0x1]  ;;  %v13803_v32 = vpop.eup %13802  ;;  %v1006_v48 = vld [vmem:[#allocation3 + $0x39f] sm:$0x1] }
 0x1d4   :  { %v15477_v49 = vpop.xlane.xlu0 %10683  ;;  %v4661_v56 = vrot.slane %v4633_v35, %v14254_v7  ;;  %v7718_v35 = vcombine.low %v993_v0, %v994_v42  ;;  %v1000_v0 = vld [vmem:[#allocation3 + $0x399] sm:$0x1]  ;;  %v1001_v42 = vld [vmem:[#allocation3 + $0x39a] sm:$0x1]  ;;  %13810 = vtanh.f32 %v10038_v16  ;;  %v13805_v33 = vpop.eup %13804 }
 0x1d5   :  { %v15482_v30 = vpop.xlane.xlu1 %10692  ;;  %v7741_v8 = vrot.slane %v7719_v44, %v14254_v7  ;;  %v7766_v47 = vcombine.low %v999_v29, %v1000_v0  ;;  %v9541_v29 = vpop.f32.mrf.mxu1 }
 0x1d6   :  { %v4663_v3 = vcombine.low %v4654_v9, %v4661_v56  ;;  %v7720_v56 = vcombine.low %v997_v27, %v998_v13  ;;  %v7734_v12 = vrot.slane %v7718_v35, %v14254_v7  ;;  %v1005_v13 = vld [vmem:[#allocation3 + $0x39e] sm:$0x1]  ;;  %v7767_v35 = vcombine.low %v1001_v42, %v1002_v36 }
 0x1d7   :  { %v10422_v36 = vmul.f32 %v15313_v57, %v13797_v25 }
 0x1d8   :  { %v15492_v63 = vpop.xlane.xlu0 %11076  ;;  %v4677_v9 = vrot.slane %v4663_v3, %v14254_v7  ;;  %v7748_v5 = vrot.slane %v7720_v56, %v14254_v7  ;;  %v7749_v27 = vcombine.low %v7727_v14, %v7734_v12  ;;  %v13391_v56 = vpop.f32.mrf.mxu0  ;;  %v7769_v14 = vcombine.low %v1005_v13, %v1006_v48  ;;  %v15528_v13 = vld [vmem:[%s17374_s0 + $0x8] sm:$0xff] }
 0x1d9   :  { %17409 = vst [vmem:[#allocation33_spill] sm:$0xff] %v15492_v63  ;;  %v15496_v62 = vpop.xlane.xlu1 %10686  ;;  %v7776_v12 = vrot.slane %v7766_v47, %v14254_v7  ;;  %v7783_v16 = vrot.slane %v7767_v35, %v14254_v7  ;;  %v9908_v25 = vadd.f32 %v15528_v13, %v9029_v46  ;;  %v10036_v35 = vadd.f32 %v15528_v13, %v9541_v29 }
 0x1da   :  { %v4678_v50 = vcombine.low %v4670_v22, %v4677_v9  ;;  %v7750_v44 = vcombine.low %v7741_v8, %v7748_v5  ;;  %v7757_v53 = vrot.slane %v7749_v27, %v14254_v7  ;;  %v7768_v22 = vcombine.low %v1003_v37, %v1004_v58  ;;  %v13807_v37 = vpop.eup %13806 }
 0x1db   :  { %v9907_v9 = vadd.f32 %v15263_v61, %v15446_v20  ;;  %v10423_v8 = vmul.f32 %v15313_v57, %v13801_v24  ;;  %v10035_v20 = vadd.f32 %v15263_v61, %v15475_v17  ;;  %v7797_v58 = vrot.slane %v7769_v14, %v14254_v7  ;;  %v15534_v17 = vpop.f32.mrf.mxu0  ;;  %v495_v14 = vld [vmem:[#allocation3 + $0x1a0] sm:$0x1] }
 0x1dc   :  { %v15504_v3 = vpop.xlane.xlu0 %11070  ;;  %13438 = vmatmul.mubr.msk.bf16.gmra.mxu0 %vm8415_vm0, %v4678_v50  ;;  %v7764_v0 = vrot.slane %v7750_v44, %v14254_v7  ;;  %v7790_v42 = vrot.slane %v7768_v22, %v14254_v7  ;;  %v7798_v5 = vcombine.low %v7776_v12, %v7783_v16  ;;  %v10766_v24 = vsel %vm8415_vm0, %v10422_v36, 0.0  ;;  %v496_v12 = vld [vmem:[#allocation3 + $0x1a1] sm:$0x1]  ;;  %v497_v16 = vld [vmem:[#allocation3 + $0x1a2] sm:$0x1] }
 0x1dd   :  { %17410 = vst [vmem:[#allocation34_spill] sm:$0xff] %v15504_v3  ;;  %v15506_v63 = vpop.xlane.xlu1 %11079  ;;  %v10769_v47 = vsel %vm8415_vm0, %v10423_v8, 0.0  ;;  %10767 = vadd.xlane.f32.xlu0 %v10766_v24  ;;  %13812 = vtanh.f32 %v9907_v9  ;;  %v10550_v46 = vmul.f32 %v15313_v57, %v13799_v21  ;;  %v499_v36 = vld [vmem:[#allocation3 + $0x1a4] sm:$0x1]  ;;  %v10428_v8 = vmul.f32 %v15313_v57, %v13805_v33  ;;  %v502_v24 = vld [vmem:[#allocation3 + $0x1a7] sm:$0x1] }
 0x1de   :  { %17411 = vst [vmem:[#allocation35_spill] sm:$0xff] %v15506_v63  ;;  %v7765_v48 = vcombine.low %v7757_v53, %v7764_v0  ;;  %v7799_v44 = vcombine.low %v7790_v42, %v7797_v58  ;;  %v7806_v22 = vrot.slane %v7798_v5, %v14254_v7  ;;  %10770 = vadd.xlane.f32.xlu1 %v10769_v47  ;;  %v498_v0 = vld [vmem:[#allocation3 + $0x1a3] sm:$0x1]  ;;  %13814 = vtanh.f32 %v10035_v20  ;;  %v500_v58 = vld [vmem:[#allocation3 + $0x1a5] sm:$0x1] }
 0x1df   :  { %v10551_v53 = vmul.f32 %v15313_v57, %v13803_v32  ;;  %v501_v5 = vld [vmem:[#allocation3 + $0x1a6] sm:$0x1]  ;;  %13816 = vtanh.f32 %v9908_v25  ;;  %v11150_v21 = vsel %vm8415_vm0, %v10550_v46, 0.0  ;;  %v503_v47 = vld [vmem:[#allocation3 + $0x1a8] sm:$0x1]  ;;  %v9913_v20 = vadd.f32 %v15263_v61, %v13391_v56  ;;  %v13809_v61 = vpop.eup %13808 }
 0x1e0   :  { %v15518_v50 = vpop.xlane.xlu0 %10701  ;;  %13565 = vmatprep.mubr.msk.bf16.mxu1 %vm8415_vm0, %v7765_v48  ;;  %v7813_v42 = vrot.slane %v7799_v44, %v14254_v7  ;;  %v10429_v48 = vmul.f32 %v15313_v57, %v13807_v37  ;;  %v504_v63 = vld [vmem:[#allocation3 + $0x1a9] sm:$0x1]  ;;  %13818 = vtanh.f32 %v10036_v35  ;;  %v13392_v44 = vpop.f32.mrf.mxu0  ;;  %v4679_v3 = vcombine.low %v495_v14, %v496_v12  ;;  %v507_v25 = vld [vmem:[#allocation3 + $0x1ac] sm:$0x1]  ;;  %v508_v37 = vld [vmem:[#allocation3 + $0x1ad] sm:$0x1] }
 0x1e1   :  { %v15523_v27 = vpop.xlane.xlu1 %10704  ;;  %v11153_v32 = vsel %vm8415_vm0, %v10551_v53, 0.0  ;;  %11151 = vadd.xlane.f32.xlu0 %v11150_v21  ;;  %v9914_v46 = vadd.f32 %v15528_v13, %v13392_v44  ;;  %v4680_v11 = vcombine.low %v497_v16, %v498_v0  ;;  %v4681_v53 = vcombine.low %v499_v36, %v500_v58  ;;  %v15556_v56 = vld [vmem:[%s17374_s0] sm:$0xff]  ;;  %v13811_v0 = vpop.eup %13810 }
 0x1e2   :  { %v7814_v33 = vcombine.low %v7806_v22, %v7813_v42  ;;  %11154 = vadd.xlane.f32.xlu1 %v11153_v32  ;;  %v4682_v26 = vcombine.low %v501_v5, %v502_v24  ;;  %v10784_v14 = vsel %vm8415_vm0, %v10428_v8, 0.0  ;;  %v10787_v12 = vsel %vm8415_vm0, %v10429_v48, 0.0 }
 0x1e3   :  { %v4689_v16 = vrot.slane %v4679_v3, %v14254_v7  ;;  %v4696_v36 = vrot.slane %v4680_v11, %v14254_v7  ;;  %v4703_v42 = vrot.slane %v4681_v53, %v14254_v7  ;;  %v4728_v5 = vcombine.low %v503_v47, %v504_v63  ;;  %v1008_v53 = vld [vmem:[#allocation3 + $0x3a1] sm:$0x1] }
 0x1e4   :  { %v15540_v29 = vpop.xlane.xlu0 %11085  ;;  %13566 = vmatmul.mubr.msk.bf16.gmra.mxu1 %vm8415_vm0, %v7814_v33  ;;  %v4710_v58 = vrot.slane %v4682_v26, %v14254_v7  ;;  %13820 = vtanh.f32 %v9913_v20  ;;  %v4730_v21 = vcombine.low %v507_v25, %v508_v37  ;;  %v4731_v32 = vcombine.low %v509_v54, %v510_v41  ;;  %v1007_v33 = vld [vmem:[#allocation3 + $0x3a0] sm:$0x1]  ;;  %v1009_v26 = vld [vmem:[#allocation3 + $0x3a2] sm:$0x1]  ;;  %v1010_v54 = vld [vmem:[#allocation3 + $0x3a3] sm:$0x1] }
 0x1e5   :  { %17412 = vst [vmem:[#allocation36_spill] sm:$0xff] %v15540_v29  ;;  %v15544_v9 = vpop.xlane.xlu1 %11088  ;;  %v13519_v29 = vpop.f32.mrf.mxu1  ;;  %10785 = vadd.xlane.f32.xlu0 %v10784_v14  ;;  %v4711_v48 = vcombine.low %v4689_v16, %v4696_v36  ;;  %v4738_v44 = vrot.slane %v4728_v5, %v14254_v7  ;;  %v10556_v11 = vmul.f32 %v15313_v57, %v13809_v61  ;;  %v1011_v41 = vld [vmem:[#allocation3 + $0x3a4] sm:$0x1]  ;;  %13822 = vtanh.f32 %v9914_v46  ;;  %v1014_v16 = vld [vmem:[#allocation3 + $0x3a7] sm:$0x1] }
 0x1e6   :  { %17413 = vst [vmem:[#allocation37_spill] sm:$0xff] %v15544_v9  ;;  %v506_v9 = vld [vmem:[#allocation3 + $0x1ab] sm:$0x1]  ;;  %v15559_v22 = vadd.f32 %v15556_v56, %v13519_v29  ;;  %10788 = vadd.xlane.f32.xlu1 %v10787_v12  ;;  %v4712_v3 = vcombine.low %v4703_v42, %v4710_v58  ;;  %v4752_v20 = vrot.slane %v4730_v21, %v14254_v7  ;;  %v1013_v12 = vld [vmem:[#allocation3 + $0x3a6] sm:$0x1] }
 0x1e7   :  { %v15570_v29 = vpop.f32.mrf.mxu1  ;;  %v4729_v8 = vcombine.low %v505_v2, %v506_v9  ;;  %v4759_v14 = vrot.slane %v4731_v32, %v14254_v7  ;;  %v10557_v2 = vmul.f32 %v15313_v57, %v13811_v0  ;;  %v1012_v9 = vld [vmem:[#allocation3 + $0x3a5] sm:$0x1]  ;;  %v4719_v25 = vrot.slane %v4711_v48, %v14254_v7  ;;  %v1015_v32 = vld [vmem:[#allocation3 + $0x3a8] sm:$0x1]  ;;  %v1016_v48 = vld [vmem:[#allocation3 + $0x3a9] sm:$0x1] }
 0x1e8   :  { %v15551_v35 = vpop.xlane.xlu0 %10695  ;;  %v4726_v37 = vrot.slane %v4712_v3, %v14254_v7  ;;  %v11168_v61 = vsel %vm8415_vm0, %v10556_v11, 0.0  ;;  %v7816_v46 = vcombine.low %v1009_v26, %v1010_v54  ;;  %v7817_v21 = vcombine.low %v1011_v41, %v1012_v9  ;;  %v1017_v3 = vld [vmem:[#allocation3 + $0x3aa] sm:$0x1]  ;;  %v1021_v9 = vld [vmem:[#allocation3 + $0x3ae] sm:$0x1] }
 0x1e9   :  { %17414 = vst [vmem:[#allocation38_spill] sm:$0xff] %v15551_v35  ;;  %v15568_v24 = vpop.xlane.xlu1 %10698  ;;  %v4745_v47 = vrot.slane %v4729_v8, %v14254_v7  ;;  %v13520_v36 = vpop.f32.mrf.mxu1  ;;  %v4761_v58 = vcombine.low %v4752_v20, %v4759_v14  ;;  %11169 = vadd.xlane.f32.xlu0 %v11168_v61  ;;  %v11171_v5 = vsel %vm8415_vm0, %v10557_v2, 0.0  ;;  %v7815_v8 = vcombine.low %v1007_v33, %v1008_v53  ;;  %v1018_v53 = vld [vmem:[#allocation3 + $0x3ab] sm:$0x1]  ;;  %v1019_v14 = vld [vmem:[#allocation3 + $0x3ac] sm:$0x1] }
 0x1ea   :  { %v10042_v57 = vadd.f32 %v15528_v13, %v13520_v36  ;;  %v4727_v0 = vcombine.low %v4719_v25, %v4726_v37  ;;  %11172 = vadd.xlane.f32.xlu1 %v11171_v5  ;;  %v13813_v10 = vpop.eup %13812  ;;  %v7818_v20 = vcombine.low %v1013_v12, %v1014_v16  ;;  %v1020_v2 = vld [vmem:[#allocation3 + $0x3ad] sm:$0x1]  ;;  %v7832_v54 = vrot.slane %v7816_v46, %v14254_v7  ;;  %v1022_v25 = vld [vmem:[#allocation3 + $0x3af] sm:$0x1] }
 0x1eb   :  { %v4760_v42 = vcombine.low %v4738_v44, %v4745_v47  ;;  %v4775_v47 = vrot.slane %v4761_v58, %v14254_v7  ;;  %v7825_v33 = vrot.slane %v7815_v8, %v14254_v7  ;;  %v13815_v26 = vpop.eup %13814  ;;  %v7839_v41 = vrot.slane %v7817_v21, %v14254_v7 }
 0x1ec   :  { %v15574_v63 = vpop.xlane.xlu0 %11082  ;;  %13441 = vmatprep.mubr.msk.bf16.mxu0 %vm8415_vm0, %v4727_v0  ;;  %v13817_v37 = vpop.eup %13816  ;;  %13824 = vtanh.f32 %v15559_v22  ;;  %v7846_v12 = vrot.slane %v7818_v20, %v14254_v7  ;;  %v7865_v58 = vcombine.low %v1017_v3, %v1018_v53  ;;  %v7866_v5 = vcombine.low %v1019_v14, %v1020_v2  ;;  %v15611_v20 = vld [vmem:[%s17377_s3] ss:$0 sm:$0xff] }
 0x1ed   :  { %17415 = vst [vmem:[#allocation39_spill] sm:$0xff] %v15574_v63  ;;  %v15587_v11 = vpop.xlane.xlu1 %10716  ;;  %v4768_v44 = vrot.slane %v4760_v42, %v14254_v7  ;;  %v13819_v16 = vpop.eup %13818  ;;  %v7847_v36 = vcombine.low %v7825_v33, %v7832_v54  ;;  %v7864_v42 = vcombine.low %v1015_v32, %v1016_v48  ;;  %13826 = vtanh.f32 %v10042_v57 }
 0x1ee   :  { %17417 = vst [vmem:[#allocation41_spill] sm:$0xff] %v15587_v11  ;;  %v7848_v8 = vcombine.low %v7839_v41, %v7846_v12  ;;  %v7867_v0 = vcombine.low %v1021_v9, %v1022_v25  ;;  %v7881_v22 = vrot.slane %v7865_v58, %v14254_v7  ;;  %v7888_v32 = vrot.slane %v7866_v5, %v14254_v7  ;;  %v9045_v2 = vpop.f32.mrf.mxu0 }
 0x1ef   :  { %v4776_v61 = vcombine.low %v4768_v44, %v4775_v47  ;;  %v7855_v21 = vrot.slane %v7847_v36, %v14254_v7  ;;  %v7874_v55 = vrot.slane %v7864_v42, %v14254_v7  ;;  %v10426_v33 = vmul.f32 %v15611_v20, %v13813_v10  ;;  %v513_v36 = vld [vmem:[#allocation3 + $0x1b2] sm:$0x1] }
 0x1f0   :  { %v15585_v63 = vpop.xlane.xlu0 %10713  ;;  %v7862_v47 = vrot.slane %v7848_v8, %v14254_v7  ;;  %v7895_v57 = vrot.slane %v7867_v0, %v14254_v7  ;;  %v10427_v53 = vmul.f32 %v15611_v20, %v13817_v37  ;;  %v9911_v14 = vadd.f32 %v15556_v56, %v15534_v17  ;;  %v512_v37 = vld [vmem:[#allocation3 + $0x1b1] sm:$0x1]  ;;  %v514_v8 = vld [vmem:[#allocation3 + $0x1b3] sm:$0x1]  ;;  %v515_v0 = vld [vmem:[#allocation3 + $0x1b4] sm:$0x1] }
 0x1f1   :  { %17416 = vst [vmem:[#allocation40_spill] sm:$0xff] %v15585_v63  ;;  %13442 = vmatmul.mubr.msk.bf16.gmra.mxu0 %vm8415_vm0, %v4776_v61  ;;  %v15603_v44 = vpop.xlane.xlu1 %11100  ;;  %v13821_v48 = vpop.eup %13820  ;;  %v7896_v3 = vcombine.low %v7874_v55, %v7881_v22  ;;  %v10778_v25 = vsel %vm8415_vm0, %v10426_v33, 0.0  ;;  %v511_v55 = vld [vmem:[#allocation3 + $0x1b0] sm:$0x1]  ;;  %v9912_v17 = vadd.f32 %v15528_v13, %v9045_v2  ;;  %v10554_v58 = vmul.f32 %v15611_v20, %v13815_v26 }
 0x1f2   :  { %17419 = vst [vmem:[#allocation43_spill] sm:$0xff] %v15603_v44  ;;  %v7863_v54 = vcombine.low %v7855_v21, %v7862_v47  ;;  %v7897_v41 = vcombine.low %v7888_v32, %v7895_v57  ;;  %v13823_v61 = vpop.eup %13822  ;;  %10779 = vadd.xlane.f32.xlu0 %v10778_v25  ;;  %v10781_v10 = vsel %vm8415_vm0, %v10427_v53, 0.0  ;;  %v10555_v5 = vmul.f32 %v15611_v20, %v13819_v16  ;;  %v516_v21 = vld [vmem:[#allocation3 + $0x1b5] sm:$0x1]  ;;  %v517_v32 = vld [vmem:[#allocation3 + $0x1b6] sm:$0x1] }
 0x1f3   :  { %v7904_v9 = vrot.slane %v7896_v3, %v14254_v7  ;;  %10782 = vadd.xlane.f32.xlu1 %v10781_v10  ;;  %13828 = vtanh.f32 %v9911_v14  ;;  %v518_v57 = vld [vmem:[#allocation3 + $0x1b7] sm:$0x1]  ;;  %v519_v3 = vld [vmem:[#allocation3 + $0x1b8] sm:$0x1]  ;;  %v10039_v33 = vadd.f32 %v15556_v56, %v15570_v29  ;;  %v11162_v53 = vsel %vm8415_vm0, %v10554_v58, 0.0 }
 0x1f4   :  { %v15598_v46 = vpop.xlane.xlu0 %11097  ;;  %13569 = vmatprep.mubr.msk.bf16.mxu1 %vm8415_vm0, %v7863_v54  ;;  %v7911_v12 = vrot.slane %v7897_v41, %v14254_v7  ;;  %v10432_v2 = vmul.f32 %v15611_v20, %v13821_v48  ;;  %v4777_v26 = vcombine.low %v511_v55, %v512_v37  ;;  %v520_v54 = vld [vmem:[#allocation3 + $0x1b9] sm:$0x1]  ;;  %v521_v16 = vld [vmem:[#allocation3 + $0x1ba] sm:$0x1]  ;;  %v11165_v41 = vsel %vm8415_vm0, %v10555_v5, 0.0 }
 0x1f5   :  { %17418 = vst [vmem:[#allocation42_spill] sm:$0xff] %v15598_v46  ;;  %v15627_v22 = vpop.xlane.xlu1 %10710  ;;  %v10433_v14 = vmul.f32 %v15611_v20, %v13823_v61  ;;  %v4779_v25 = vcombine.low %v515_v0, %v516_v21  ;;  %v523_v10 = vld [vmem:[#allocation3 + $0x1bc] sm:$0x1]  ;;  %13830 = vtanh.f32 %v9912_v17  ;;  %v4780_v29 = vcombine.low %v517_v32, %v518_v57  ;;  %v524_v55 = vld [vmem:[#allocation3 + $0x1bd] sm:$0x1]  ;;  %v9557_v21 = vpop.f32.mrf.mxu1 }
 0x1f6   :  { %17421 = vst [vmem:[#allocation45_spill] sm:$0xff] %v15627_v22  ;;  %v7912_v47 = vcombine.low %v7904_v9, %v7911_v12  ;;  %11163 = vadd.xlane.f32.xlu0 %v11162_v53  ;;  %v4778_v9 = vcombine.low %v513_v36, %v514_v8  ;;  %v522_v12 = vld [vmem:[#allocation3 + $0x1bb] sm:$0x1]  ;;  %v4787_v48 = vrot.slane %v4777_v26, %v14254_v7  ;;  %v525_v37 = vld [vmem:[#allocation3 + $0x1be] sm:$0x1]  ;;  %13832 = vtanh.f32 %v10039_v33  ;;  %v13395_v32 = vpop.f32.mrf.mxu0 }
 0x1f7   :  { %11166 = vadd.xlane.f32.xlu1 %v11165_v41  ;;  %v526_v58 = vld [vmem:[#allocation3 + $0x1bf] sm:$0x1]  ;;  %v4801_v53 = vrot.slane %v4779_v25, %v14254_v7  ;;  %v4826_v5 = vcombine.low %v519_v3, %v520_v54  ;;  %v10796_v36 = vsel %vm8415_vm0, %v10432_v2, 0.0  ;;  %v4808_v17 = vrot.slane %v4780_v29, %v14254_v7  ;;  %v1023_v3 = vld [vmem:[#allocation3 + $0x3b0] sm:$0x1] }
 0x1f8   :  { %v15622_v42 = vpop.xlane.xlu0 %10707  ;;  %13570 = vmatmul.mubr.msk.bf16.gmra.mxu1 %vm8415_vm0, %v7912_v47  ;;  %v4794_v47 = vrot.slane %v4778_v9, %v14254_v7  ;;  %v4827_v8 = vcombine.low %v521_v16, %v522_v12  ;;  %v10799_v57 = vsel %vm8415_vm0, %v10433_v14, 0.0  ;;  %v4828_v41 = vcombine.low %v523_v10, %v524_v55  ;;  %v1024_v16 = vld [vmem:[#allocation3 + $0x3b1] sm:$0x1]  ;;  %v1025_v12 = vld [vmem:[#allocation3 + $0x3b2] sm:$0x1] }
 0x1f9   :  { %17420 = vst [vmem:[#allocation44_spill] sm:$0xff] %v15622_v42  ;;  %v13825_v44 = vpop.eup %13824  ;;  %v15643_v0 = vpop.xlane.xlu1 %11094  ;;  %v4829_v9 = vcombine.low %v525_v37, %v526_v58  ;;  %v4810_v54 = vcombine.low %v4801_v53, %v4808_v17  ;;  %v4836_v33 = vrot.slane %v4826_v5, %v14254_v7  ;;  %v1026_v29 = vld [vmem:[#allocation3 + $0x3b3] sm:$0x1]  ;;  %v1028_v55 = vld [vmem:[#allocation3 + $0x3b5] sm:$0x1]  ;;  %v10040_v37 = vadd.f32 %v15528_v13, %v9557_v21 }
 0x1fa   :  { %v13827_v61 = vpop.eup %13826  ;;  %17423 = vst [vmem:[#allocation47_spill] sm:$0xff] %v15643_v0  ;;  %10797 = vadd.xlane.f32.xlu0 %v10796_v36  ;;  %v4809_v26 = vcombine.low %v4787_v48, %v4794_v47  ;;  %v4843_v2 = vrot.slane %v4827_v8, %v14254_v7  ;;  %v10560_v25 = vmul.f32 %v15611_v20, %v13825_v44  ;;  %v1027_v48 = vld [vmem:[#allocation3 + $0x3b4] sm:$0x1]  ;;  %v1029_v53 = vld [vmem:[#allocation3 + $0x3b6] sm:$0x1]  ;;  %v9058_v17 = vpop.f32.mrf.mxu0 }
 0x1fb   :  { %10800 = vadd.xlane.f32.xlu1 %v10799_v57  ;;  %v4850_v36 = vrot.slane %v4828_v41, %v14254_v7  ;;  %v4857_v14 = vrot.slane %v4829_v9, %v14254_v7  ;;  %v10561_v10 = vmul.f32 %v15611_v20, %v13827_v61  ;;  %v4824_v58 = vrot.slane %v4810_v54, %v14254_v7  ;;  %v1030_v5 = vld [vmem:[#allocation3 + $0x3b7] sm:$0x1]  ;;  %v537_v42 = vld [vmem:[#allocation3 + $0x1ca] sm:$0x1] }
 0x1fc   :  { %v15639_v46 = vpop.xlane.xlu0 %11091  ;;  %v4817_v0 = vrot.slane %v4809_v26, %v14254_v7  ;;  %v4858_v47 = vcombine.low %v4836_v33, %v4843_v2  ;;  %v11180_v44 = vsel %vm8415_vm0, %v10560_v25, 0.0  ;;  %v7913_v26 = vcombine.low %v1023_v3, %v1024_v16  ;;  %v1031_v16 = vld [vmem:[#allocation3 + $0x3b8] sm:$0x1] }
 0x1fd   :  { %17422 = vst [vmem:[#allocation46_spill] sm:$0xff] %v15639_v46  ;;  %v4859_v8 = vcombine.low %v4850_v36, %v4857_v14  ;;  %v11183_v57 = vsel %vm8415_vm0, %v10561_v10, 0.0  ;;  %v7914_v41 = vcombine.low %v1025_v12, %v1026_v29  ;;  %v9917_v61 = vadd.f32 %v15556_v56, %v13395_v32  ;;  %v13523_v46 = vpop.f32.mrf.mxu1  ;;  %v15661_v2 = vpop.xlane.xlu1 %10728  ;;  %v1032_v12 = vld [vmem:[#allocation3 + $0x3b9] sm:$0x1]  ;;  %v1033_v32 = vld [vmem:[#allocation3 + $0x3ba] sm:$0x1] }
 0x1fe   :  { %11181 = vadd.xlane.f32.xlu0 %v11180_v44  ;;  %v4825_v21 = vcombine.low %v4817_v0, %v4824_v58  ;;  %v4866_v54 = vrot.slane %v4858_v47, %v14254_v7  ;;  %v7915_v33 = vcombine.low %v1027_v48, %v1028_v55  ;;  %17425 = vst [vmem:[#allocation49_spill] sm:$0xff] %v15661_v2  ;;  %13834 = vtanh.f32 %v10040_v37  ;;  %v1034_v10 = vld [vmem:[#allocation3 + $0x3bb] sm:$0x1]  ;;  %v1035_v48 = vld [vmem:[#allocation3 + $0x3bc] sm:$0x1] }
 0x1ff   :  { %11184 = vadd.xlane.f32.xlu1 %v11183_v57  ;;  %v4873_v25 = vrot.slane %v4859_v8, %v14254_v7  ;;  %v7916_v36 = vcombine.low %v1029_v53, %v1030_v5  ;;  %v7923_v14 = vrot.slane %v7913_v26, %v14254_v7  ;;  %v7930_v3 = vrot.slane %v7914_v41, %v14254_v7  ;;  %v1036_v44 = vld [vmem:[#allocation3 + $0x3bd] sm:$0x1]  ;;  %v1037_v53 = vld [vmem:[#allocation3 + $0x3be] sm:$0x1]  ;;  %v1038_v5 = vld [vmem:[#allocation3 + $0x3bf] sm:$0x1]  ;;  %v13396_v8 = vpop.f32.mrf.mxu0  ;;  %v15669_v57 = vpop.f32.mrf.mxu1 }
 0x200   :  { %v15657_v9 = vpop.xlane.xlu0 %10725  ;;  %v13829_v29 = vpop.eup %13828  ;;  %13445 = vmatprep.mubr.msk.bf16.mxu0 %vm8415_vm0, %v4825_v21  ;;  %v7937_v0 = vrot.slane %v7915_v33, %v14254_v7  ;;  %v7962_v26 = vcombine.low %v1031_v16, %v1032_v12  ;;  %13836 = vtanh.f32 %v9917_v61  ;;  %v9918_v37 = vadd.f32 %v15528_v13, %v13396_v8  ;;  %v528_v2 = vld [vmem:[#allocation3 + $0x1c1] sm:$0x1]  ;;  %v531_v8 = vld [vmem:[#allocation3 + $0x1c4] sm:$0x1] }
 0x201   :  { %17424 = vst [vmem:[#allocation48_spill] sm:$0xff] %v15657_v9  ;;  %v4874_v55 = vcombine.low %v4866_v54, %v4873_v25  ;;  %v7944_v58 = vrot.slane %v7916_v36, %v14254_v7  ;;  %v7945_v47 = vcombine.low %v7923_v14, %v7930_v3  ;;  %v15677_v25 = vadd.f32 %v15556_v56, %v9058_v17  ;;  %v15679_v16 = vpop.xlane.xlu1 %11112  ;;  %v530_v17 = vld [vmem:[#allocation3 + $0x1c3] sm:$0x1]  ;;  %v535_v9 = vld [vmem:[#allocation3 + $0x1c8] sm:$0x1] }
 0x202   :  { %v13831_v41 = vpop.eup %13830  ;;  %v7963_v36 = vcombine.low %v1033_v32, %v1034_v10  ;;  %v7964_v14 = vcombine.low %v1035_v48, %v1036_v44  ;;  %v7965_v3 = vcombine.low %v1037_v53, %v1038_v5  ;;  %17427 = vst [vmem:[#allocation51_spill] sm:$0xff] %v15679_v16  ;;  %v10045_v12 = vadd.f32 %v15556_v56, %v13523_v46  ;;  %v13524_v32 = vpop.f32.mrf.mxu1  ;;  %v532_v5 = vld [vmem:[#allocation3 + $0x1c5] sm:$0x1]  ;;  %v533_v46 = vld [vmem:[#allocation3 + $0x1c6] sm:$0x1] }
 0x203   :  { %13446 = vmatmul.mubr.msk.bf16.gmra.mxu0 %vm8415_vm0, %v4874_v55  ;;  %v7946_v21 = vcombine.low %v7937_v0, %v7944_v58  ;;  %v7953_v33 = vrot.slane %v7945_v47, %v14254_v7  ;;  %v15681_v61 = vpop.eup %13832  ;;  %v7972_v55 = vrot.slane %v7962_v26, %v14254_v7  ;;  %v10430_v58 = vmul.f32 %v15611_v20, %v13829_v29  ;;  %v529_v47 = vld [vmem:[#allocation3 + $0x1c2] sm:$0x1]  ;;  %v534_v16 = vld [vmem:[#allocation3 + $0x1c7] sm:$0x1] }
 0x204   :  { %v15674_v54 = vpop.xlane.xlu0 %11109  ;;  %v7979_v10 = vrot.slane %v7963_v36, %v14254_v7  ;;  %v7986_v48 = vrot.slane %v7964_v14, %v14254_v7  ;;  %v7993_v44 = vrot.slane %v7965_v3, %v14254_v7  ;;  %v10431_v53 = vmul.f32 %v15611_v20, %v13831_v41  ;;  %v536_v3 = vld [vmem:[#allocation3 + $0x1c9] sm:$0x1] }
 0x205   :  { %17426 = vst [vmem:[#allocation50_spill] sm:$0xff] %v15674_v54  ;;  %v7960_v0 = vrot.slane %v7946_v21, %v14254_v7  ;;  %13838 = vtanh.f32 %v9918_v37  ;;  %v9061_v21 = vpop.f32.mrf.mxu0  ;;  %v10046_v26 = vadd.f32 %v15528_v13, %v13524_v32  ;;  %v10790_v54 = vsel %vm8415_vm0, %v10430_v58, 0.0  ;;  %v538_v32 = vld [vmem:[#allocation3 + $0x1cb] sm:$0x1] }
 0x206   :  { %v7994_v18 = vcombine.low %v7972_v55, %v7979_v10  ;;  %v7995_v22 = vcombine.low %v7986_v48, %v7993_v44  ;;  %10791 = vadd.xlane.f32.xlu0 %v10790_v54  ;;  %v10793_v36 = vsel %vm8415_vm0, %v10431_v53, 0.0  ;;  %v4875_v14 = vcombine.low %v527_v6, %v528_v2  ;;  %v542_v10 = vld [vmem:[#allocation3 + $0x1cf] sm:$0x1] }
 0x207   :  { %v7961_v29 = vcombine.low %v7953_v33, %v7960_v0  ;;  %13840 = vtanh.f32 %v10045_v12  ;;  %10794 = vadd.xlane.f32.xlu1 %v10793_v36  ;;  %v4876_v41 = vcombine.low %v529_v47, %v530_v17  ;;  %v4877_v37 = vcombine.low %v531_v8, %v532_v5  ;;  %v539_v33 = vld [vmem:[#allocation3 + $0x1cc] sm:$0x1]  ;;  %v540_v0 = vld [vmem:[#allocation3 + $0x1cd] sm:$0x1]  ;;  %v541_v12 = vld [vmem:[#allocation3 + $0x1ce] sm:$0x1] }
 0x208   :  { %v4878_v11 = vcombine.low %v533_v46, %v534_v16  ;;  %v9916_v55 = vadd.f32 %v15528_v13, %v9061_v21  ;;  %v8002_v54 = vrot.slane %v7994_v18, %v14254_v7  ;;  %v8009_v6 = vrot.slane %v7995_v22, %v14254_v7 }
 0x209   :  { %13573 = vmatprep.mubr.msk.bf16.mxu1 %vm8415_vm0, %v7961_v29  ;;  %v15695_v58 = vpop.xlane.xlu0 %10719  ;;  %v4885_v2 = vrot.slane %v4875_v14, %v14254_v7  ;;  %v15701_v48 = vpop.xlane.xlu1 %10722  ;;  %13842 = vtanh.f32 %v10046_v26  ;;  %v4892_v16 = vrot.slane %v4876_v41, %v14254_v7  ;;  %v4899_v47 = vrot.slane %v4877_v37, %v14254_v7  ;;  %v1039_v29 = vld [vmem:[#allocation3 + $0x3c0] sm:$0x1]  ;;  %v1040_v41 = vld [vmem:[#allocation3 + $0x3c1] sm:$0x1]  ;;  %v1041_v37 = vld [vmem:[#allocation3 + $0x3c2] sm:$0x1] }
 0x20a   :  { %17428 = vst [vmem:[#allocation52_spill] sm:$0xff] %v15695_v58  ;;  %17429 = vst [vmem:[#allocation53_spill] sm:$0xff] %v15701_v48  ;;  %v4906_v17 = vrot.slane %v4878_v11, %v14254_v7  ;;  %v8010_v8 = vcombine.low %v8002_v54, %v8009_v6  ;;  %v4924_v44 = vcombine.low %v535_v9, %v536_v3  ;;  %v1042_v11 = vld [vmem:[#allocation3 + $0x3c3] sm:$0x1]  ;;  %13844 = vtanh.f32 %v15677_v25  ;;  %v1046_v25 = vld [vmem:[#allocation3 + $0x3c7] sm:$0x1] }
 0x20b   :  { %v4925_v53 = vcombine.low %v537_v42, %v538_v32  ;;  %v4926_v5 = vcombine.low %v539_v33, %v540_v0  ;;  %v13835_v18 = vpop.eup %13834  ;;  %v4907_v46 = vcombine.low %v4885_v2, %v4892_v16  ;;  %v4927_v21 = vcombine.low %v541_v12, %v542_v10  ;;  %v1043_v32 = vld [vmem:[#allocation3 + $0x3c4] sm:$0x1]  ;;  %v1044_v33 = vld [vmem:[#allocation3 + $0x3c5] sm:$0x1]  ;;  %v1045_v10 = vld [vmem:[#allocation3 + $0x3c6] sm:$0x1] }
 0x20c   :  { %v4908_v22 = vcombine.low %v4899_v47, %v4906_v17  ;;  %13574 = vmatmul.mubr.msk.bf16.gmra.mxu1 %vm8415_vm0, %v8010_v8  ;;  %v4934_v36 = vrot.slane %v4924_v44, %v14254_v7  ;;  %13846 = vtanh.f32 %v9916_v55  ;;  %v10558_v2 = vmul.f32 %v15611_v20, %v15681_v61  ;;  %v1047_v16 = vld [vmem:[#allocation3 + $0x3c8] sm:$0x1]  ;;  %v9573_v17 = vpop.f32.mrf.mxu1  ;;  %v1052_v48 = vld [vmem:[#allocation3 + $0x3cd] sm:$0x1] }
 0x20d   :  { %v4941_v26 = vrot.slane %v4925_v53, %v14254_v7  ;;  %v4948_v14 = vrot.slane %v4926_v5, %v14254_v7  ;;  %v4915_v42 = vrot.slane %v4907_v46, %v14254_v7  ;;  %v4955_v3 = vrot.slane %v4927_v21, %v14254_v7  ;;  %v15714_v0 = vpop.xlane.xlu0 %11103  ;;  %v13837_v54 = vpop.eup %13836  ;;  %v1048_v46 = vld [vmem:[#allocation3 + $0x3c9] sm:$0x1]  ;;  %v1050_v21 = vld [vmem:[#allocation3 + $0x3cb] sm:$0x1] }
 0x20e   :  { %v4922_v9 = vrot.slane %v4908_v22, %v14254_v7  ;;  %17430 = vst [vmem:[#allocation54_spill] sm:$0xff] %v15714_v0  ;;  %v10559_v12 = vmul.f32 %v15611_v20, %v13835_v18  ;;  %v15719_v47 = vpop.xlane.xlu1 %11106  ;;  %v8011_v53 = vcombine.low %v1039_v29, %v1040_v41  ;;  %v8012_v5 = vcombine.low %v1041_v37, %v1042_v11  ;;  %v1049_v22 = vld [vmem:[#allocation3 + $0x3ca] sm:$0x1]  ;;  %v1051_v0 = vld [vmem:[#allocation3 + $0x3cc] sm:$0x1] }
 0x20f   :  { %v4956_v6 = vcombine.low %v4934_v36, %v4941_v26  ;;  %17431 = vst [vmem:[#allocation55_spill] sm:$0xff] %v15719_v47  ;;  %v4957_v44 = vcombine.low %v4948_v14, %v4955_v3  ;;  %v10043_v55 = vadd.f32 %v15556_v56, %v15669_v57  ;;  %v13399_v36 = vpop.f32.mrf.mxu0  ;;  %v11174_v18 = vsel %vm8415_vm0, %v10558_v2, 0.0  ;;  %v1053_v11 = vld [vmem:[#allocation3 + $0x3ce] sm:$0x1]  ;;  %v1054_v57 = vld [vmem:[#allocation3 + $0x3cf] sm:$0x1] }
 0x210   :  { %v4923_v8 = vcombine.low %v4915_v42, %v4922_v9  ;;  %v8013_v26 = vcombine.low %v1043_v32, %v1044_v33  ;;  %11175 = vadd.xlane.f32.xlu0 %v11174_v18  ;;  %v11177_v29 = vsel %vm8415_vm0, %v10559_v12, 0.0  ;;  %v8014_v41 = vcombine.low %v1045_v10, %v1046_v25  ;;  %v557_v47 = vld [vmem:[#allocation3 + $0x1de] sm:$0x1] }
 0x211   :  { %v4964_v61 = vrot.slane %v4956_v6, %v14254_v7  ;;  %v4971_v14 = vrot.slane %v4957_v44, %v14254_v7  ;;  %v8021_v37 = vrot.slane %v8011_v53, %v14254_v7  ;;  %v10044_v9 = vadd.f32 %v15528_v13, %v9573_v17  ;;  %11178 = vadd.xlane.f32.xlu1 %v11177_v29  ;;  %v15733_v44 = vpop.xlane.xlu0 %10737  ;;  %v15735_v10 = vpop.f32.mrf.mxu0 }
 0x212   :  { %13449 = vmatprep.mubr.msk.bf16.mxu0 %vm8415_vm0, %v4923_v8  ;;  %v13839_v42 = vpop.eup %13838  ;;  %v8028_v3 = vrot.slane %v8012_v5, %v14254_v7  ;;  %v8035_v32 = vrot.slane %v8013_v26, %v14254_v7  ;;  %v8042_v6 = vrot.slane %v8014_v41, %v14254_v7  ;;  %v8060_v2 = vcombine.low %v1047_v16, %v1048_v46  ;;  %v15737_v17 = vpop.xlane.xlu1 %10740 }
 0x213   :  { %v4972_v33 = vcombine.low %v4964_v61, %v4971_v14  ;;  %v8061_v8 = vcombine.low %v1049_v22, %v1050_v21  ;;  %17432 = vst [vmem:[#allocation56_spill] sm:$0xff] %v15733_v44  ;;  %13848 = vtanh.f32 %v10043_v55  ;;  %v8062_v53 = vcombine.low %v1051_v0, %v1052_v48  ;;  %17433 = vst [vmem:[#allocation57_spill] sm:$0xff] %v15737_v17  ;;  %v13527_v29 = vpop.f32.mrf.mxu1 }
 0x214   :  { %v13841_v12 = vpop.eup %13840  ;;  %v8043_v25 = vcombine.low %v8021_v37, %v8028_v3  ;;  %v8063_v18 = vcombine.low %v1053_v11, %v1054_v57  ;;  %v8044_v5 = vcombine.low %v8035_v32, %v8042_v6  ;;  %v8070_v61 = vrot.slane %v8060_v2, %v14254_v7  ;;  %v13400_v11 = vpop.f32.mrf.mxu0 }
 0x215   :  { %13450 = vmatmul.mubr.msk.bf16.gmra.mxu0 %vm8415_vm0, %v4972_v33  ;;  %v8077_v16 = vrot.slane %v8061_v8, %v14254_v7  ;;  %v10436_v46 = vmul.f32 %v15611_v20, %v13837_v54  ;;  %v8084_v55 = vrot.slane %v8062_v53, %v14254_v7  ;;  %v10437_v0 = vmul.f32 %v15611_v20, %v13839_v42  ;;  %v15751_v3 = vpop.f32.mrf.mxu1  ;;  %v15756_v6 = vpop.xlane.xlu0 %11121  ;;  %v544_v53 = vld [vmem:[#allocation3 + $0x1d1] sm:$0x1] }
 0x216   :  { %v13843_v22 = vpop.eup %13842  ;;  %v8051_v21 = vrot.slane %v8043_v25, %v14254_v7  ;;  %v8091_v48 = vrot.slane %v8063_v18, %v14254_v7  ;;  %13850 = vtanh.f32 %v10044_v9  ;;  %v8058_v26 = vrot.slane %v8044_v5, %v14254_v7  ;;  %17434 = vst [vmem:[#allocation58_spill] sm:$0xff] %v15756_v6  ;;  %v543_v25 = vld [vmem:[#allocation3 + $0x1d0] sm:$0x1]  ;;  %v15760_v18 = vpop.xlane.xlu1 %11124 }
 0x217   :  { %v8092_v14 = vcombine.low %v8070_v61, %v8077_v16  ;;  %v10808_v41 = vsel %vm8415_vm0, %v10436_v46, 0.0  ;;  %v9921_v37 = vadd.f32 %v15556_v56, %v13399_v36  ;;  %v10811_v54 = vsel %vm8415_vm0, %v10437_v0, 0.0  ;;  %v13845_v2 = vpop.eup %13844  ;;  %17435 = vst [vmem:[#allocation59_spill] sm:$0xff] %v15760_v18  ;;  %v545_v16 = vld [vmem:[#allocation3 + $0x1d2] sm:$0x1]  ;;  %v13528_v0 = vpop.f32.mrf.mxu1 }
 0x218   :  { %v8093_v57 = vcombine.low %v8084_v55, %v8091_v48  ;;  %10809 = vadd.xlane.f32.xlu0 %v10808_v41  ;;  %v8059_v32 = vcombine.low %v8051_v21, %v8058_v26  ;;  %10812 = vadd.xlane.f32.xlu1 %v10811_v54  ;;  %v10564_v42 = vmul.f32 %v15611_v20, %v13841_v12  ;;  %v546_v12 = vld [vmem:[#allocation3 + $0x1d3] sm:$0x1]  ;;  %v547_v21 = vld [vmem:[#allocation3 + $0x1d4] sm:$0x1]  ;;  %v548_v55 = vld [vmem:[#allocation3 + $0x1d5] sm:$0x1] }
 0x219   :  { %v8100_v33 = vrot.slane %v8092_v14, %v14254_v7  ;;  %v10565_v9 = vmul.f32 %v15611_v20, %v13843_v22  ;;  %v9922_v36 = vadd.f32 %v15528_v13, %v13400_v11  ;;  %v13847_v5 = vpop.eup %13846  ;;  %13852 = vtanh.f32 %v9921_v37  ;;  %v549_v14 = vld [vmem:[#allocation3 + $0x1d6] sm:$0x1]  ;;  %v550_v41 = vld [vmem:[#allocation3 + $0x1d7] sm:$0x1]  ;;  %v551_v11 = vld [vmem:[#allocation3 + $0x1d8] sm:$0x1]  ;;  %v9077_v37 = vpop.f32.mrf.mxu0 }
 0x21a   :  { %v8107_v8 = vrot.slane %v8093_v57, %v14254_v7  ;;  %13577 = vmatprep.mubr.msk.bf16.mxu1 %vm8415_vm0, %v8059_v32  ;;  %v11192_v61 = vsel %vm8415_vm0, %v10564_v42, 0.0  ;;  %v10049_v48 = vadd.f32 %v15556_v56, %v13527_v29  ;;  %v10434_v26 = vmul.f32 %v15611_v20, %v13845_v2  ;;  %v552_v32 = vld [vmem:[#allocation3 + $0x1d9] sm:$0x1]  ;;  %v554_v42 = vld [vmem:[#allocation3 + $0x1db] sm:$0x1] }
 0x21b   :  { %v11195_v22 = vsel %vm8415_vm0, %v10565_v9, 0.0  ;;  %13854 = vtanh.f32 %v9922_v36  ;;  %v10050_v57 = vadd.f32 %v15528_v13, %v13528_v0  ;;  %v10435_v54 = vmul.f32 %v15611_v20, %v13847_v5 }
 0x21c   :  { %v8108_v46 = vcombine.low %v8100_v33, %v8107_v8  ;;  %11193 = vadd.xlane.f32.xlu0 %v11192_v61  ;;  %11196 = vadd.xlane.f32.xlu1 %v11195_v22  ;;  %v553_v33 = vld [vmem:[#allocation3 + $0x1da] sm:$0x1]  ;;  %v10802_v29 = vsel %vm8415_vm0, %v10434_v26, 0.0  ;;  %v4973_v9 = vcombine.low %v543_v25, %v544_v53  ;;  %v555_v8 = vld [vmem:[#allocation3 + $0x1dc] sm:$0x1]  ;;  %v15771_v2 = vpop.xlane.xlu0 %10731  ;;  %v4974_v22 = vcombine.low %v545_v16, %v546_v12  ;;  %v13403_v26 = vpop.f32.mrf.mxu0 }
 0x21d   :  { %v556_v61 = vld [vmem:[#allocation3 + $0x1dd] sm:$0x1]  ;;  %17436 = vst [vmem:[#allocation60_spill] sm:$0xff] %v15771_v2  ;;  %v10805_v36 = vsel %vm8415_vm0, %v10435_v54, 0.0  ;;  %v4975_v0 = vcombine.low %v547_v21, %v548_v55  ;;  %v9919_v6 = vadd.f32 %v15556_v56, %v15735_v10  ;;  %13856 = vtanh.f32 %v10049_v48  ;;  %v9589_v48 = vpop.f32.mrf.mxu1  ;;  %v1070_v2 = vld [vmem:[#allocation3 + $0x3df] sm:$0x1] }
 0x21e   :  { %13578 = vmatmul.mubr.msk.bf16.gmra.mxu1 %vm8415_vm0, %v8108_v46  ;;  %v558_v46 = vld [vmem:[#allocation3 + $0x1df] sm:$0x1]  ;;  %v15774_v18 = vpop.xlane.xlu1 %10734  ;;  %v4976_v25 = vcombine.low %v549_v14, %v550_v41  ;;  %v4983_v53 = vrot.slane %v4973_v9, %v14254_v7  ;;  %13858 = vtanh.f32 %v10050_v57  ;;  %v5022_v12 = vcombine.low %v551_v11, %v552_v32  ;;  %v15784_v41 = vpop.f32.mrf.mxu0  ;;  %v1055_v32 = vld [vmem:[#allocation3 + $0x3d0] sm:$0x1] }
 0x21f   :  { %17437 = vst [vmem:[#allocation61_spill] sm:$0xff] %v15774_v18  ;;  %v4997_v16 = vrot.slane %v4975_v0, %v14254_v7  ;;  %v5023_v55 = vcombine.low %v553_v33, %v554_v42  ;;  %v5024_v54 = vcombine.low %v555_v8, %v556_v61  ;;  %v5025_v58 = vcombine.low %v557_v47, %v558_v46  ;;  %v1056_v33 = vld [vmem:[#allocation3 + $0x3d1] sm:$0x1]  ;;  %v1057_v42 = vld [vmem:[#allocation3 + $0x3d2] sm:$0x1] }
 0x220   :  { %10803 = vadd.xlane.f32.xlu0 %v10802_v29  ;;  %v13849_v5 = vpop.eup %13848  ;;  %10806 = vadd.xlane.f32.xlu1 %v10805_v36  ;;  %v4990_v29 = vrot.slane %v4974_v22, %v14254_v7  ;;  %v5004_v21 = vrot.slane %v4976_v25, %v14254_v7  ;;  %v9920_v10 = vadd.f32 %v15528_v13, %v9077_v37  ;;  %v1058_v47 = vld [vmem:[#allocation3 + $0x3d3] sm:$0x1]  ;;  %v15789_v8 = vpop.xlane.xlu0 %11115  ;;  %13860 = vtanh.f32 %v9919_v6  ;;  %v1059_v22 = vld [vmem:[#allocation3 + $0x3d4] sm:$0x1]  ;;  %v1060_v0 = vld [vmem:[#allocation3 + $0x3d5] sm:$0x1] }
 0x221   :  { %v5032_v14 = vrot.slane %v5022_v12, %v14254_v7  ;;  %v5039_v9 = vrot.slane %v5023_v55, %v14254_v7  ;;  %v5046_v36 = vrot.slane %v5024_v54, %v14254_v7  ;;  %v5053_v11 = vrot.slane %v5025_v58, %v14254_v7  ;;  %17438 = vst [vmem:[#allocation62_spill] sm:$0xff] %v15789_v8  ;;  %v1061_v46 = vld [vmem:[#allocation3 + $0x3d6] sm:$0x1]  ;;  %v1062_v12 = vld [vmem:[#allocation3 + $0x3d7] sm:$0x1] }
 0x222   :  { %v5005_v44 = vcombine.low %v4983_v53, %v4990_v29  ;;  %v5006_v57 = vcombine.low %v4997_v16, %v5004_v21  ;;  %v10047_v13 = vadd.f32 %v15556_v56, %v15751_v3  ;;  %v10562_v61 = vmul.f32 %v15611_v20, %v13849_v5  ;;  %v15795_v25 = vpop.xlane.xlu1 %11118  ;;  %v1063_v6 = vld [vmem:[#allocation3 + $0x3d8] sm:$0x1]  ;;  %v1064_v21 = vld [vmem:[#allocation3 + $0x3d9] sm:$0x1]  ;;  %v1065_v54 = vld [vmem:[#allocation3 + $0x3da] sm:$0x1] }
 0x223   :  { %v13851_v17 = vpop.eup %13850  ;;  %17439 = vst [vmem:[#allocation63_spill] sm:$0xff] %v15795_v25  ;;  %v5054_v53 = vcombine.low %v5032_v14, %v5039_v9  ;;  %v5055_v29 = vcombine.low %v5046_v36, %v5053_v11  ;;  %13862 = vtanh.f32 %v9920_v10  ;;  %v9925_v5 = vadd.f32 %v15556_v56, %v13403_v26  ;;  %v1066_v14 = vld [vmem:[#allocation3 + $0x3db] sm:$0x1]  ;;  %v1067_v11 = vld [vmem:[#allocation3 + $0x3dc] sm:$0x1] }
 0x224   :  { %v5013_v37 = vrot.slane %v5005_v44, %v14254_v7  ;;  %v5020_v58 = vrot.slane %v5006_v57, %v14254_v7  ;;  %v10563_v16 = vmul.f32 %v15611_v20, %v13851_v17  ;;  %v15802_v44 = vld [vmem:[%s17374_s0 + $0x8] sm:$0xff]  ;;  %v11186_v55 = vsel %vm8415_vm0, %v10562_v61, 0.0  ;;  %v13404_v57 = vpop.f32.mrf.mxu0  ;;  %v1068_v25 = vld [vmem:[#allocation3 + $0x3dd] sm:$0x1]  ;;  %v1069_v18 = vld [vmem:[#allocation3 + $0x3de] sm:$0x1] }
 0x225   :  { %v10048_v3 = vadd.f32 %v15802_v44, %v9589_v48  ;;  %v5062_v17 = vrot.slane %v5054_v53, %v14254_v7  ;;  %v5069_v36 = vrot.slane %v5055_v29, %v14254_v7  ;;  %11187 = vadd.xlane.f32.xlu0 %v11186_v55  ;;  %v9926_v48 = vadd.f32 %v15802_v44, %v13404_v57 }
 0x226   :  { %v5021_v9 = vcombine.low %v5013_v37, %v5020_v58  ;;  %v11189_v10 = vsel %vm8415_vm0, %v10563_v16, 0.0  ;;  %v13853_v8 = vpop.eup %13852  ;;  %v8109_v56 = vcombine.low %v1055_v32, %v1056_v33  ;;  %v8110_v26 = vcombine.low %v1057_v42, %v1058_v47  ;;  %v13531_v37 = vpop.f32.mrf.mxu1 }
 0x227   :  { %11190 = vadd.xlane.f32.xlu1 %v11189_v10  ;;  %v8111_v61 = vcombine.low %v1059_v22, %v1060_v0  ;;  %v5070_v58 = vcombine.low %v5062_v17, %v5069_v36  ;;  %v8112_v53 = vcombine.low %v1061_v46, %v1062_v12  ;;  %v8158_v29 = vcombine.low %v1063_v6, %v1064_v21  ;;  %v15812_v16 = vpop.xlane.xlu0 %10749  ;;  %v15817_v42 = vpop.xlane.xlu1 %10752 }
 0x228   :  { %v13855_v63 = vpop.eup %13854  ;;  %13453 = vmatprep.mubr.msk.bf16.mxu0 %vm8415_vm0, %v5021_v9  ;;  %v8159_v55 = vcombine.low %v1065_v54, %v1066_v14  ;;  %17440 = vst [vmem:[#allocation64_spill] sm:$0xff] %v15812_v16  ;;  %v8119_v35 = vrot.slane %v8109_v56, %v14254_v7  ;;  %v8126_v57 = vrot.slane %v8110_v26, %v14254_v7  ;;  %17441 = vst [vmem:[#allocation65_spill] sm:$0xff] %v15817_v42  ;;  %v15826_v9 = vpop.f32.mrf.mxu1  ;;  %v560_v56 = vld [vmem:[#allocation3 + $0x1e1] sm:$0x1]  ;;  %v561_v26 = vld [vmem:[#allocation3 + $0x1e2] sm:$0x1] }
 0x229   :  { %v8133_v32 = vrot.slane %v8111_v61, %v14254_v7  ;;  %v8160_v33 = vcombine.low %v1067_v11, %v1068_v25  ;;  %13454 = vmatmul.mubr.msk.bf16.gmra.mxu0 %vm8415_vm0, %v5070_v58  ;;  %v8140_v47 = vrot.slane %v8112_v53, %v14254_v7  ;;  %v8161_v22 = vcombine.low %v1069_v18, %v1070_v2  ;;  %v559_v11 = vld [vmem:[#allocation3 + $0x1e0] sm:$0x1]  ;;  %v562_v61 = vld [vmem:[#allocation3 + $0x1e3] sm:$0x1]  ;;  %v563_v58 = vld [vmem:[#allocation3 + $0x1e4] sm:$0x1] }
 0x22a   :  { %v8168_v0 = vrot.slane %v8158_v29, %v14254_v7  ;;  %v8175_v46 = vrot.slane %v8159_v55, %v14254_v7  ;;  %v13857_v12 = vpop.eup %13856  ;;  %v8141_v6 = vcombine.low %v8119_v35, %v8126_v57  ;;  %v10440_v54 = vmul.f32 %v15611_v20, %v13853_v8  ;;  %v564_v55 = vld [vmem:[#allocation3 + $0x1e5] sm:$0x1]  ;;  %v565_v57 = vld [vmem:[#allocation3 + $0x1e6] sm:$0x1]  ;;  %v590_v42 = vld [vmem:[#allocation3 + $0x1ff] sm:$0x1] }
 0x22b   :  { %v8182_v21 = vrot.slane %v8160_v33, %v14254_v7  ;;  %v10441_v14 = vmul.f32 %v15611_v20, %v13855_v63  ;;  %v13859_v25 = vpop.eup %13858  ;;  %13864 = vtanh.f32 %v10047_v13  ;;  %v8142_v17 = vcombine.low %v8133_v32, %v8140_v47  ;;  %v15838_v32 = vpop.xlane.xlu1 %11136  ;;  %v15843_v47 = vld [vmem:[%s17374_s0] sm:$0xff] }
 0x22c   :  { %v8189_v36 = vrot.slane %v8161_v22, %v14254_v7  ;;  %v8190_v18 = vcombine.low %v8168_v0, %v8175_v46  ;;  %13866 = vtanh.f32 %v10048_v3  ;;  %v8149_v2 = vrot.slane %v8141_v6, %v14254_v7  ;;  %v15834_v3 = vpop.xlane.xlu0 %11133  ;;  %17443 = vst [vmem:[#allocation67_spill] sm:$0xff] %v15838_v32  ;;  %v13532_v0 = vpop.f32.mrf.mxu1  ;;  %v567_v6 = vld [vmem:[#allocation3 + $0x1e8] sm:$0x1]  ;;  %v586_v32 = vld [vmem:[#allocation3 + $0x1fb] sm:$0x1] }
 0x22d   :  { %v10820_v10 = vsel %vm8415_vm0, %v10440_v54, 0.0  ;;  %v10823_v35 = vsel %vm8415_vm0, %v10441_v14, 0.0  ;;  %13868 = vtanh.f32 %v9925_v5  ;;  %v8156_v63 = vrot.slane %v8142_v17, %v14254_v7  ;;  %17442 = vst [vmem:[#allocation66_spill] sm:$0xff] %v15834_v3  ;;  %v566_v5 = vld [vmem:[#allocation3 + $0x1e7] sm:$0x1]  ;;  %v13861_v33 = vpop.eup %13860 }
 0x22e   :  { %v8191_v8 = vcombine.low %v8182_v21, %v8189_v36  ;;  %v8198_v13 = vrot.slane %v8190_v18, %v14254_v7  ;;  %10821 = vadd.xlane.f32.xlu0 %v10820_v10  ;;  %10824 = vadd.xlane.f32.xlu1 %v10823_v35  ;;  %13870 = vtanh.f32 %v9926_v48  ;;  %v10568_v53 = vmul.f32 %v15611_v20, %v13857_v12  ;;  %v568_v21 = vld [vmem:[#allocation3 + $0x1e9] sm:$0x1]  ;;  %v569_v17 = vld [vmem:[#allocation3 + $0x1ea] sm:$0x1]  ;;  %v570_v36 = vld [vmem:[#allocation3 + $0x1eb] sm:$0x1]  ;;  %v9093_v10 = vpop.f32.mrf.mxu0 }
 0x22f   :  { %v10569_v29 = vmul.f32 %v15611_v20, %v13859_v25  ;;  %v10053_v22 = vadd.f32 %v15843_v47, %v13531_v37  ;;  %v8157_v46 = vcombine.low %v8149_v2, %v8156_v63  ;;  %v5071_v12 = vcombine.low %v559_v11, %v560_v56  ;;  %v571_v11 = vld [vmem:[#allocation3 + $0x1ec] sm:$0x1]  ;;  %v572_v56 = vld [vmem:[#allocation3 + $0x1ed] sm:$0x1]  ;;  %v588_v3 = vld [vmem:[#allocation3 + $0x1fd] sm:$0x1] }
 0x230   :  { %v8205_v48 = vrot.slane %v8191_v8, %v14254_v7  ;;  %v10054_v54 = vadd.f32 %v15802_v44, %v13532_v0  ;;  %v11204_v14 = vsel %vm8415_vm0, %v10568_v53, 0.0  ;;  %v5072_v25 = vcombine.low %v561_v26, %v562_v61  ;;  %v13863_v18 = vpop.eup %13862  ;;  %v573_v26 = vld [vmem:[#allocation3 + $0x1ee] sm:$0x1]  ;;  %v574_v61 = vld [vmem:[#allocation3 + $0x1ef] sm:$0x1]  ;;  %v13407_v0 = vpop.f32.mrf.mxu0 }
 0x231   :  { %13581 = vmatprep.mubr.msk.bf16.mxu1 %vm8415_vm0, %v8157_v46  ;;  %v11207_v37 = vsel %vm8415_vm0, %v10569_v29, 0.0  ;;  %v5073_v2 = vcombine.low %v563_v58, %v564_v55  ;;  %v5074_v63 = vcombine.low %v565_v57, %v566_v5  ;;  %v5081_v8 = vrot.slane %v5071_v12, %v14254_v7 }
 0x232   :  { %v8206_v35 = vcombine.low %v8198_v13, %v8205_v48  ;;  %11205 = vadd.xlane.f32.xlu0 %v11204_v14  ;;  %11208 = vadd.xlane.f32.xlu1 %v11207_v37  ;;  %v5088_v53 = vrot.slane %v5072_v25, %v14254_v7  ;;  %13872 = vtanh.f32 %v10053_v22  ;;  %v5120_v29 = vcombine.low %v567_v6, %v568_v21  ;;  %v15856_v58 = vpop.xlane.xlu0 %10743  ;;  %v15860_v12 = vpop.xlane.xlu1 %10746 }
 0x233   :  { %v5095_v13 = vrot.slane %v5073_v2, %v14254_v7  ;;  %v5102_v46 = vrot.slane %v5074_v63, %v14254_v7  ;;  %17444 = vst [vmem:[#allocation68_spill] sm:$0xff] %v15856_v58  ;;  %v9923_v55 = vadd.f32 %v15843_v47, %v15784_v41  ;;  %v5121_v5 = vcombine.low %v569_v17, %v570_v36  ;;  %v9605_v22 = vpop.f32.mrf.mxu1  ;;  %v15867_v41 = vpop.f32.mrf.mxu0 }
 0x234   :  { %13582 = vmatmul.mubr.msk.bf16.gmra.mxu1 %vm8415_vm0, %v8206_v35  ;;  %v5103_v57 = vcombine.low %v5081_v8, %v5088_v53  ;;  %v5122_v48 = vcombine.low %v571_v11, %v572_v56  ;;  %17445 = vst [vmem:[#allocation69_spill] sm:$0xff] %v15860_v12  ;;  %13874 = vtanh.f32 %v10054_v54  ;;  %v5123_v25 = vcombine.low %v573_v26, %v574_v61 }
 0x235   :  { %v5104_v14 = vcombine.low %v5095_v13, %v5102_v46  ;;  %v5130_v35 = vrot.slane %v5120_v29, %v14254_v7  ;;  %v9924_v37 = vadd.f32 %v15802_v44, %v9093_v10  ;;  %v5137_v21 = vrot.slane %v5121_v5, %v14254_v7  ;;  %v13535_v54 = vpop.f32.mrf.mxu1  ;;  %v575_v5 = vld [vmem:[#allocation3 + $0x1f0] sm:$0x1] }
 0x236   :  { %v5111_v6 = vrot.slane %v5103_v57, %v14254_v7  ;;  %v5144_v2 = vrot.slane %v5122_v48, %v14254_v7  ;;  %v5151_v36 = vrot.slane %v5123_v25, %v14254_v7  ;;  %v10438_v63 = vmul.f32 %v15611_v20, %v13861_v33  ;;  %v15877_v29 = vpop.xlane.xlu0 %11127  ;;  %v13408_v48 = vpop.f32.mrf.mxu0  ;;  %v576_v25 = vld [vmem:[#allocation3 + $0x1f1] sm:$0x1] }
 0x237   :  { %v5118_v17 = vrot.slane %v5104_v14, %v14254_v7  ;;  %13876 = vtanh.f32 %v9923_v55  ;;  %v10051_v10 = vadd.f32 %v15843_v47, %v15826_v9  ;;  %v5152_v56 = vcombine.low %v5130_v35, %v5137_v21  ;;  %17446 = vst [vmem:[#allocation70_spill] sm:$0xff] %v15877_v29  ;;  %v15886_v14 = vpop.f32.mrf.mxu1  ;;  %v577_v35 = vld [vmem:[#allocation3 + $0x1f2] sm:$0x1] }
 0x238   :  { %v13865_v11 = vpop.eup %13864  ;;  %v10439_v8 = vmul.f32 %v15611_v20, %v13863_v18  ;;  %v10052_v26 = vadd.f32 %v15802_v44, %v9605_v22  ;;  %v5153_v13 = vcombine.low %v5144_v2, %v5151_v36  ;;  %v10814_v46 = vsel %vm8415_vm0, %v10438_v63, 0.0  ;;  %v15882_v20 = vpop.xlane.xlu1 %11130  ;;  %v580_v36 = vld [vmem:[#allocation3 + $0x1f5] sm:$0x1]  ;;  %v581_v63 = vld [vmem:[#allocation3 + $0x1f6] sm:$0x1] }
 0x239   :  { %v13867_v53 = vpop.eup %13866  ;;  %v5119_v61 = vcombine.low %v5111_v6, %v5118_v17  ;;  %13878 = vtanh.f32 %v9924_v37  ;;  %v9929_v33 = vadd.f32 %v15843_v47, %v13407_v0  ;;  %v5160_v55 = vrot.slane %v5152_v56, %v14254_v7  ;;  %10815 = vadd.xlane.f32.xlu0 %v10814_v46  ;;  %17447 = vst [vmem:[#allocation71_spill] sm:$0xff] %v15882_v20  ;;  %v578_v0 = vld [vmem:[#allocation3 + $0x1f3] sm:$0x1]  ;;  %v15892_v6 = vld [vmem:[%s17377_s3] ss:$0 sm:$0xff] }
 0x23a   :  { %v13869_v57 = vpop.eup %13868  ;;  %v10817_v9 = vsel %vm8415_vm0, %v10439_v8, 0.0  ;;  %v5167_v22 = vrot.slane %v5153_v13, %v14254_v7  ;;  %13880 = vtanh.f32 %v10051_v10  ;;  %v9930_v37 = vadd.f32 %v15802_v44, %v13408_v48  ;;  %v579_v17 = vld [vmem:[#allocation3 + $0x1f4] sm:$0x1]  ;;  %v583_v10 = vld [vmem:[#allocation3 + $0x1f8] sm:$0x1]  ;;  %v15901_v20 = vpop.xlane.xlu0 %10761 }
 0x23b   :  { %v13871_v18 = vpop.eup %13870  ;;  %13457 = vmatprep.mubr.msk.bf16.mxu0 %vm8415_vm0, %v5119_v61  ;;  %10818 = vadd.xlane.f32.xlu1 %v10817_v9  ;;  %v10566_v21 = vmul.f32 %v15892_v6, %v13865_v11  ;;  %v10567_v2 = vmul.f32 %v15892_v6, %v13867_v53  ;;  %13882 = vtanh.f32 %v10052_v26  ;;  %v10444_v8 = vmul.f32 %v15892_v6, %v13869_v57  ;;  %v582_v61 = vld [vmem:[#allocation3 + $0x1f7] sm:$0x1]  ;;  %v584_v13 = vld [vmem:[#allocation3 + $0x1f9] sm:$0x1]  ;;  %v585_v48 = vld [vmem:[#allocation3 + $0x1fa] sm:$0x1]  ;;  %v13536_v11 = vpop.f32.mrf.mxu1 }
 0x23c   :  { %v5168_v56 = vcombine.low %v5160_v55, %v5167_v22  ;;  %13884 = vtanh.f32 %v9929_v33  ;;  %v10445_v9 = vmul.f32 %v15892_v6, %v13871_v18  ;;  %v5169_v26 = vcombine.low %v575_v5, %v576_v25  ;;  %v587_v57 = vld [vmem:[#allocation3 + $0x1fc] sm:$0x1]  ;;  %17448 = vst [vmem:[#allocation72_spill] sm:$0xff] %v15901_v20 }
 0x23d   :  { %v11198_v46 = vsel %vm8415_vm0, %v10566_v21, 0.0  ;;  %v11201_v53 = vsel %vm8415_vm0, %v10567_v2, 0.0  ;;  %v5170_v55 = vcombine.low %v577_v35, %v578_v0  ;;  %v5171_v22 = vcombine.low %v579_v17, %v580_v36 }
 0x23e   :  { %13458 = vmatmul.mubr.msk.bf16.gmra.mxu0 %vm8415_vm0, %v5168_v56  ;;  %11199 = vadd.xlane.f32.xlu0 %v11198_v46  ;;  %13886 = vtanh.f32 %v9930_v37  ;;  %v10057_v21 = vadd.f32 %v15843_v47, %v13535_v54  ;;  %v10058_v18 = vadd.f32 %v15802_v44, %v13536_v11  ;;  %v5172_v29 = vcombine.low %v581_v63, %v582_v61  ;;  %v589_v56 = vld [vmem:[#allocation3 + $0x1fe] sm:$0x1]  ;;  %v15905_v46 = vpop.xlane.xlu1 %10764 }
 0x23f   :  { %v13873_v33 = vpop.eup %13872  ;;  %11202 = vadd.xlane.f32.xlu1 %v11201_v53  ;;  %17449 = vst [vmem:[#allocation73_spill] sm:$0xff] %v15905_v46  ;;  %v10832_v5 = vsel %vm8415_vm0, %v10444_v8, 0.0  ;;  %v5179_v25 = vrot.slane %v5169_v26, %v14254_v7  ;;  %v5186_v35 = vrot.slane %v5170_v55, %v14254_v7  ;;  %v5193_v0 = vrot.slane %v5171_v22, %v14254_v7  ;;  %v9109_v8 = vpop.f32.mrf.mxu0 }
 0x240   :  { %v5200_v37 = vrot.slane %v5172_v29, %v14254_v7  ;;  %v5218_v54 = vcombine.low %v583_v10, %v584_v13  ;;  %v5219_v17 = vcombine.low %v585_v48, %v586_v32  ;;  %v5220_v36 = vcombine.low %v587_v57, %v588_v3  ;;  %v15920_v13 = vpop.xlane.xlu0 %11145 }
 0x241   :  { %v13875_v2 = vpop.eup %13874  ;;  %v10835_v63 = vsel %vm8415_vm0, %v10445_v9, 0.0  ;;  %v5201_v61 = vcombine.low %v5179_v25, %v5186_v35  ;;  %v5221_v11 = vcombine.low %v589_v56, %v590_v42  ;;  %v10572_v53 = vmul.f32 %v15892_v6, %v13873_v33  ;;  %17450 = vst [vmem:[#allocation74_spill] sm:$0xff] %v15920_v13  ;;  %v13411_v9 = vpop.f32.mrf.mxu0  ;;  %v1084_v13 = vld [vmem:[#allocation3 + $0x3ed] sm:$0x1] }
 0x242   :  { %10833 = vadd.xlane.f32.xlu0 %v10832_v5  ;;  %v5202_v26 = vcombine.low %v5193_v0, %v5200_v37  ;;  %v5228_v55 = vrot.slane %v5218_v54, %v14254_v7  ;;  %v5235_v22 = vrot.slane %v5219_v17, %v14254_v7  ;;  %v5242_v46 = vrot.slane %v5220_v36, %v14254_v7  ;;  %v15924_v33 = vpop.xlane.xlu1 %11148 }
 0x243   :  { %10836 = vadd.xlane.f32.xlu1 %v10835_v63  ;;  %v5209_v32 = vrot.slane %v5201_v61, %v14254_v7  ;;  %v5249_v3 = vrot.slane %v5221_v11, %v14254_v7  ;;  %v10573_v10 = vmul.f32 %v15892_v6, %v13875_v2  ;;  %13888 = vtanh.f32 %v10057_v21  ;;  %17451 = vst [vmem:[#allocation75_spill] sm:$0xff] %v15924_v33  ;;  %v9621_v21 = vpop.f32.mrf.mxu1  ;;  %v1083_v33 = vld [vmem:[#allocation3 + $0x3ec] sm:$0x1] }
 0x244   :  { %v13877_v29 = vpop.eup %13876  ;;  %v5216_v42 = vrot.slane %v5202_v26, %v14254_v7  ;;  %v5250_v48 = vcombine.low %v5228_v55, %v5235_v22  ;;  %v11216_v57 = vsel %vm8415_vm0, %v10572_v53, 0.0  ;;  %v9927_v5 = vadd.f32 %v15843_v47, %v15867_v41 }
 0x245   :  { %13890 = vtanh.f32 %v10058_v18  ;;  %v5251_v25 = vcombine.low %v5242_v46, %v5249_v3  ;;  %v11219_v35 = vsel %vm8415_vm0, %v10573_v10, 0.0  ;;  %v9928_v0 = vadd.f32 %v15802_v44, %v9109_v8  ;;  %v9122_v18 = vpop.f32.mrf.mxu0  ;;  %v13539_v8 = vpop.f32.mrf.mxu1 }
 0x246   :  { %v13879_v56 = vpop.eup %13878  ;;  %11217 = vadd.xlane.f32.xlu0 %v11216_v57  ;;  %v5217_v2 = vcombine.low %v5209_v32, %v5216_v42  ;;  %v5258_v37 = vrot.slane %v5250_v48, %v14254_v7  ;;  %v10442_v36 = vmul.f32 %v15892_v6, %v13877_v29  ;;  %v10055_v41 = vadd.f32 %v15843_v47, %v15886_v14  ;;  %v1071_v14 = vld [vmem:[#allocation3 + $0x3e0] sm:$0x1]  ;;  %v1072_v29 = vld [vmem:[#allocation3 + $0x3e1] sm:$0x1]  ;;  %v1073_v57 = vld [vmem:[#allocation3 + $0x3e2] sm:$0x1] }
 0x247   :  { %11220 = vadd.xlane.f32.xlu1 %v11219_v35  ;;  %v13881_v54 = vpop.eup %13880  ;;  %v5265_v17 = vrot.slane %v5251_v25, %v14254_v7  ;;  %v10443_v46 = vmul.f32 %v15892_v6, %v13879_v56  ;;  %13892 = vtanh.f32 %v9927_v5  ;;  %v10056_v11 = vadd.f32 %v15802_v44, %v9621_v21  ;;  %v15939_v55 = vpop.xlane.xlu0 %10755  ;;  %v1074_v56 = vld [vmem:[#allocation3 + $0x3e3] sm:$0x1]  ;;  %v1075_v5 = vld [vmem:[#allocation3 + $0x3e4] sm:$0x1]  ;;  %v1077_v21 = vld [vmem:[#allocation3 + $0x3e6] sm:$0x1] }
 0x248   :  { %v13883_v63 = vpop.eup %13882  ;;  %13461 = vmatprep.mubr.msk.bf16.mxu0 %vm8415_vm0, %v5217_v2  ;;  %v10826_v26 = vsel %vm8415_vm0, %v10442_v36, 0.0  ;;  %17452 = vst [vmem:[#allocation76_spill] sm:$0xff] %v15939_v55  ;;  %13894 = vtanh.f32 %v9928_v0  ;;  %v15942_v32 = vpop.xlane.xlu1 %10758  ;;  %v9933_v10 = vadd.f32 %v15843_v47, %v13411_v9  ;;  %v10570_v42 = vmul.f32 %v15892_v6, %v13881_v54  ;;  %v1076_v0 = vld [vmem:[#allocation3 + $0x3e5] sm:$0x1]  ;;  %v1078_v2 = vld [vmem:[#allocation3 + $0x3e7] sm:$0x1] }
 0x249   :  { %v13885_v61 = vpop.eup %13884  ;;  %v5266_v53 = vcombine.low %v5258_v37, %v5265_v17  ;;  %v10829_v22 = vsel %vm8415_vm0, %v10443_v46, 0.0  ;;  %17453 = vst [vmem:[#allocation77_spill] sm:$0xff] %v15942_v32  ;;  %v10571_v48 = vmul.f32 %v15892_v6, %v13883_v63  ;;  %13896 = vtanh.f32 %v10055_v41  ;;  %v13412_v25 = vpop.f32.mrf.mxu0  ;;  %v1079_v36 = vld [vmem:[#allocation3 + $0x3e8] sm:$0x1]  ;;  %v1080_v54 = vld [vmem:[#allocation3 + $0x3e9] sm:$0x1] }
 0x24a   :  { %10827 = vadd.xlane.f32.xlu0 %v10826_v26  ;;  %v10448_v35 = vmul.f32 %v15892_v6, %v13885_v61  ;;  %13898 = vtanh.f32 %v10056_v11  ;;  %v9934_v9 = vadd.f32 %v15802_v44, %v13412_v25  ;;  %v9634_v37 = vpop.f32.mrf.mxu1  ;;  %v11210_v17 = vsel %vm8415_vm0, %v10570_v42, 0.0  ;;  %v1081_v26 = vld [vmem:[#allocation3 + $0x3ea] sm:$0x1]  ;;  %v1082_v61 = vld [vmem:[#allocation3 + $0x3eb] sm:$0x1] }
 0x24b   :  { %v13887_v3 = vpop.eup %13886  ;;  %13462 = vmatmul.mubr.msk.bf16.gmra.mxu0 %vm8415_vm0, %v5266_v53  ;;  %10830 = vadd.xlane.f32.xlu1 %v10829_v22  ;;  %v11213_v63 = vsel %vm8415_vm0, %v10571_v48, 0.0  ;;  %v8207_v41 = vcombine.low %v1071_v14, %v1072_v29  ;;  %v8208_v53 = vcombine.low %v1073_v57, %v1074_v56  ;;  %13900 = vtanh.f32 %v9933_v10  ;;  %v15954_v42 = vpop.xlane.xlu0 %11139  ;;  %v1085_v29 = vld [vmem:[#allocation3 + $0x3ee] sm:$0x1]  ;;  %v1086_v57 = vld [vmem:[#allocation3 + $0x3ef] sm:$0x1] }
 0x24c   :  { %v10449_v46 = vmul.f32 %v15892_v6, %v13887_v3  ;;  %v9931_v22 = vadd.f32 %v15843_v47, %v9122_v18  ;;  %v8209_v11 = vcombine.low %v1075_v5, %v1076_v0  ;;  %v8210_v25 = vcombine.low %v1077_v21, %v1078_v2  ;;  %17454 = vst [vmem:[#allocation78_spill] sm:$0xff] %v15954_v42  ;;  %v15960_v10 = vpop.xlane.xlu1 %11142  ;;  %v13540_v56 = vpop.f32.mrf.mxu1 }
 0x24d   :  { %v10844_v48 = vsel %vm8415_vm0, %v10448_v35, 0.0  ;;  %v8217_v3 = vrot.slane %v8207_v41, %v14254_v7  ;;  %v8224_v14 = vrot.slane %v8208_v53, %v14254_v7  ;;  %17455 = vst [vmem:[#allocation79_spill] sm:$0xff] %v15960_v10  ;;  %v8256_v21 = vcombine.low %v1079_v36, %v1080_v54  ;;  %v9125_v53 = vpop.f32.mrf.mxu0 }
 0x24e   :  { %11211 = vadd.xlane.f32.xlu0 %v11210_v17  ;;  %v10061_v17 = vadd.f32 %v15843_v47, %v13539_v8  ;;  %v8231_v5 = vrot.slane %v8209_v11, %v14254_v7  ;;  %v8238_v0 = vrot.slane %v8210_v25, %v14254_v7  ;;  %v8257_v2 = vcombine.low %v1081_v26, %v1082_v61  ;;  %v9637_v26 = vpop.f32.mrf.mxu1 }
 0x24f   :  { %11214 = vadd.xlane.f32.xlu1 %v11213_v63  ;;  %13902 = vtanh.f32 %v9934_v9  ;;  %v10847_v8 = vsel %vm8415_vm0, %v10449_v46, 0.0  ;;  %v8239_v35 = vcombine.low %v8217_v3, %v8224_v14  ;;  %v8258_v41 = vcombine.low %v1083_v33, %v1084_v13  ;;  %v15975_v25 = vpop.xlane.xlu0 %10773  ;;  %v13415_v14 = vpop.f32.mrf.mxu0 }
 0x250   :  { %v13889_v18 = vpop.eup %13888  ;;  %v10062_v42 = vadd.f32 %v15802_v44, %v13540_v56  ;;  %v8240_v10 = vcombine.low %v8231_v5, %v8238_v0  ;;  %v8259_v32 = vcombine.low %v1085_v29, %v1086_v57  ;;  %v8266_v55 = vrot.slane %v8256_v21, %v14254_v7  ;;  %17456 = vst [vmem:[#allocation80_spill] sm:$0xff] %v15975_v25 }
 0x251   :  { %v8247_v11 = vrot.slane %v8239_v35, %v14254_v7  ;;  %v8273_v36 = vrot.slane %v8257_v2, %v14254_v7  ;;  %v8280_v54 = vrot.slane %v8258_v41, %v14254_v7  ;;  %v10576_v9 = vmul.f32 %v15892_v6, %v13889_v18  ;;  %v15979_v18 = vpop.xlane.xlu1 %10776  ;;  %v9138_v35 = vpop.f32.mrf.mxu0 }
 0x252   :  { %v13891_v63 = vpop.eup %13890  ;;  %10845 = vadd.xlane.f32.xlu0 %v10844_v48  ;;  %v10059_v46 = vadd.f32 %v15843_v47, %v9634_v37  ;;  %v8254_v13 = vrot.slane %v8240_v10, %v14254_v7  ;;  %v8287_v33 = vrot.slane %v8259_v32, %v14254_v7  ;;  %13904 = vtanh.f32 %v10061_v17  ;;  %17457 = vst [vmem:[#allocation81_spill] sm:$0xff] %v15979_v18  ;;  %v13543_v17 = vpop.f32.mrf.mxu1  ;;  %v1102_v18 = vld [vmem:[#allocation3 + $0x3ff] sm:$0x1] }
 0x253   :  { %10848 = vadd.xlane.f32.xlu1 %v10847_v8  ;;  %v10577_v61 = vmul.f32 %v15892_v6, %v13891_v63  ;;  %v9932_v3 = vadd.f32 %v15802_v44, %v9125_v53  ;;  %v8288_v29 = vcombine.low %v8266_v55, %v8273_v36  ;;  %v11228_v57 = vsel %vm8415_vm0, %v10576_v9, 0.0  ;;  %v1087_v63 = vld [vmem:[#allocation3 + $0x3f0] sm:$0x1]  ;;  %v1088_v53 = vld [vmem:[#allocation3 + $0x3f1] sm:$0x1] }
 0x254   :  { %v13893_v48 = vpop.eup %13892  ;;  %13906 = vtanh.f32 %v10062_v42  ;;  %v8255_v56 = vcombine.low %v8247_v11, %v8254_v13  ;;  %v8289_v10 = vcombine.low %v8280_v54, %v8287_v33  ;;  %v10060_v5 = vadd.f32 %v15802_v44, %v9637_v26  ;;  %v1089_v11 = vld [vmem:[#allocation3 + $0x3f2] sm:$0x1]  ;;  %v1090_v36 = vld [vmem:[#allocation3 + $0x3f3] sm:$0x1]  ;;  %v1091_v9 = vld [vmem:[#allocation3 + $0x3f4] sm:$0x1] }
 0x255   :  { %v13895_v37 = vpop.eup %13894  ;;  %v11231_v32 = vsel %vm8415_vm0, %v10577_v61, 0.0  ;;  %v8296_v0 = vrot.slane %v8288_v29, %v14254_v7  ;;  %13908 = vtanh.f32 %v9931_v22  ;;  %v9937_v55 = vadd.f32 %v15843_v47, %v13415_v14  ;;  %v1092_v26 = vld [vmem:[#allocation3 + $0x3f5] sm:$0x1]  ;;  %v15992_v61 = vpop.f32.mrf.mxu1  ;;  %v1094_v14 = vld [vmem:[#allocation3 + $0x3f7] sm:$0x1] }
 0x256   :  { %11229 = vadd.xlane.f32.xlu0 %v11228_v57  ;;  %v13897_v21 = vpop.eup %13896  ;;  %13585 = vmatprep.mubr.msk.bf16.mxu1 %vm8415_vm0, %v8255_v56  ;;  %v8303_v2 = vrot.slane %v8289_v10, %v14254_v7  ;;  %v10446_v42 = vmul.f32 %v15892_v6, %v13893_v48  ;;  %13910 = vtanh.f32 %v10059_v46  ;;  %v10447_v41 = vmul.f32 %v15892_v6, %v13895_v37  ;;  %v1093_v48 = vld [vmem:[#allocation3 + $0x3f6] sm:$0x1]  ;;  %v1095_v37 = vld [vmem:[#allocation3 + $0x3f8] sm:$0x1]  ;;  %v1096_v56 = vld [vmem:[#allocation3 + $0x3f9] sm:$0x1] }
 0x257   :  { %11232 = vadd.xlane.f32.xlu1 %v11231_v32  ;;  %v13899_v8 = vpop.eup %13898  ;;  %13912 = vtanh.f32 %v9932_v3  ;;  %v15990_v13 = vpop.xlane.xlu0 %11157  ;;  %v10574_v3 = vmul.f32 %v15892_v6, %v13897_v21  ;;  %v1097_v10 = vld [vmem:[#allocation3 + $0x3fa] sm:$0x1]  ;;  %v16001_v32 = vadd.f32 %v15843_v47, %v9138_v35  ;;  %v10065_v21 = vadd.f32 %v15843_v47, %v13543_v17 }
 0x258   :  { %v8304_v54 = vcombine.low %v8296_v0, %v8303_v2  ;;  %v10838_v22 = vsel %vm8415_vm0, %v10446_v42, 0.0  ;;  %17458 = vst [vmem:[#allocation82_spill] sm:$0xff] %v15990_v13  ;;  %v13901_v33 = vpop.eup %13900  ;;  %13914 = vtanh.f32 %v10060_v5  ;;  %v10841_v46 = vsel %vm8415_vm0, %v10447_v41, 0.0  ;;  %v13416_v5 = vpop.f32.mrf.mxu0  ;;  %v1098_v41 = vld [vmem:[#allocation3 + $0x3fb] sm:$0x1] }
 0x259   :  { %13916 = vtanh.f32 %v9937_v55  ;;  %v10575_v57 = vmul.f32 %v15892_v6, %v13899_v8  ;;  %v8305_v0 = vcombine.low %v1087_v63, %v1088_v53  ;;  %v8306_v2 = vcombine.low %v1089_v11, %v1090_v36  ;;  %v1100_v55 = vld [vmem:[#allocation3 + $0x3fd] sm:$0x1]  ;;  %v1101_v13 = vld [vmem:[#allocation3 + $0x3fe] sm:$0x1]  ;;  %v13544_v25 = vpop.f32.mrf.mxu1 }
 0x25a   :  { %10839 = vadd.xlane.f32.xlu0 %v10838_v22  ;;  %13586 = vmatmul.mubr.msk.bf16.gmra.mxu1 %vm8415_vm0, %v8304_v54  ;;  %v8307_v42 = vcombine.low %v1091_v9, %v1092_v26  ;;  %v1099_v22 = vld [vmem:[#allocation3 + $0x3fc] sm:$0x1]  ;;  %v9938_v54 = vadd.f32 %v15802_v44, %v13416_v5  ;;  %v11222_v8 = vsel %vm8415_vm0, %v10574_v3, 0.0  ;;  %v10066_v36 = vadd.f32 %v15802_v44, %v13544_v25 }
 0x25b   :  { %v15995_v29 = vpop.xlane.xlu1 %11160  ;;  %10842 = vadd.xlane.f32.xlu1 %v10841_v46  ;;  %v8308_v46 = vcombine.low %v1093_v48, %v1094_v14  ;;  %v11225_v35 = vsel %vm8415_vm0, %v10575_v57, 0.0  ;;  %v8315_v63 = vrot.slane %v8305_v0, %v14254_v7  ;;  %v8322_v53 = vrot.slane %v8306_v2, %v14254_v7  ;;  %v9141_v2 = vpop.f32.mrf.mxu0 }
 0x25c   :  { %17459 = vst [vmem:[#allocation83_spill] sm:$0xff] %v15995_v29  ;;  %v13903_v29 = vpop.eup %13902  ;;  %v8329_v11 = vrot.slane %v8307_v42, %v14254_v7  ;;  %v8354_v9 = vcombine.low %v1095_v37, %v1096_v56  ;;  %v8355_v26 = vcombine.low %v1097_v10, %v1098_v41  ;;  %v8356_v3 = vcombine.low %v1099_v22, %v1100_v55 }
 0x25d   :  { %v8336_v17 = vrot.slane %v8308_v46, %v14254_v7  ;;  %v8337_v14 = vcombine.low %v8315_v63, %v8322_v53  ;;  %v8357_v5 = vcombine.low %v1101_v13, %v1102_v18  ;;  %v10452_v57 = vmul.f32 %v15892_v6, %v13901_v33  ;;  %v13419_v22 = vpop.f32.mrf.mxu0 }
 0x25e   :  { %11223 = vadd.xlane.f32.xlu0 %v11222_v8  ;;  %13918 = vtanh.f32 %v9938_v54  ;;  %v8364_v25 = vrot.slane %v8354_v9, %v14254_v7  ;;  %v8378_v56 = vrot.slane %v8356_v3, %v14254_v7  ;;  %v10453_v41 = vmul.f32 %v15892_v6, %v13903_v29 }
 0x25f   :  { %11226 = vadd.xlane.f32.xlu1 %v11225_v35  ;;  %v13905_v0 = vpop.eup %13904  ;;  %v8338_v42 = vcombine.low %v8329_v11, %v8336_v17  ;;  %v8371_v35 = vrot.slane %v8355_v26, %v14254_v7  ;;  %v8345_v37 = vrot.slane %v8337_v14, %v14254_v7  ;;  %v8385_v10 = vrot.slane %v8357_v5, %v14254_v7  ;;  %v9653_v17 = vpop.f32.mrf.mxu1 }
 0x260   :  { %v10856_v18 = vsel %vm8415_vm0, %v10452_v57, 0.0  ;;  %13920 = vtanh.f32 %v10065_v21  ;;  %v9936_v54 = vadd.f32 %v15802_v44, %v9141_v2  ;;  %v10580_v53 = vmul.f32 %v15892_v6, %v13905_v0 }
 0x261   :  { %v13907_v46 = vpop.eup %13906  ;;  %v8352_v13 = vrot.slane %v8338_v42, %v14254_v7  ;;  %v8386_v33 = vcombine.low %v8364_v25, %v8371_v35  ;;  %13922 = vtanh.f32 %v10066_v36  ;;  %v8387_v63 = vcombine.low %v8378_v56, %v8385_v10  ;;  %v9154_v42 = vpop.f32.mrf.mxu0 }
 0x262   :  { %10857 = vadd.xlane.f32.xlu0 %v10856_v18  ;;  %v13909_v55 = vpop.eup %13908  ;;  %v10859_v21 = vsel %vm8415_vm0, %v10453_v41, 0.0  ;;  %v10581_v14 = vmul.f32 %v15892_v6, %v13907_v46  ;;  %v11240_v36 = vsel %vm8415_vm0, %v10580_v53, 0.0  ;;  %13924 = vtanh.f32 %v16001_v32 }
 0x263   :  { %v13911_v11 = vpop.eup %13910  ;;  %v8353_v9 = vcombine.low %v8345_v37, %v8352_v13  ;;  %v8394_v26 = vrot.slane %v8386_v33, %v14254_v7  ;;  %v8401_v5 = vrot.slane %v8387_v63, %v14254_v7  ;;  %10860 = vadd.xlane.f32.xlu1 %v10859_v21  ;;  %v10063_v2 = vadd.f32 %v15843_v47, %v15992_v61  ;;  %v13547_v7 = vpop.f32.mrf.mxu1 }
 0x264   :  { %v13913_v29 = vpop.eup %13912  ;;  %v10064_v35 = vadd.f32 %v15802_v44, %v9653_v17  ;;  %13926 = vtanh.f32 %v9936_v54  ;;  %v11243_v37 = vsel %vm8415_vm0, %v10581_v14, 0.0  ;;  %v10450_v56 = vmul.f32 %v15892_v6, %v13909_v55  ;;  %v13420_v32 = vpop.f32.mrf.mxu0 }
 0x265   :  { %v13915_v0 = vpop.eup %13914  ;;  %13589 = vmatprep.mubr.msk.bf16.mxu1 %vm8415_vm0, %v8353_v9  ;;  %v8402_v46 = vcombine.low %v8394_v26, %v8401_v5  ;;  %v10451_v10 = vmul.f32 %v15892_v6, %v13913_v29  ;;  %13928 = vtanh.f32 %v10063_v2  ;;  %v9941_v61 = vadd.f32 %v15843_v47, %v13419_v22  ;;  %v9666_v33 = vpop.f32.mrf.mxu1 }
 0x266   :  { %v16012_v48 = vpop.xlane.xlu0 %10767  ;;  %11241 = vadd.xlane.f32.xlu0 %v11240_v36  ;;  %v13917_v25 = vpop.eup %13916  ;;  %v10850_v18 = vsel %vm8415_vm0, %v10450_v56, 0.0  ;;  %13930 = vtanh.f32 %v10064_v35  ;;  %v9942_v55 = vadd.f32 %v15802_v44, %v13420_v32  ;;  %v10578_v63 = vmul.f32 %v15892_v6, %v13911_v11 }
 0x267   :  { %17460 = vst [vmem:[#allocation84_spill] sm:$0xff] %v16012_v48  ;;  %v16015_v8 = vpop.xlane.xlu1 %10770  ;;  %13590 = vmatmul.mubr.msk.bf16.gmra.mxu1 %vm8415_vm0, %v8402_v46  ;;  %11244 = vadd.xlane.f32.xlu1 %v11243_v37  ;;  %v10853_v54 = vsel %vm8415_vm0, %v10451_v10, 0.0  ;;  %v10579_v53 = vmul.f32 %v15892_v6, %v13915_v0  ;;  %13932 = vtanh.f32 %v9941_v61  ;;  %v10069_v22 = vadd.f32 %v15843_v47, %v13547_v7  ;;  %v13548_v14 = vpop.f32.mrf.mxu1 }
 0x268   :  { %17461 = vst [vmem:[#allocation85_spill] sm:$0xff] %v16015_v8  ;;  %v11234_v9 = vsel %vm8415_vm0, %v10578_v63, 0.0  ;;  %v10456_v26 = vmul.f32 %v15892_v6, %v13917_v25  ;;  %13934 = vtanh.f32 %v9942_v55  ;;  %v9157_v5 = vpop.f32.mrf.mxu0  ;;  %v10070_v36 = vadd.f32 %v15802_v44, %v13548_v14 }
 0x269   :  { %v11237_v11 = vsel %vm8415_vm0, %v10579_v53, 0.0  ;;  %v9939_v46 = vadd.f32 %v15843_v47, %v9154_v42  ;;  %13936 = vtanh.f32 %v10069_v22  ;;  %v9940_v10 = vadd.f32 %v15802_v44, %v9157_v5  ;;  %v9669_v55 = vpop.f32.mrf.mxu1 }
 0x26a   :  { %v16030_v3 = vpop.xlane.xlu0 %11151  ;;  %10851 = vadd.xlane.f32.xlu0 %v10850_v18  ;;  %v10868_v25 = vsel %vm8415_vm0, %v10456_v26, 0.0  ;;  %v13423_v7 = vpop.f32.mrf.mxu0  ;;  %13938 = vtanh.f32 %v10070_v36  ;;  %v10067_v42 = vadd.f32 %v15843_v47, %v9666_v33 }
 0x26b   :  { %17462 = vst [vmem:[#allocation86_spill] sm:$0xff] %v16030_v3  ;;  %v16034_v57 = vpop.xlane.xlu1 %11154  ;;  %v13919_v17 = vpop.eup %13918  ;;  %10854 = vadd.xlane.f32.xlu1 %v10853_v54  ;;  %13940 = vtanh.f32 %v9939_v46  ;;  %v9945_v5 = vadd.f32 %v15843_v47, %v13423_v7 }
 0x26c   :  { %17463 = vst [vmem:[#allocation87_spill] sm:$0xff] %v16034_v57  ;;  %v10457_v0 = vmul.f32 %v15892_v6, %v13919_v17  ;;  %v9170_v63 = vpop.f32.mrf.mxu0  ;;  %v13551_v44 = vpop.f32.mrf.mxu1  ;;  %13942 = vtanh.f32 %v9940_v10 }
 0x26d   :  { %v13921_v21 = vpop.eup %13920  ;;  %13944 = vtanh.f32 %v10067_v42 }
 0x26e   :  { %v16047_v13 = vpop.xlane.xlu0 %10785  ;;  %11235 = vadd.xlane.f32.xlu0 %v11234_v9  ;;  %v13923_v29 = vpop.eup %13922  ;;  %v10584_v37 = vmul.f32 %v15892_v6, %v13921_v21  ;;  %v10871_v61 = vsel %vm8415_vm0, %v10457_v0, 0.0  ;;  %v16081_v21 = vld [vmem:[%s17374_s0 + $0x8] sm:$0xff] }
 0x26f   :  { %17464 = vst [vmem:[#allocation88_spill] sm:$0xff] %v16047_v13  ;;  %v16049_v41 = vpop.xlane.xlu1 %10788  ;;  %11238 = vadd.xlane.f32.xlu1 %v11237_v11  ;;  %v13925_v56 = vpop.eup %13924  ;;  %v10585_v32 = vmul.f32 %v15892_v6, %v13923_v29  ;;  %v10068_v33 = vadd.f32 %v16081_v21, %v9669_v55 }
 0x270   :  { %17465 = vst [vmem:[#allocation89_spill] sm:$0xff] %v16049_v41  ;;  %v11252_v54 = vsel %vm8415_vm0, %v10584_v37, 0.0  ;;  %v10454_v53 = vmul.f32 %v15892_v6, %v13925_v56  ;;  %v13424_v46 = vpop.f32.mrf.mxu0 }
 0x271   :  { %v13927_v18 = vpop.eup %13926  ;;  %v11255_v14 = vsel %vm8415_vm0, %v10585_v32, 0.0  ;;  %13946 = vtanh.f32 %v10068_v33  ;;  %v9946_v37 = vadd.f32 %v16081_v21, %v13424_v46 }
 0x272   :  { %v16061_v2 = vpop.xlane.xlu0 %11169  ;;  %10869 = vadd.xlane.f32.xlu0 %v10868_v25  ;;  %v13929_v22 = vpop.eup %13928  ;;  %v10455_v29 = vmul.f32 %v15892_v6, %v13927_v18  ;;  %v10862_v36 = vsel %vm8415_vm0, %v10454_v53, 0.0  ;;  %13948 = vtanh.f32 %v9945_v5  ;;  %v10073_v18 = vadd.f32 %v15843_v47, %v13551_v44 }
 0x273   :  { %17466 = vst [vmem:[#allocation90_spill] sm:$0xff] %v16061_v2  ;;  %v16063_v35 = vpop.xlane.xlu1 %11172  ;;  %10872 = vadd.xlane.f32.xlu1 %v10871_v61  ;;  %v13931_v26 = vpop.eup %13930  ;;  %v10582_v11 = vmul.f32 %v15892_v6, %v13929_v22  ;;  %13950 = vtanh.f32 %v9946_v37  ;;  %v9943_v5 = vadd.f32 %v15843_v47, %v9170_v63 }
 0x274   :  { %17467 = vst [vmem:[#allocation91_spill] sm:$0xff] %v16063_v35  ;;  %v13933_v0 = vpop.eup %13932  ;;  %v9682_v25 = vpop.f32.mrf.mxu1  ;;  %v10865_v56 = vsel %vm8415_vm0, %v10455_v29, 0.0  ;;  %v10583_v10 = vmul.f32 %v15892_v6, %v13931_v26  ;;  %13952 = vtanh.f32 %v10073_v18 }
 0x275   :  { %v13935_v32 = vpop.eup %13934  ;;  %v11246_v55 = vsel %vm8415_vm0, %v10582_v11, 0.0  ;;  %v10460_v42 = vmul.f32 %v15892_v6, %v13933_v0  ;;  %v9173_v29 = vpop.f32.mrf.mxu0 }
 0x276   :  { %11253 = vadd.xlane.f32.xlu0 %v11252_v54  ;;  %v13937_v54 = vpop.eup %13936  ;;  %v13552_v53 = vpop.f32.mrf.mxu1  ;;  %v11249_v26 = vsel %vm8415_vm0, %v10583_v10, 0.0  ;;  %v10461_v33 = vmul.f32 %v15892_v6, %v13935_v32 }
 0x277   :  { %11256 = vadd.xlane.f32.xlu1 %v11255_v14  ;;  %v10074_v22 = vadd.f32 %v16081_v21, %v13552_v53  ;;  %v13939_v14 = vpop.eup %13938  ;;  %v10880_v44 = vsel %vm8415_vm0, %v10460_v42, 0.0  ;;  %v13427_v46 = vpop.f32.mrf.mxu0 }
 0x278   :  { %v13941_v0 = vpop.eup %13940  ;;  %v10883_v10 = vsel %vm8415_vm0, %v10461_v33, 0.0  ;;  %v10589_v32 = vmul.f32 %v15892_v6, %v13939_v14  ;;  %v9685_v18 = vpop.f32.mrf.mxu1 }
 0x279   :  { %13954 = vtanh.f32 %v10074_v22  ;;  %v13943_v63 = vpop.eup %13942  ;;  %v10072_v22 = vadd.f32 %v16081_v21, %v9685_v18 }
 0x27a   :  { %10863 = vadd.xlane.f32.xlu0 %v10862_v36  ;;  %v10588_v36 = vmul.f32 %v15892_v6, %v13937_v54  ;;  %13956 = vtanh.f32 %v9943_v5  ;;  %v10458_v54 = vmul.f32 %v15892_v6, %v13941_v0  ;;  %v13945_v53 = vpop.eup %13944  ;;  %v11267_v33 = vsel %vm8415_vm0, %v10589_v32, 0.0 }
 0x27b   :  { %v16074_v17 = vpop.xlane.xlu0 %10779  ;;  %10866 = vadd.xlane.f32.xlu1 %v10865_v56  ;;  %v9944_v56 = vadd.f32 %v16081_v21, %v9173_v29  ;;  %v10459_v14 = vmul.f32 %v15892_v6, %v13943_v63 }
 0x27c   :  { %17468 = vst [vmem:[#allocation92_spill] sm:$0xff] %v16074_v17  ;;  %v16076_v9 = vpop.xlane.xlu1 %10782  ;;  %v11264_v42 = vsel %vm8415_vm0, %v10588_v36, 0.0  ;;  %v9949_v36 = vadd.f32 %v15843_v47, %v13427_v46  ;;  %v10874_v0 = vsel %vm8415_vm0, %v10458_v54, 0.0 }
 0x27d   :  { %17469 = vst [vmem:[#allocation93_spill] sm:$0xff] %v16076_v9  ;;  %13958 = vtanh.f32 %v9944_v56  ;;  %v10877_v63 = vsel %vm8415_vm0, %v10459_v14, 0.0 }
 0x27e   :  { %11247 = vadd.xlane.f32.xlu0 %v11246_v55  ;;  %v10071_v55 = vadd.f32 %v15843_v47, %v9682_v25  ;;  %v13947_v5 = vpop.eup %13946  ;;  %v16131_v47 = vld [vmem:[%s17374_s0] sm:$0xff] }
 0x27f   :  { %v16092_v61 = vpop.xlane.xlu0 %11163  ;;  %11250 = vadd.xlane.f32.xlu1 %v11249_v26  ;;  %v9186_v26 = vpop.f32.mrf.mxu0 }
 0x280   :  { %17470 = vst [vmem:[#allocation94_spill] sm:$0xff] %v16092_v61  ;;  %v16094_v7 = vpop.xlane.xlu1 %11166  ;;  %13960 = vtanh.f32 %v10071_v55  ;;  %v13949_v56 = vpop.eup %13948 }
 0x281   :  { %17471 = vst [vmem:[#allocation95_spill] sm:$0xff] %v16094_v7  ;;  %13962 = vtanh.f32 %v10072_v22  ;;  %v10464_v54 = vmul.f32 %v15892_v6, %v13949_v56 }
 0x282   :  { %10881 = vadd.xlane.f32.xlu0 %v10880_v44  ;;  %v13555_v44 = vpop.f32.mrf.mxu1  ;;  %13964 = vtanh.f32 %v9949_v36 }
 0x283   :  { %v16105_v11 = vpop.xlane.xlu0 %10797  ;;  %10884 = vadd.xlane.f32.xlu1 %v10883_v10  ;;  %v10586_v10 = vmul.f32 %v15892_v6, %v13945_v53  ;;  %v10077_v46 = vadd.f32 %v16131_v47, %v13555_v44  ;;  %v10892_v56 = vsel %vm8415_vm0, %v10464_v54, 0.0 }
 0x284   :  { %17472 = vst [vmem:[#allocation96_spill] sm:$0xff] %v16105_v11  ;;  %v16107_v37 = vpop.xlane.xlu1 %10800  ;;  %v9698_v18 = vpop.f32.mrf.mxu1 }
 0x285   :  { %17473 = vst [vmem:[#allocation97_spill] sm:$0xff] %v16107_v37  ;;  %v11258_v55 = vsel %vm8415_vm0, %v10586_v10, 0.0  ;;  %v9947_v10 = vadd.f32 %v16131_v47, %v9186_v26 }
 0x286   :  { %11265 = vadd.xlane.f32.xlu0 %v11264_v42  ;;  %v13428_v42 = vpop.f32.mrf.mxu0  ;;  %v13556_v14 = vpop.f32.mrf.mxu1 }
 0x287   :  { %v16118_v29 = vpop.xlane.xlu0 %11181  ;;  %11268 = vadd.xlane.f32.xlu1 %v11267_v33  ;;  %v9950_v32 = vadd.f32 %v16081_v21, %v13428_v42  ;;  %v10587_v33 = vmul.f32 %v15892_v6, %v13947_v5 }
 0x288   :  { %17474 = vst [vmem:[#allocation98_spill] sm:$0xff] %v16118_v29  ;;  %v16120_v25 = vpop.xlane.xlu1 %11184  ;;  %v13951_v29 = vpop.eup %13950 }
 0x289   :  { %17475 = vst [vmem:[#allocation99_spill] sm:$0xff] %v16120_v25  ;;  %v13953_v22 = vpop.eup %13952  ;;  %13966 = vtanh.f32 %v9950_v32  ;;  %v9189_v36 = vpop.f32.mrf.mxu0  ;;  %v11261_v42 = vsel %vm8415_vm0, %v10587_v33, 0.0 }
 0x28a   :  { %10875 = vadd.xlane.f32.xlu0 %v10874_v0  ;;  %v10078_v0 = vadd.f32 %v16081_v21, %v13556_v14  ;;  %v13955_v44 = vpop.eup %13954  ;;  %13968 = vtanh.f32 %v10077_v46  ;;  %v9948_v32 = vadd.f32 %v16081_v21, %v9189_v36  ;;  %v9701_v3 = vpop.f32.mrf.mxu1  ;;  %v10075_v46 = vadd.f32 %v16131_v47, %v9698_v18 }
 0x28b   :  { %10878 = vadd.xlane.f32.xlu1 %v10877_v63  ;;  %v10465_v63 = vmul.f32 %v15892_v6, %v13951_v29  ;;  %v13431_v25 = vpop.f32.mrf.mxu0  ;;  %v13957_v57 = vpop.eup %13956  ;;  %v10593_v33 = vmul.f32 %v15892_v6, %v13955_v44  ;;  %v10076_v44 = vadd.f32 %v16081_v21, %v9701_v3 }
 0x28c   :  { %13970 = vtanh.f32 %v10078_v0  ;;  %v10462_v36 = vmul.f32 %v15892_v6, %v13957_v57  ;;  %v9953_v18 = vadd.f32 %v16131_v47, %v13431_v25 }
 0x28d   :  { %v10895_v14 = vsel %vm8415_vm0, %v10465_v63, 0.0  ;;  %13972 = vtanh.f32 %v9947_v10  ;;  %v13559_v63 = vpop.f32.mrf.mxu1 }
 0x28e   :  { %11259 = vadd.xlane.f32.xlu0 %v11258_v55  ;;  %v10592_v55 = vmul.f32 %v15892_v6, %v13953_v22  ;;  %v9202_v22 = vpop.f32.mrf.mxu0  ;;  %13974 = vtanh.f32 %v9948_v32 }
 0x28f   :  { %v16136_v53 = vpop.xlane.xlu0 %10791  ;;  %11262 = vadd.xlane.f32.xlu1 %v11261_v42  ;;  %v13959_v42 = vpop.eup %13958  ;;  %13976 = vtanh.f32 %v10075_v46 }
 0x290   :  { %17476 = vst [vmem:[#allocation100_spill] sm:$0xff] %v16136_v53  ;;  %v16138_v5 = vpop.xlane.xlu1 %10794  ;;  %v11276_v54 = vsel %vm8415_vm0, %v10592_v55, 0.0  ;;  %v13961_v0 = vpop.eup %13960  ;;  %v10886_v55 = vsel %vm8415_vm0, %v10462_v36, 0.0  ;;  %13978 = vtanh.f32 %v10076_v44  ;;  %v10081_v36 = vadd.f32 %v16131_v47, %v13559_v63 }
 0x291   :  { %17477 = vst [vmem:[#allocation101_spill] sm:$0xff] %v16138_v5  ;;  %v13963_v35 = vpop.eup %13962  ;;  %v13432_v10 = vpop.f32.mrf.mxu0  ;;  %v10590_v57 = vmul.f32 %v15892_v6, %v13961_v0  ;;  %13980 = vtanh.f32 %v9953_v18 }
 0x292   :  { %10893 = vadd.xlane.f32.xlu0 %v10892_v56  ;;  %v11279_v56 = vsel %vm8415_vm0, %v10593_v33, 0.0  ;;  %v9714_v32 = vpop.f32.mrf.mxu1  ;;  %v9954_v33 = vadd.f32 %v16081_v21, %v13432_v10  ;;  %v10591_v46 = vmul.f32 %v15892_v6, %v13963_v35  ;;  %v16177_v35 = vld [vmem:[%s17377_s3] ss:$0 sm:$0xff] }
 0x293   :  { %10896 = vadd.xlane.f32.xlu1 %v10895_v14  ;;  %v10463_v14 = vmul.f32 %v15892_v6, %v13959_v42  ;;  %v9205_v0 = vpop.f32.mrf.mxu0 }
 0x294   :  { %13982 = vtanh.f32 %v9954_v33 }
 0x295   :  { %v10889_v42 = vsel %vm8415_vm0, %v10463_v14, 0.0  ;;  %v11273_v14 = vsel %vm8415_vm0, %v10591_v46, 0.0  ;;  %v13435_v18 = vpop.f32.mrf.mxu0  ;;  %13984 = vtanh.f32 %v10081_v36 }
 0x296   :  { %11277 = vadd.xlane.f32.xlu0 %v11276_v54  ;;  %v13965_v54 = vpop.eup %13964 }
 0x297   :  { %11280 = vadd.xlane.f32.xlu1 %v11279_v56  ;;  %v13967_v25 = vpop.eup %13966  ;;  %v11270_v56 = vsel %vm8415_vm0, %v10590_v57, 0.0 }
 0x298   :  { %v10469_v63 = vmul.f32 %v16177_v35, %v13967_v25 }
 0x299   :  { %v16149_v29 = vpop.xlane.xlu0 %11175 }
 0x29a   :  { %17478 = vst [vmem:[#allocation102_spill] sm:$0xff] %v16149_v29  ;;  %v16151_v26 = vpop.xlane.xlu1 %11178  ;;  %10887 = vadd.xlane.f32.xlu0 %v10886_v55  ;;  %v13969_v55 = vpop.eup %13968  ;;  %v10907_v25 = vsel %vm8415_vm0, %v10469_v63, 0.0 }
 0x29b   :  { %17479 = vst [vmem:[#allocation103_spill] sm:$0xff] %v16151_v26  ;;  %10890 = vadd.xlane.f32.xlu1 %v10889_v42  ;;  %v10468_v26 = vmul.f32 %v15892_v6, %v13965_v54  ;;  %v13560_v29 = vpop.f32.mrf.mxu1  ;;  %v13971_v57 = vpop.eup %13970  ;;  %v9951_v54 = vadd.f32 %v16131_v47, %v9202_v22  ;;  %v10596_v33 = vmul.f32 %v16177_v35, %v13969_v55 }
 0x29c   :  { %v10082_v44 = vadd.f32 %v16081_v21, %v13560_v29  ;;  %v13973_v42 = vpop.eup %13972  ;;  %v10079_v22 = vadd.f32 %v16131_v47, %v9714_v32 }
 0x29d   :  { %v10904_v29 = vsel %vm8415_vm0, %v10468_v26, 0.0  ;;  %v9717_v46 = vpop.f32.mrf.mxu1  ;;  %v13975_v7 = vpop.eup %13974  ;;  %v11288_v26 = vsel %vm8415_vm0, %v10596_v33, 0.0  ;;  %v10466_v36 = vmul.f32 %v16177_v35, %v13973_v42  ;;  %v9957_v33 = vadd.f32 %v16131_v47, %v13435_v18 }
 0x29e   :  { %11271 = vadd.xlane.f32.xlu0 %v11270_v56  ;;  %v9952_v56 = vadd.f32 %v16081_v21, %v9205_v0  ;;  %13986 = vtanh.f32 %v10082_v44  ;;  %v10080_v44 = vadd.f32 %v16081_v21, %v9717_v46 }
 0x29f   :  { %11274 = vadd.xlane.f32.xlu1 %v11273_v14  ;;  %v9218_v14 = vpop.f32.mrf.mxu0  ;;  %13988 = vtanh.f32 %v9951_v54  ;;  %v10467_v54 = vmul.f32 %v16177_v35, %v13975_v7  ;;  %v10898_v42 = vsel %vm8415_vm0, %v10466_v36, 0.0 }
 0x2a0   :  { %13990 = vtanh.f32 %v9952_v56 }
 0x2a1   :  { %v16162_v2 = vpop.xlane.xlu0 %10809  ;;  %v16164_v3 = vpop.xlane.xlu1 %10812  ;;  %13992 = vtanh.f32 %v10079_v22 }
 0x2a2   :  { %17480 = vst [vmem:[#allocation104_spill] sm:$0xff] %v16162_v2  ;;  %17481 = vst [vmem:[#allocation105_spill] sm:$0xff] %v16164_v3  ;;  %10905 = vadd.xlane.f32.xlu0 %v10904_v29  ;;  %v13977_v29 = vpop.eup %13976  ;;  %13994 = vtanh.f32 %v10080_v44 }
 0x2a3   :  { %10908 = vadd.xlane.f32.xlu1 %v10907_v25  ;;  %v13979_v25 = vpop.eup %13978  ;;  %13996 = vtanh.f32 %v9957_v33  ;;  %v9955_v33 = vadd.f32 %v16131_v47, %v9218_v14 }
 0x2a4   :  { %v13981_v61 = vpop.eup %13980  ;;  %v10595_v7 = vmul.f32 %v16177_v35, %v13979_v25 }
 0x2a5   :  { %v16180_v10 = vpop.xlane.xlu0 %11193  ;;  %v16182_v6 = vpop.xlane.xlu1 %11196  ;;  %v10472_v44 = vmul.f32 %v16177_v35, %v13981_v61 }
 0x2a6   :  { %17482 = vst [vmem:[#allocation106_spill] sm:$0xff] %v16180_v10  ;;  %17483 = vst [vmem:[#allocation107_spill] sm:$0xff] %v16182_v6  ;;  %v10597_v10 = vmul.f32 %v16177_v35, %v13971_v57  ;;  %v13563_v6 = vpop.f32.mrf.mxu1  ;;  %11289 = vadd.xlane.f32.xlu0 %v11288_v26  ;;  %v13436_v57 = vpop.f32.mrf.mxu0  ;;  %v10594_v26 = vmul.f32 %v16177_v35, %v13977_v29  ;;  %v11285_v25 = vsel %vm8415_vm0, %v10595_v7, 0.0 }
 0x2a7   :  { %v9958_v46 = vadd.f32 %v16081_v21, %v13436_v57  ;;  %v10085_v36 = vadd.f32 %v16131_v47, %v13563_v6  ;;  %v10916_v6 = vsel %vm8415_vm0, %v10472_v44, 0.0 }
 0x2a8   :  { %v11291_v63 = vsel %vm8415_vm0, %v10597_v10, 0.0  ;;  %v9730_v32 = vpop.f32.mrf.mxu1  ;;  %v10901_v10 = vsel %vm8415_vm0, %v10467_v54, 0.0  ;;  %v9221_v56 = vpop.f32.mrf.mxu0  ;;  %v11282_v29 = vsel %vm8415_vm0, %v10594_v26, 0.0 }
 0x2a9   :  { %v16193_v55 = vpop.xlane.xlu0 %10803  ;;  %v16195_v0 = vpop.xlane.xlu1 %10806  ;;  %11292 = vadd.xlane.f32.xlu1 %v11291_v63  ;;  %13998 = vtanh.f32 %v9958_v46  ;;  %v9956_v7 = vadd.f32 %v16081_v21, %v9221_v56  ;;  %v10083_v44 = vadd.f32 %v16131_v47, %v9730_v32 }
 0x2aa   :  { %17484 = vst [vmem:[#allocation108_spill] sm:$0xff] %v16193_v55  ;;  %17485 = vst [vmem:[#allocation109_spill] sm:$0xff] %v16195_v0  ;;  %10899 = vadd.xlane.f32.xlu0 %v10898_v42  ;;  %v13983_v63 = vpop.eup %13982  ;;  %v13564_v22 = vpop.f32.mrf.mxu1  ;;  %14000 = vtanh.f32 %v10085_v36 }
 0x2ab   :  { %v13439_v57 = vpop.f32.mrf.mxu0  ;;  %v13985_v42 = vpop.eup %13984  ;;  %v10086_v54 = vadd.f32 %v16081_v21, %v13564_v22 }
 0x2ac   :  { %v9733_v2 = vpop.f32.mrf.mxu1  ;;  %v10600_v61 = vmul.f32 %v16177_v35, %v13985_v42 }
 0x2ad   :  { %10902 = vadd.xlane.f32.xlu1 %v10901_v10  ;;  %v10473_v10 = vmul.f32 %v16177_v35, %v13983_v63  ;;  %v9234_v26 = vpop.f32.mrf.mxu0  ;;  %14002 = vtanh.f32 %v10086_v54  ;;  %v10084_v56 = vadd.f32 %v16081_v21, %v9733_v2 }
 0x2ae   :  { %v16206_v3 = vpop.xlane.xlu0 %11187  ;;  %11283 = vadd.xlane.f32.xlu0 %v11282_v29  ;;  %v13567_v22 = vpop.f32.mrf.mxu1  ;;  %14004 = vtanh.f32 %v9955_v33  ;;  %v11300_v42 = vsel %vm8415_vm0, %v10600_v61, 0.0  ;;  %v9961_v61 = vadd.f32 %v16131_v47, %v13439_v57 }
 0x2af   :  { %17486 = vst [vmem:[#allocation110_spill] sm:$0xff] %v16206_v3  ;;  %v13987_v3 = vpop.eup %13986  ;;  %v10919_v63 = vsel %vm8415_vm0, %v10473_v10, 0.0  ;;  %14006 = vtanh.f32 %v9956_v7  ;;  %v10089_v57 = vadd.f32 %v16131_v47, %v13567_v22 }
 0x2b0   :  { %v16208_v18 = vpop.xlane.xlu1 %11190  ;;  %v13989_v46 = vpop.eup %13988  ;;  %v10601_v14 = vmul.f32 %v16177_v35, %v13987_v3  ;;  %14008 = vtanh.f32 %v10083_v44 }
 0x2b1   :  { %17487 = vst [vmem:[#allocation111_spill] sm:$0xff] %v16208_v18  ;;  %11286 = vadd.xlane.f32.xlu1 %v11285_v25  ;;  %v13991_v36 = vpop.eup %13990  ;;  %v13440_v25 = vpop.f32.mrf.mxu0  ;;  %14010 = vtanh.f32 %v10084_v56 }
 0x2b2   :  { %10917 = vadd.xlane.f32.xlu0 %v10916_v6  ;;  %v10470_v6 = vmul.f32 %v16177_v35, %v13989_v46  ;;  %v11303_v54 = vsel %vm8415_vm0, %v10601_v14, 0.0  ;;  %v10471_v3 = vmul.f32 %v16177_v35, %v13991_v36  ;;  %v9962_v14 = vadd.f32 %v16081_v21, %v13440_v25 }
 0x2b3   :  { %14012 = vtanh.f32 %v9961_v61 }
 0x2b4   :  { %v10910_v46 = vsel %vm8415_vm0, %v10470_v6, 0.0  ;;  %v10913_v36 = vsel %vm8415_vm0, %v10471_v3, 0.0  ;;  %14014 = vtanh.f32 %v9962_v14 }
 0x2b5   :  { %10920 = vadd.xlane.f32.xlu1 %v10919_v63  ;;  %v9237_v63 = vpop.f32.mrf.mxu0  ;;  %14016 = vtanh.f32 %v10089_v57 }
 0x2b6   :  { %11301 = vadd.xlane.f32.xlu0 %v11300_v42 }
 0x2b7   :  { %v16219_v18 = vpop.xlane.xlu0 %10821  ;;  %v16221_v29 = vpop.xlane.xlu1 %10824 }
 0x2b8   :  { %17488 = vst [vmem:[#allocation112_spill] sm:$0xff] %v16219_v18  ;;  %17489 = vst [vmem:[#allocation113_spill] sm:$0xff] %v16221_v29  ;;  %v13993_v18 = vpop.eup %13992  ;;  %v9746_v29 = vpop.f32.mrf.mxu1 }
 0x2b9   :  { %v13995_v33 = vpop.eup %13994  ;;  %11304 = vadd.xlane.f32.xlu1 %v11303_v54  ;;  %v10598_v7 = vmul.f32 %v16177_v35, %v13993_v18 }
 0x2ba   :  { %v13997_v42 = vpop.eup %13996  ;;  %10911 = vadd.xlane.f32.xlu0 %v10910_v46  ;;  %v13568_v2 = vpop.f32.mrf.mxu1  ;;  %v10599_v54 = vmul.f32 %v16177_v35, %v13995_v33 }
 0x2bb   :  { %v16232_v10 = vpop.xlane.xlu0 %11205  ;;  %v16234_v32 = vpop.xlane.xlu1 %11208  ;;  %v11294_v44 = vsel %vm8415_vm0, %v10598_v7, 0.0  ;;  %v10476_v18 = vmul.f32 %v16177_v35, %v13997_v42  ;;  %v10090_v3 = vadd.f32 %v16081_v21, %v13568_v2  ;;  %v17494_v7 = vlaneseq }
 0x2bc   :  { %17490 = vst [vmem:[#allocation114_spill] sm:$0xff] %v16232_v10  ;;  %17491 = vst [vmem:[#allocation115_spill] sm:$0xff] %v16234_v32  ;;  %v13443_v10 = vpop.f32.mrf.mxu0  ;;  %v13999_v32 = vpop.eup %13998  ;;  %v11297_v33 = vsel %vm8415_vm0, %v10599_v54, 0.0  ;;  %v9960_v54 = vadd.f32 %v16081_v21, %v9237_v63 }
 0x2bd   :  { %10914 = vadd.xlane.f32.xlu1 %v10913_v36  ;;  %v14001_v46 = vpop.eup %14000  ;;  %v9749_v56 = vpop.f32.mrf.mxu1  ;;  %v10477_v61 = vmul.f32 %v16177_v35, %v13999_v32  ;;  %v11659_v8 = vand.u32 127, %v17494_v7  ;;  %14018 = vtanh.f32 %v10090_v3 }
 0x2be   :  { %11295 = vadd.xlane.f32.xlu0 %v11294_v44  ;;  %v16252_v36 = vpop.f32.mrf.mxu0  ;;  %v14003_v22 = vpop.eup %14002  ;;  %v10928_v44 = vsel %vm8415_vm0, %v10476_v18, 0.0  ;;  %v10604_v14 = vmul.f32 %v16177_v35, %v14001_v46  ;;  %v10087_v18 = vadd.f32 %v16131_v47, %v9746_v29  ;;  %v10088_v29 = vadd.f32 %v16081_v21, %v9749_v56 }
 0x2bf   :  { %v13571_v42 = vpop.f32.mrf.mxu1  ;;  %v11664_v2 = vadd.s32 4294967288, %v11659_v8  ;;  %v10931_v0 = vsel %vm8415_vm0, %v10477_v61, 0.0  ;;  %v16269_v55 = vsub.s32 %v11659_v8, %v14251_v4 }
 0x2c0   :  { %v11312_v63 = vsel %vm8415_vm0, %v10604_v14, 0.0 }
 0x2c1   :  { %11298 = vadd.xlane.f32.xlu1 %v11297_v33  ;;  %v10605_v33 = vmul.f32 %v16177_v35, %v14003_v22  ;;  %v16266_v46 = vpop.f32.mrf.mxu1  ;;  %v16274_v22 = vsub.s32 %v11664_v2, %v14251_v4  ;;  %v9965_v2 = vadd.f32 %v16131_v47, %v13443_v10 }
 0x2c2   :  { %v16245_v6 = vpop.xlane.xlu0 %10815  ;;  %10929 = vadd.xlane.f32.xlu0 %v10928_v44  ;;  %v10091_v5 = vadd.f32 %v16131_v47, %v16266_v46 }
 0x2c3   :  { %17492 = vst [vmem:[#allocation116_spill] sm:$0xff] %v16245_v6  ;;  %v9959_v6 = vadd.f32 %v16131_v47, %v9234_v26  ;;  %v13444_v26 = vpop.f32.mrf.mxu0  ;;  %v13572_v4 = vpop.f32.mrf.mxu1 }
 0x2c4   :  { %v16247_v25 = vpop.xlane.xlu1 %10818 }
 0x2c5   :  { %17493 = vst [vmem:[#allocation117_spill] sm:$0xff] %v16247_v25  ;;  %v14005_v25 = vpop.eup %14004  ;;  %10932 = vadd.xlane.f32.xlu1 %v10931_v0  ;;  %14020 = vtanh.f32 %v9959_v6  ;;  %v11315_v0 = vsel %vm8415_vm0, %v10605_v33, 0.0  ;;  %v9253_v8 = vpop.f32.mrf.mxu0 }
 0x2c6   :  { %v14007_v57 = vpop.eup %14006  ;;  %v10474_v3 = vmul.f32 %v16177_v35, %v14005_v25  ;;  %14022 = vtanh.f32 %v9960_v54  ;;  %11313 = vadd.xlane.f32.xlu0 %v11312_v63  ;;  %v9966_v63 = vadd.f32 %v16081_v21, %v13444_v26  ;;  %v10093_v26 = vadd.f32 %v16131_v47, %v13571_v42 }
 0x2c7   :  { %v16259_v32 = vpop.xlane.xlu0 %11199  ;;  %v14009_v61 = vpop.eup %14008  ;;  %v10475_v48 = vmul.f32 %v16177_v35, %v14007_v57  ;;  %14024 = vtanh.f32 %v10087_v18 }
 0x2c8   :  { %v16263_v7 = vpop.xlane.xlu1 %11202  ;;  %v14011_v14 = vpop.eup %14010  ;;  %v10922_v54 = vsel %vm8415_vm0, %v10474_v3, 0.0  ;;  %v10602_v56 = vmul.f32 %v16177_v35, %v14009_v61  ;;  %14026 = vtanh.f32 %v10088_v29 }
 0x2c9   :  { %11316 = vadd.xlane.f32.xlu1 %v11315_v0  ;;  %v16284_v33 = vpop.f32.mrf.mxu0  ;;  %v14013_v57 = vpop.eup %14012  ;;  %v10603_v0 = vmul.f32 %v16177_v35, %v14011_v14  ;;  %14028 = vtanh.f32 %v9965_v2 }
 0x2ca   :  { %10923 = vadd.xlane.f32.xlu0 %v10922_v54  ;;  %v14015_v3 = vpop.eup %14014  ;;  %v9765_v61 = vpop.f32.mrf.mxu1  ;;  %v11306_v54 = vsel %vm8415_vm0, %v10602_v56, 0.0  ;;  %14030 = vtanh.f32 %v9966_v63  ;;  %v9963_v56 = vadd.f32 %v16131_v47, %v16252_v36 }
 0x2cb   :  { %v10834_v44 = vpop.xlane.xlu0 %10833  ;;  %v16295_v29 = vpop.f32.mrf.mxu0  ;;  %v10481_v2 = vmul.f32 %v16177_v35, %v14015_v3  ;;  %14032 = vtanh.f32 %v10093_v26  ;;  %v9964_v3 = vadd.f32 %v16081_v21, %v9253_v8 }
 0x2cc   :  { %v11962_v6 = vrot.slane %v10834_v44, %v16269_v55  ;;  %v10837_v37 = vpop.xlane.xlu1 %10836 }
 0x2cd   :  { %v11966_v25 = vrot.slane %v10837_v37, %v16274_v22  ;;  %v10925_v37 = vsel %vm8415_vm0, %v10475_v48, 0.0  ;;  %v14017_v48 = vpop.eup %14016 }
 0x2ce   :  { %10926 = vadd.xlane.f32.xlu1 %v10925_v37  ;;  %11307 = vadd.xlane.f32.xlu0 %v11306_v54  ;;  %v14019_v37 = vpop.eup %14018  ;;  %v13448_v54 = vpop.f32.mrf.mxu0 }
 0x2cf   :  { %v11967_v44 = vsel %vm11669_vm1, %v11966_v25, %v11962_v6  ;;  %v11218_v18 = vpop.xlane.xlu0 %11217  ;;  %v10480_v6 = vmul.f32 %v16177_v35, %v14013_v57  ;;  %v16298_v25 = vpop.f32.mrf.mxu1 }
 0x2d0   :  { %v12538_v10 = vrot.slane %v11218_v18, %v16269_v55  ;;  %v11221_v11 = vpop.xlane.xlu1 %11220  ;;  %v10094_v18 = vadd.f32 %v16081_v21, %v13572_v4  ;;  %v10608_v4 = vmul.f32 %v16177_v35, %v14017_v48 }
 0x2d1   :  { %v12542_v41 = vrot.slane %v11221_v11, %v16274_v22  ;;  %v11309_v11 = vsel %vm8415_vm0, %v10603_v0, 0.0  ;;  %v16310_v13 = vpop.f32.mrf.mxu1 }
 0x2d2   :  { %11310 = vadd.xlane.f32.xlu1 %v11309_v11  ;;  %v14021_v0 = vpop.eup %14020  ;;  %14034 = vtanh.f32 %v10094_v18  ;;  %v10943_v11 = vsel %vm8415_vm0, %v10481_v2, 0.0  ;;  %v11324_v18 = vsel %vm8415_vm0, %v10608_v4, 0.0 }
 0x2d3   :  { %v12543_v14 = vsel %vm11669_vm1, %v12542_v41, %v12538_v10  ;;  %v10828_v42 = vpop.xlane.xlu0 %10827  ;;  %v10940_v41 = vsel %vm8415_vm0, %v10480_v6, 0.0  ;;  %v14023_v36 = vpop.eup %14022  ;;  %v10609_v6 = vmul.f32 %v16177_v35, %v14019_v37  ;;  %14036 = vtanh.f32 %v9963_v56 }
 0x2d4   :  { %v11953_v57 = vrot.slane %v10828_v42, %v16269_v55  ;;  %v10831_v63 = vpop.xlane.xlu1 %10830  ;;  %10941 = vadd.xlane.f32.xlu0 %v10940_v41  ;;  %v14025_v41 = vpop.eup %14024  ;;  %14038 = vtanh.f32 %v9964_v3  ;;  %v10479_v56 = vmul.f32 %v16177_v35, %v14023_v36  ;;  %v9969_v36 = vadd.f32 %v16131_v47, %v16284_v33 }
 0x2d5   :  { %v11957_v10 = vrot.slane %v10831_v63, %v16274_v22  ;;  %v9269_v37 = vpop.f32.mrf.mxu0  ;;  %14040 = vtanh.f32 %v10091_v5 }
 0x2d6   :  { %10944 = vadd.xlane.f32.xlu1 %v10943_v11  ;;  %v11327_v11 = vsel %vm8415_vm0, %v10609_v6, 0.0 }
 0x2d7   :  { %v11958_v26 = vsel %vm11669_vm1, %v11957_v10, %v11953_v57  ;;  %v11212_v42 = vpop.xlane.xlu0 %11211  ;;  %v10478_v57 = vmul.f32 %v16177_v35, %v14021_v0  ;;  %v10092_v10 = vadd.f32 %v16081_v21, %v9765_v61 }
 0x2d8   :  { %v16316_v48 = vsel %vm12814_vm2, %v11967_v44, %v11958_v26  ;;  %v12529_v63 = vrot.slane %v11212_v42, %v16269_v55  ;;  %v11215_v8 = vpop.xlane.xlu1 %11214  ;;  %11325 = vadd.xlane.f32.xlu0 %v11324_v18  ;;  %v16325_v44 = vpop.f32.mrf.mxu1 }
 0x2d9   :  { %v12533_v2 = vrot.slane %v11215_v8, %v16274_v22  ;;  %v14027_v42 = vpop.eup %14026  ;;  %v10606_v8 = vmul.f32 %v16177_v35, %v14025_v41  ;;  %v10934_v61 = vsel %vm8415_vm0, %v10478_v57, 0.0  ;;  %14042 = vtanh.f32 %v10092_v10 }
 0x2da   :  { %11328 = vadd.xlane.f32.xlu1 %v11327_v11  ;;  %v14029_v18 = vpop.eup %14028  ;;  %v10607_v33 = vmul.f32 %v16177_v35, %v14027_v42  ;;  %14044 = vtanh.f32 %v9969_v36 }
 0x2db   :  { %v12534_v26 = vsel %vm11669_vm1, %v12533_v2, %v12529_v63  ;;  %v10846_v46 = vpop.xlane.xlu0 %10845  ;;  %v13451_v63 = vpop.f32.mrf.mxu0  ;;  %v10937_v2 = vsel %vm8415_vm0, %v10479_v56, 0.0  ;;  %v11318_v41 = vsel %vm8415_vm0, %v10606_v8, 0.0  ;;  %v10484_v10 = vmul.f32 %v16177_v35, %v14029_v18 }
 0x2dc   :  { %v16331_v4 = vsel %vm12814_vm2, %v12543_v14, %v12534_v26  ;;  %v11980_v0 = vrot.slane %v10846_v46, %v16269_v55  ;;  %v10849_v3 = vpop.xlane.xlu1 %10848  ;;  %10935 = vadd.xlane.f32.xlu0 %v10934_v61  ;;  %v16340_v14 = vpop.f32.mrf.mxu1  ;;  %v9970_v26 = vadd.f32 %v16081_v21, %v13448_v54  ;;  %v9967_v46 = vadd.f32 %v16131_v47, %v16295_v29 }
 0x2dd   :  { %v11984_v6 = vrot.slane %v10849_v3, %v16274_v22  ;;  %v14031_v11 = vpop.eup %14030  ;;  %v9282_v56 = vpop.f32.mrf.mxu0  ;;  %v9968_v8 = vadd.f32 %v16081_v21, %v9269_v37  ;;  %v11321_v36 = vsel %vm8415_vm0, %v10607_v33, 0.0  ;;  %v9973_v18 = vadd.f32 %v16131_v47, %v13451_v63 }
 0x2de   :  { %10938 = vadd.xlane.f32.xlu1 %v10937_v2  ;;  %v14033_v54 = vpop.eup %14032  ;;  %v10485_v42 = vmul.f32 %v16177_v35, %v14031_v11  ;;  %14046 = vtanh.f32 %v9970_v26 }
 0x2df   :  { %v16344_v5 = vsel %vm11669_vm1, %v11984_v6, %v11980_v0  ;;  %v11230_v57 = vpop.xlane.xlu0 %11229  ;;  %v13579_v6 = vpop.f32.mrf.mxu1  ;;  %14048 = vtanh.f32 %v9967_v46  ;;  %v10612_v11 = vmul.f32 %v16177_v35, %v14033_v54 }
 0x2e0   :  { %v12556_v3 = vrot.slane %v11230_v57, %v16269_v55  ;;  %v11233_v61 = vpop.xlane.xlu1 %11232  ;;  %11319 = vadd.xlane.f32.xlu0 %v11318_v41  ;;  %v14035_v2 = vpop.eup %14034  ;;  %v10955_v37 = vsel %vm8415_vm0, %v10485_v42, 0.0  ;;  %14050 = vtanh.f32 %v9968_v8  ;;  %v10101_v54 = vadd.f32 %v16131_v47, %v13579_v6 }
 0x2e1   :  { %v12560_v0 = vrot.slane %v11233_v61, %v16274_v22  ;;  %v14037_v57 = vpop.eup %14036  ;;  %v13452_v41 = vpop.f32.mrf.mxu0  ;;  %v10952_v61 = vsel %vm8415_vm0, %v10484_v10, 0.0  ;;  %v10613_v63 = vmul.f32 %v16177_v35, %v14035_v2  ;;  %14052 = vtanh.f32 %v9973_v18 }
 0x2e2   :  { %11322 = vadd.xlane.f32.xlu1 %v11321_v36  ;;  %v9794_v26 = vpop.f32.mrf.mxu1  ;;  %v14039_v9 = vpop.eup %14038  ;;  %v10482_v10 = vmul.f32 %v16177_v35, %v14037_v57 }
 0x2e3   :  { %v16357_v29 = vsel %vm11669_vm1, %v12560_v0, %v12556_v3  ;;  %v10840_v53 = vpop.xlane.xlu0 %10839  ;;  %v9974_v3 = vadd.f32 %v16081_v21, %v13452_v41  ;;  %v9285_v0 = vpop.f32.mrf.mxu0  ;;  %v10483_v57 = vmul.f32 %v16177_v35, %v14039_v9  ;;  %v11339_v18 = vsel %vm8415_vm0, %v10613_v63, 0.0 }
 0x2e4   :  { %10953 = vadd.xlane.f32.xlu0 %v10952_v61  ;;  %v11971_v33 = vrot.slane %v10840_v53, %v16269_v55  ;;  %v10843_v36 = vpop.xlane.xlu1 %10842  ;;  %v11336_v53 = vsel %vm8415_vm0, %v10612_v11, 0.0  ;;  %v14041_v8 = vpop.eup %14040 }
 0x2e5   :  { %v11975_v46 = vrot.slane %v10843_v36, %v16274_v22  ;;  %v13580_v36 = vpop.f32.mrf.mxu1  ;;  %14054 = vtanh.f32 %v9974_v3  ;;  %v9972_v3 = vadd.f32 %v16081_v21, %v9285_v0 }
 0x2e6   :  { %10956 = vadd.xlane.f32.xlu1 %v10955_v37  ;;  %v10102_v6 = vadd.f32 %v16081_v21, %v13580_v36  ;;  %14056 = vtanh.f32 %v10101_v54 }
 0x2e7   :  { %v11976_v42 = vsel %vm11669_vm1, %v11975_v46, %v11971_v33  ;;  %v11224_v61 = vpop.xlane.xlu0 %11223  ;;  %v14043_v33 = vpop.eup %14042  ;;  %v9971_v46 = vadd.f32 %v16131_v47, %v9282_v56 }
 0x2e8   :  { %v16373_v41 = vsel %vm12816_vm3, %v11976_v42, %v16316_v48  ;;  %11337 = vadd.xlane.f32.xlu0 %v11336_v53  ;;  %v12547_v2 = vrot.slane %v11224_v61, %v16269_v55  ;;  %v11227_v37 = vpop.xlane.xlu1 %11226  ;;  %v10946_v53 = vsel %vm8415_vm0, %v10482_v10, 0.0  ;;  %v10610_v61 = vmul.f32 %v16177_v35, %v14041_v8  ;;  %v14045_v9 = vpop.eup %14044 }
 0x2e9   :  { %v12551_v11 = vrot.slane %v11227_v37, %v16274_v22  ;;  %v13455_v48 = vpop.f32.mrf.mxu0  ;;  %14058 = vtanh.f32 %v10102_v6  ;;  %v9797_v56 = vpop.f32.mrf.mxu1  ;;  %v10949_v37 = vsel %vm8415_vm0, %v10483_v57, 0.0  ;;  %v10611_v54 = vmul.f32 %v16177_v35, %v14043_v33 }
 0x2ea   :  { %11340 = vadd.xlane.f32.xlu1 %v11339_v18  ;;  %14060 = vtanh.f32 %v9971_v46  ;;  %v10099_v10 = vadd.f32 %v16131_v47, %v9794_v26  ;;  %v10488_v6 = vmul.f32 %v16177_v35, %v14045_v9  ;;  %v10100_v46 = vadd.f32 %v16081_v21, %v9797_v56 }
 0x2eb   :  { %v12552_v42 = vsel %vm11669_vm1, %v12551_v11, %v12547_v2  ;;  %v10858_v36 = vpop.xlane.xlu0 %10857  ;;  %v14047_v2 = vpop.eup %14046  ;;  %14062 = vtanh.f32 %v9972_v3  ;;  %v11333_v26 = vsel %vm8415_vm0, %v10611_v54, 0.0 }
 0x2ec   :  { %v16387_v63 = vsel %vm12816_vm3, %v12552_v42, %v16331_v4  ;;  %10947 = vadd.xlane.f32.xlu0 %v10946_v53  ;;  %v11998_v8 = vrot.slane %v10858_v36, %v16269_v55  ;;  %v9298_v0 = vpop.f32.mrf.mxu0  ;;  %v10861_v18 = vpop.xlane.xlu1 %10860  ;;  %v11330_v4 = vsel %vm8415_vm0, %v10610_v61, 0.0  ;;  %v10489_v53 = vmul.f32 %v16177_v35, %v14047_v2  ;;  %v16412_v2 = vld [vmem:[%s17374_s0 + $0x8] sm:$0xff] }
 0x2ed   :  { %v14049_v42 = vpop.eup %14048  ;;  %v12002_v57 = vrot.slane %v10861_v18, %v16274_v22  ;;  %14064 = vtanh.f32 %v10099_v10  ;;  %v9977_v18 = vadd.f32 %v16131_v47, %v13455_v48  ;;  %v10964_v17 = vsel %vm8415_vm0, %v10488_v6, 0.0 }
 0x2ee   :  { %10950 = vadd.xlane.f32.xlu1 %v10949_v37  ;;  %v14051_v36 = vpop.eup %14050  ;;  %v13456_v37 = vpop.f32.mrf.mxu0  ;;  %v10486_v21 = vmul.f32 %v16177_v35, %v14049_v42  ;;  %14066 = vtanh.f32 %v10100_v46 }
 0x2ef   :  { %v11242_v33 = vpop.xlane.xlu0 %11241  ;;  %v16402_v61 = vsel %vm11669_vm1, %v12002_v57, %v11998_v8  ;;  %v14053_v56 = vpop.eup %14052  ;;  %v9978_v10 = vadd.f32 %v16412_v2, %v13456_v37  ;;  %v10967_v8 = vsel %vm8415_vm0, %v10489_v53, 0.0  ;;  %v10487_v57 = vmul.f32 %v16177_v35, %v14051_v36 }
 0x2f0   :  { %11331 = vadd.xlane.f32.xlu0 %v11330_v4  ;;  %v12574_v9 = vrot.slane %v11242_v33, %v16269_v55  ;;  %v11245_v4 = vpop.xlane.xlu1 %11244  ;;  %v9301_v33 = vpop.f32.mrf.mxu0  ;;  %14068 = vtanh.f32 %v9977_v18  ;;  %v10958_v37 = vsel %vm8415_vm0, %v10486_v21, 0.0  ;;  %v10492_v53 = vmul.f32 %v16177_v35, %v14053_v56 }
 0x2f1   :  { %v12578_v54 = vrot.slane %v11245_v4, %v16274_v22  ;;  %14070 = vtanh.f32 %v9978_v10 }
 0x2f2   :  { %11334 = vadd.xlane.f32.xlu1 %v11333_v26  ;;  %v14055_v6 = vpop.eup %14054  ;;  %v9975_v26 = vadd.f32 %v16131_v47, %v9298_v0 }
 0x2f3   :  { %v10852_v48 = vpop.xlane.xlu0 %10851  ;;  %v16418_v42 = vsel %vm11669_vm1, %v12578_v54, %v12574_v9  ;;  %v14057_v20 = vpop.eup %14056  ;;  %v9976_v9 = vadd.f32 %v16412_v2, %v9301_v33  ;;  %v10961_v54 = vsel %vm8415_vm0, %v10487_v57, 0.0  ;;  %v10976_v33 = vsel %vm8415_vm0, %v10492_v53, 0.0 }
 0x2f4   :  { %v16394_v11 = vpop.f32.mrf.mxu1  ;;  %10965 = vadd.xlane.f32.xlu0 %v10964_v17  ;;  %v11989_v17 = vrot.slane %v10852_v48, %v16269_v55  ;;  %v10855_v4 = vpop.xlane.xlu1 %10854  ;;  %v10493_v48 = vmul.f32 %v16177_v35, %v14055_v6  ;;  %14072 = vtanh.f32 %v9975_v26  ;;  %v10620_v57 = vmul.f32 %v16177_v35, %v14057_v20 }
 0x2f5   :  { %v11993_v36 = vrot.slane %v10855_v4, %v16274_v22  ;;  %14074 = vtanh.f32 %v9976_v9 }
 0x2f6   :  { %v9810_v3 = vpop.f32.mrf.mxu1  ;;  %10968 = vadd.xlane.f32.xlu1 %v10967_v8  ;;  %v14059_v18 = vpop.eup %14058 }
 0x2f7   :  { %v11236_v8 = vpop.xlane.xlu0 %11235  ;;  %v11994_v0 = vsel %vm11669_vm1, %v11993_v36, %v11989_v17  ;;  %v14061_v56 = vpop.eup %14060  ;;  %v10103_v4 = vadd.f32 %v16131_v47, %v9810_v3  ;;  %v10979_v36 = vsel %vm8415_vm0, %v10493_v48, 0.0  ;;  %v10621_v26 = vmul.f32 %v16177_v35, %v14059_v18 }
 0x2f8   :  { %v16421_v46 = vpop.f32.mrf.mxu1  ;;  %10959 = vadd.xlane.f32.xlu0 %v10958_v37  ;;  %v12565_v21 = vrot.slane %v11236_v8, %v16269_v55  ;;  %v11239_v37 = vpop.xlane.xlu1 %11238  ;;  %v10490_v53 = vmul.f32 %v16177_v35, %v14061_v56  ;;  %v11360_v48 = vsel %vm8415_vm0, %v10620_v57, 0.0 }
 0x2f9   :  { %v12569_v12 = vrot.slane %v11239_v37, %v16274_v22  ;;  %v14063_v6 = vpop.eup %14062  ;;  %14076 = vtanh.f32 %v10103_v4 }
 0x2fa   :  { %10962 = vadd.xlane.f32.xlu1 %v10961_v54  ;;  %v9813_v16 = vpop.f32.mrf.mxu1  ;;  %v14065_v20 = vpop.eup %14064  ;;  %v10491_v18 = vmul.f32 %v16177_v35, %v14063_v6  ;;  %v10970_v57 = vsel %vm8415_vm0, %v10490_v53, 0.0  ;;  %v16460_v6 = vld [vmem:[%s17374_s0] sm:$0xff] }
 0x2fb   :  { %v10104_v17 = vadd.f32 %v16412_v2, %v9813_v16  ;;  %v10870_v8 = vpop.xlane.xlu0 %10869  ;;  %v16440_v3 = vsel %vm11669_vm1, %v12569_v12, %v12565_v21  ;;  %v11363_v21 = vsel %vm8415_vm0, %v10621_v26, 0.0  ;;  %v14067_v4 = vpop.eup %14066 }
 0x2fc   :  { %10977 = vadd.xlane.f32.xlu0 %v10976_v33  ;;  %v12016_v9 = vrot.slane %v10870_v8, %v16269_v55  ;;  %v10873_v33 = vpop.xlane.xlu1 %10872  ;;  %v10973_v53 = vsel %vm8415_vm0, %v10491_v18, 0.0 }
 0x2fd   :  { %v12020_v58 = vrot.slane %v10873_v33, %v16274_v22  ;;  %14078 = vtanh.f32 %v10104_v17  ;;  %v14069_v26 = vpop.eup %14068  ;;  %v10619_v33 = vmul.f32 %v16177_v35, %v14067_v4 }
 0x2fe   :  { %v13459_v10 = vpop.f32.mrf.mxu0  ;;  %10980 = vadd.xlane.f32.xlu1 %v10979_v36  ;;  %v10618_v36 = vmul.f32 %v16177_v35, %v14065_v20 }
 0x2ff   :  { %v9981_v37 = vadd.f32 %v16131_v47, %v13459_v10  ;;  %v16450_v56 = vpop.xlane.xlu0 %11253  ;;  %v12851_v47 = vsel %vm12818_vm4, %v16344_v5, %v16373_v41  ;;  %v12021_v5 = vsel %vm11669_vm1, %v12020_v58, %v12016_v9 }
 0x300   :  { %v9314_v54 = vpop.f32.mrf.mxu0  ;;  %11361 = vadd.xlane.f32.xlu0 %v11360_v48  ;;  %v16463_v8 = vpop.xlane.xlu1 %11256  ;;  %v12852_v41 = vsel %vm12820_vm5, %v11994_v0, %v12851_v47  ;;  %v11354_v9 = vsel %vm8415_vm0, %v10618_v36, 0.0  ;;  %v10496_v48 = vmul.f32 %v16177_v35, %v14069_v26 }
 0x301   :  { %14080 = vtanh.f32 %v9981_v37  ;;  %v9979_v17 = vadd.f32 %v16460_v6, %v9314_v54  ;;  %v12853_v54 = vsel %vm12822_vm6, %v16402_v61, %v12852_v41  ;;  %v11357_v61 = vsel %vm8415_vm0, %v10619_v33, 0.0 }
 0x302   :  { %v13460_v16 = vpop.f32.mrf.mxu0  ;;  %11364 = vadd.xlane.f32.xlu1 %v11363_v21  ;;  %v10106_v21 = vadd.f32 %v16412_v2, %v16421_v46  ;;  %v10988_v46 = vsel %vm8415_vm0, %v10496_v48, 0.0 }
 0x303   :  { %v9982_v12 = vadd.f32 %v16412_v2, %v13460_v16  ;;  %v10864_v37 = vpop.xlane.xlu0 %10863  ;;  %v14071_v16 = vpop.eup %14070 }
 0x304   :  { %v9317_v10 = vpop.f32.mrf.mxu0  ;;  %10971 = vadd.xlane.f32.xlu0 %v10970_v57  ;;  %v12007_v58 = vrot.slane %v10864_v37, %v16269_v55  ;;  %v10867_v0 = vpop.xlane.xlu1 %10866 }
 0x305   :  { %14082 = vtanh.f32 %v9982_v12  ;;  %v9980_v20 = vadd.f32 %v16412_v2, %v9317_v10  ;;  %v14073_v18 = vpop.eup %14072  ;;  %v12011_v12 = vrot.slane %v10867_v0, %v16274_v22  ;;  %v10497_v10 = vmul.f32 %v16177_v35, %v14071_v16 }
 0x306   :  { %10974 = vadd.xlane.f32.xlu1 %v10973_v53  ;;  %14084 = vtanh.f32 %v9979_v17  ;;  %v14075_v57 = vpop.eup %14074  ;;  %v10494_v53 = vmul.f32 %v16177_v35, %v14073_v18 }
 0x307   :  { %14086 = vtanh.f32 %v9980_v20  ;;  %v16479_v4 = vpop.xlane.xlu0 %11247  ;;  %v12012_v17 = vsel %vm11669_vm1, %v12011_v12, %v12007_v58  ;;  %v14077_v37 = vpop.eup %14076  ;;  %v10991_v0 = vsel %vm8415_vm0, %v10497_v10, 0.0 }
 0x308   :  { %11355 = vadd.xlane.f32.xlu0 %v11354_v9  ;;  %v16484_v26 = vpop.xlane.xlu1 %11250  ;;  %v12854_v20 = vsel %vm12824_vm7, %v12012_v17, %v12853_v54  ;;  %v10495_v9 = vmul.f32 %v16177_v35, %v14075_v57  ;;  %v10105_v54 = vadd.f32 %v16460_v6, %v16394_v11  ;;  %v10622_v10 = vmul.f32 %v16177_v35, %v14077_v37 }
 0x309   :  { %v16495_v48 = vsel %vm12826_vm8, %v12021_v5, %v12854_v20  ;;  %v12511_v5 = vrot.slane %v16259_v32, %v16269_v55  ;;  %v12515_v57 = vrot.slane %v16263_v7, %v16274_v22  ;;  %v16517_v7 = vld [vmem:[%s17377_s3] ss:$0 sm:$0xff] }
 0x30a   :  { %11358 = vadd.xlane.f32.xlu1 %v11357_v61  ;;  %v14079_v18 = vpop.eup %14078  ;;  %v10982_v61 = vsel %vm8415_vm0, %v10494_v53, 0.0  ;;  %v10985_v17 = vsel %vm8415_vm0, %v10495_v9, 0.0  ;;  %v10095_v53 = vadd.f32 %v16460_v6, %v16310_v13  ;;  %v11366_v32 = vsel %vm8415_vm0, %v10622_v10, 0.0 }
 0x30b   :  { %v13463_v47 = vpop.f32.mrf.mxu0  ;;  %v16491_v58 = vpop.xlane.xlu0 %10881 }
 0x30c   :  { %v9985_v36 = vadd.f32 %v16460_v6, %v13463_v47  ;;  %10989 = vadd.xlane.f32.xlu0 %v10988_v46  ;;  %v10623_v46 = vmul.f32 %v16177_v35, %v14079_v18  ;;  %v16521_v35 = vsel %vm11669_vm1, %v12515_v57, %v12511_v5 }
 0x30d   :  { %v9330_v41 = vpop.f32.mrf.mxu0  ;;  %17495 = vst [vmem:[#allocation118_spill] sm:$0xff] %v16521_v35 }
 0x30e   :  { %14088 = vtanh.f32 %v9985_v36  ;;  %v9983_v33 = vadd.f32 %v16460_v6, %v9330_v41  ;;  %10992 = vadd.xlane.f32.xlu1 %v10991_v0  ;;  %v14081_v36 = vpop.eup %14080  ;;  %v10096_v0 = vadd.f32 %v16412_v2, %v16340_v14  ;;  %v11369_v13 = vsel %vm8415_vm0, %v10623_v46, 0.0 }
 0x30f   :  { %14090 = vtanh.f32 %v10106_v21  ;;  %v13464_v16 = vpop.f32.mrf.mxu0  ;;  %v16500_v21 = vpop.xlane.xlu1 %10884 }
 0x310   :  { %v9986_v12 = vadd.f32 %v16412_v2, %v13464_v16  ;;  %14092 = vtanh.f32 %v9983_v33  ;;  %10983 = vadd.xlane.f32.xlu0 %v10982_v61  ;;  %v11266_v41 = vpop.xlane.xlu0 %11265  ;;  %v10500_v33 = vmul.f32 %v16517_v7, %v14081_v36 }
 0x311   :  { %v9333_v47 = vpop.f32.mrf.mxu0 }
 0x312   :  { %14094 = vtanh.f32 %v9986_v12  ;;  %v9984_v11 = vadd.f32 %v16412_v2, %v9333_v47  ;;  %v14083_v20 = vpop.eup %14082  ;;  %10986 = vadd.xlane.f32.xlu1 %v10985_v17  ;;  %v11000_v47 = vsel %vm8415_vm0, %v10500_v33, 0.0 }
 0x313   :  { %14096 = vtanh.f32 %v10105_v54  ;;  %v11269_v37 = vpop.xlane.xlu1 %11268  ;;  %v14085_v16 = vpop.eup %14084  ;;  %v10501_v18 = vmul.f32 %v16517_v7, %v14083_v20 }
 0x314   :  { %11367 = vadd.xlane.f32.xlu0 %v11366_v32  ;;  %14098 = vtanh.f32 %v9984_v11  ;;  %v16526_v9 = vpop.xlane.xlu0 %10875  ;;  %v14087_v54 = vpop.eup %14086  ;;  %v10498_v61 = vmul.f32 %v16517_v7, %v14085_v16  ;;  %v12610_v11 = vrot.slane %v11266_v41, %v16269_v55  ;;  %v12614_v17 = vrot.slane %v11269_v37, %v16274_v22 }
 0x315   :  { %14100 = vtanh.f32 %v10095_v53  ;;  %v11003_v14 = vsel %vm8415_vm0, %v10501_v18, 0.0  ;;  %v10499_v5 = vmul.f32 %v16517_v7, %v14087_v54  ;;  %v10097_v53 = vadd.f32 %v16460_v6, %v16298_v25 }
 0x316   :  { %11370 = vadd.xlane.f32.xlu1 %v11369_v13  ;;  %14102 = vtanh.f32 %v10096_v0  ;;  %v10994_v16 = vsel %vm8415_vm0, %v10498_v61, 0.0  ;;  %v10098_v41 = vadd.f32 %v16412_v2, %v16325_v44 }
 0x317   :  { %v16529_v12 = vpop.xlane.xlu1 %10878  ;;  %v10997_v18 = vsel %vm8415_vm0, %v10499_v5, 0.0  ;;  %14104 = vtanh.f32 %v10097_v53 }
 0x318   :  { %11001 = vadd.xlane.f32.xlu0 %v11000_v47  ;;  %v11260_v36 = vpop.xlane.xlu0 %11259 }
 0x319   :  { %v12601_v46 = vrot.slane %v11260_v36, %v16269_v55 }
 0x31a   :  { %11004 = vadd.xlane.f32.xlu1 %v11003_v14  ;;  %v13587_v32 = vpop.f32.mrf.mxu1  ;;  %v12615_v14 = vsel %vm11669_vm1, %v12614_v17, %v12610_v11 }
 0x31b   :  { %v14089_v10 = vpop.eup %14088  ;;  %v11263_v33 = vpop.xlane.xlu1 %11262  ;;  %v10109_v44 = vadd.f32 %v16460_v6, %v13587_v32 }
 0x31c   :  { %v14091_v57 = vpop.eup %14090  ;;  %v10504_v20 = vmul.f32 %v16517_v7, %v14089_v10  ;;  %v12605_v13 = vrot.slane %v11263_v33, %v16274_v22  ;;  %10995 = vadd.xlane.f32.xlu0 %v10994_v16  ;;  %v9826_v37 = vpop.f32.mrf.mxu1 }
 0x31d   :  { %v14093_v0 = vpop.eup %14092  ;;  %v10894_v54 = vpop.xlane.xlu0 %10893  ;;  %v10625_v47 = vmul.f32 %v16517_v7, %v14091_v57  ;;  %v10107_v61 = vadd.f32 %v16460_v6, %v9826_v37 }
 0x31e   :  { %v11012_v10 = vsel %vm8415_vm0, %v10504_v20, 0.0  ;;  %v12606_v36 = vsel %vm11669_vm1, %v12605_v13, %v12601_v46  ;;  %10998 = vadd.xlane.f32.xlu1 %v10997_v18  ;;  %v12052_v33 = vrot.slane %v10894_v54, %v16269_v55  ;;  %v13588_v57 = vpop.f32.mrf.mxu1  ;;  %v10502_v20 = vmul.f32 %v16517_v7, %v14093_v0 }
 0x31f   :  { %v14095_v25 = vpop.eup %14094  ;;  %v16554_v5 = vsel %vm12814_vm2, %v12615_v14, %v12606_v36  ;;  %v10897_v35 = vpop.xlane.xlu1 %10896  ;;  %14106 = vtanh.f32 %v10107_v61  ;;  %v11375_v46 = vsel %vm8415_vm0, %v10625_v47, 0.0  ;;  %v10110_v14 = vadd.f32 %v16412_v2, %v13588_v57 }
 0x320   :  { %v14097_v16 = vpop.eup %14096  ;;  %v12056_v11 = vrot.slane %v10897_v35, %v16274_v22  ;;  %11013 = vadd.xlane.f32.xlu0 %v11012_v10  ;;  %14108 = vtanh.f32 %v10098_v41  ;;  %v9829_v17 = vpop.f32.mrf.mxu1  ;;  %v10505_v53 = vmul.f32 %v16517_v7, %v14095_v25  ;;  %v12025_v35 = vrot.slane %v16526_v9, %v16269_v55 }
 0x321   :  { %v11278_v13 = vpop.xlane.xlu0 %11277  ;;  %v14099_v37 = vpop.eup %14098  ;;  %v10108_v32 = vadd.f32 %v16412_v2, %v9829_v17  ;;  %v10624_v0 = vmul.f32 %v16517_v7, %v14097_v16  ;;  %v12029_v41 = vrot.slane %v16529_v12, %v16274_v22  ;;  %14110 = vtanh.f32 %v10109_v44 }
 0x322   :  { %v12057_v18 = vsel %vm11669_vm1, %v12056_v11, %v12052_v33  ;;  %11376 = vadd.xlane.f32.xlu1 %v11375_v46  ;;  %v12628_v54 = vrot.slane %v11278_v13, %v16269_v55  ;;  %v11006_v10 = vsel %vm8415_vm0, %v10502_v20, 0.0  ;;  %v14101_v25 = vpop.eup %14100  ;;  %v12034_v36 = vrot.slane %v16491_v58, %v16269_v55 }
 0x323   :  { %v11281_v47 = vpop.xlane.xlu1 %11280  ;;  %14112 = vtanh.f32 %v10108_v32  ;;  %v12038_v9 = vrot.slane %v16500_v21, %v16274_v22  ;;  %v11015_v33 = vsel %vm8415_vm0, %v10505_v53, 0.0  ;;  %v10503_v16 = vmul.f32 %v16517_v7, %v14099_v37  ;;  %v14103_v44 = vpop.eup %14102 }
 0x324   :  { %v12632_v61 = vrot.slane %v11281_v47, %v16274_v22  ;;  %11007 = vadd.xlane.f32.xlu0 %v11006_v10  ;;  %v12030_v11 = vsel %vm11669_vm1, %v12029_v41, %v12025_v35  ;;  %v11372_v46 = vsel %vm8415_vm0, %v10624_v0, 0.0  ;;  %v10614_v58 = vmul.f32 %v16517_v7, %v14101_v25 }
 0x325   :  { %v10888_v12 = vpop.xlane.xlu0 %10887  ;;  %14114 = vtanh.f32 %v10110_v14  ;;  %v12039_v13 = vsel %vm11669_vm1, %v12038_v9, %v12034_v36  ;;  %v11009_v53 = vsel %vm8415_vm0, %v10503_v16, 0.0  ;;  %v10615_v32 = vmul.f32 %v16517_v7, %v14103_v44 }
 0x326   :  { %v12633_v20 = vsel %vm11669_vm1, %v12632_v61, %v12628_v54  ;;  %11016 = vadd.xlane.f32.xlu1 %v11015_v33  ;;  %v12043_v57 = vrot.slane %v10888_v12, %v16269_v55  ;;  %v12856_v54 = vsel %vm12814_vm2, %v12039_v13, %v12030_v11  ;;  %v11342_v14 = vsel %vm8415_vm0, %v10614_v58, 0.0  ;;  %v14105_v61 = vpop.eup %14104 }
 0x327   :  { %v10891_v17 = vpop.xlane.xlu1 %10890  ;;  %v13591_v47 = vpop.f32.mrf.mxu1  ;;  %v11345_v44 = vsel %vm8415_vm0, %v10615_v32, 0.0 }
 0x328   :  { %v12047_v21 = vrot.slane %v10891_v17, %v16274_v22  ;;  %11373 = vadd.xlane.f32.xlu0 %v11372_v46  ;;  %v10113_v41 = vadd.f32 %v16460_v6, %v13591_v47 }
 0x329   :  { %v11272_v37 = vpop.xlane.xlu0 %11271  ;;  %v9842_v36 = vpop.f32.mrf.mxu1 }
 0x32a   :  { %v12048_v35 = vsel %vm11669_vm1, %v12047_v21, %v12043_v57  ;;  %11010 = vadd.xlane.f32.xlu1 %v11009_v53  ;;  %v12619_v0 = vrot.slane %v11272_v37, %v16269_v55  ;;  %14116 = vtanh.f32 %v10113_v41  ;;  %v10111_v16 = vadd.f32 %v16460_v6, %v9842_v36 }
 0x32b   :  { %v12857_v10 = vsel %vm12816_vm3, %v12048_v35, %v12856_v54  ;;  %v11275_v25 = vpop.xlane.xlu1 %11274  ;;  %v13592_v17 = vpop.f32.mrf.mxu1  ;;  %v10616_v6 = vmul.f32 %v16517_v7, %v14105_v61 }
 0x32c   :  { %v12623_v9 = vrot.slane %v11275_v25, %v16274_v22  ;;  %11343 = vadd.xlane.f32.xlu0 %v11342_v14  ;;  %v12858_v33 = vsel %vm12818_vm4, %v12057_v18, %v12857_v10  ;;  %v14107_v12 = vpop.eup %14106  ;;  %14118 = vtanh.f32 %v10111_v16  ;;  %v10114_v13 = vadd.f32 %v16412_v2, %v13592_v17 }
 0x32d   :  { %v10906_v57 = vpop.xlane.xlu0 %10905  ;;  %v14109_v11 = vpop.eup %14108  ;;  %v10626_v21 = vmul.f32 %v16517_v7, %v14107_v12  ;;  %v11348_v36 = vsel %vm8415_vm0, %v10616_v6, 0.0 }
 0x32e   :  { %v12624_v46 = vsel %vm11669_vm1, %v12623_v9, %v12619_v0  ;;  %11346 = vadd.xlane.f32.xlu1 %v11345_v44  ;;  %v12070_v58 = vrot.slane %v10906_v57, %v16269_v55  ;;  %v14111_v37 = vpop.eup %14110  ;;  %v9845_v32 = vpop.f32.mrf.mxu1  ;;  %14120 = vtanh.f32 %v10114_v13  ;;  %v10617_v12 = vmul.f32 %v16517_v7, %v14109_v11 }
 0x32f   :  { %v12913_v18 = vsel %vm12816_vm3, %v12624_v46, %v16554_v5  ;;  %v10909_v53 = vpop.xlane.xlu1 %10908  ;;  %v11378_v47 = vsel %vm8415_vm0, %v10626_v21, 0.0  ;;  %v10112_v41 = vadd.f32 %v16412_v2, %v9845_v32  ;;  %v10628_v2 = vmul.f32 %v16517_v7, %v14111_v37 }
 0x330   :  { %v12074_v54 = vrot.slane %v10909_v53, %v16274_v22  ;;  %v12914_v35 = vsel %vm12818_vm4, %v12633_v20, %v12913_v18  ;;  %v14113_v0 = vpop.eup %14112  ;;  %11379 = vadd.xlane.f32.xlu0 %v11378_v47  ;;  %v12907_v46 = vsel %vm12818_vm4, %v16357_v29, %v16387_v63  ;;  %v11351_v21 = vsel %vm8415_vm0, %v10617_v12, 0.0 }
 0x331   :  { %v11290_v10 = vpop.xlane.xlu0 %11289  ;;  %v10627_v5 = vmul.f32 %v16517_v7, %v14113_v0  ;;  %14122 = vtanh.f32 %v10112_v41  ;;  %v11384_v13 = vsel %vm8415_vm0, %v10628_v2, 0.0 }
 0x332   :  { %v12075_v25 = vsel %vm11669_vm1, %v12074_v54, %v12070_v58  ;;  %v12646_v14 = vrot.slane %v11290_v10, %v16269_v55  ;;  %v14115_v16 = vpop.eup %14114 }
 0x333   :  { %v11293_v61 = vpop.xlane.xlu1 %11292  ;;  %v11381_v9 = vsel %vm8415_vm0, %v10627_v5, 0.0  ;;  %v10629_v18 = vmul.f32 %v16517_v7, %v14115_v16 }
 0x334   :  { %v12650_v20 = vrot.slane %v11293_v61, %v16274_v22  ;;  %11382 = vadd.xlane.f32.xlu1 %v11381_v9  ;;  %11349 = vadd.xlane.f32.xlu0 %v11348_v36 }
 0x335   :  { %v10900_v44 = vpop.xlane.xlu0 %10899  ;;  %v11387_v47 = vsel %vm8415_vm0, %v10629_v18, 0.0 }
 0x336   :  { %v16616_v57 = vsel %vm11669_vm1, %v12650_v20, %v12646_v14  ;;  %v12061_v17 = vrot.slane %v10900_v44, %v16269_v55 }
 0x337   :  { %v10903_v58 = vpop.xlane.xlu1 %10902  ;;  %v14117_v6 = vpop.eup %14116 }
 0x338   :  { %v12065_v11 = vrot.slane %v10903_v58, %v16274_v22  ;;  %11352 = vadd.xlane.f32.xlu1 %v11351_v21  ;;  %11385 = vadd.xlane.f32.xlu0 %v11384_v13  ;;  %v10632_v14 = vmul.f32 %v16517_v7, %v14117_v6 }
 0x339   :  { %v11284_v53 = vpop.xlane.xlu0 %11283  ;;  %v14119_v63 = vpop.eup %14118 }
 0x33a   :  { %v12066_v37 = vsel %vm11669_vm1, %v12065_v11, %v12061_v17  ;;  %v12637_v32 = vrot.slane %v11284_v53, %v16269_v55  ;;  %v10630_v10 = vmul.f32 %v16517_v7, %v14119_v63  ;;  %v11396_v44 = vsel %vm8415_vm0, %v10632_v14, 0.0 }
 0x33b   :  { %v12859_v54 = vsel %vm12820_vm5, %v12066_v37, %v12858_v33  ;;  %v11287_v29 = vpop.xlane.xlu1 %11286  ;;  %v14121_v61 = vpop.eup %14120  ;;  %v12908_v53 = vsel %vm12820_vm5, %v16440_v3, %v12907_v46  ;;  %v12587_v14 = vrot.slane %v16484_v26, %v16274_v22  ;;  %v11687_v26 = vrot.slane %v15323_v43, %v16274_v22 }
 0x33c   :  { %v12641_v0 = vrot.slane %v11287_v29, %v16274_v22  ;;  %v12860_v41 = vsel %vm12822_vm6, %v12075_v25, %v12859_v54  ;;  %11388 = vadd.xlane.f32.xlu1 %v11387_v47  ;;  %v11390_v20 = vsel %vm8415_vm0, %v10630_v10, 0.0  ;;  %v10633_v17 = vmul.f32 %v16517_v7, %v14121_v61 }
 0x33d   :  { %v10918_v5 = vpop.xlane.xlu0 %10917  ;;  %11391 = vadd.xlane.f32.xlu0 %v11390_v20  ;;  %v12909_v37 = vsel %vm12822_vm6, %v16418_v42, %v12908_v53  ;;  %v12596_v54 = vrot.slane %v16463_v8, %v16274_v22  ;;  %v12583_v8 = vrot.slane %v16479_v4, %v16269_v55  ;;  %v11683_v4 = vrot.slane %v15329_v60, %v16269_v55 }
 0x33e   :  { %v12642_v36 = vsel %vm11669_vm1, %v12641_v0, %v12637_v32  ;;  %v12088_v9 = vrot.slane %v10918_v5, %v16269_v55  ;;  %v14123_v2 = vpop.eup %14122  ;;  %v12592_v32 = vrot.slane %v16450_v56, %v16269_v55 }
 0x33f   :  { %v12915_v33 = vsel %vm12820_vm5, %v12642_v36, %v12914_v35  ;;  %v10921_v12 = vpop.xlane.xlu1 %10920  ;;  %v10631_v16 = vmul.f32 %v16517_v7, %v14123_v2  ;;  %v11399_v35 = vsel %vm8415_vm0, %v10633_v17, 0.0  ;;  %v11678_v17 = vrot.slane %v15241_v39, %v16274_v22 }
 0x340   :  { %v12092_v25 = vrot.slane %v10921_v12, %v16274_v22  ;;  %v12597_v56 = vsel %vm11669_vm1, %v12596_v54, %v12592_v32  ;;  %v11663_v12 = vrot.slane %v15248_v31, %v16269_v55  ;;  %v12916_v43 = vsel %vm12822_vm6, %v16616_v57, %v12915_v33 }
 0x341   :  { %v11302_v58 = vpop.xlane.xlu0 %11301  ;;  %v11393_v11 = vsel %vm8415_vm0, %v10631_v16, 0.0  ;;  %11397 = vadd.xlane.f32.xlu0 %v11396_v44  ;;  %v12588_v44 = vsel %vm11669_vm1, %v12587_v14, %v12583_v8  ;;  %v11696_v39 = vrot.slane %v15287_v38, %v16274_v22  ;;  %v11701_v33 = vrot.slane %v15382_v1, %v16269_v55 }
 0x342   :  { %v12093_v21 = vsel %vm11669_vm1, %v12092_v25, %v12088_v9  ;;  %11394 = vadd.xlane.f32.xlu1 %v11393_v11  ;;  %v12664_v61 = vrot.slane %v11302_v58, %v16269_v55  ;;  %v11668_v9 = vrot.slane %v15283_v19, %v16274_v22  ;;  %v11674_v25 = vrot.slane %v15222_v28, %v16269_v55 }
 0x343   :  { %v11305_v13 = vpop.xlane.xlu1 %11304  ;;  %v12910_v60 = vsel %vm12824_vm7, %v12588_v44, %v12909_v37  ;;  %v11692_v28 = vrot.slane %v15297_v34, %v16269_v55  ;;  %v11714_v34 = vrot.slane %v15344_v52, %v16274_v22  ;;  %v11741_v32 = vrot.slane %v15496_v62, %v16274_v22  ;;  %v17501_v44 = vld [vmem:[#allocation60_spill] sm:$0xff] }
 0x344   :  { %v12668_v36 = vrot.slane %v11305_v13, %v16274_v22  ;;  %v11670_v31 = vsel %vm11669_vm1, %v11668_v9, %v11663_v12  ;;  %v16697_v11 = vsel %vm12826_vm8, %v12597_v56, %v12910_v60  ;;  %v11679_v37 = vsel %vm11669_vm1, %v11678_v17, %v11674_v25  ;;  %v17497_v9 = vld [vmem:[#allocation40_spill] sm:$0xff]  ;;  %v17500_v25 = vld [vmem:[#allocation45_spill] sm:$0xff] }
 0x345   :  { %v10912_v18 = vpop.xlane.xlu0 %10911  ;;  %v16724_v54 = vsel %vm11669_vm1, %v11696_v39, %v11692_v28  ;;  %v11728_v62 = vrot.slane %v15409_v23, %v16269_v55  ;;  %v11746_v56 = vrot.slane %v15464_v51, %v16269_v55  ;;  %v11782_v12 = vrot.slane %v17497_v9, %v16269_v55  ;;  %v17502_v17 = vld [vmem:[#allocation61_spill] sm:$0xff]  ;;  %v17511_v9 = vld [vmem:[#allocation72_spill] sm:$0xff] }
 0x346   :  { %v12079_v6 = vrot.slane %v10912_v18, %v16269_v55  ;;  %11400 = vadd.xlane.f32.xlu1 %v11399_v35  ;;  %v12669_v19 = vsel %vm11669_vm1, %v12668_v36, %v12664_v61  ;;  %v11688_v35 = vsel %vm11669_vm1, %v11687_v26, %v11683_v4  ;;  %v11710_v18 = vrot.slane %v15353_v59, %v16269_v55  ;;  %v17499_v26 = vld [vmem:[#allocation44_spill] sm:$0xff] }
 0x347   :  { %v10915_v7 = vpop.xlane.xlu1 %10914  ;;  %v12815_v59 = vsel %vm12814_vm2, %v11679_v37, %v11670_v31  ;;  %v11764_v61 = vrot.slane %v15518_v50, %v16269_v55  ;;  %v11768_v36 = vrot.slane %v15523_v27, %v16274_v22  ;;  %v11777_v50 = vrot.slane %v17500_v25, %v16274_v22  ;;  %v17507_v37 = vld [vmem:[#allocation57_spill] sm:$0xff] }
 0x348   :  { %v12083_v29 = vrot.slane %v10915_v7, %v16274_v22  ;;  %v16727_v52 = vsel %vm12816_vm3, %v11688_v35, %v12815_v59  ;;  %v11813_v31 = vrot.slane %v17502_v17, %v16274_v22  ;;  %v17505_v35 = vld [vmem:[#allocation69_spill] sm:$0xff]  ;;  %v11822_v59 = vrot.slane %v17507_v37, %v16274_v22 }
 0x349   :  { %v11296_v63 = vpop.xlane.xlu0 %11295  ;;  %v17519_v37 = vld [vmem:[#allocation93_spill] sm:$0xff] }
 0x34a   :  { %v12084_v47 = vsel %vm11669_vm1, %v12083_v29, %v12079_v6  ;;  %v12655_v3 = vrot.slane %v11296_v63, %v16269_v55  ;;  %v11705_v6 = vrot.slane %v15372_v40, %v16274_v22  ;;  %v16730_v40 = vsel %vm11669_vm1, %v11714_v34, %v11710_v18 }
 0x34b   :  { %v11299_v46 = vpop.xlane.xlu1 %11298  ;;  %v12861_v0 = vsel %vm12824_vm7, %v12084_v47, %v12860_v41  ;;  %v11737_v63 = vrot.slane %v15477_v49, %v16269_v55  ;;  %v11750_v49 = vrot.slane %v15482_v30, %v16274_v22  ;;  %v17498_v30 = vld [vmem:[#allocation41_spill] sm:$0xff]  ;;  %v11831_v18 = vrot.slane %v17505_v35, %v16274_v22 }
 0x34c   :  { %v12659_v42 = vrot.slane %v11299_v46, %v16274_v22  ;;  %v16660_v10 = vsel %vm12826_vm8, %v12093_v21, %v12861_v0  ;;  %v16733_v29 = vsel %vm11669_vm1, %v11705_v6, %v11701_v33  ;;  %v11719_v46 = vrot.slane %v15436_v15, %v16269_v55  ;;  %v17506_v6 = vld [vmem:[#allocation56_spill] sm:$0xff] }
 0x34d   :  { %v16665_v5 = vpop.xlane.xlu0 %10929  ;;  %v11759_v0 = vrot.slane %v15568_v24, %v16274_v22  ;;  %v11742_v8 = vsel %vm11669_vm1, %v11741_v32, %v11737_v63  ;;  %v11786_v4 = vrot.slane %v17498_v30, %v16274_v22  ;;  %v11769_v33 = vsel %vm11669_vm1, %v11768_v36, %v11764_v61  ;;  %v17510_v61 = vld [vmem:[#allocation65_spill] sm:$0xff] }
 0x34e   :  { %v12660_v41 = vsel %vm11669_vm1, %v12659_v42, %v12655_v3  ;;  %v11732_v3 = vrot.slane %v15401_v45, %v16274_v22  ;;  %v11840_v36 = vrot.slane %v17510_v61, %v16274_v22  ;;  %v17512_v30 = vld [vmem:[#allocation73_spill] sm:$0xff]  ;;  %v17520_v61 = vld [vmem:[#allocation100_spill] sm:$0xff] }
 0x34f   :  { %v16674_v20 = vpop.xlane.xlu1 %10932  ;;  %v12917_v13 = vsel %vm12824_vm7, %v12660_v41, %v12916_v43  ;;  %v17496_v41 = vld [vmem:[#allocation38_spill] sm:$0xff]  ;;  %v17503_v43 = vld [vmem:[#allocation28_spill] sm:$0xff]  ;;  %v16794_v63 = vsel %vm11669_vm1, %v11786_v4, %v11782_v12  ;;  %v11854_v12 = vrot.slane %v17511_v9, %v16269_v55  ;;  %v11858_v4 = vrot.slane %v17512_v30, %v16274_v22  ;;  %v17523_v30 = vld [vmem:[#allocation89_spill] sm:$0xff] }
 0x350   :  { %v16708_v57 = vsel %vm12826_vm8, %v12669_v19, %v12917_v13  ;;  %v11755_v24 = vrot.slane %v17496_v41, %v16269_v55  ;;  %v11809_v19 = vrot.slane %v17501_v44, %v16269_v55  ;;  %v11723_v28 = vrot.slane %v17503_v43, %v16274_v22  ;;  %v17504_v13 = vld [vmem:[#allocation68_spill] sm:$0xff]  ;;  %v17515_v44 = vld [vmem:[#allocation77_spill] sm:$0xff] }
 0x351   :  { %v11314_v2 = vpop.xlane.xlu0 %11313  ;;  %v11827_v39 = vrot.slane %v17504_v13, %v16269_v55 }
 0x352   :  { %v12682_v16 = vrot.slane %v11314_v2, %v16269_v55  ;;  %v11773_v2 = vrot.slane %v17499_v26, %v16269_v55  ;;  %v11760_v27 = vsel %vm11669_vm1, %v11759_v0, %v11755_v24 }
 0x353   :  { %v11317_v58 = vpop.xlane.xlu1 %11316  ;;  %v11832_v24 = vsel %vm11669_vm1, %v11831_v18, %v11827_v39 }
 0x354   :  { %v12686_v21 = vrot.slane %v11317_v58, %v16274_v22 }
 0x355   :  { %v16705_v53 = vpop.xlane.xlu0 %10923 }
 0x356   :  { %v12687_v38 = vsel %vm11669_vm1, %v12686_v21, %v12682_v16  ;;  %v11751_v21 = vsel %vm11669_vm1, %v11750_v49, %v11746_v56  ;;  %v11814_v49 = vsel %vm11669_vm1, %v11813_v31, %v11809_v19  ;;  %v11849_v19 = vrot.slane %v17515_v44, %v16274_v22  ;;  %v17516_v31 = vld [vmem:[#allocation52_spill] sm:$0xff]  ;;  %v17525_v44 = vld [vmem:[#allocation97_spill] sm:$0xff] }
 0x357   :  { %v16718_v7 = vpop.xlane.xlu1 %10926  ;;  %v12828_v34 = vsel %vm12814_vm2, %v11751_v21, %v11742_v8  ;;  %v17509_v8 = vld [vmem:[#allocation64_spill] sm:$0xff]  ;;  %v11791_v43 = vrot.slane %v17516_v31, %v16269_v55  ;;  %v17517_v21 = vld [vmem:[#allocation53_spill] sm:$0xff]  ;;  %v11912_v31 = vrot.slane %v17525_v44, %v16274_v22 }
 0x358   :  { %v11795_v13 = vrot.slane %v17517_v21, %v16274_v22 }
 0x359   :  { %v11308_v1 = vpop.xlane.xlu0 %11307 }
 0x35a   :  { %v12673_v47 = vrot.slane %v11308_v1, %v16269_v55  ;;  %v12829_v1 = vsel %vm12816_vm3, %v11760_v27, %v12828_v34 }
 0x35b   :  { %v11311_v42 = vpop.xlane.xlu1 %11310 }
 0x35c   :  { %v12677_v14 = vrot.slane %v11311_v42, %v16274_v22  ;;  %v17508_v42 = vld [vmem:[#allocation48_spill] sm:$0xff] }
 0x35d   :  { %v16760_v51 = vpop.xlane.xlu0 %10941  ;;  %v11800_v56 = vrot.slane %v17508_v42, %v16269_v55 }
 0x35e   :  { %v12678_v16 = vsel %vm11669_vm1, %v12677_v14, %v12673_v47  ;;  %v11778_v47 = vsel %vm11669_vm1, %v11777_v50, %v11773_v2  ;;  %v11836_v14 = vrot.slane %v17509_v8, %v16269_v55  ;;  %v17513_v2 = vld [vmem:[#allocation49_spill] sm:$0xff]  ;;  %v11859_v8 = vsel %vm11669_vm1, %v11858_v4, %v11854_v12  ;;  %v17524_v4 = vld [vmem:[#allocation96_spill] sm:$0xff] }
 0x35f   :  { %v16775_v58 = vsel %vm12814_vm2, %v12687_v38, %v12678_v16  ;;  %v16777_v60 = vpop.xlane.xlu1 %10944  ;;  %v11818_v38 = vrot.slane %v17506_v6, %v16269_v55  ;;  %v11804_v25 = vrot.slane %v17513_v2, %v16274_v22  ;;  %v17514_v16 = vld [vmem:[#allocation76_spill] sm:$0xff] }
 0x360   :  { %v11845_v27 = vrot.slane %v17514_v16, %v16269_v55  ;;  %v11841_v18 = vsel %vm11669_vm1, %v11840_v36, %v11836_v14  ;;  %v17518_v6 = vld [vmem:[#allocation92_spill] sm:$0xff]  ;;  %v12819_v14 = vsel %vm12818_vm4, %v16724_v54, %v16727_v52  ;;  %v11908_v16 = vrot.slane %v17524_v4, %v16269_v55 }
 0x361   :  { %v11326_v32 = vpop.xlane.xlu0 %11325  ;;  %v11823_v50 = vsel %vm11669_vm1, %v11822_v59, %v11818_v38  ;;  %v11881_v38 = vrot.slane %v17518_v6, %v16269_v55  ;;  %v11885_v59 = vrot.slane %v17519_v37, %v16274_v22  ;;  %v12821_v12 = vsel %vm12820_vm5, %v16733_v29, %v12819_v14  ;;  %v17527_v29 = vld [vmem:[#allocation108_spill] sm:$0xff]  ;;  %v17528_v6 = vld [vmem:[#allocation109_spill] sm:$0xff] }
 0x362   :  { %v12700_v0 = vrot.slane %v11326_v32, %v16269_v55  ;;  %v12835_v39 = vsel %vm12814_vm2, %v11823_v50, %v11814_v49  ;;  %v17521_v49 = vld [vmem:[#allocation101_spill] sm:$0xff]  ;;  %v11850_v36 = vsel %vm11669_vm1, %v11849_v19, %v11845_v27  ;;  %v11724_v52 = vsel %vm11669_vm1, %v11723_v28, %v11719_v46  ;;  %v17526_v27 = vld [vmem:[#allocation84_spill] sm:$0xff] }
 0x363   :  { %v11329_v41 = vpop.xlane.xlu1 %11328  ;;  %v12836_v34 = vsel %vm12816_vm3, %v11832_v24, %v12835_v39  ;;  %v17522_v24 = vld [vmem:[#allocation88_spill] sm:$0xff]  ;;  %v11863_v19 = vrot.slane %v17526_v27, %v16269_v55  ;;  %v11886_v21 = vsel %vm11669_vm1, %v11885_v59, %v11881_v38  ;;  %v11917_v39 = vrot.slane %v17527_v29, %v16269_v55  ;;  %v17529_v28 = vld [vmem:[#allocation85_spill] sm:$0xff] }
 0x364   :  { %v12704_v26 = vrot.slane %v11329_v41, %v16274_v22  ;;  %v11899_v41 = vrot.slane %v17520_v61, %v16269_v55  ;;  %v11890_v9 = vrot.slane %v17522_v24, %v16269_v55  ;;  %v11921_v37 = vrot.slane %v17528_v6, %v16274_v22  ;;  %v17534_v27 = vld [vmem:[#allocation80_spill] sm:$0xff]  ;;  %v17535_v29 = vld [vmem:[#allocation81_spill] sm:$0xff] }
 0x365   :  { %v16818_v17 = vpop.xlane.xlu0 %10935  ;;  %v12823_v15 = vsel %vm12822_vm6, %v16730_v40, %v12821_v12  ;;  %v12830_v46 = vsel %vm12818_vm4, %v11769_v33, %v12829_v1  ;;  %v11867_v24 = vrot.slane %v17529_v28, %v16274_v22  ;;  %v11796_v40 = vsel %vm11669_vm1, %v11795_v13, %v11791_v43  ;;  %v17537_v28 = vld [vmem:[#allocation113_spill] sm:$0xff] }
 0x366   :  { %v12705_v35 = vsel %vm11669_vm1, %v12704_v26, %v12700_v0  ;;  %v11903_v0 = vrot.slane %v17521_v49, %v16274_v22  ;;  %v11894_v26 = vrot.slane %v17523_v30, %v16274_v22  ;;  %v12825_v30 = vsel %vm12824_vm7, %v11724_v52, %v12823_v15 }
 0x367   :  { %v16832_v32 = vpop.xlane.xlu1 %10938  ;;  %v11922_v1 = vsel %vm11669_vm1, %v11921_v37, %v11917_v39  ;;  %v12837_v13 = vsel %vm12818_vm4, %v11841_v18, %v12836_v34  ;;  %v11868_v34 = vsel %vm11669_vm1, %v11867_v24, %v11863_v19  ;;  %v11876_v39 = vrot.slane %v17535_v29, %v16274_v22 }
 0x368   :  { %v11904_v49 = vsel %vm11669_vm1, %v11903_v0, %v11899_v41  ;;  %v11895_v38 = vsel %vm11669_vm1, %v11894_v26, %v11890_v9  ;;  %v11913_v0 = vsel %vm11669_vm1, %v11912_v31, %v11908_v16  ;;  %v17531_v31 = vld [vmem:[#allocation117_spill] sm:$0xff]  ;;  %v11948_v24 = vrot.slane %v17537_v28, %v16274_v22 }
 0x369   :  { %v11320_v50 = vpop.xlane.xlu0 %11319  ;;  %v12842_v41 = vsel %vm12814_vm2, %v11895_v38, %v11886_v21  ;;  %v11939_v23 = vrot.slane %v17531_v31, %v16274_v22  ;;  %v11872_v21 = vrot.slane %v17534_v27, %v16269_v55  ;;  %v12124_v31 = vrot.slane %v16760_v51, %v16269_v55 }
 0x36a   :  { %v12691_v54 = vrot.slane %v11320_v50, %v16269_v55  ;;  %v12831_v50 = vsel %vm12820_vm5, %v11778_v47, %v12830_v46  ;;  %v12843_v33 = vsel %vm12816_vm3, %v11904_v49, %v12842_v41  ;;  %v11733_v47 = vsel %vm11669_vm1, %v11732_v3, %v11728_v62  ;;  %v17532_v3 = vld [vmem:[#allocation104_spill] sm:$0xff] }
 0x36b   :  { %v11323_v61 = vpop.xlane.xlu1 %11322  ;;  %v12827_v12 = vsel %vm12826_vm8, %v11733_v47, %v12825_v30  ;;  %v12832_v43 = vsel %vm12822_vm6, %v16794_v63, %v12831_v50  ;;  %v12838_v62 = vsel %vm12820_vm5, %v11850_v36, %v12837_v13  ;;  %v11926_v52 = vrot.slane %v17532_v3, %v16269_v55  ;;  %v17533_v63 = vld [vmem:[#allocation105_spill] sm:$0xff] }
 0x36c   :  { %v12695_v14 = vrot.slane %v11323_v61, %v16274_v22  ;;  %v12833_v45 = vsel %vm12824_vm7, %v11796_v40, %v12832_v43  ;;  %v11930_v18 = vrot.slane %v17533_v63, %v16274_v22  ;;  %v11805_v36 = vsel %vm11669_vm1, %v11804_v25, %v11800_v56  ;;  %v17536_v56 = vld [vmem:[#allocation112_spill] sm:$0xff] }
 0x36d   :  { %v16873_v59 = vpop.xlane.xlu0 %10953  ;;  %v12844_v37 = vsel %vm12818_vm4, %v11913_v0, %v12843_v33  ;;  %v12834_v19 = vsel %vm12826_vm8, %v11805_v36, %v12833_v45  ;;  %v12839_v49 = vsel %vm12822_vm6, %v11859_v8, %v12838_v62  ;;  %v11944_v25 = vrot.slane %v17536_v56, %v16269_v55 }
 0x36e   :  { %v12696_v4 = vsel %vm11669_vm1, %v12695_v14, %v12691_v54  ;;  %12949 = vxpose.xlu0.b32.start [1/16] (narrow) %v12827_v12, 16  ;;  %v12845_v14 = vsel %vm12820_vm5, %v11922_v1, %v12844_v37  ;;  %v12840_v46 = vsel %vm12824_vm7, %v11868_v34, %v12839_v49  ;;  %v11931_v2 = vsel %vm11669_vm1, %v11930_v18, %v11926_v52 }
 0x36f   :  { %v12920_v9 = vsel %vm12816_vm3, %v12696_v4, %v16775_v58  ;;  %v16885_v26 = vpop.xlane.xlu1 %10956  ;;  %v17530_v58 = vld [vmem:[#allocation116_spill] sm:$0xff]  ;;  %v12097_v8 = vrot.slane %v16705_v53, %v16269_v55  ;;  %v12101_v30 = vrot.slane %v16718_v7, %v16274_v22  ;;  %v11877_v41 = vsel %vm11669_vm1, %v11876_v39, %v11872_v21 }
 0x370   :  { %v12921_v16 = vsel %vm12818_vm4, %v12705_v35, %v12920_v9  ;;  %v11935_v44 = vrot.slane %v17530_v58, %v16269_v55  ;;  %v12846_v0 = vsel %vm12822_vm6, %v11931_v2, %v12845_v14  ;;  %v12115_v4 = vrot.slane %v16818_v17, %v16269_v55 }
 0x371   :  { %v11338_v54 = vpop.xlane.xlu0 %11337  ;;  %v12119_v40 = vrot.slane %v16832_v32, %v16274_v22  ;;  %v12841_v33 = vsel %vm12826_vm8, %v11877_v41, %v12840_v46  ;;  %v12106_v53 = vrot.slane %v16665_v5, %v16269_v55  ;;  %v12110_v7 = vrot.slane %v16674_v20, %v16274_v22 }
 0x372   :  { %v12718_v35 = vrot.slane %v11338_v54, %v16269_v55  ;;  %12950 = vxpose.xlu0.b32.cont [2/16] (narrow) %v12834_v19, 16  ;;  %v11940_v42 = vsel %vm11669_vm1, %v11939_v23, %v11935_v44  ;;  %v11949_v12 = vsel %vm11669_vm1, %v11948_v24, %v11944_v25  ;;  %v12102_v17 = vsel %vm11669_vm1, %v12101_v30, %v12097_v8  ;;  %v17538_v8 = vld [vmem:[#allocation17_spill] sm:$0xff] }
 0x373   :  { %v11341_v6 = vpop.xlane.xlu1 %11340  ;;  %v12847_v1 = vsel %vm12824_vm7, %v11940_v42, %v12846_v0  ;;  %v12120_v13 = vsel %vm11669_vm1, %v12119_v40, %v12115_v4  ;;  %v12111_v20 = vsel %vm11669_vm1, %v12110_v7, %v12106_v53  ;;  %v12128_v23 = vrot.slane %v16777_v60, %v16274_v22  ;;  %v17540_v0 = vld [vmem:[#allocation20_spill] sm:$0xff]  ;;  %v17542_v53 = vld [vmem:[#allocation15_spill] sm:$0xff] }
 0x374   :  { %v12722_v61 = vrot.slane %v11341_v6, %v16274_v22  ;;  %v12848_v32 = vsel %vm12826_vm8, %v11949_v12, %v12847_v1  ;;  %v12863_v45 = vsel %vm12814_vm2, %v12111_v20, %v12102_v17  ;;  %v12142_v60 = vrot.slane %v16873_v59, %v16269_v55 }
 0x375   :  { %v10948_v15 = vpop.xlane.xlu0 %10947  ;;  %v12864_v3 = vsel %vm12816_vm3, %v12120_v13, %v12863_v45  ;;  %v12129_v51 = vsel %vm11669_vm1, %v12128_v23, %v12124_v31  ;;  %v12146_v34 = vrot.slane %v16885_v26, %v16274_v22  ;;  %v12245_v30 = vrot.slane %v17538_v8, %v16274_v22  ;;  %v17545_v13 = vld [vmem:[#allocation18_spill] sm:$0xff] }
 0x376   :  { %v12723_v38 = vsel %vm11669_vm1, %v12722_v61, %v12718_v35  ;;  %12951 = vxpose.xlu0.b32.cont [3/16] (narrow) %v12841_v33, 16  ;;  %v12133_v58 = vrot.slane %v10948_v15, %v16269_v55  ;;  %v12865_v21 = vsel %vm12818_vm4, %v12129_v51, %v12864_v3  ;;  %v12263_v4 = vrot.slane %v17540_v0, %v16274_v22  ;;  %v17541_v33 = vld [vmem:[#allocation16_spill] sm:$0xff]  ;;  %v17547_v31 = vld [vmem:[#allocation22_spill] sm:$0xff] }
 0x377   :  { %v10951_v50 = vpop.xlane.xlu1 %10950  ;;  %v12147_v59 = vsel %vm11669_vm1, %v12146_v34, %v12142_v60  ;;  %v12241_v1 = vrot.slane %v17541_v33, %v16269_v55  ;;  %v12254_v7 = vrot.slane %v17542_v53, %v16274_v22  ;;  %v12290_v23 = vrot.slane %v17547_v31, %v16274_v22  ;;  %v17551_v34 = vld [vmem:[#allocation34_spill] sm:$0xff] }
 0x378   :  { %v12137_v5 = vrot.slane %v10951_v50, %v16274_v22  ;;  %v17539_v50 = vld [vmem:[#allocation21_spill] sm:$0xff] }
 0x379   :  { %v11332_v9 = vpop.xlane.xlu0 %11331  ;;  %v12259_v41 = vrot.slane %v17539_v50, %v16269_v55  ;;  %v12246_v17 = vsel %vm11669_vm1, %v12245_v30, %v12241_v1  ;;  %v17556_v30 = vld [vmem:[#allocation27_spill] sm:$0xff] }
 0x37a   :  { %v12709_v47 = vrot.slane %v11332_v9, %v16269_v55  ;;  %12952 = vxpose.xlu0.b32.cont [4/16] (narrow) %v12848_v32, 16  ;;  %v12138_v18 = vsel %vm11669_vm1, %v12137_v5, %v12133_v58  ;;  %v17543_v9 = vld [vmem:[#allocation14_spill] sm:$0xff]  ;;  %v12272_v58 = vrot.slane %v17545_v13, %v16274_v22  ;;  %v12304_v50 = vrot.slane %v17556_v30, %v16269_v55 }
 0x37b   :  { %v11335_v43 = vpop.xlane.xlu1 %11334  ;;  %v12866_v29 = vsel %vm12820_vm5, %v12138_v18, %v12865_v21  ;;  %v12264_v5 = vsel %vm11669_vm1, %v12263_v4, %v12259_v41  ;;  %v17550_v18 = vld [vmem:[#allocation33_spill] sm:$0xff]  ;;  %v17552_v21 = vld [vmem:[#allocation39_spill] sm:$0xff]  ;;  %v17557_v41 = vld [vmem:[#allocation26_spill] sm:$0xff] }
 0x37c   :  { %v12713_v44 = vrot.slane %v11335_v43, %v16274_v22  ;;  %v12867_v61 = vsel %vm12822_vm6, %v12147_v59, %v12866_v29  ;;  %v17544_v43 = vld [vmem:[#allocation19_spill] sm:$0xff]  ;;  %v12326_v51 = vrot.slane %v17550_v18, %v16274_v22  ;;  %v12308_v0 = vrot.slane %v17557_v41, %v16274_v22  ;;  %v17558_v4 = vld [vmem:[#allocation30_spill] sm:$0xff] }
 0x37d   :  { %v10966_v54 = vpop.xlane.xlu0 %10965  ;;  %v12268_v32 = vrot.slane %v17544_v43, %v16269_v55  ;;  %v12295_v33 = vrot.slane %v17558_v4, %v16269_v55  ;;  %v17561_v13 = vld [vmem:[#allocation42_spill] sm:$0xff] }
 0x37e   :  { %v12714_v62 = vsel %vm11669_vm1, %v12713_v44, %v12709_v47  ;;  %12953 = vxpose.xlu0.b32.cont [5/16] (narrow) %v16495_v48, 16  ;;  %v12160_v39 = vrot.slane %v10966_v54, %v16269_v55  ;;  %v12250_v47 = vrot.slane %v17543_v9, %v16269_v55  ;;  %v17546_v44 = vld [vmem:[#allocation23_spill] sm:$0xff]  ;;  %v17548_v54 = vld [vmem:[#allocation25_spill] sm:$0xff] }
 0x37f   :  { %v12922_v52 = vsel %vm12820_vm5, %v12714_v62, %v12921_v16  ;;  %v10969_v63 = vpop.xlane.xlu1 %10968  ;;  %v12286_v20 = vrot.slane %v17546_v44, %v16269_v55  ;;  %v12277_v45 = vrot.slane %v17548_v54, %v16269_v55  ;;  %v17549_v62 = vld [vmem:[#allocation24_spill] sm:$0xff] }
 0x380   :  { %v16970_v35 = vsel %vm12822_vm6, %v12723_v38, %v12922_v52  ;;  %v12164_v6 = vrot.slane %v10969_v63, %v16274_v22  ;;  %v12281_v3 = vrot.slane %v17549_v62, %v16274_v22  ;;  %v12255_v63 = vsel %vm11669_vm1, %v12254_v7, %v12250_v47  ;;  %v17559_v7 = vld [vmem:[#allocation36_spill] sm:$0xff]  ;;  %v17560_v47 = vld [vmem:[#allocation37_spill] sm:$0xff] }
 0x381   :  { %v10960_v27 = vpop.xlane.xlu0 %10959  ;;  %v12877_v60 = vsel %vm12814_vm2, %v12255_v63, %v12246_v17  ;;  %v17064_v59 = vsel %vm11669_vm1, %v12290_v23, %v12286_v20  ;;  %v12340_v9 = vrot.slane %v17559_v7, %v16269_v55  ;;  %v12344_v17 = vrot.slane %v17560_v47, %v16274_v22  ;;  %v17563_v20 = vld [vmem:[#allocation46_spill] sm:$0xff]  ;;  %v17564_v23 = vld [vmem:[#allocation47_spill] sm:$0xff] }
 0x382   :  { %v12151_v16 = vrot.slane %v10960_v27, %v16269_v55  ;;  %12954 = vxpose.xlu0.b32.cont [6/16] (narrow) %v16660_v10, 16  ;;  %v12165_v49 = vsel %vm11669_vm1, %v12164_v6, %v12160_v39  ;;  %v12317_v27 = vrot.slane %v17551_v34, %v16274_v22  ;;  %v17056_v39 = vsel %vm11669_vm1, %v12272_v58, %v12268_v32  ;;  %v17567_v34 = vld [vmem:[#allocation29_spill] sm:$0xff] }
 0x383   :  { %v10963_v36 = vpop.xlane.xlu1 %10962  ;;  %v17059_v6 = vsel %vm12816_vm3, %v12264_v5, %v12877_v60  ;;  %v12358_v58 = vrot.slane %v17561_v13, %v16269_v55  ;;  %v17562_v5 = vld [vmem:[#allocation43_spill] sm:$0xff]  ;;  %v12349_v31 = vrot.slane %v17563_v20, %v16269_v55  ;;  %v12353_v54 = vrot.slane %v17564_v23, %v16274_v22  ;;  %v17572_v13 = vld [vmem:[#allocation66_spill] sm:$0xff] }
 0x384   :  { %v12155_v37 = vrot.slane %v10963_v36, %v16274_v22  ;;  %v17553_v36 = vld [vmem:[#allocation31_spill] sm:$0xff]  ;;  %v12362_v44 = vrot.slane %v17562_v5, %v16274_v22 }
 0x385   :  { %v16986_v26 = vpop.xlane.xlu0 %10977 }
 0x386   :  { %v12156_v48 = vsel %vm11669_vm1, %v12155_v37, %v12151_v16  ;;  %v12335_v16 = vrot.slane %v17552_v21, %v16274_v22  ;;  %v12322_v37 = vrot.slane %v17553_v36, %v16269_v55 }
 0x387   :  { %v16990_v19 = vpop.xlane.xlu1 %10980  ;;  %v12868_v14 = vsel %vm12824_vm7, %v12156_v48, %v12867_v61  ;;  %v17067_v48 = vsel %vm11669_vm1, %v12281_v3, %v12277_v45  ;;  %v17554_v61 = vld [vmem:[#allocation32_spill] sm:$0xff]  ;;  %v17565_v45 = vld [vmem:[#allocation62_spill] sm:$0xff]  ;;  %v17566_v3 = vld [vmem:[#allocation63_spill] sm:$0xff] }
 0x388   :  { %v12869_v15 = vsel %vm12826_vm8, %v12165_v49, %v12868_v14  ;;  %v12313_v49 = vrot.slane %v17554_v61, %v16269_v55  ;;  %v17555_v14 = vld [vmem:[#allocation35_spill] sm:$0xff]  ;;  %v12327_v1 = vsel %vm11669_vm1, %v12326_v51, %v12322_v37  ;;  %v12385_v62 = vrot.slane %v17565_v45, %v16269_v55 }
 0x389   :  { %12955 = vxpose.xlu0.b32.cont [7/16] (narrow) %v12869_v15, 16  ;;  %v16995_v46 = vpop.xlane.xlu0 %11361  ;;  %v12331_v15 = vrot.slane %v17555_v14, %v16269_v55  ;;  %v12389_v63 = vrot.slane %v17566_v3, %v16274_v22  ;;  %v17112_v37 = vsel %vm11669_vm1, %v12344_v17, %v12340_v9  ;;  %v12182_v61 = vrot.slane %v16990_v19, %v16274_v22  ;;  %v17571_v19 = vld [vmem:[#allocation71_spill] sm:$0xff] }
 0x38a   :  { %v12318_v53 = vsel %vm11669_vm1, %v12317_v27, %v12313_v49  ;;  %v12299_v27 = vrot.slane %v17567_v34, %v16274_v22  ;;  %v17124_v14 = vsel %vm11669_vm1, %v12362_v44, %v12358_v58  ;;  %v12407_v47 = vrot.slane %v17571_v19, %v16274_v22  ;;  %v17579_v19 = vld [vmem:[#allocation55_spill] sm:$0xff] }
 0x38b   :  { %v16997_v42 = vpop.xlane.xlu1 %11364  ;;  %v12336_v43 = vsel %vm11669_vm1, %v12335_v16, %v12331_v15  ;;  %v12884_v21 = vsel %vm12814_vm2, %v12327_v1, %v12318_v53  ;;  %v17569_v1 = vld [vmem:[#allocation59_spill] sm:$0xff]  ;;  %v12390_v7 = vsel %vm11669_vm1, %v12389_v63, %v12385_v62  ;;  %v12412_v58 = vrot.slane %v17572_v13, %v16269_v55  ;;  %v17574_v63 = vld [vmem:[#allocation50_spill] sm:$0xff] }
 0x38c   :  { %v12398_v53 = vrot.slane %v17569_v1, %v16274_v22  ;;  %v17578_v1 = vld [vmem:[#allocation54_spill] sm:$0xff]  ;;  %v12371_v13 = vrot.slane %v17579_v19, %v16274_v22 }
 0x38d   :  { %v16999_v10 = vpop.xlane.xlu0 %10971 }
 0x38e   :  { %v12169_v18 = vrot.slane %v16999_v10, %v16269_v55  ;;  %v17115_v10 = vsel %vm12816_vm3, %v12336_v43, %v12884_v21 }
 0x38f   :  { %v17001_v2 = vpop.xlane.xlu1 %10974  ;;  %v12886_v34 = vsel %vm12818_vm4, %v17112_v37, %v17115_v10 }
 0x390   :  { %v12173_v51 = vrot.slane %v17001_v2, %v16274_v22  ;;  %v12178_v2 = vrot.slane %v16986_v26, %v16269_v55  ;;  %v17570_v26 = vld [vmem:[#allocation70_spill] sm:$0xff] }
 0x391   :  { %v17003_v56 = vpop.xlane.xlu0 %11355  ;;  %v12403_v9 = vrot.slane %v17570_v26, %v16269_v55  ;;  %v12367_v26 = vrot.slane %v17578_v1, %v16269_v55 }
 0x392   :  { %v12174_v17 = vsel %vm11669_vm1, %v12173_v51, %v12169_v18  ;;  %v12376_v18 = vrot.slane %v17574_v63, %v16269_v55  ;;  %v17575_v51 = vld [vmem:[#allocation51_spill] sm:$0xff]  ;;  %v17598_v63 = vld [vmem:[#allocation114_spill] sm:$0xff] }
 0x393   :  { %v17005_v25 = vpop.xlane.xlu1 %11358  ;;  %v12372_v10 = vsel %vm11669_vm1, %v12371_v13, %v12367_v26 }
 0x395   :  { %v17007_v28 = vpop.xlane.xlu0 %10989 }
 0x396   :  { %v12196_v45 = vrot.slane %v17007_v28, %v16269_v55  ;;  %v17577_v28 = vld [vmem:[#allocation79_spill] sm:$0xff] }
 0x397   :  { %v17009_v24 = vpop.xlane.xlu1 %10992 }
 0x398   :  { %v12200_v62 = vrot.slane %v17009_v24, %v16274_v22 }
 0x399   :  { %v17011_v38 = vpop.xlane.xlu0 %10983 }
 0x39a   :  { %v12187_v16 = vrot.slane %v17011_v38, %v16269_v55  ;;  %v17127_v38 = vsel %vm11669_vm1, %v12353_v54, %v12349_v31  ;;  %v17573_v31 = vld [vmem:[#allocation67_spill] sm:$0xff]  ;;  %v12183_v54 = vsel %vm11669_vm1, %v12182_v61, %v12178_v2  ;;  %v12425_v61 = vrot.slane %v17577_v28, %v16274_v22 }
 0x39b   :  { %v17019_v40 = vpop.xlane.xlu1 %10986  ;;  %v12416_v23 = vrot.slane %v17573_v31, %v16274_v22  ;;  %v12870_v21 = vsel %vm12814_vm2, %v12183_v54, %v12174_v17 }
 0x39c   :  { %v12191_v36 = vrot.slane %v17019_v40, %v16274_v22  ;;  %v17568_v40 = vld [vmem:[#allocation58_spill] sm:$0xff] }
 0x39d   :  { %v17027_v12 = vpop.xlane.xlu0 %11367  ;;  %v12394_v15 = vrot.slane %v17568_v40, %v16269_v55 }
 0x39e   :  { %v12192_v5 = vsel %vm11669_vm1, %v12191_v36, %v12187_v16  ;;  %v12408_v16 = vsel %vm11669_vm1, %v12407_v47, %v12403_v9  ;;  %v17576_v36 = vld [vmem:[#allocation78_spill] sm:$0xff]  ;;  %v12417_v9 = vsel %vm11669_vm1, %v12416_v23, %v12412_v58  ;;  %v12201_v47 = vsel %vm11669_vm1, %v12200_v62, %v12196_v45 }
 0x39f   :  { %v17043_v52 = vpop.xlane.xlu1 %11370  ;;  %v12421_v2 = vrot.slane %v17576_v36, %v16269_v55  ;;  %v12871_v24 = vsel %vm12816_vm3, %v12192_v5, %v12870_v21  ;;  %v17580_v21 = vld [vmem:[#allocation74_spill] sm:$0xff] }
 0x3a0   :  { %v12430_v36 = vrot.slane %v17580_v21, %v16269_v55  ;;  %v12872_v58 = vsel %vm12818_vm4, %v12201_v47, %v12871_v24  ;;  %v17582_v23 = vld [vmem:[#allocation94_spill] sm:$0xff]  ;;  %v12879_v24 = vsel %vm12818_vm4, %v17056_v39, %v17059_v6  ;;  %v12300_v6 = vsel %vm11669_vm1, %v12299_v27, %v12295_v33  ;;  %v17589_v27 = vld [vmem:[#allocation87_spill] sm:$0xff] }
 0x3a1   :  { %v17053_v29 = vpop.xlane.xlu0 %11001 }
 0x3a2   :  { %v12214_v17 = vrot.slane %v17053_v29, %v16269_v55  ;;  %v12457_v29 = vrot.slane %v17582_v23, %v16269_v55  ;;  %v17588_v23 = vld [vmem:[#allocation86_spill] sm:$0xff] }
 0x3a3   :  { %v17073_v8 = vpop.xlane.xlu1 %11004 }
 0x3a4   :  { %v12218_v5 = vrot.slane %v17073_v8, %v16274_v22 }
 0x3a5   :  { %v10996_v32 = vpop.xlane.xlu0 %10995 }
 0x3a6   :  { %v12205_v44 = vrot.slane %v10996_v32, %v16269_v55  ;;  %v12380_v32 = vrot.slane %v17575_v51, %v16274_v22  ;;  %v12219_v19 = vsel %vm11669_vm1, %v12218_v5, %v12214_v17  ;;  %v17599_v51 = vld [vmem:[#allocation115_spill] sm:$0xff] }
 0x3a7   :  { %v10999_v60 = vpop.xlane.xlu1 %10998 }
 0x3a8   :  { %v12209_v20 = vrot.slane %v10999_v60, %v16274_v22  ;;  %v12399_v60 = vsel %vm11669_vm1, %v12398_v53, %v12394_v15 }
 0x3a9   :  { %v17121_v49 = vpop.xlane.xlu0 %11013  ;;  %v12891_v15 = vsel %vm12814_vm2, %v12399_v60, %v12390_v7  ;;  %v17581_v7 = vld [vmem:[#allocation75_spill] sm:$0xff] }
 0x3aa   :  { %v12210_v53 = vsel %vm11669_vm1, %v12209_v20, %v12205_v44  ;;  %v12892_v54 = vsel %vm12816_vm3, %v12408_v16, %v12891_v15  ;;  %v12434_v44 = vrot.slane %v17581_v7, %v16274_v22  ;;  %v12426_v20 = vsel %vm11669_vm1, %v12425_v61, %v12421_v2  ;;  %v17583_v60 = vld [vmem:[#allocation95_spill] sm:$0xff]  ;;  %v17584_v2 = vld [vmem:[#allocation102_spill] sm:$0xff] }
 0x3ab   :  { %v17139_v43 = vpop.xlane.xlu1 %11376  ;;  %v12873_v45 = vsel %vm12820_vm5, %v12210_v53, %v12872_v58  ;;  %v12461_v16 = vrot.slane %v17583_v60, %v16274_v22  ;;  %v12475_v61 = vrot.slane %v17584_v2, %v16269_v55  ;;  %v12880_v53 = vsel %vm12820_vm5, %v17067_v48, %v12879_v24  ;;  %v17587_v48 = vld [vmem:[#allocation91_spill] sm:$0xff]  ;;  %v17590_v2 = vld [vmem:[#allocation110_spill] sm:$0xff] }
 0x3ac   :  { %v12874_v39 = vsel %vm12822_vm6, %v12219_v19, %v12873_v45  ;;  %v12470_v5 = vrot.slane %v17587_v48, %v16274_v22  ;;  %v12439_v45 = vrot.slane %v17588_v23, %v16269_v55  ;;  %v12881_v33 = vsel %vm12822_vm6, %v17064_v59, %v12880_v53  ;;  %v17591_v19 = vld [vmem:[#allocation111_spill] sm:$0xff] }
 0x3ad   :  { %v11008_v3 = vpop.xlane.xlu0 %11007  ;;  %v12443_v60 = vrot.slane %v17589_v27, %v16274_v22  ;;  %v12493_v59 = vrot.slane %v17590_v2, %v16269_v55  ;;  %v17600_v2 = vld [vmem:[#allocation118_spill] sm:$0xff] }
 0x3ae   :  { %v12223_v28 = vrot.slane %v11008_v3, %v16269_v55  ;;  %v17585_v3 = vld [vmem:[#allocation103_spill] sm:$0xff] }
 0x3af   :  { %v11017_v40 = vpop.xlane.xlu1 %11016  ;;  %v12479_v47 = vrot.slane %v17585_v3, %v16274_v22  ;;  %v17593_v3 = vld [vmem:[#allocation99_spill] sm:$0xff] }
 0x3b0   :  { %v12236_v8 = vrot.slane %v11017_v40, %v16274_v22  ;;  %v12232_v40 = vrot.slane %v17121_v49, %v16269_v55  ;;  %v17586_v49 = vld [vmem:[#allocation90_spill] sm:$0xff] }
 0x3b1   :  { %v17177_v31 = vpop.xlane.xlu0 %11373  ;;  %v12466_v17 = vrot.slane %v17586_v49, %v16269_v55  ;;  %v12480_v24 = vsel %vm11669_vm1, %v12479_v47, %v12475_v61  ;;  %v12309_v61 = vsel %vm11669_vm1, %v12308_v0, %v12304_v50  ;;  %v17594_v50 = vld [vmem:[#allocation82_spill] sm:$0xff]  ;;  %v17595_v49 = vld [vmem:[#allocation83_spill] sm:$0xff] }
 0x3b2   :  { %v12237_v7 = vsel %vm11669_vm1, %v12236_v8, %v12232_v40  ;;  %v12462_v8 = vsel %vm11669_vm1, %v12461_v16, %v12457_v29  ;;  %v12497_v40 = vrot.slane %v17591_v19, %v16274_v22  ;;  %v17592_v16 = vld [vmem:[#allocation98_spill] sm:$0xff]  ;;  %v12448_v0 = vrot.slane %v17594_v50, %v16269_v55 }
 0x3b3   :  { %v11011_v62 = vpop.xlane.xlu1 %11010  ;;  %v12471_v29 = vsel %vm11669_vm1, %v12470_v5, %v12466_v17  ;;  %v12484_v53 = vrot.slane %v17592_v16, %v16269_v55  ;;  %v12452_v17 = vrot.slane %v17595_v49, %v16274_v22  ;;  %v12754_v16 = vrot.slane %v16995_v46, %v16269_v55 }
 0x3b4   :  { %v12227_v1 = vrot.slane %v11011_v62, %v16274_v22  ;;  %v12898_v47 = vsel %vm12814_vm2, %v12471_v29, %v12462_v8  ;;  %v12498_v48 = vsel %vm11669_vm1, %v12497_v40, %v12493_v59  ;;  %v12520_v8 = vrot.slane %v17598_v63, %v16269_v55 }
 0x3b5   :  { %v17202_v15 = vpop.xlane.xlu0 %11343  ;;  %v12758_v46 = vrot.slane %v16997_v42, %v16274_v22  ;;  %v12776_v42 = vrot.slane %v17139_v43, %v16274_v22 }
 0x3b6   :  { %v12228_v21 = vsel %vm11669_vm1, %v12227_v1, %v12223_v28  ;;  %v12882_v28 = vsel %vm12824_vm7, %v12300_v6, %v12881_v33  ;;  %v12887_v1 = vsel %vm12820_vm5, %v17127_v38, %v12886_v34  ;;  %v12488_v38 = vrot.slane %v17593_v3, %v16274_v22 }
 0x3b7   :  { %v12875_v58 = vsel %vm12824_vm7, %v12228_v21, %v12874_v39  ;;  %v17225_v62 = vpop.xlane.xlu1 %11346  ;;  %v12883_v26 = vsel %vm12826_vm8, %v12309_v61, %v12882_v28  ;;  %v12888_v13 = vsel %vm12822_vm6, %v17124_v14, %v12887_v1  ;;  %v12893_v21 = vsel %vm12818_vm4, %v12417_v9, %v12892_v54 }
 0x3b8   :  { %v12876_v4 = vsel %vm12826_vm8, %v12237_v7, %v12875_v58  ;;  %v12435_v39 = vsel %vm11669_vm1, %v12434_v44, %v12430_v36  ;;  %v12899_v6 = vsel %vm12816_vm3, %v12480_v24, %v12898_v47  ;;  %v12889_v30 = vsel %vm12824_vm7, %v12372_v10, %v12888_v13  ;;  %v17596_v36 = vld [vmem:[#allocation106_spill] sm:$0xff]  ;;  %v17597_v7 = vld [vmem:[#allocation107_spill] sm:$0xff] }
 0x3b9   :  { %12956 = vxpose.xlu0.b32.cont [8/16] (narrow) %v12876_v4, 16  ;;  %v17244_v37 = vpop.xlane.xlu0 %11379  ;;  %v12894_v41 = vsel %vm12820_vm5, %v12426_v20, %v12893_v21  ;;  %v12444_v9 = vsel %vm11669_vm1, %v12443_v60, %v12439_v45  ;;  %v12489_v54 = vsel %vm11669_vm1, %v12488_v38, %v12484_v53  ;;  %v12502_v44 = vrot.slane %v17596_v36, %v16269_v55 }
 0x3ba   :  { %v12506_v20 = vrot.slane %v17597_v7, %v16274_v22  ;;  %v12381_v58 = vsel %vm11669_vm1, %v12380_v32, %v12376_v18  ;;  %v12895_v45 = vsel %vm12822_vm6, %v12435_v39, %v12894_v41  ;;  %v12900_v4 = vsel %vm12818_vm4, %v12489_v54, %v12899_v6 }
 0x3bb   :  { %v12890_v23 = vsel %vm12826_vm8, %v12381_v58, %v12889_v30  ;;  %v12896_v33 = vsel %vm12824_vm7, %v12444_v9, %v12895_v45  ;;  %v12901_v34 = vsel %vm12820_vm5, %v12498_v48, %v12900_v4  ;;  %v12524_v18 = vrot.slane %v17599_v51, %v16274_v22 }
 0x3bc   :  { %v12507_v60 = vsel %vm11669_vm1, %v12506_v20, %v12502_v44  ;;  %v12453_v28 = vsel %vm11669_vm1, %v12452_v17, %v12448_v0  ;;  %v12745_v53 = vrot.slane %v17003_v56, %v16269_v55  ;;  %v12749_v3 = vrot.slane %v17005_v25, %v16274_v22 }
 0x3bd   :  { %12957 = vxpose.xlu0.b32.cont [9/16] (narrow) %v12883_v26, 16  ;;  %v11383_v14 = vpop.xlane.xlu1 %11382  ;;  %v11350_v5 = vpop.xlane.xlu0 %11349  ;;  %v12897_v1 = vsel %vm12826_vm8, %v12453_v28, %v12896_v33  ;;  %v12902_v24 = vsel %vm12822_vm6, %v12507_v60, %v12901_v34  ;;  %v12525_v40 = vsel %vm11669_vm1, %v12524_v18, %v12520_v8  ;;  %v12763_v38 = vrot.slane %v17027_v12, %v16269_v55  ;;  %v12987_v33 = vld [vmem:[%s17379_s5 + $0x2] sm:$0x1]  ;;  %v12988_v34 = vld [vmem:[%s17379_s5 + $0x3] sm:$0x1] }
 0x3be   :  { %v12903_v59 = vsel %vm12824_vm7, %v17600_v2, %v12902_v24  ;;  %v12767_v61 = vrot.slane %v17043_v52, %v16274_v22  ;;  %v12727_v47 = vrot.slane %v17202_v15, %v16269_v55  ;;  %v12731_v26 = vrot.slane %v17225_v62, %v16274_v22 }
 0x3bf   :  { %v12904_v10 = vsel %vm12826_vm8, %v12525_v40, %v12903_v59  ;;  %v12772_v56 = vrot.slane %v17177_v31, %v16269_v55  ;;  %v12736_v25 = vrot.slane %v11350_v5, %v16269_v55  ;;  %v12781_v52 = vrot.slane %v17244_v37, %v16269_v55 }
 0x3c0   :  { %v12785_v15 = vrot.slane %v11383_v14, %v16274_v22  ;;  %v12750_v62 = vsel %vm11669_vm1, %v12749_v3, %v12745_v53  ;;  %v12768_v6 = vsel %vm11669_vm1, %v12767_v61, %v12763_v38  ;;  %v12732_v30 = vsel %vm11669_vm1, %v12731_v26, %v12727_v47 }
 0x3c1   :  { %12958 = vxpose.xlu0.b32.cont [10/16] (narrow) %v12890_v23, 16  ;;  %v11353_v27 = vpop.xlane.xlu1 %11352  ;;  %v11386_v32 = vpop.xlane.xlu0 %11385  ;;  %v12759_v41 = vsel %vm11669_vm1, %v12758_v46, %v12754_v16  ;;  %v12777_v50 = vsel %vm11669_vm1, %v12776_v42, %v12772_v56  ;;  %v12924_v54 = vsel %vm12824_vm7, %v12732_v30, %v16970_v35  ;;  %v12985_v35 = vld [vmem:[%s17379_s5] sm:$0x1]  ;;  %v12986_v23 = vld [vmem:[%s17379_s5 + $0x1] sm:$0x1]  ;;  %v12991_v8 = vunpack.c.0.s8 %v12987_v33 }
 0x3c2   :  { %v12740_v13 = vrot.slane %v11353_v27, %v16274_v22  ;;  %v12790_v31 = vrot.slane %v11386_v32, %v16269_v55  ;;  %v12926_v17 = vsel %vm12814_vm2, %v12759_v41, %v12750_v62  ;;  %v12786_v48 = vsel %vm11669_vm1, %v12785_v15, %v12781_v52 }
 0x3c3   :  { %v12927_v5 = vsel %vm12816_vm3, %v12768_v6, %v12926_v17  ;;  %v12989_v45 = vunpack.c.0.s8 %v12985_v35  ;;  %v12990_v4 = vunpack.c.0.s8 %v12986_v23  ;;  %v12982_v27 = vstv %s17378_s4 }
 0x3c4   :  { %v12741_v43 = vsel %vm11669_vm1, %v12740_v13, %v12736_v25  ;;  %v12992_v51 = vunpack.c.0.s8 %v12988_v34  ;;  %v12995_v28 = vcvt.s32.f32 %v12991_v8 }
 0x3c5   :  { %12959 = vxpose.xlu0.b32.cont [11/16] (narrow) %v12897_v1, 16  ;;  %v11389_v19 = vpop.xlane.xlu1 %11388  ;;  %v12993_v60 = vcvt.s32.f32 %v12989_v45  ;;  %v12994_v63 = vcvt.s32.f32 %v12990_v4 }
 0x3c6   :  { %v11392_v29 = vpop.xlane.xlu0 %11391  ;;  %v12794_v39 = vrot.slane %v11389_v19, %v16274_v22  ;;  %v12996_v1 = vcvt.s32.f32 %v12992_v51  ;;  %vm12999_vm11 = vcmp.ne.f32.partialorder %v12995_v28, 0.0 }
 0x3c7   :  { %vm12997_vm9 = vcmp.ne.f32.partialorder %v12993_v60, 0.0  ;;  %vm12998_vm10 = vcmp.ne.f32.partialorder %v12994_v63, 0.0 }
 0x3c8   :  { %v12795_v9 = vsel %vm11669_vm1, %v12794_v39, %v12790_v31  ;;  %vm13000_vm12 = vcmp.ne.f32.partialorder %v12996_v1, 0.0 }
 0x3c9   :  { %12960 = vxpose.xlu0.b32.cont [12/16] (narrow) %v12904_v10, 16 }
 0x3ca   :  { %v11398_v21 = vpop.xlane.xlu0 %11397 }
 0x3cb   :  { %v11395_v12 = vpop.xlane.xlu1 %11394  ;;  %v12808_v0 = vrot.slane %v11398_v21, %v16269_v55 }
 0x3cc   :  { %v12803_v37 = vrot.slane %v11395_v12, %v16274_v22 }
 0x3cd   :  { %12961 = vxpose.xlu0.b32.cont [13/16] (narrow) %v16697_v11, 16  ;;  %v12799_v11 = vrot.slane %v11392_v29, %v16269_v55  ;;  %v12928_v55 = vsel %vm12818_vm4, %v12777_v50, %v12927_v5 }
 0x3ce   :  { %v12929_v44 = vsel %vm12820_vm5, %v12786_v48, %v12928_v55 }
 0x3cf   :  { %v11401_v49 = vpop.xlane.xlu1 %11400  ;;  %v12804_v36 = vsel %vm11669_vm1, %v12803_v37, %v12799_v11 }
 0x3d0   :  { %v12812_v14 = vrot.slane %v11401_v49, %v16274_v22  ;;  %v12930_v22 = vsel %vm12822_vm6, %v12795_v9, %v12929_v44 }
 0x3d1   :  { %12962 = vxpose.xlu0.b32.cont [14/16] (narrow) %v16708_v57, 16  ;;  %v12925_v57 = vsel %vm12826_vm8, %v12741_v43, %v12924_v54  ;;  %v12931_v20 = vsel %vm12824_vm7, %v12804_v36, %v12930_v22 }
 0x3d2   :  { %v12813_v7 = vsel %vm11669_vm1, %v12812_v14, %v12808_v0 }
 0x3d3   :  { %v12932_v58 = vsel %vm12826_vm8, %v12813_v7, %v12931_v20 }
 0x3d5   :  { %12963 = vxpose.xlu0.b32.cont [15/16] (narrow) %v12925_v57, 16 }
 0x3d9   :  { %12964 = vxpose.xlu0.b32.end [16/16] (narrow) %v12932_v58, 16 }
 0x419   :  { %v12965_v18 = vpop.trf.xlu0 }
 0x41a   :  { %v12983_v32 = vadd.f32 %v12982_v27, %v12965_v18 }
 0x41c   :  { %v13003_v24 = vcombine.high %v12983_v32, %v12983_v32  ;;  %v13007_v59 = vsel %vm12997_vm9, -1e+12, %v12983_v32 }
 0x41d   :  { %v12966_v2 = vpop.trf.xlu0 }
 0x41e   :  { %v13008_v19 = vsel %vm12998_vm10, -1e+12, %v13003_v24  ;;  %v12984_v40 = vadd.f32 %v12982_v27, %v12966_v2 }
 0x41f   :  { %v13016_v10 = vcombine.low %v13007_v59, %v13008_v19 }
 0x420   :  { %v13004_v29 = vcombine.high %v12984_v40, %v12984_v40  ;;  %v13009_v16 = vsel %vm12999_vm11, -1e+12, %v12984_v40 }
 0x421   :  { %13031 = vmax.xlane.f32.xlu1 %v13016_v10 }
 0x422   :  { %v13010_v53 = vsel %vm13000_vm12, -1e+12, %v13004_v29 }
 0x423   :  { %v13017_v3 = vcombine.low %v13009_v16, %v13010_v53 }
 0x425   :  { %13033 = vmax.xlane.f32.xlu1 %v13017_v3 }
 0x4aa   :  { %v13032_v38 = vpop.xlane.xlu1 %13031 }
 0x4ab   :  { %v13035_v61 = vsub.f32 %v13016_v10, %v13032_v38 }
 0x4ad   :  { %v13037_v47 = vmul.f32 1.442695, %v13035_v61 }
 0x4ae   :  { %v13034_v26 = vpop.xlane.xlu1 %13033 }
 0x4af   :  { %14124 = vpow2.f32 %v13037_v47  ;;  %v13036_v46 = vsub.f32 %v13017_v3, %v13034_v26 }
 0x4b1   :  { %v13039_v56 = vmul.f32 1.442695, %v13036_v46 }
 0x4b3   :  { %14126 = vpow2.f32 %v13039_v56 }
 0x4bc   :  { %v14125_v25 = vpop.eup %14124 }
 0x4bd   :  { %13041 = vadd.xlane.f32.xlu1 %v14125_v25 }
 0x4c0   :  { %v14127_v13 = vpop.eup %14126 }
 0x4c1   :  { %13043 = vadd.xlane.f32.xlu1 %v14127_v13 }
 0x546   :  { %v13042_v12 = vpop.xlane.xlu1 %13041 }
 0x547   :  { %14128 = vrcp.f32 %v13042_v12 }
 0x54a   :  { %v13044_v52 = vpop.xlane.xlu1 %13043 }
 0x54b   :  { %14130 = vrcp.f32 %v13044_v52 }
 0x554   :  { %v14129_v15 = vpop.eup %14128 }
 0x555   :  { %v13047_v21 = vmul.f32 %v14129_v15, %v14125_v25 }
 0x557   :  { %13049 = vst [vmem:[#allocation8] sm:$0xff] %v13047_v21 }
 0x558   :  { %v14131_v62 = vpop.eup %14130 }
 0x559   :  { %v13048_v42 = vmul.f32 %v14131_v62, %v14127_v13 }
 0x55b   :  { %13050 = vst [vmem:[#allocation8 + $0x8] sm:$0xff] %v13048_v42 }
 0x55c   :  { %13055 = vsyncadd [#allocation5], 224  ;;  %s14206_s4 = smov [#allocation8]  }
 0x55d   :  { %s13056_s5 = sshll.u32 %s14206_s4, 4  ;;  %s13057_s5 = int_to_ptr.vmem [resolvable:$true] %s13056_s5 }
 0x55e   :  { %s14170_s14 = scalar_lea.vmem %s13057_s5, 32  ;;  %s14174_s15 = scalar_lea.vmem %s13057_s5, 256 }
 0x55f   :  { %p14171_p5 = scmp.ne.s32.totalorder %s13057_s5, %s14170_s14  ;;  %p14175_p6 = scmp.lt.s32.totalorder %s13057_s5, %s13057_s5 }
 0x560   :  { %p14176_p7 = scmp.lt.s32.totalorder %s14174_s15, %s14170_s14 }
 0x562   :  { %p14177_p8 = por %p14176_p7, %p14175_p6 }
 0x564   :  { %p14178_p9 = pnand %p14177_p8, %p14171_p5 }
 0x566   :  { %14181 = shalt.err (!%p14178_p9)
}
 0x567   :  { %s14207_s1 = smov 32   ;;  %s14208_s2 = smov 2  }
 0x568   :  { %13062 = dma.vmem_to_hbm [thread:$0]  %s13057_s5, 32, %s17380_s6, [#allocation5], %s14207_s1, %s14207_s1, %s14208_s2  }
 0x569   :  { %14194 = dma.done.wait [#allocation5], 256  }
 0x56a   :  { %14195 = vsyncadd [#allocation5], 4294967040 }
 0x56b   :  { %13066 = vsyncpa [#allocation4], 1 }
 0x56c   :  { %13067 = vsyncpa [#allocation7], 1 }
 0x56d   :  { %13068 = vsyncpa [#allocation5], 1 }

</bundles_post_ra>
